<compile_context>
chip_gen: v6e
topology: v6e:2x2x1
jax: 0.10.0
libtpu: 0.0.40
codegen_flags: <defaults>
</compile_context>

<pallas_src>
import jax
import jax.numpy as jnp
from jax.experimental import pallas as pl
from jax.experimental.pallas import tpu as pltpu

EPS = 1e-5
_TAPS = tuple((di, dj) for di in range(3) for dj in range(3))   # tap k = di*3 + dj


# ------------------------------ compiler params ------------------------------

def _vmem_limit_bytes():
    """Per-generation VMEM budget: ~3/4 of physical, capped; safe fallback."""
    cap = None
    try:
        cap = getattr(pltpu.get_tpu_info(), "vmem_capacity_bytes", None)
    except Exception:
        cap = None
    if not cap:
        return 48 * 1024 * 1024          # safe on v5e/v6e (128 MiB) and v7x (64 MiB)
    return int(min(cap * 3 // 4, 100 * 1024 * 1024))


def _compiler_params():
    return pltpu.CompilerParams(
        dimension_semantics=("parallel",),   # batch axis -> megacore / 2 TCs
        vmem_limit_bytes=_vmem_limit_bytes())


# --------------------------------- kernels -----------------------------------

def _write_partial_stats(y, st_ref, m):
    """BN partials (f32, computed before the bf16 cast of the activation)."""
    s = jnp.sum(y, axis=0, keepdims=True)                       # (1, C)
    centered = y - s / m
    st_ref[0, 0:1, :] = s
    st_ref[0, 1:2, :] = jnp.sum(centered * centered, axis=0, keepdims=True)


def conv1_stats_kernel(x_ref, w_ref, y_ref, st_ref, xp_scr, patch_scr):
    """conv3x3 of one (unpadded) image + BN1 partial statistics.

    x_ref : (1, H, W, Cin) bf16 ; w_ref : (9*Cin, Cout) bf16
    y_ref : (1, H*W, Cout) bf16 ; st_ref: (1, 2, Cout) f32
    xp_scr: (H+2, W+2, Cin) bf16 VMEM ; patch_scr: (H*W, 9*Cin) bf16 VMEM
    """
    _, h, w, c_in = x_ref.shape

    # In-VMEM zero padding (padding=1); no HBM pad copy.
    xp_scr[...] = jnp.zeros_like(xp_scr)
    xp_scr[1:h + 1, 1:w + 1, :] = x_ref[0]

    # im2col patch built in scratch: ONE MXU matmul with K = 9*Cin.
    for k, (di, dj) in enumerate(_TAPS):
        patch_scr[:, k * c_in:(k + 1) * c_in] = (
            xp_scr[di:di + h, dj:dj + w, :].reshape(h * w, c_in))

    y = jnp.dot(patch_scr[...], w_ref[...], preferred_element_type=jnp.float32)
    _write_partial_stats(y, st_ref, h * w)
    y_ref[0] = y.astype(jnp.bfloat16)


def bn_relu_conv2_stats_kernel(y1_ref, sc_ref, sh_ref, w_ref, y2_ref, st_ref,
                               hp_scr, patch_scr):
    """Fused bn1 -> relu -> conv2 (+ BN2 partials); h1 never leaves VMEM.

    y1_ref: (1, H*W, C) bf16 raw conv1 output ; sc_ref/sh_ref: (1, C) f32
    w_ref : (9*C, Cout) bf16
    y2_ref: (1, H*W, Cout) bf16 ; st_ref: (1, 2, Cout) f32
    hp_scr: (H+2, W+2, C) bf16 VMEM ; patch_scr: (H*W, 9*C) bf16 VMEM
    """
    _, _, c = y1_ref.shape
    h = hp_scr.shape[0] - 2
    w = hp_scr.shape[1] - 2

    # bn1 + relu in f32 on the VPU, then cast to bf16 for the MXU.
    h1 = jnp.maximum(y1_ref[0].astype(jnp.float32) * sc_ref[...] + sh_ref[...], 0.0)

    # Zero padding built in scratch (no concatenate copies).
    hp_scr[...] = jnp.zeros_like(hp_scr)
    hp_scr[1:h + 1, 1:w + 1, :] = h1.astype(jnp.bfloat16).reshape(h, w, c)

    for k, (di, dj) in enumerate(_TAPS):
        patch_scr[:, k * c:(k + 1) * c] = (
            hp_scr[di:di + h, dj:dj + w, :].reshape(h * w, c))

    y2 = jnp.dot(patch_scr[...], w_ref[...], preferred_element_type=jnp.float32)
    _write_partial_stats(y2, st_ref, h * w)
    y2_ref[0] = y2.astype(jnp.bfloat16)


def bn_res_relu_kernel(y2_ref, sc_ref, sh_ref, id_ref, o_ref):
    """out = relu(bn2(conv2) + identity); bf16 reads, f32 math, f32 output."""
    o_ref[0] = jnp.maximum(
        y2_ref[0].astype(jnp.float32) * sc_ref[...] + sh_ref[...]
        + id_ref[0].astype(jnp.float32), 0.0)


# ---------------------------- pallas_call wrappers ----------------------------

def _conv1_call(xb_nhwc, w_mat):
    n, h, w, c_in = xb_nhwc.shape
    c_out = w_mat.shape[1]
    return pl.pallas_call(
        conv1_stats_kernel,
        grid=(n,),
        in_specs=[
            pl.BlockSpec((1, h, w, c_in), lambda i: (i, 0, 0, 0)),
            pl.BlockSpec((9 * c_in, c_out), lambda i: (0, 0)),      # fetched once
        ],
        out_specs=(
            pl.BlockSpec((1, h * w, c_out), lambda i: (i, 0, 0)),
            pl.BlockSpec((1, 2, c_out), lambda i: (i, 0, 0)),
        ),
        out_shape=(
            jax.ShapeDtypeStruct((n, h * w, c_out), jnp.bfloat16),
            jax.ShapeDtypeStruct((n, 2, c_out), jnp.float32),
        ),
        scratch_shapes=[
            pltpu.VMEM((h + 2, w + 2, c_in), jnp.bfloat16),
            pltpu.VMEM((h * w, 9 * c_in), jnp.bfloat16),
        ],
        compiler_params=_compiler_params(),
    )(xb_nhwc, w_mat)


def _bn_relu_conv2_call(y1, sc, sh, w_mat, h, w):
    n, hw, c = y1.shape
    c_out = w_mat.shape[1]
    return pl.pallas_call(
        bn_relu_conv2_stats_kernel,
        grid=(n,),
        in_specs=[
            pl.BlockSpec((1, hw, c), lambda i: (i, 0, 0)),
            pl.BlockSpec((1, c), lambda i: (0, 0)),
            pl.BlockSpec((1, c), lambda i: (0, 0)),
            pl.BlockSpec((9 * c, c_out), lambda i: (0, 0)),
        ],
        out_specs=(
            pl.BlockSpec((1, hw, c_out), lambda i: (i, 0, 0)),
            pl.BlockSpec((1, 2, c_out), lambda i: (i, 0, 0)),
        ),
        out_shape=(
            jax.ShapeDtypeStruct((n, hw, c_out), jnp.bfloat16),
            jax.ShapeDtypeStruct((n, 2, c_out), jnp.float32),
        ),
        scratch_shapes=[
            pltpu.VMEM((h + 2, w + 2, c), jnp.bfloat16),
            pltpu.VMEM((hw, 9 * c), jnp.bfloat16),
        ],
        compiler_params=_compiler_params(),
    )(y1, sc, sh, w_mat)


def _bn_res_relu_call(y2, sc, sh, identity_flat):
    n, hw, c_out = y2.shape
    return pl.pallas_call(
        bn_res_relu_kernel,
        grid=(n,),
        in_specs=[
            pl.BlockSpec((1, hw, c_out), lambda i: (i, 0, 0)),
            pl.BlockSpec((1, c_out), lambda i: (0, 0)),
            pl.BlockSpec((1, c_out), lambda i: (0, 0)),
            pl.BlockSpec((1, hw, c_out), lambda i: (i, 0, 0)),
        ],
        out_specs=pl.BlockSpec((1, hw, c_out), lambda i: (i, 0, 0)),
        out_shape=jax.ShapeDtypeStruct((n, hw, c_out), jnp.float32),
        compiler_params=_compiler_params(),
    )(y2, sc, sh, identity_flat)


# ---------------------------------- JAX glue ----------------------------------

def _w_to_mat(w_oihw):
    """(Cout, Cin, 3, 3) torch layout -> (9*Cin, Cout) bf16, tap k = di*3 + dj."""
    c_out, c_in = w_oihw.shape[0], w_oihw.shape[1]
    return (jnp.transpose(w_oihw, (2, 3, 1, 0))
            .reshape(9 * c_in, c_out).astype(jnp.bfloat16))


def _combine_stats(st, m_img):
    """Chan-style combine of per-image (sum, centered sumsq) -> mean, rsqrt(var+eps)."""
    n = st.shape[0]
    total = n * m_img
    sums = st[:, 0, :]                                   # (N, C)
    ssqs = st[:, 1, :]                                   # (N, C)
    gmean = jnp.sum(sums, axis=0) / total                # (C,)
    means = sums / m_img
    var = (jnp.sum(ssqs, axis=0)
           + m_img * jnp.sum((means - gmean[None, :]) ** 2, axis=0)) / total
    return gmean, jax.lax.rsqrt(var + EPS)


def _fold_bn(gamma, beta, mean, inv_std, c):
    scale = (gamma * inv_std).astype(jnp.float32)
    shift = (beta - mean * gamma * inv_std).astype(jnp.float32)
    return scale.reshape(1, c), shift.reshape(1, c)


def basic_block_forward(x_nchw, params):
    """ResNet BasicBlock forward (stride=1, downsample=None, inplanes == planes)."""
    w1, g1, b1, w2, g2, b2 = params
    n, c, h, w = x_nchw.shape
    c_out = w1.shape[0]

    # Single transpose+cast; no wrapper-side padding (padding is done in VMEM).
    xb = jnp.transpose(x_nchw, (0, 2, 3, 1)).astype(jnp.bfloat16)   # (N,H,W,C) bf16

    # ---- conv1 (+ BN1 partial statistics) ----------------------------------
    y1, st1 = _conv1_call(xb, _w_to_mat(w1))
    mean1, inv1 = _combine_stats(st1, h * w)
    sc1, sh1 = _fold_bn(g1, b1, mean1, inv1, c_out)

    # ---- fused bn1 -> relu -> conv2 (+ BN2 partials); h1 stays in VMEM ------
    y2, st2 = _bn_relu_conv2_call(y1, sc1, sh1, _w_to_mat(w2), h, w)
    mean2, inv2 = _combine_stats(st2, h * w)
    sc2, sh2 = _fold_bn(g2, b2, mean2, inv2, c_out)

    # ---- bn2 -> +identity -> relu -------------------------------------------
    identity_flat = xb.reshape(n, h * w, c)              # bf16 residual read
    out = _bn_res_relu_call(y2, sc2, sh2, identity_flat)
    return jnp.transpose(out.reshape(n, h, w, c_out), (0, 3, 1, 2))


# --------------------------- pure-JAX reference checks -------------------------

def _conv3x3_ref(x_nchw, w_oihw, mxu_dtype):
    return jax.lax.conv_general_dilated(
        x_nchw.astype(mxu_dtype), w_oihw.astype(mxu_dtype),
        window_strides=(1, 1), padding=((1, 1), (1, 1)),
        dimension_numbers=("NCHW", "OIHW", "NCHW"),
        preferred_element_type=jnp.float32)


def _bn_fold_ref(y, gamma, beta):
    mean = jnp.mean(y, axis=(0, 2, 3))
    var = jnp.mean((y - mean.reshape(1, -1, 1, 1)) ** 2, axis=(0, 2, 3))
    sc = gamma * jax.lax.rsqrt(var + EPS)
    sh = beta - mean * sc
    return sc.reshape(1, -1, 1, 1), sh.reshape(1, -1, 1, 1)


def basic_block_ref_matched(x, params):
    """Pure-JAX reference replicating the kernel's bf16 data path exactly."""
    w1, g1, b1, w2, g2, b2 = params
    xb = x.astype(jnp.bfloat16)
    y1 = _conv3x3_ref(xb, w1, jnp.bfloat16)                      # f32 accumulate
    sc1, sh1 = _bn_fold_ref(y1, g1, b1)                          # stats on f32
    y1q = y1.astype(jnp.bfloat16).astype(jnp.float32)            # stored bf16
    h1 = jnp.maximum(y1q * sc1 + sh1, 0.0)
    y2 = _conv3x3_ref(h1, w2, jnp.bfloat16)
    sc2, sh2 = _bn_fold_ref(y2, g2, b2)
    y2q = y2.astype(jnp.bfloat16).astype(jnp.float32)
    return jnp.maximum(y2q * sc2 + sh2 + xb.astype(jnp.float32), 0.0)


def basic_block_ref_f32(x, params):
    """Full-f32 reference of BasicBlock's training-mode forward."""
    w1, g1, b1, w2, g2, b2 = params
    y1 = _conv3x3_ref(x, w1, jnp.float32)
    sc1, sh1 = _bn_fold_ref(y1, g1, b1)
    h1 = jnp.maximum(y1 * sc1 + sh1, 0.0)
    y2 = _conv3x3_ref(h1, w2, jnp.float32)
    sc2, sh2 = _bn_fold_ref(y2, g2, b2)
    return jnp.maximum(y2 * sc2 + sh2 + x, 0.0)


# ------------------------------------ main -------------------------------------

if __name__ == "__main__":
    N, C, H, W = 2, 4, 16, 16          # inplanes == planes == 4, stride == 1
    planes = C

    key = jax.random.PRNGKey(0)
    k = jax.random.split(key, 7)
    x = jax.random.normal(k[0], (N, C, H, W), dtype=jnp.float32)
    w1 = 0.1 * jax.random.normal(k[1], (planes, C, 3, 3), dtype=jnp.float32)
    w2 = 0.1 * jax.random.normal(k[2], (planes, planes, 3, 3), dtype=jnp.float32)
    g1 = 1.0 + 0.1 * jax.random.normal(k[3], (planes,), dtype=jnp.float32)
    b1 = 0.1 * jax.random.normal(k[4], (planes,), dtype=jnp.float32)
    g2 = 1.0 + 0.1 * jax.random.normal(k[5], (planes,), dtype=jnp.float32)
    b2 = 0.1 * jax.random.normal(k[6], (planes,), dtype=jnp.float32)
    params = (w1, g1, b1, w2, g2, b2)

    out = jax.block_until_ready(jax.jit(basic_block_forward)(x, params))
    assert out.shape == (N, planes, H, W), out.shape

    # Tight check vs. a reference that follows the exact same bf16 data path
    # (differences are only accumulation / stat-combination order).
    ref_m = jax.block_until_ready(basic_block_ref_matched(x, params))
    err_m = float(jnp.max(jnp.abs(out - ref_m)))
    assert err_m < 2e-2, f"bf16-matched reference mismatch: {err_m}"

    # Loose check vs. the full-f32 reference (remaining error is the intended
    # bf16 casts of MXU operands / stored intermediates, not a structural bug).
    ref_f = jax.block_until_ready(basic_block_ref_f32(x, params))
    err_f = float(jnp.max(jnp.abs(out - ref_f)))
    assert err_f < 3e-1, f"f32 reference mismatch: {err_f}"

    print("KERNEL_OK")
</pallas_src>

<mosaic_0001>
module attributes {stable_mosaic.version = 11 : i64} {
  func.func @conv1_stats_kernel(%arg0: i32, %arg1: memref<1x16x16x4xbf16, #tpu.memory_space<vmem>>, %arg2: memref<36x4xbf16, #tpu.memory_space<vmem>>, %arg3: memref<1x256x4xbf16, #tpu.memory_space<vmem>>, %arg4: memref<1x2x4xf32, #tpu.memory_space<vmem>>, %arg5: memref<18x18x4xbf16, #tpu.memory_space<vmem>>, %arg6: memref<256x36xbf16, #tpu.memory_space<vmem>>) attributes {dimension_semantics = [#tpu.dimension_semantics<parallel>], iteration_bounds = array<i64: 2>, scalar_prefetch = 0 : i64, scratch_operands = 2 : i64, tpu.core_type = #tpu.core_type<tc>, window_params = [{transform_indices = @transform_0, window_bounds = array<i64: 1, 16, 16, 4>}, {pipeline_mode = #tpu.pipeline_mode<synchronous>, transform_indices = @transform_1, window_bounds = array<i64: 36, 4>}, {transform_indices = @transform_2, window_bounds = array<i64: 1, 256, 4>}, {transform_indices = @transform_3, window_bounds = array<i64: 1, 2, 4>}]} {
    %cst = arith.constant 0.000000e+00 : bf16
    %0 = vector.broadcast %cst : bf16 to vector<18x18x4xbf16>
    %c0 = arith.constant 0 : index
    %c0_0 = arith.constant 0 : index
    %c0_1 = arith.constant 0 : index
    %1 = vector.load %arg5[%c0, %c0_0, %c0_1] : memref<18x18x4xbf16, #tpu.memory_space<vmem>>, vector<18x18x4xbf16>
    tpu.vector_store %arg5[%c0, %c0_0, %c0_1], %0 {strides = array<i32>} : memref<18x18x4xbf16, #tpu.memory_space<vmem>>, vector<18x18x4xbf16>,
    %c0_2 = arith.constant 0 : index
    %c0_3 = arith.constant 0 : index
    %c0_4 = arith.constant 0 : index
    %c0_5 = arith.constant 0 : index
    %2 = vector.load %arg1[%c0_2, %c0_3, %c0_4, %c0_5] : memref<1x16x16x4xbf16, #tpu.memory_space<vmem>>, vector<1x16x16x4xbf16>
    %3 = vector.shape_cast %2 : vector<1x16x16x4xbf16> to vector<16x16x4xbf16>
    %c1 = arith.constant 1 : index
    %c1_6 = arith.constant 1 : index
    %c0_7 = arith.constant 0 : index
    %4 = vector.load %arg5[%c1, %c1_6, %c0_7] : memref<18x18x4xbf16, #tpu.memory_space<vmem>>, vector<16x16x4xbf16>
    tpu.vector_store %arg5[%c1, %c1_6, %c0_7], %3 {strides = array<i32>} : memref<18x18x4xbf16, #tpu.memory_space<vmem>>, vector<16x16x4xbf16>,
    %c0_8 = arith.constant 0 : index
    %c0_9 = arith.constant 0 : index
    %c0_10 = arith.constant 0 : index
    %5 = vector.load %arg5[%c0_8, %c0_9, %c0_10] : memref<18x18x4xbf16, #tpu.memory_space<vmem>>, vector<16x16x4xbf16>
    %6 = vector.shape_cast %5 : vector<16x16x4xbf16> to vector<256x4xbf16>
    %c0_11 = arith.constant 0 : index
    %c0_12 = arith.constant 0 : index
    %7 = vector.load %arg6[%c0_11, %c0_12] : memref<256x36xbf16, #tpu.memory_space<vmem>>, vector<256x4xbf16>
    tpu.vector_store %arg6[%c0_11, %c0_12], %6 {strides = array<i32>} : memref<256x36xbf16, #tpu.memory_space<vmem>>, vector<256x4xbf16>,
    %c0_13 = arith.constant 0 : index
    %c1_14 = arith.constant 1 : index
    %c0_15 = arith.constant 0 : index
    %8 = vector.load %arg5[%c0_13, %c1_14, %c0_15] : memref<18x18x4xbf16, #tpu.memory_space<vmem>>, vector<16x16x4xbf16>
    %9 = vector.shape_cast %8 : vector<16x16x4xbf16> to vector<256x4xbf16>
    %c0_16 = arith.constant 0 : index
    %c4 = arith.constant 4 : index
    %10 = vector.load %arg6[%c0_16, %c4] : memref<256x36xbf16, #tpu.memory_space<vmem>>, vector<256x4xbf16>
    tpu.vector_store %arg6[%c0_16, %c4], %9 {strides = array<i32>} : memref<256x36xbf16, #tpu.memory_space<vmem>>, vector<256x4xbf16>,
    %c0_17 = arith.constant 0 : index
    %c2 = arith.constant 2 : index
    %c0_18 = arith.constant 0 : index
    %11 = vector.load %arg5[%c0_17, %c2, %c0_18] : memref<18x18x4xbf16, #tpu.memory_space<vmem>>, vector<16x16x4xbf16>
    %12 = vector.shape_cast %11 : vector<16x16x4xbf16> to vector<256x4xbf16>
    %c0_19 = arith.constant 0 : index
    %c8 = arith.constant 8 : index
    %13 = vector.load %arg6[%c0_19, %c8] : memref<256x36xbf16, #tpu.memory_space<vmem>>, vector<256x4xbf16>
    tpu.vector_store %arg6[%c0_19, %c8], %12 {strides = array<i32>} : memref<256x36xbf16, #tpu.memory_space<vmem>>, vector<256x4xbf16>,
    %c1_20 = arith.constant 1 : index
    %c0_21 = arith.constant 0 : index
    %c0_22 = arith.constant 0 : index
    %14 = vector.load %arg5[%c1_20, %c0_21, %c0_22] : memref<18x18x4xbf16, #tpu.memory_space<vmem>>, vector<16x16x4xbf16>
    %15 = vector.shape_cast %14 : vector<16x16x4xbf16> to vector<256x4xbf16>
    %c0_23 = arith.constant 0 : index
    %c12 = arith.constant 12 : index
    %16 = vector.load %arg6[%c0_23, %c12] : memref<256x36xbf16, #tpu.memory_space<vmem>>, vector<256x4xbf16>
    tpu.vector_store %arg6[%c0_23, %c12], %15 {strides = array<i32>} : memref<256x36xbf16, #tpu.memory_space<vmem>>, vector<256x4xbf16>,
    %c1_24 = arith.constant 1 : index
    %c1_25 = arith.constant 1 : index
    %c0_26 = arith.constant 0 : index
    %17 = vector.load %arg5[%c1_24, %c1_25, %c0_26] : memref<18x18x4xbf16, #tpu.memory_space<vmem>>, vector<16x16x4xbf16>
    %18 = vector.shape_cast %17 : vector<16x16x4xbf16> to vector<256x4xbf16>
    %c0_27 = arith.constant 0 : index
    %c16 = arith.constant 16 : index
    %19 = vector.load %arg6[%c0_27, %c16] : memref<256x36xbf16, #tpu.memory_space<vmem>>, vector<256x4xbf16>
    tpu.vector_store %arg6[%c0_27, %c16], %18 {strides = array<i32>} : memref<256x36xbf16, #tpu.memory_space<vmem>>, vector<256x4xbf16>,
    %c1_28 = arith.constant 1 : index
    %c2_29 = arith.constant 2 : index
    %c0_30 = arith.constant 0 : index
    %20 = vector.load %arg5[%c1_28, %c2_29, %c0_30] : memref<18x18x4xbf16, #tpu.memory_space<vmem>>, vector<16x16x4xbf16>
    %21 = vector.shape_cast %20 : vector<16x16x4xbf16> to vector<256x4xbf16>
    %c0_31 = arith.constant 0 : index
    %c20 = arith.constant 20 : index
    %22 = vector.load %arg6[%c0_31, %c20] : memref<256x36xbf16, #tpu.memory_space<vmem>>, vector<256x4xbf16>
    tpu.vector_store %arg6[%c0_31, %c20], %21 {strides = array<i32>} : memref<256x36xbf16, #tpu.memory_space<vmem>>, vector<256x4xbf16>,
    %c2_32 = arith.constant 2 : index
    %c0_33 = arith.constant 0 : index
    %c0_34 = arith.constant 0 : index
    %23 = vector.load %arg5[%c2_32, %c0_33, %c0_34] : memref<18x18x4xbf16, #tpu.memory_space<vmem>>, vector<16x16x4xbf16>
    %24 = vector.shape_cast %23 : vector<16x16x4xbf16> to vector<256x4xbf16>
    %c0_35 = arith.constant 0 : index
    %c24 = arith.constant 24 : index
    %25 = vector.load %arg6[%c0_35, %c24] : memref<256x36xbf16, #tpu.memory_space<vmem>>, vector<256x4xbf16>
    tpu.vector_store %arg6[%c0_35, %c24], %24 {strides = array<i32>} : memref<256x36xbf16, #tpu.memory_space<vmem>>, vector<256x4xbf16>,
    %c2_36 = arith.constant 2 : index
    %c1_37 = arith.constant 1 : index
    %c0_38 = arith.constant 0 : index
    %26 = vector.load %arg5[%c2_36, %c1_37, %c0_38] : memref<18x18x4xbf16, #tpu.memory_space<vmem>>, vector<16x16x4xbf16>
    %27 = vector.shape_cast %26 : vector<16x16x4xbf16> to vector<256x4xbf16>
    %c0_39 = arith.constant 0 : index
    %c28 = arith.constant 28 : index
    %28 = vector.load %arg6[%c0_39, %c28] : memref<256x36xbf16, #tpu.memory_space<vmem>>, vector<256x4xbf16>
    tpu.vector_store %arg6[%c0_39, %c28], %27 {strides = array<i32>} : memref<256x36xbf16, #tpu.memory_space<vmem>>, vector<256x4xbf16>,
    %c2_40 = arith.constant 2 : index
    %c2_41 = arith.constant 2 : index
    %c0_42 = arith.constant 0 : index
    %29 = vector.load %arg5[%c2_40, %c2_41, %c0_42] : memref<18x18x4xbf16, #tpu.memory_space<vmem>>, vector<16x16x4xbf16>
    %30 = vector.shape_cast %29 : vector<16x16x4xbf16> to vector<256x4xbf16>
    %c0_43 = arith.constant 0 : index
    %c32 = arith.constant 32 : index
    %31 = vector.load %arg6[%c0_43, %c32] : memref<256x36xbf16, #tpu.memory_space<vmem>>, vector<256x4xbf16>
    tpu.vector_store %arg6[%c0_43, %c32], %30 {strides = array<i32>} : memref<256x36xbf16, #tpu.memory_space<vmem>>, vector<256x4xbf16>,
    %c0_44 = arith.constant 0 : index
    %c0_45 = arith.constant 0 : index
    %32 = vector.load %arg6[%c0_44, %c0_45] : memref<256x36xbf16, #tpu.memory_space<vmem>>, vector<256x36xbf16>
    %c0_46 = arith.constant 0 : index
    %c0_47 = arith.constant 0 : index
    %33 = vector.load %arg2[%c0_46, %c0_47] : memref<36x4xbf16, #tpu.memory_space<vmem>>, vector<36x4xbf16>
    %cst_48 = arith.constant dense<0.000000e+00> : vector<256x4xf32>
    %34 = tpu.matmul %32, %33, %cst_48 {dimension_numbers = #tpu.dot_dimension_numbers<[1], [0], [0], [1], [0, 0, 1, 1], [], []>} : vector<256x36xbf16>, vector<36x4xbf16>, vector<256x4xf32> -> vector<256x4xf32>
    %cst_49 = arith.constant dense<0.000000e+00> : vector<4xf32>
    %35 = vector.multi_reduction <add>, %34, %cst_49 [0] : vector<256x4xf32> to vector<4xf32>
    %36 = vector.shape_cast %35 : vector<4xf32> to vector<1x4xf32>
    %cst_50 = arith.constant 2.560000e+02 : f32
    %37 = vector.broadcast %cst_50 : f32 to vector<1x4xf32>
    %38 = arith.divf %36, %37 : vector<1x4xf32>
    %39 = vector.broadcast %38 : vector<1x4xf32> to vector<256x4xf32>
    %40 = arith.subf %34, %39 : vector<256x4xf32>
    %c0_51 = arith.constant 0 : index
    %c0_52 = arith.constant 0 : index
    %c0_53 = arith.constant 0 : index
    %41 = vector.load %arg4[%c0_51, %c0_52, %c0_53] : memref<1x2x4xf32, #tpu.memory_space<vmem>>, vector<1x1x4xf32>
    %42 = vector.shape_cast %41 : vector<1x1x4xf32> to vector<1x4xf32>
    %43 = vector.shape_cast %36 : vector<1x4xf32> to vector<1x1x4xf32>
    tpu.vector_store %arg4[%c0_51, %c0_52, %c0_53], %43 {strides = array<i32>} : memref<1x2x4xf32, #tpu.memory_space<vmem>>, vector<1x1x4xf32>,
    %44 = arith.mulf %40, %40 : vector<256x4xf32>
    %cst_54 = arith.constant dense<0.000000e+00> : vector<4xf32>
    %45 = vector.multi_reduction <add>, %44, %cst_54 [0] : vector<256x4xf32> to vector<4xf32>
    %46 = vector.shape_cast %45 : vector<4xf32> to vector<1x4xf32>
    %c0_55 = arith.constant 0 : index
    %c1_56 = arith.constant 1 : index
    %c0_57 = arith.constant 0 : index
    %47 = vector.load %arg4[%c0_55, %c1_56, %c0_57] : memref<1x2x4xf32, #tpu.memory_space<vmem>>, vector<1x1x4xf32>
    %48 = vector.shape_cast %47 : vector<1x1x4xf32> to vector<1x4xf32>
    %49 = vector.shape_cast %46 : vector<1x4xf32> to vector<1x1x4xf32>
    tpu.vector_store %arg4[%c0_55, %c1_56, %c0_57], %49 {strides = array<i32>} : memref<1x2x4xf32, #tpu.memory_space<vmem>>, vector<1x1x4xf32>,
    %50 = arith.truncf %34 : vector<256x4xf32> to vector<256x4xbf16>
    %c0_58 = arith.constant 0 : index
    %c0_59 = arith.constant 0 : index
    %c0_60 = arith.constant 0 : index
    %51 = vector.load %arg3[%c0_58, %c0_59, %c0_60] : memref<1x256x4xbf16, #tpu.memory_space<vmem>>, vector<1x256x4xbf16>
    %52 = vector.shape_cast %51 : vector<1x256x4xbf16> to vector<256x4xbf16>
    %53 = vector.shape_cast %50 : vector<256x4xbf16> to vector<1x256x4xbf16>
    tpu.vector_store %arg3[%c0_58, %c0_59, %c0_60], %53 {strides = array<i32>} : memref<1x256x4xbf16, #tpu.memory_space<vmem>>, vector<1x256x4xbf16>,
    return
  }
  func.func @transform_0(%arg0: i32) -> (i32, i32, i32, i32) {
    %c0_i32 = arith.constant 0 : i32
    %c0_i32_0 = arith.constant 0 : i32
    %c0_i32_1 = arith.constant 0 : i32
    %c0_i32_2 = arith.constant 0 : i32
    return %arg0, %c0_i32, %c0_i32_0, %c0_i32_1 : i32, i32, i32, i32
  }
  func.func @transform_1(%arg0: i32) -> (i32, i32) {
    %c0_i32 = arith.constant 0 : i32
    %c0_i32_0 = arith.constant 0 : i32
    %c0_i32_1 = arith.constant 0 : i32
    return %c0_i32, %c0_i32_0 : i32, i32
  }
  func.func @transform_2(%arg0: i32) -> (i32, i32, i32) {
    %c0_i32 = arith.constant 0 : i32
    %c0_i32_0 = arith.constant 0 : i32
    %c0_i32_1 = arith.constant 0 : i32
    return %arg0, %c0_i32, %c0_i32_0 : i32, i32, i32
  }
  func.func @transform_3(%arg0: i32) -> (i32, i32, i32) {
    %c0_i32 = arith.constant 0 : i32
    %c0_i32_0 = arith.constant 0 : i32
    %c0_i32_1 = arith.constant 0 : i32
    return %arg0, %c0_i32, %c0_i32_0 : i32, i32, i32
  }
}

module attributes {stable_mosaic.version = 11 : i64} {
  func.func @bn_res_relu_kernel(%arg0: i32, %arg1: memref<1x256x4xbf16, #tpu.memory_space<vmem>>, %arg2: memref<1x4xf32, #tpu.memory_space<vmem>>, %arg3: memref<1x4xf32, #tpu.memory_space<vmem>>, %arg4: memref<1x256x4xbf16, #tpu.memory_space<vmem>>, %arg5: memref<1x256x4xf32, #tpu.memory_space<vmem>>) attributes {dimension_semantics = [#tpu.dimension_semantics<parallel>], iteration_bounds = array<i64: 2>, scalar_prefetch = 0 : i64, scratch_operands = 0 : i64, tpu.core_type = #tpu.core_type<tc>, window_params = [{transform_indices = @transform_0, window_bounds = array<i64: 1, 256, 4>}, {pipeline_mode = #tpu.pipeline_mode<synchronous>, transform_indices = @transform_1, window_bounds = array<i64: 1, 4>}, {pipeline_mode = #tpu.pipeline_mode<synchronous>, transform_indices = @transform_2, window_bounds = array<i64: 1, 4>}, {transform_indices = @transform_3, window_bounds = array<i64: 1, 256, 4>}, {transform_indices = @transform_4, window_bounds = array<i64: 1, 256, 4>}]} {
    %c0 = arith.constant 0 : index
    %c0_0 = arith.constant 0 : index
    %c0_1 = arith.constant 0 : index
    %0 = vector.load %arg1[%c0, %c0_0, %c0_1] : memref<1x256x4xbf16, #tpu.memory_space<vmem>>, vector<1x256x4xbf16>
    %1 = vector.shape_cast %0 : vector<1x256x4xbf16> to vector<256x4xbf16>
    %2 = arith.extf %1 : vector<256x4xbf16> to vector<256x4xf32>
    %c0_2 = arith.constant 0 : index
    %c0_3 = arith.constant 0 : index
    %3 = vector.load %arg2[%c0_2, %c0_3] : memref<1x4xf32, #tpu.memory_space<vmem>>, vector<1x4xf32>
    %4 = vector.broadcast %3 : vector<1x4xf32> to vector<256x4xf32>
    %5 = arith.mulf %2, %4 : vector<256x4xf32>
    %c0_4 = arith.constant 0 : index
    %c0_5 = arith.constant 0 : index
    %6 = vector.load %arg3[%c0_4, %c0_5] : memref<1x4xf32, #tpu.memory_space<vmem>>, vector<1x4xf32>
    %7 = vector.broadcast %6 : vector<1x4xf32> to vector<256x4xf32>
    %8 = arith.addf %5, %7 : vector<256x4xf32>
    %c0_6 = arith.constant 0 : index
    %c0_7 = arith.constant 0 : index
    %c0_8 = arith.constant 0 : index
    %9 = vector.load %arg4[%c0_6, %c0_7, %c0_8] : memref<1x256x4xbf16, #tpu.memory_space<vmem>>, vector<1x256x4xbf16>
    %10 = vector.shape_cast %9 : vector<1x256x4xbf16> to vector<256x4xbf16>
    %11 = arith.extf %10 : vector<256x4xbf16> to vector<256x4xf32>
    %12 = arith.addf %8, %11 : vector<256x4xf32>
    %cst = arith.constant 0.000000e+00 : f32
    %13 = vector.broadcast %cst : f32 to vector<256x4xf32>
    %14 = arith.maximumf %12, %13 : vector<256x4xf32>
    %c0_9 = arith.constant 0 : index
    %c0_10 = arith.constant 0 : index
    %c0_11 = arith.constant 0 : index
    %15 = vector.load %arg5[%c0_9, %c0_10, %c0_11] : memref<1x256x4xf32, #tpu.memory_space<vmem>>, vector<1x256x4xf32>
    %16 = vector.shape_cast %15 : vector<1x256x4xf32> to vector<256x4xf32>
    %17 = vector.shape_cast %14 : vector<256x4xf32> to vector<1x256x4xf32>
    tpu.vector_store %arg5[%c0_9, %c0_10, %c0_11], %17 {strides = array<i32>} : memref<1x256x4xf32, #tpu.memory_space<vmem>>, vector<1x256x4xf32>,
    return
  }
  func.func @transform_0(%arg0: i32) -> (i32, i32, i32) {
    %c0_i32 = arith.constant 0 : i32
    %c0_i32_0 = arith.constant 0 : i32
    %c0_i32_1 = arith.constant 0 : i32
    return %arg0, %c0_i32, %c0_i32_0 : i32, i32, i32
  }
  func.func @transform_1(%arg0: i32) -> (i32, i32) {
    %c0_i32 = arith.constant 0 : i32
    %c0_i32_0 = arith.constant 0 : i32
    %c0_i32_1 = arith.constant 0 : i32
    return %c0_i32, %c0_i32_0 : i32, i32
  }
  func.func @transform_2(%arg0: i32) -> (i32, i32) {
    %c0_i32 = arith.constant 0 : i32
    %c0_i32_0 = arith.constant 0 : i32
    %c0_i32_1 = arith.constant 0 : i32
    return %c0_i32, %c0_i32_0 : i32, i32
  }
  func.func @transform_3(%arg0: i32) -> (i32, i32, i32) {
    %c0_i32 = arith.constant 0 : i32
    %c0_i32_0 = arith.constant 0 : i32
    %c0_i32_1 = arith.constant 0 : i32
    return %arg0, %c0_i32, %c0_i32_0 : i32, i32, i32
  }
  func.func @transform_4(%arg0: i32) -> (i32, i32, i32) {
    %c0_i32 = arith.constant 0 : i32
    %c0_i32_0 = arith.constant 0 : i32
    %c0_i32_1 = arith.constant 0 : i32
    return %arg0, %c0_i32, %c0_i32_0 : i32, i32, i32
  }
}

module attributes {stable_mosaic.version = 11 : i64} {
  func.func @bn_relu_conv2_stats_kernel(%arg0: i32, %arg1: memref<1x256x4xbf16, #tpu.memory_space<vmem>>, %arg2: memref<1x4xf32, #tpu.memory_space<vmem>>, %arg3: memref<1x4xf32, #tpu.memory_space<vmem>>, %arg4: memref<36x4xbf16, #tpu.memory_space<vmem>>, %arg5: memref<1x256x4xbf16, #tpu.memory_space<vmem>>, %arg6: memref<1x2x4xf32, #tpu.memory_space<vmem>>, %arg7: memref<18x18x4xbf16, #tpu.memory_space<vmem>>, %arg8: memref<256x36xbf16, #tpu.memory_space<vmem>>) attributes {dimension_semantics = [#tpu.dimension_semantics<parallel>], iteration_bounds = array<i64: 2>, scalar_prefetch = 0 : i64, scratch_operands = 2 : i64, tpu.core_type = #tpu.core_type<tc>, window_params = [{transform_indices = @transform_0, window_bounds = array<i64: 1, 256, 4>}, {pipeline_mode = #tpu.pipeline_mode<synchronous>, transform_indices = @transform_1, window_bounds = array<i64: 1, 4>}, {pipeline_mode = #tpu.pipeline_mode<synchronous>, transform_indices = @transform_2, window_bounds = array<i64: 1, 4>}, {pipeline_mode = #tpu.pipeline_mode<synchronous>, transform_indices = @transform_3, window_bounds = array<i64: 36, 4>}, {transform_indices = @transform_4, window_bounds = array<i64: 1, 256, 4>}, {transform_indices = @transform_5, window_bounds = array<i64: 1, 2, 4>}]} {
    %c0 = arith.constant 0 : index
    %c0_0 = arith.constant 0 : index
    %c0_1 = arith.constant 0 : index
    %0 = vector.load %arg1[%c0, %c0_0, %c0_1] : memref<1x256x4xbf16, #tpu.memory_space<vmem>>, vector<1x256x4xbf16>
    %1 = vector.shape_cast %0 : vector<1x256x4xbf16> to vector<256x4xbf16>
    %2 = arith.extf %1 : vector<256x4xbf16> to vector<256x4xf32>
    %c0_2 = arith.constant 0 : index
    %c0_3 = arith.constant 0 : index
    %3 = vector.load %arg2[%c0_2, %c0_3] : memref<1x4xf32, #tpu.memory_space<vmem>>, vector<1x4xf32>
    %4 = vector.broadcast %3 : vector<1x4xf32> to vector<256x4xf32>
    %5 = arith.mulf %2, %4 : vector<256x4xf32>
    %c0_4 = arith.constant 0 : index
    %c0_5 = arith.constant 0 : index
    %6 = vector.load %arg3[%c0_4, %c0_5] : memref<1x4xf32, #tpu.memory_space<vmem>>, vector<1x4xf32>
    %7 = vector.broadcast %6 : vector<1x4xf32> to vector<256x4xf32>
    %8 = arith.addf %5, %7 : vector<256x4xf32>
    %cst = arith.constant 0.000000e+00 : f32
    %9 = vector.broadcast %cst : f32 to vector<256x4xf32>
    %10 = arith.maximumf %8, %9 : vector<256x4xf32>
    %cst_6 = arith.constant 0.000000e+00 : bf16
    %11 = vector.broadcast %cst_6 : bf16 to vector<18x18x4xbf16>
    %c0_7 = arith.constant 0 : index
    %c0_8 = arith.constant 0 : index
    %c0_9 = arith.constant 0 : index
    %12 = vector.load %arg7[%c0_7, %c0_8, %c0_9] : memref<18x18x4xbf16, #tpu.memory_space<vmem>>, vector<18x18x4xbf16>
    tpu.vector_store %arg7[%c0_7, %c0_8, %c0_9], %11 {strides = array<i32>} : memref<18x18x4xbf16, #tpu.memory_space<vmem>>, vector<18x18x4xbf16>,
    %13 = arith.truncf %10 : vector<256x4xf32> to vector<256x4xbf16>
    %14 = vector.shape_cast %13 : vector<256x4xbf16> to vector<16x16x4xbf16>
    %c1 = arith.constant 1 : index
    %c1_10 = arith.constant 1 : index
    %c0_11 = arith.constant 0 : index
    %15 = vector.load %arg7[%c1, %c1_10, %c0_11] : memref<18x18x4xbf16, #tpu.memory_space<vmem>>, vector<16x16x4xbf16>
    tpu.vector_store %arg7[%c1, %c1_10, %c0_11], %14 {strides = array<i32>} : memref<18x18x4xbf16, #tpu.memory_space<vmem>>, vector<16x16x4xbf16>,
    %c0_12 = arith.constant 0 : index
    %c0_13 = arith.constant 0 : index
    %c0_14 = arith.constant 0 : index
    %16 = vector.load %arg7[%c0_12, %c0_13, %c0_14] : memref<18x18x4xbf16, #tpu.memory_space<vmem>>, vector<16x16x4xbf16>
    %17 = vector.shape_cast %16 : vector<16x16x4xbf16> to vector<256x4xbf16>
    %c0_15 = arith.constant 0 : index
    %c0_16 = arith.constant 0 : index
    %18 = vector.load %arg8[%c0_15, %c0_16] : memref<256x36xbf16, #tpu.memory_space<vmem>>, vector<256x4xbf16>
    tpu.vector_store %arg8[%c0_15, %c0_16], %17 {strides = array<i32>} : memref<256x36xbf16, #tpu.memory_space<vmem>>, vector<256x4xbf16>,
    %c0_17 = arith.constant 0 : index
    %c1_18 = arith.constant 1 : index
    %c0_19 = arith.constant 0 : index
    %19 = vector.load %arg7[%c0_17, %c1_18, %c0_19] : memref<18x18x4xbf16, #tpu.memory_space<vmem>>, vector<16x16x4xbf16>
    %20 = vector.shape_cast %19 : vector<16x16x4xbf16> to vector<256x4xbf16>
    %c0_20 = arith.constant 0 : index
    %c4 = arith.constant 4 : index
    %21 = vector.load %arg8[%c0_20, %c4] : memref<256x36xbf16, #tpu.memory_space<vmem>>, vector<256x4xbf16>
    tpu.vector_store %arg8[%c0_20, %c4], %20 {strides = array<i32>} : memref<256x36xbf16, #tpu.memory_space<vmem>>, vector<256x4xbf16>,
    %c0_21 = arith.constant 0 : index
    %c2 = arith.constant 2 : index
    %c0_22 = arith.constant 0 : index
    %22 = vector.load %arg7[%c0_21, %c2, %c0_22] : memref<18x18x4xbf16, #tpu.memory_space<vmem>>, vector<16x16x4xbf16>
    %23 = vector.shape_cast %22 : vector<16x16x4xbf16> to vector<256x4xbf16>
    %c0_23 = arith.constant 0 : index
    %c8 = arith.constant 8 : index
    %24 = vector.load %arg8[%c0_23, %c8] : memref<256x36xbf16, #tpu.memory_space<vmem>>, vector<256x4xbf16>
    tpu.vector_store %arg8[%c0_23, %c8], %23 {strides = array<i32>} : memref<256x36xbf16, #tpu.memory_space<vmem>>, vector<256x4xbf16>,
    %c1_24 = arith.constant 1 : index
    %c0_25 = arith.constant 0 : index
    %c0_26 = arith.constant 0 : index
    %25 = vector.load %arg7[%c1_24, %c0_25, %c0_26] : memref<18x18x4xbf16, #tpu.memory_space<vmem>>, vector<16x16x4xbf16>
    %26 = vector.shape_cast %25 : vector<16x16x4xbf16> to vector<256x4xbf16>
    %c0_27 = arith.constant 0 : index
    %c12 = arith.constant 12 : index
    %27 = vector.load %arg8[%c0_27, %c12] : memref<256x36xbf16, #tpu.memory_space<vmem>>, vector<256x4xbf16>
    tpu.vector_store %arg8[%c0_27, %c12], %26 {strides = array<i32>} : memref<256x36xbf16, #tpu.memory_space<vmem>>, vector<256x4xbf16>,
    %c1_28 = arith.constant 1 : index
    %c1_29 = arith.constant 1 : index
    %c0_30 = arith.constant 0 : index
    %28 = vector.load %arg7[%c1_28, %c1_29, %c0_30] : memref<18x18x4xbf16, #tpu.memory_space<vmem>>, vector<16x16x4xbf16>
    %29 = vector.shape_cast %28 : vector<16x16x4xbf16> to vector<256x4xbf16>
    %c0_31 = arith.constant 0 : index
    %c16 = arith.constant 16 : index
    %30 = vector.load %arg8[%c0_31, %c16] : memref<256x36xbf16, #tpu.memory_space<vmem>>, vector<256x4xbf16>
    tpu.vector_store %arg8[%c0_31, %c16], %29 {strides = array<i32>} : memref<256x36xbf16, #tpu.memory_space<vmem>>, vector<256x4xbf16>,
    %c1_32 = arith.constant 1 : index
    %c2_33 = arith.constant 2 : index
    %c0_34 = arith.constant 0 : index
    %31 = vector.load %arg7[%c1_32, %c2_33, %c0_34] : memref<18x18x4xbf16, #tpu.memory_space<vmem>>, vector<16x16x4xbf16>
    %32 = vector.shape_cast %31 : vector<16x16x4xbf16> to vector<256x4xbf16>
    %c0_35 = arith.constant 0 : index
    %c20 = arith.constant 20 : index
    %33 = vector.load %arg8[%c0_35, %c20] : memref<256x36xbf16, #tpu.memory_space<vmem>>, vector<256x4xbf16>
    tpu.vector_store %arg8[%c0_35, %c20], %32 {strides = array<i32>} : memref<256x36xbf16, #tpu.memory_space<vmem>>, vector<256x4xbf16>,
    %c2_36 = arith.constant 2 : index
    %c0_37 = arith.constant 0 : index
    %c0_38 = arith.constant 0 : index
    %34 = vector.load %arg7[%c2_36, %c0_37, %c0_38] : memref<18x18x4xbf16, #tpu.memory_space<vmem>>, vector<16x16x4xbf16>
    %35 = vector.shape_cast %34 : vector<16x16x4xbf16> to vector<256x4xbf16>
    %c0_39 = arith.constant 0 : index
    %c24 = arith.constant 24 : index
    %36 = vector.load %arg8[%c0_39, %c24] : memref<256x36xbf16, #tpu.memory_space<vmem>>, vector<256x4xbf16>
    tpu.vector_store %arg8[%c0_39, %c24], %35 {strides = array<i32>} : memref<256x36xbf16, #tpu.memory_space<vmem>>, vector<256x4xbf16>,
    %c2_40 = arith.constant 2 : index
    %c1_41 = arith.constant 1 : index
    %c0_42 = arith.constant 0 : index
    %37 = vector.load %arg7[%c2_40, %c1_41, %c0_42] : memref<18x18x4xbf16, #tpu.memory_space<vmem>>, vector<16x16x4xbf16>
    %38 = vector.shape_cast %37 : vector<16x16x4xbf16> to vector<256x4xbf16>
    %c0_43 = arith.constant 0 : index
    %c28 = arith.constant 28 : index
    %39 = vector.load %arg8[%c0_43, %c28] : memref<256x36xbf16, #tpu.memory_space<vmem>>, vector<256x4xbf16>
    tpu.vector_store %arg8[%c0_43, %c28], %38 {strides = array<i32>} : memref<256x36xbf16, #tpu.memory_space<vmem>>, vector<256x4xbf16>,
    %c2_44 = arith.constant 2 : index
    %c2_45 = arith.constant 2 : index
    %c0_46 = arith.constant 0 : index
    %40 = vector.load %arg7[%c2_44, %c2_45, %c0_46] : memref<18x18x4xbf16, #tpu.memory_space<vmem>>, vector<16x16x4xbf16>
    %41 = vector.shape_cast %40 : vector<16x16x4xbf16> to vector<256x4xbf16>
    %c0_47 = arith.constant 0 : index
    %c32 = arith.constant 32 : index
    %42 = vector.load %arg8[%c0_47, %c32] : memref<256x36xbf16, #tpu.memory_space<vmem>>, vector<256x4xbf16>
    tpu.vector_store %arg8[%c0_47, %c32], %41 {strides = array<i32>} : memref<256x36xbf16, #tpu.memory_space<vmem>>, vector<256x4xbf16>,
    %c0_48 = arith.constant 0 : index
    %c0_49 = arith.constant 0 : index
    %43 = vector.load %arg8[%c0_48, %c0_49] : memref<256x36xbf16, #tpu.memory_space<vmem>>, vector<256x36xbf16>
    %c0_50 = arith.constant 0 : index
    %c0_51 = arith.constant 0 : index
    %44 = vector.load %arg4[%c0_50, %c0_51] : memref<36x4xbf16, #tpu.memory_space<vmem>>, vector<36x4xbf16>
    %cst_52 = arith.constant dense<0.000000e+00> : vector<256x4xf32>
    %45 = tpu.matmul %43, %44, %cst_52 {dimension_numbers = #tpu.dot_dimension_numbers<[1], [0], [0], [1], [0, 0, 1, 1], [], []>} : vector<256x36xbf16>, vector<36x4xbf16>, vector<256x4xf32> -> vector<256x4xf32>
    %cst_53 = arith.constant dense<0.000000e+00> : vector<4xf32>
    %46 = vector.multi_reduction <add>, %45, %cst_53 [0] : vector<256x4xf32> to vector<4xf32>
    %47 = vector.shape_cast %46 : vector<4xf32> to vector<1x4xf32>
    %cst_54 = arith.constant 2.560000e+02 : f32
    %48 = vector.broadcast %cst_54 : f32 to vector<1x4xf32>
    %49 = arith.divf %47, %48 : vector<1x4xf32>
    %50 = vector.broadcast %49 : vector<1x4xf32> to vector<256x4xf32>
    %51 = arith.subf %45, %50 : vector<256x4xf32>
    %c0_55 = arith.constant 0 : index
    %c0_56 = arith.constant 0 : index
    %c0_57 = arith.constant 0 : index
    %52 = vector.load %arg6[%c0_55, %c0_56, %c0_57] : memref<1x2x4xf32, #tpu.memory_space<vmem>>, vector<1x1x4xf32>
    %53 = vector.shape_cast %52 : vector<1x1x4xf32> to vector<1x4xf32>
    %54 = vector.shape_cast %47 : vector<1x4xf32> to vector<1x1x4xf32>
    tpu.vector_store %arg6[%c0_55, %c0_56, %c0_57], %54 {strides = array<i32>} : memref<1x2x4xf32, #tpu.memory_space<vmem>>, vector<1x1x4xf32>,
    %55 = arith.mulf %51, %51 : vector<256x4xf32>
    %cst_58 = arith.constant dense<0.000000e+00> : vector<4xf32>
    %56 = vector.multi_reduction <add>, %55, %cst_58 [0] : vector<256x4xf32> to vector<4xf32>
    %57 = vector.shape_cast %56 : vector<4xf32> to vector<1x4xf32>
    %c0_59 = arith.constant 0 : index
    %c1_60 = arith.constant 1 : index
    %c0_61 = arith.constant 0 : index
    %58 = vector.load %arg6[%c0_59, %c1_60, %c0_61] : memref<1x2x4xf32, #tpu.memory_space<vmem>>, vector<1x1x4xf32>
    %59 = vector.shape_cast %58 : vector<1x1x4xf32> to vector<1x4xf32>
    %60 = vector.shape_cast %57 : vector<1x4xf32> to vector<1x1x4xf32>
    tpu.vector_store %arg6[%c0_59, %c1_60, %c0_61], %60 {strides = array<i32>} : memref<1x2x4xf32, #tpu.memory_space<vmem>>, vector<1x1x4xf32>,
    %61 = arith.truncf %45 : vector<256x4xf32> to vector<256x4xbf16>
    %c0_62 = arith.constant 0 : index
    %c0_63 = arith.constant 0 : index
    %c0_64 = arith.constant 0 : index
    %62 = vector.load %arg5[%c0_62, %c0_63, %c0_64] : memref<1x256x4xbf16, #tpu.memory_space<vmem>>, vector<1x256x4xbf16>
    %63 = vector.shape_cast %62 : vector<1x256x4xbf16> to vector<256x4xbf16>
    %64 = vector.shape_cast %61 : vector<256x4xbf16> to vector<1x256x4xbf16>
    tpu.vector_store %arg5[%c0_62, %c0_63, %c0_64], %64 {strides = array<i32>} : memref<1x256x4xbf16, #tpu.memory_space<vmem>>, vector<1x256x4xbf16>,
    return
  }
  func.func @transform_0(%arg0: i32) -> (i32, i32, i32) {
    %c0_i32 = arith.constant 0 : i32
    %c0_i32_0 = arith.constant 0 : i32
    %c0_i32_1 = arith.constant 0 : i32
    return %arg0, %c0_i32, %c0_i32_0 : i32, i32, i32
  }
  func.func @transform_1(%arg0: i32) -> (i32, i32) {
    %c0_i32 = arith.constant 0 : i32
    %c0_i32_0 = arith.constant 0 : i32
    %c0_i32_1 = arith.constant 0 : i32
    return %c0_i32, %c0_i32_0 : i32, i32
  }
  func.func @transform_2(%arg0: i32) -> (i32, i32) {
    %c0_i32 = arith.constant 0 : i32
    %c0_i32_0 = arith.constant 0 : i32
    %c0_i32_1 = arith.constant 0 : i32
    return %c0_i32, %c0_i32_0 : i32, i32
  }
  func.func @transform_3(%arg0: i32) -> (i32, i32) {
    %c0_i32 = arith.constant 0 : i32
    %c0_i32_0 = arith.constant 0 : i32
    %c0_i32_1 = arith.constant 0 : i32
    return %c0_i32, %c0_i32_0 : i32, i32
  }
  func.func @transform_4(%arg0: i32) -> (i32, i32, i32) {
    %c0_i32 = arith.constant 0 : i32
    %c0_i32_0 = arith.constant 0 : i32
    %c0_i32_1 = arith.constant 0 : i32
    return %arg0, %c0_i32, %c0_i32_0 : i32, i32, i32
  }
  func.func @transform_5(%arg0: i32) -> (i32, i32, i32) {
    %c0_i32 = arith.constant 0 : i32
    %c0_i32_0 = arith.constant 0 : i32
    %c0_i32_1 = arith.constant 0 : i32
    return %arg0, %c0_i32, %c0_i32_0 : i32, i32, i32
  }
}

</mosaic_0001>

<bundles_post_ra>
// kernel: basic_block_forward.5
= control target key start
LH: loop header
LB: loop body
LE: loop exit
PB: predicated region body
PF: predicated region fallthrough
CT: control target
= control target key end

     0   :  { %s805_s15 = smov 0   ;;  %s1005_s0 = inlined_call_operand.vmem [shape: bf16[2,256,4], index: 0, kind: input, shape index: {}]   ;;  %s1006_s1 = inlined_call_operand.vmem [shape: f32[1,4], index: 1, kind: input, shape index: {}]   ;;  %s1007_s2 = inlined_call_operand.vmem [shape: f32[1,4], index: 2, kind: input, shape index: {}]   ;;  %s1008_s3 = inlined_call_operand.vmem [shape: bf16[2,256,4], index: 3, kind: input, shape index: {}]   ;;  %s1009_s4 = inlined_call_operand.vmem [shape: f32[2,256,4], index: 4, kind: output, shape index: {}]  }
   0x1 LB: > { %s588_s16 = sadd.s32 4294967295, %s778_s15   ;;  %p592_p0 = scmp.ge.s32.totalorder %s778_s15, 1  ;;  %s778_s15 = sphi %s805_s15, %s14_s15  }
   0x2   : > { %p172_p1 = scmp.lt.s32.totalorder %s778_s15, 3 }
   0x4   : > { %p173_p2 = pnand %p592_p0, %p172_p1 }
   0x5   : > { %p203_p3 = scmp.lt.s32.totalorder (!%p173_p2), %s588_s16, 1 }
   0x6   : > { %176 = sbr.rel (%p173_p2) target bundleno = 69 (0x45), region = 36 }
   0xb   : > { %s1011_s16 = smov (!%p203_p3, %s588_s16), 1  ;;  %v829_v0 = vld [vmem:[%s1006_s1] ss:$0 sm:$0xff]  ;;  %vm488_vm0 = vcmask 31744  }
   0xc   : > { %s603_s17 = sshll.u32 %s1011_s16, 7  ;;  %v840_v11 = vld [vmem:[%s1007_s2] ss:$0 sm:$0xff]  ;;  %s605_s28 = sshll.u32 %s1011_s16, 8 }
   0xd   : > { %s819_s20 = scalar_lea.vmem %s1005_s0, %s603_s17  ;;  %s824_s23 = scalar_lea.vmem %s1008_s3, %s603_s17 }
   0xe   : > { %v607_v1 = vld [vmem:[%s819_s20] sm:$0xff]   ;;  %v734_v3 = vld [vmem:[%s819_s20 + $0x8] sm:$0xff]   ;;  %v735_v9 = vld [vmem:[%s819_s20 + $0x10] sm:$0xff]   ;;  %s860_s5 = scalar_lea.vmem %s1009_s4, %s605_s28 }
   0xf   : > { %v671_v2 = vld [vmem:[%s824_s23] sm:$0xff]   ;;  %v608_v4 = vunpack.c.l.bf16 %v607_v1  ;;  %v609_v6 = vunpack.c.h.bf16 %v607_v1  ;;  %v749_v8 = vld [vmem:[%s824_s23 + $0x8] sm:$0xff]   ;;  %v750_v10 = vld [vmem:[%s824_s23 + $0x10] sm:$0xff]   ;;  %v612_v12 = vunpack.c.l.bf16 %v734_v3  ;;  %v613_v14 = vunpack.c.h.bf16 %v734_v3 }
  0x10   : > { %v672_v5 = vunpack.c.l.bf16 %v671_v2  ;;  %v673_v7 = vunpack.c.h.bf16 %v671_v2  ;;  %v676_v13 = vunpack.c.l.bf16 %v749_v8  ;;  %v677_v15 = vunpack.c.h.bf16 %v749_v8  ;;  %v736_v16 = vld [vmem:[%s819_s20 + $0x18] sm:$0xff]   ;;  %v737_v42 = vld [vmem:[%s819_s20 + $0x20] sm:$0xff]   ;;  %v738_v52 = vld [vmem:[%s819_s20 + $0x28] sm:$0xff]  }
  0x11   : > { %v289_v17 = vmul.f32 %v608_v4, %v829_v0  ;;  %v290_v18 = vmul.f32 %v609_v6, %v829_v0  ;;  %v616_v19 = vunpack.c.l.bf16 %v735_v9  ;;  %v680_v20 = vunpack.c.l.bf16 %v750_v10  ;;  %v751_v21 = vld [vmem:[%s824_s23 + $0x18] sm:$0xff]   ;;  %v752_v47 = vld [vmem:[%s824_s23 + $0x20] sm:$0xff]   ;;  %v753_v57 = vld [vmem:[%s824_s23 + $0x28] sm:$0xff]  }
  0x12   : > { %v291_v22 = vmul.f32 %v612_v12, %v829_v0  ;;  %v292_v23 = vmul.f32 %v613_v14, %v829_v0  ;;  %v617_v24 = vunpack.c.h.bf16 %v735_v9  ;;  %v681_v25 = vunpack.c.h.bf16 %v750_v10  ;;  %v739_v62 = vld [vmem:[%s819_s20 + $0x30] sm:$0xff]   ;;  %v740_v14 = vld [vmem:[%s819_s20 + $0x38] sm:$0xff]  }
  0x13   : > { %v328_v26 = vadd.f32 %v840_v11, %v289_v17  ;;  %v329_v27 = vadd.f32 %v840_v11, %v290_v18  ;;  %v293_v28 = vmul.f32 %v616_v19, %v829_v0  ;;  %v620_v29 = vunpack.c.l.bf16 %v736_v16  ;;  %v754_v4 = vld [vmem:[%s824_s23 + $0x30] sm:$0xff]  }
  0x14   : > { %v330_v30 = vadd.f32 %v840_v11, %v291_v22  ;;  %v331_v31 = vadd.f32 %v840_v11, %v292_v23  ;;  %v294_v32 = vmul.f32 %v617_v24, %v829_v0  ;;  %v684_v33 = vunpack.c.l.bf16 %v751_v21  ;;  %v755_v23 = vld [vmem:[%s824_s23 + $0x38] sm:$0xff]  }
  0x15   : > { %v424_v34 = vadd.f32 %v672_v5, %v328_v26  ;;  %v425_v35 = vadd.f32 %v673_v7, %v329_v27  ;;  %v332_v36 = vadd.f32 %v840_v11, %v293_v28  ;;  %v295_v37 = vmul.f32 %v620_v29, %v829_v0 }
  0x16   : > { %v426_v38 = vadd.f32 %v676_v13, %v330_v30  ;;  %v427_v39 = vadd.f32 %v677_v15, %v331_v31  ;;  %v333_v40 = vadd.f32 %v840_v11, %v294_v32  ;;  %v621_v41 = vunpack.c.h.bf16 %v736_v16  ;;  %v741_v32 = vld [vmem:[%s819_s20 + $0x40] sm:$0xff]  }
  0x17   : > { %v456_v43 = vmax.f32 %v424_v34, 0.0  ;;  %v457_v44 = vmax.f32 %v425_v35, 0.0  ;;  %v428_v45 = vadd.f32 %v680_v20, %v332_v36  ;;  %v334_v46 = vadd.f32 %v840_v11, %v295_v37  ;;  %v756_v37 = vld [vmem:[%s824_s23 + $0x40] sm:$0xff]  }
  0x18   : > { %v458_v48 = vmax.f32 %v426_v38, 0.0  ;;  %v459_v49 = vmax.f32 %v427_v39, 0.0  ;;  %v429_v50 = vadd.f32 %v681_v25, %v333_v40  ;;  %v296_v51 = vmul.f32 %v621_v41, %v829_v0 }
  0x19   : > { %489 = vst.msk [vmem:[%s860_s5] sm:$0xff] %vm488_vm0, %v456_v43  ;;  %490 = vst.msk [vmem:[%s860_s5 + $0x8] sm:$0xff] %vm488_vm0, %v457_v44  ;;  %v460_v53 = vmax.f32 %v428_v45, 0.0  ;;  %v430_v54 = vadd.f32 %v684_v33, %v334_v46  ;;  %v685_v55 = vunpack.c.h.bf16 %v751_v21  ;;  %v624_v56 = vunpack.c.l.bf16 %v737_v42  ;;  %v742_v46 = vld [vmem:[%s819_s20 + $0x48] sm:$0xff]  }
  0x1a   : > { %491 = vst.msk [vmem:[%s860_s5 + $0x10] sm:$0xff] %vm488_vm0, %v458_v48  ;;  %492 = vst.msk [vmem:[%s860_s5 + $0x18] sm:$0xff] %vm488_vm0, %v459_v49  ;;  %v461_v58 = vmax.f32 %v429_v50, 0.0  ;;  %v335_v59 = vadd.f32 %v840_v11, %v296_v51  ;;  %v688_v60 = vunpack.c.l.bf16 %v752_v47  ;;  %v625_v61 = vunpack.c.h.bf16 %v737_v42 }
  0x1b   : > { %493 = vst.msk [vmem:[%s860_s5 + $0x20] sm:$0xff] %vm488_vm0, %v460_v53  ;;  %v462_v63 = vmax.f32 %v430_v54, 0.0  ;;  %v297_v1 = vmul.f32 %v624_v56, %v829_v0  ;;  %v689_v2 = vunpack.c.h.bf16 %v752_v47  ;;  %v628_v3 = vunpack.c.l.bf16 %v738_v52  ;;  %v757_v47 = vld [vmem:[%s824_s23 + $0x48] sm:$0xff]   ;;  %v743_v56 = vld [vmem:[%s819_s20 + $0x50] sm:$0xff]  }
  0x1c   : > { %494 = vst.msk [vmem:[%s860_s5 + $0x28] sm:$0xff] %vm488_vm0, %v461_v58  ;;  %v431_v5 = vadd.f32 %v685_v55, %v335_v59  ;;  %v298_v6 = vmul.f32 %v625_v61, %v829_v0  ;;  %v692_v7 = vunpack.c.l.bf16 %v753_v57  ;;  %v629_v8 = vunpack.c.h.bf16 %v738_v52  ;;  %v758_v61 = vld [vmem:[%s824_s23 + $0x50] sm:$0xff]  }
  0x1d   : > { %495 = vst.msk [vmem:[%s860_s5 + $0x30] sm:$0xff] %vm488_vm0, %v462_v63  ;;  %v336_v9 = vadd.f32 %v840_v11, %v297_v1  ;;  %v299_v10 = vmul.f32 %v628_v3, %v829_v0  ;;  %v693_v12 = vunpack.c.h.bf16 %v753_v57  ;;  %v632_v13 = vunpack.c.l.bf16 %v739_v62 }
  0x1e   : > { %v463_v15 = vmax.f32 %v431_v5, 0.0  ;;  %v337_v16 = vadd.f32 %v840_v11, %v298_v6  ;;  %v300_v17 = vmul.f32 %v629_v8, %v829_v0  ;;  %v696_v18 = vunpack.c.l.bf16 %v754_v4 }
  0x1f   : > { %v432_v19 = vadd.f32 %v688_v60, %v336_v9  ;;  %v338_v20 = vadd.f32 %v840_v11, %v299_v10  ;;  %v301_v21 = vmul.f32 %v632_v13, %v829_v0  ;;  %v633_v22 = vunpack.c.h.bf16 %v739_v62 }
  0x20   : > { %496 = vst.msk [vmem:[%s860_s5 + $0x38] sm:$0xff] %vm488_vm0, %v463_v15  ;;  %v433_v24 = vadd.f32 %v689_v2, %v337_v16  ;;  %v339_v25 = vadd.f32 %v840_v11, %v300_v17  ;;  %v697_v26 = vunpack.c.h.bf16 %v754_v4  ;;  %v636_v27 = vunpack.c.l.bf16 %v740_v14  ;;  %v759_v17 = vld [vmem:[%s824_s23 + $0x58] sm:$0xff]  }
  0x21   : > { %v464_v28 = vmax.f32 %v432_v19, 0.0  ;;  %v434_v29 = vadd.f32 %v692_v7, %v338_v20  ;;  %v340_v30 = vadd.f32 %v840_v11, %v301_v21  ;;  %v302_v31 = vmul.f32 %v633_v22, %v829_v0 }
  0x22   : > { %v465_v33 = vmax.f32 %v433_v24, 0.0  ;;  %v435_v34 = vadd.f32 %v693_v12, %v339_v25  ;;  %v303_v35 = vmul.f32 %v636_v27, %v829_v0  ;;  %v700_v36 = vunpack.c.l.bf16 %v755_v23  ;;  %v744_v12 = vld [vmem:[%s819_s20 + $0x58] sm:$0xff]  }
  0x23   : > { %497 = vst.msk [vmem:[%s860_s5 + $0x40] sm:$0xff] %vm488_vm0, %v464_v28  ;;  %v466_v38 = vmax.f32 %v434_v29, 0.0  ;;  %v436_v39 = vadd.f32 %v696_v18, %v340_v30  ;;  %v341_v40 = vadd.f32 %v840_v11, %v302_v31  ;;  %v637_v41 = vunpack.c.h.bf16 %v740_v14  ;;  %v760_v31 = vld [vmem:[%s824_s23 + $0x60] sm:$0xff]  }
  0x24   : > { %498 = vst.msk [vmem:[%s860_s5 + $0x48] sm:$0xff] %vm488_vm0, %v465_v33  ;;  %v467_v42 = vmax.f32 %v435_v34, 0.0  ;;  %v342_v43 = vadd.f32 %v840_v11, %v303_v35  ;;  %v701_v44 = vunpack.c.h.bf16 %v755_v23  ;;  %v640_v45 = vunpack.c.l.bf16 %v741_v32 }
  0x25   : > { %499 = vst.msk [vmem:[%s860_s5 + $0x50] sm:$0xff] %vm488_vm0, %v466_v38  ;;  %v468_v48 = vmax.f32 %v436_v39, 0.0  ;;  %v437_v49 = vadd.f32 %v697_v26, %v341_v40  ;;  %v304_v50 = vmul.f32 %v637_v41, %v829_v0  ;;  %v704_v51 = vunpack.c.l.bf16 %v756_v37  ;;  %v745_v26 = vld [vmem:[%s819_s20 + $0x60] sm:$0xff]   ;;  %v746_v40 = vld [vmem:[%s819_s20 + $0x68] sm:$0xff]  }
  0x26   : > { %500 = vst.msk [vmem:[%s860_s5 + $0x58] sm:$0xff] %vm488_vm0, %v467_v42  ;;  %v438_v52 = vadd.f32 %v700_v36, %v342_v43  ;;  %v305_v53 = vmul.f32 %v640_v45, %v829_v0  ;;  %v641_v54 = vunpack.c.h.bf16 %v741_v32  ;;  %v705_v55 = vunpack.c.h.bf16 %v756_v37  ;;  %v761_v41 = vld [vmem:[%s824_s23 + $0x68] sm:$0xff]  }
  0x27   : > { %501 = vst.msk [vmem:[%s860_s5 + $0x60] sm:$0xff] %vm488_vm0, %v468_v48  ;;  %v469_v57 = vmax.f32 %v437_v49, 0.0  ;;  %v343_v58 = vadd.f32 %v840_v11, %v304_v50  ;;  %v644_v59 = vunpack.c.l.bf16 %v742_v46  ;;  %v708_v60 = vunpack.c.l.bf16 %v757_v47  ;;  %v747_v50 = vld [vmem:[%s819_s20 + $0x70] sm:$0xff]  }
  0x28   : > { %v470_v62 = vmax.f32 %v438_v52, 0.0  ;;  %v344_v63 = vadd.f32 %v840_v11, %v305_v53  ;;  %v306_v1 = vmul.f32 %v641_v54, %v829_v0  ;;  %v645_v2 = vunpack.c.h.bf16 %v742_v46 }
  0x29   : > { %502 = vst.msk [vmem:[%s860_s5 + $0x68] sm:$0xff] %vm488_vm0, %v469_v57  ;;  %v439_v3 = vadd.f32 %v701_v44, %v343_v58  ;;  %v307_v4 = vmul.f32 %v644_v59, %v829_v0  ;;  %v709_v5 = vunpack.c.h.bf16 %v757_v47  ;;  %v648_v6 = vunpack.c.l.bf16 %v743_v56  ;;  %v762_v59 = vld [vmem:[%s824_s23 + $0x70] sm:$0xff]  }
  0x2a   : > { %503 = vst.msk [vmem:[%s860_s5 + $0x70] sm:$0xff] %vm488_vm0, %v470_v62  ;;  %v440_v7 = vadd.f32 %v704_v51, %v344_v63  ;;  %v345_v8 = vadd.f32 %v840_v11, %v306_v1  ;;  %v308_v9 = vmul.f32 %v645_v2, %v829_v0  ;;  %v712_v10 = vunpack.c.l.bf16 %v758_v61 }
  0x2b   : > { %v471_v13 = vmax.f32 %v439_v3, 0.0  ;;  %v346_v14 = vadd.f32 %v840_v11, %v307_v4  ;;  %v309_v15 = vmul.f32 %v648_v6, %v829_v0  ;;  %v649_v16 = vunpack.c.h.bf16 %v743_v56 }
  0x2c   : > { %v472_v18 = vmax.f32 %v440_v7, 0.0  ;;  %v441_v19 = vadd.f32 %v705_v55, %v345_v8  ;;  %v347_v20 = vadd.f32 %v840_v11, %v308_v9  ;;  %v713_v21 = vunpack.c.h.bf16 %v758_v61 }
  0x2d   : > { %504 = vst.msk [vmem:[%s860_s5 + $0x78] sm:$0xff] %vm488_vm0, %v471_v13  ;;  %v442_v22 = vadd.f32 %v708_v60, %v346_v14  ;;  %v348_v23 = vadd.f32 %v840_v11, %v309_v15  ;;  %v310_v24 = vmul.f32 %v649_v16, %v829_v0  ;;  %v652_v25 = vunpack.c.l.bf16 %v744_v12 }
  0x2e   : > { %505 = vst.msk [vmem:[%s860_s5 + $0x80] sm:$0xff] %vm488_vm0, %v472_v18  ;;  %v473_v27 = vmax.f32 %v441_v19, 0.0  ;;  %v443_v28 = vadd.f32 %v709_v5, %v347_v20  ;;  %v716_v29 = vunpack.c.l.bf16 %v759_v17  ;;  %v653_v30 = vunpack.c.h.bf16 %v744_v12  ;;  %v748_v5 = vld [vmem:[%s819_s20 + $0x78] sm:$0xff]  }
  0x2f   : > { %v474_v32 = vmax.f32 %v442_v22, 0.0  ;;  %v444_v33 = vadd.f32 %v712_v10, %v348_v23  ;;  %v349_v34 = vadd.f32 %v840_v11, %v310_v24  ;;  %v311_v35 = vmul.f32 %v652_v25, %v829_v0  ;;  %v763_v10 = vld [vmem:[%s824_s23 + $0x78] sm:$0xff]  }
  0x30   : > { %506 = vst.msk [vmem:[%s860_s5 + $0x88] sm:$0xff] %vm488_vm0, %v473_v27  ;;  %v475_v36 = vmax.f32 %v443_v28, 0.0  ;;  %v312_v37 = vmul.f32 %v653_v30, %v829_v0  ;;  %v717_v38 = vunpack.c.h.bf16 %v759_v17  ;;  %v656_v39 = vunpack.c.l.bf16 %v745_v26 }
  0x31   : > { %507 = vst.msk [vmem:[%s860_s5 + $0x90] sm:$0xff] %vm488_vm0, %v474_v32  ;;  %v476_v42 = vmax.f32 %v444_v33, 0.0  ;;  %v445_v43 = vadd.f32 %v713_v21, %v349_v34  ;;  %v350_v44 = vadd.f32 %v840_v11, %v311_v35  ;;  %v720_v45 = vunpack.c.l.bf16 %v760_v31 }
  0x32   : > { %508 = vst.msk [vmem:[%s860_s5 + $0x98] sm:$0xff] %vm488_vm0, %v475_v36  ;;  %v351_v46 = vadd.f32 %v840_v11, %v312_v37  ;;  %v313_v47 = vmul.f32 %v656_v39, %v829_v0  ;;  %v657_v48 = vunpack.c.h.bf16 %v745_v26  ;;  %v721_v49 = vunpack.c.h.bf16 %v760_v31 }
  0x33   : > { %509 = vst.msk [vmem:[%s860_s5 + $0xa0] sm:$0xff] %vm488_vm0, %v476_v42  ;;  %v477_v51 = vmax.f32 %v445_v43, 0.0  ;;  %v446_v52 = vadd.f32 %v716_v29, %v350_v44  ;;  %v660_v53 = vunpack.c.l.bf16 %v746_v40  ;;  %v724_v54 = vunpack.c.l.bf16 %v761_v41 }
  0x34   : > { %v447_v55 = vadd.f32 %v717_v38, %v351_v46  ;;  %v352_v56 = vadd.f32 %v840_v11, %v313_v47  ;;  %v314_v57 = vmul.f32 %v657_v48, %v829_v0  ;;  %v661_v58 = vunpack.c.h.bf16 %v746_v40 }
  0x35   : > { %510 = vst.msk [vmem:[%s860_s5 + $0xa8] sm:$0xff] %vm488_vm0, %v477_v51  ;;  %v478_v60 = vmax.f32 %v446_v52, 0.0  ;;  %v315_v61 = vmul.f32 %v660_v53, %v829_v0  ;;  %v725_v62 = vunpack.c.h.bf16 %v761_v41  ;;  %v664_v63 = vunpack.c.l.bf16 %v747_v50 }
  0x36   : > { %v479_v1 = vmax.f32 %v447_v55, 0.0  ;;  %v448_v2 = vadd.f32 %v720_v45, %v352_v56  ;;  %v353_v3 = vadd.f32 %v840_v11, %v314_v57  ;;  %v316_v4 = vmul.f32 %v661_v58, %v829_v0 }
  0x37   : > { %511 = vst.msk [vmem:[%s860_s5 + $0xb0] sm:$0xff] %vm488_vm0, %v478_v60  ;;  %v354_v6 = vadd.f32 %v840_v11, %v315_v61  ;;  %v317_v7 = vmul.f32 %v664_v63, %v829_v0  ;;  %v728_v8 = vunpack.c.l.bf16 %v762_v59  ;;  %v665_v9 = vunpack.c.h.bf16 %v747_v50 }
  0x38   : > { %512 = vst.msk [vmem:[%s860_s5 + $0xb8] sm:$0xff] %vm488_vm0, %v479_v1  ;;  %v480_v12 = vmax.f32 %v448_v2, 0.0  ;;  %v449_v13 = vadd.f32 %v721_v49, %v353_v3  ;;  %v355_v14 = vadd.f32 %v840_v11, %v316_v4  ;;  %v729_v15 = vunpack.c.h.bf16 %v762_v59 }
  0x39   : > { %v450_v16 = vadd.f32 %v724_v54, %v354_v6  ;;  %v356_v17 = vadd.f32 %v840_v11, %v317_v7  ;;  %v318_v18 = vmul.f32 %v665_v9, %v829_v0  ;;  %v668_v19 = vunpack.c.l.bf16 %v748_v5 }
  0x3a   : > { %513 = vst.msk [vmem:[%s860_s5 + $0xc0] sm:$0xff] %vm488_vm0, %v480_v12  ;;  %v481_v20 = vmax.f32 %v449_v13, 0.0  ;;  %v451_v21 = vadd.f32 %v725_v62, %v355_v14  ;;  %v732_v22 = vunpack.c.l.bf16 %v763_v10  ;;  %v669_v23 = vunpack.c.h.bf16 %v748_v5 }
  0x3b   : > { %v482_v24 = vmax.f32 %v450_v16, 0.0  ;;  %v452_v25 = vadd.f32 %v728_v8, %v356_v17  ;;  %v357_v26 = vadd.f32 %v840_v11, %v318_v18  ;;  %v319_v27 = vmul.f32 %v668_v19, %v829_v0 }
  0x3c   : > { %514 = vst.msk [vmem:[%s860_s5 + $0xc8] sm:$0xff] %vm488_vm0, %v481_v20  ;;  %v483_v28 = vmax.f32 %v451_v21, 0.0  ;;  %v320_v29 = vmul.f32 %v669_v23, %v829_v0  ;;  %v733_v30 = vunpack.c.h.bf16 %v763_v10 }
  0x3d   : > { %515 = vst.msk [vmem:[%s860_s5 + $0xd0] sm:$0xff] %vm488_vm0, %v482_v24  ;;  %v484_v31 = vmax.f32 %v452_v25, 0.0  ;;  %v453_v32 = vadd.f32 %v729_v15, %v357_v26  ;;  %v358_v33 = vadd.f32 %v840_v11, %v319_v27 }
  0x3e   : > { %516 = vst.msk [vmem:[%s860_s5 + $0xd8] sm:$0xff] %vm488_vm0, %v483_v28  ;;  %v359_v34 = vadd.f32 %v840_v11, %v320_v29 }
  0x3f   : > { %517 = vst.msk [vmem:[%s860_s5 + $0xe0] sm:$0xff] %vm488_vm0, %v484_v31  ;;  %v485_v35 = vmax.f32 %v453_v32, 0.0  ;;  %v454_v36 = vadd.f32 %v732_v22, %v358_v33 }
  0x40   : > { %v455_v37 = vadd.f32 %v733_v30, %v359_v34 }
  0x41   : > { %518 = vst.msk [vmem:[%s860_s5 + $0xe8] sm:$0xff] %vm488_vm0, %v485_v35  ;;  %v486_v0 = vmax.f32 %v454_v36, 0.0 }
  0x42   : > { %v487_v38 = vmax.f32 %v455_v37, 0.0 }
  0x43   : > { %519 = vst.msk [vmem:[%s860_s5 + $0xf0] sm:$0xff] %vm488_vm0, %v486_v0 }
  0x44   : > { %520 = vst.msk [vmem:[%s860_s5 + $0xf8] sm:$0xff] %vm488_vm0, %v487_v38 }
  0x45 PF: > { %s14_s15 = sadd.s32 1, %s778_s15  }
  0x46   : > { %p11_p4 = scmp.ge.s32.totalorder %s14_s15, 4  }
  0x48   :  { %13 = sbr.rel (!%p11_p4) target bundleno = 1 (0x1), region = 69 }

// kernel: basic_block_forward.3
= control target key start
LH: loop header
LB: loop body
LE: loop exit
PB: predicated region body
PF: predicated region fallthrough
CT: control target
= control target key end

     0   :  { %s4961_s12 = smov 0   ;;  %s6579_s0 = inlined_call_operand.vmem [shape: bf16[2,16,16,4], index: 0, kind: input, shape index: {}]   ;;  %s6580_s1 = inlined_call_operand.vmem [shape: bf16[36,4], index: 1, kind: input, shape index: {}]   ;;  %s6581_s2 = inlined_call_operand.vmem [shape: bf16[2,256,4], index: 2, kind: output, shape index: {0}]   ;;  %s6582_s3 = inlined_call_operand.vmem [shape: f32[2,2,4], index: 3, kind: output, shape index: {1}]  }
   0x1 LB: > { %s4662_s13 = sadd.s32 4294967295, %s4930_s12   ;;  %p4666_p0 = scmp.ge.s32.totalorder %s4930_s12, 1  ;;  %s4930_s12 = sphi %s4961_s12, %s14_s12  }
   0x2   : > { %p140_p1 = scmp.lt.s32.totalorder %s4930_s12, 3 }
   0x4   : > { %p141_p2 = pnand %p4666_p0, %p140_p1 }
   0x5   : > { %p168_p3 = scmp.lt.s32.totalorder (!%p141_p2), %s4662_s13, 1  ;;  %s4933_s18 = smov (!%p141_p2), 4  }
   0x6   : > { %144 = sbr.rel (%p141_p2) target bundleno = 1027 (0x403), region = 28  ;;  %s4934_s19 = smov (!%p141_p2), 8  }
   0x7   : > { %s4935_s20 = smov (!%p141_p2), 12   ;;  %s4936_s21 = smov (!%p141_p2), 16  }
   0x8   : > { %s4937_s22 = smov (!%p141_p2), 20   ;;  %s4938_s23 = smov (!%p141_p2), 24  }
   0x9   : > { %s4939_s24 = smov (!%p141_p2), 28   ;;  %s4940_s25 = smov (!%p141_p2), 32  }
   0xb   : > { %vm183_vm0 = vcmask 27648   ;;  %v4932_v0 = vmov 0   ;;  %vm186_vm1 = vcmask 24576   ;;  %s6594_s13 = smov (!%p168_p3, %s4662_s13), 1  ;;  %vm824_vm2 = vsmask.f32 3328 }
   0xc   : > { %184 = vst.msk [vmem:[#allocation2] sm:$0xf] %vm183_vm0, %v4932_v0  ;;  %185 = vst.msk [vmem:[#allocation2 + $0x4] sm:$0xf] %vm183_vm0, %v4932_v0  ;;  %vm825_vm3 = vsmask.f32 7440 }
   0xd   : > { %188 = vst.msk [vmem:[#allocation2 + $0xc] sm:$0xf] %vm183_vm0, %v4932_v0  ;;  %189 = vst.msk [vmem:[#allocation2 + $0x10] sm:$0xf] %vm183_vm0, %v4932_v0  ;;  %s4789_s14 = sshll.u32 %s6594_s13, 7  ;;  %vm1436_vm11 = vcmask 1042432  }
   0xe   : > { %191 = vst.msk [vmem:[#allocation2 + $0x18] sm:$0xf] %vm183_vm0, %v4932_v0  ;;  %192 = vst.msk [vmem:[#allocation2 + $0x1c] sm:$0xf] %vm183_vm0, %v4932_v0  ;;  %s5035_s17 = scalar_lea.vmem %s6579_s0, %s4789_s14  ;;  %vm271_vm4 = vsmask.f32 256  ;;  %s6032_s7 = scalar_lea.vmem %s6581_s2, %s4789_s14 }
   0xf   : > { %194 = vst.msk [vmem:[#allocation2 + $0x24] sm:$0xf] %vm183_vm0, %v4932_v0  ;;  %195 = vst.msk [vmem:[#allocation2 + $0x28] sm:$0xf] %vm183_vm0, %v4932_v0  ;;  %vm272_vm5 = vsmask.f32 4368 }
  0x10   : > { %197 = vst.msk [vmem:[#allocation2 + $0x30] sm:$0xf] %vm183_vm0, %v4932_v0  ;;  %198 = vst.msk [vmem:[#allocation2 + $0x34] sm:$0xf] %vm183_vm0, %v4932_v0  ;;  %vm596_vm6 = vsmask.f32 7938 }
  0x11   : > { %200 = vst.msk [vmem:[#allocation2 + $0x3c] sm:$0xf] %vm183_vm0, %v4932_v0  ;;  %201 = vst.msk [vmem:[#allocation2 + $0x40] sm:$0xf] %vm183_vm0, %v4932_v0  ;;  %v239_v1 = vld [vmem:[%s5035_s17] sm:$0xf] }
  0x12   : > { %203 = vst.msk [vmem:[#allocation2 + $0x48] sm:$0xf] %vm183_vm0, %v4932_v0  ;;  %204 = vst.msk [vmem:[#allocation2 + $0x4c] sm:$0xf] %vm183_vm0, %v4932_v0  ;;  %v240_v2 = vld [vmem:[%s5035_s17 + $0x4] sm:$0xf] }
  0x13   : > { %206 = vst.msk [vmem:[#allocation2 + $0x54] sm:$0xf] %vm183_vm0, %v4932_v0  ;;  %207 = vst.msk [vmem:[#allocation2 + $0x58] sm:$0xf] %vm183_vm0, %v4932_v0  ;;  %v241_v3 = vld [vmem:[%s5035_s17 + $0x8] sm:$0xf] }
  0x14   : > { %209 = vst.msk [vmem:[#allocation2 + $0x60] sm:$0xf] %vm183_vm0, %v4932_v0  ;;  %210 = vst.msk [vmem:[#allocation2 + $0x64] sm:$0xf] %vm183_vm0, %v4932_v0  ;;  %v776_v4 = vld [vmem:[#allocation2] sm:$0xf] }
  0x15   : > { %212 = vst.msk [vmem:[#allocation2 + $0x6c] sm:$0xf] %vm183_vm0, %v4932_v0  ;;  %213 = vst.msk [vmem:[#allocation2 + $0x70] sm:$0xf] %vm183_vm0, %v4932_v0  ;;  %v777_v5 = vld [vmem:[#allocation2 + $0x4] sm:$0xf] }
  0x16   : > { %215 = vst.msk [vmem:[#allocation2 + $0x78] sm:$0xf] %vm183_vm0, %v4932_v0  ;;  %216 = vst.msk [vmem:[#allocation2 + $0x7c] sm:$0xf] %vm183_vm0, %v4932_v0  ;;  %v275_v6 = vshrl.u32 %v239_v1, 16  ;;  %v278_v7 = vshll.u32 %v239_v1, 16 }
  0x17   : > { %218 = vst.msk [vmem:[#allocation2 + $0x84] sm:$0xf] %vm183_vm0, %v4932_v0  ;;  %219 = vst.msk [vmem:[#allocation2 + $0x88] sm:$0xf] %vm183_vm0, %v4932_v0  ;;  %v828_v8 = vshrl.u32 %v776_v4, 16  ;;  %v831_v9 = vshll.u32 %v776_v4, 16 }
  0x18   : > { %221 = vst.msk [vmem:[#allocation2 + $0x90] sm:$0xf] %vm183_vm0, %v4932_v0  ;;  %222 = vst.msk [vmem:[#allocation2 + $0x94] sm:$0xf] %vm183_vm0, %v4932_v0  ;;  %v837_v10 = vshll.u32 %v777_v5, 16  ;;  %v841_v11 = vshrl.u32 %v777_v5, 16 }
  0x19   : > { %224 = vst.msk [vmem:[#allocation2 + $0x9c] sm:$0xf] %vm183_vm0, %v4932_v0  ;;  %225 = vst.msk [vmem:[#allocation2 + $0xa0] sm:$0xf] %vm183_vm0, %v4932_v0  ;;  %v277_v12 = vrot.slane %v275_v6, 7  ;;  %v283_v13 = vshrl.u32 %v240_v2, 16 }
  0x1a   : > { %227 = vst.msk [vmem:[#allocation2 + $0xa8] sm:$0xf] %vm183_vm0, %v4932_v0  ;;  %228 = vst.msk [vmem:[#allocation2 + $0xac] sm:$0xf] %vm183_vm0, %v4932_v0  ;;  %v286_v14 = vshll.u32 %v240_v2, 16  ;;  %v292_v16 = vshrl.u32 %v241_v3, 16 }
  0x1b   : > { %230 = vst.msk [vmem:[#allocation2 + $0xb4] sm:$0xf] %vm183_vm0, %v4932_v0  ;;  %231 = vst.msk [vmem:[#allocation2 + $0xb8] sm:$0xf] %vm183_vm0, %v4932_v0  ;;  %v830_v17 = vrot.slane %v828_v8, 4  ;;  %v833_v18 = vrot.slane %v831_v9, 5  ;;  %v280_v24 = vor.u32 %v278_v7, %v277_v12 }
  0x1c   : > { %233 = vst.msk [vmem:[#allocation2 + $0xc0] sm:$0xf] %vm183_vm0, %v4932_v0  ;;  %234 = vst.msk [vmem:[#allocation2 + $0xc4] sm:$0xf] %vm183_vm0, %v4932_v0  ;;  %v839_v19 = vrot.slane %v837_v10, 5  ;;  %v843_v20 = vrot.slane %v841_v11, 4 }
  0x1d   : > { %236 = vst.msk [vmem:[#allocation2 + $0xcc] sm:$0xf] %vm183_vm0, %v4932_v0  ;;  %237 = vst.msk [vmem:[#allocation2 + $0xd0] sm:$0xf] %vm183_vm0, %v4932_v0  ;;  %v598_v22 = vld [vmem:[#allocation2 + $0xc] sm:$0xf]  ;;  %v834_v28 = vor.u32 %v833_v18, %v830_v17 }
  0x1e   : > { %187 = vst.msk [vmem:[#allocation2 + $0x8] sm:$0x1] %vm186_vm1, %v4932_v0  ;;  %190 = vst.msk [vmem:[#allocation2 + $0x14] sm:$0x1] %vm186_vm1, %v4932_v0  ;;  %v281_v25 = vrot.slane %v277_v12, 4  ;;  %v285_v26 = vrot.slane %v283_v13, 7  ;;  %v844_v29 = vor.u32 %v843_v20, %v839_v19 }
  0x1f   : > { %193 = vst.msk [vmem:[#allocation2 + $0x20] sm:$0x1] %vm186_vm1, %v4932_v0  ;;  %196 = vst.msk [vmem:[#allocation2 + $0x2c] sm:$0x1] %vm186_vm1, %v4932_v0  ;;  %v242_v32 = vld [vmem:[%s5035_s17 + $0xc] sm:$0xf] }
  0x20   : > { %199 = vst.msk [vmem:[#allocation2 + $0x38] sm:$0x1] %vm186_vm1, %v4932_v0  ;;  %202 = vst.msk [vmem:[#allocation2 + $0x44] sm:$0x1] %vm186_vm1, %v4932_v0  ;;  %v294_v33 = vrot.slane %v292_v16, 7  ;;  %v295_v34 = vshll.u32 %v241_v3, 16  ;;  %v288_v36 = vor.u32 %v286_v14, %v285_v26 }
  0x21   : > { %205 = vst.msk [vmem:[#allocation2 + $0x50] sm:$0x1] %vm186_vm1, %v4932_v0  ;;  %208 = vst.msk [vmem:[#allocation2 + $0x5c] sm:$0x1] %vm186_vm1, %v4932_v0  ;;  %v290_v39 = vrot.slane %v285_v26, 4  ;;  %v835_v42 = vrot.slane %v834_v28, 4 }
  0x22   : > { %211 = vst.msk [vmem:[#allocation2 + $0x68] sm:$0x1] %vm186_vm1, %v4932_v0  ;;  %214 = vst.msk [vmem:[#allocation2 + $0x74] sm:$0x1] %vm186_vm1, %v4932_v0  ;;  %v607_v40 = vld [vmem:[#allocation2 + $0x18] sm:$0xf]  ;;  %v297_v44 = vor.u32 %v295_v34, %v294_v33 }
  0x23   : > { %217 = vst.msk [vmem:[#allocation2 + $0x80] sm:$0x1] %vm186_vm1, %v4932_v0  ;;  %220 = vst.msk [vmem:[#allocation2 + $0x8c] sm:$0x1] %vm186_vm1, %v4932_v0  ;;  %v243_v41 = vld [vmem:[%s5035_s17 + $0x10] sm:$0xf] }
  0x24   : > { %223 = vst.msk [vmem:[#allocation2 + $0x98] sm:$0x1] %vm186_vm1, %v4932_v0  ;;  %226 = vst.msk [vmem:[#allocation2 + $0xa4] sm:$0x1] %vm186_vm1, %v4932_v0  ;;  %v845_v43 = vrot.slane %v844_v29, 4  ;;  %v298_v45 = vrot.slane %v294_v33, 4 }
  0x25   : > { %229 = vst.msk [vmem:[#allocation2 + $0xb0] sm:$0x1] %vm186_vm1, %v4932_v0  ;;  %232 = vst.msk [vmem:[#allocation2 + $0xbc] sm:$0x1] %vm186_vm1, %v4932_v0  ;;  %v778_v15 = vld [vmem:[#allocation2 + $0x8] sm:$0x1] }
  0x26   : > { %235 = vst.msk [vmem:[#allocation2 + $0xc8] sm:$0x1] %vm186_vm1, %v4932_v0  ;;  %238 = vst.msk [vmem:[#allocation2 + $0xd4] sm:$0x1] %vm186_vm1, %v4932_v0  ;;  %v847_v27 = vshll.u32 %v778_v15, 16  ;;  %v300_v49 = vshrl.u32 %v242_v32, 16 }
  0x27   : > { %vm5042_vm7 = vmand %vm183_vm0, %vm596_vm6  ;;  %v604_v31 = vld [vmem:[#allocation2 + $0x14] sm:$0x1]  ;;  %v303_v50 = vshll.u32 %v242_v32, 16  ;;  %v245_v51 = vld [vmem:[%s5035_s17 + $0x18] sm:$0xf]  ;;  %v309_v55 = vshrl.u32 %v243_v41, 16 }
  0x28   : > { %vm5048_vm8 = vmor %vm271_vm4, %vm272_vm5  ;;  %v599_v37 = vsel %vm5042_vm7, %v280_v24, %v598_v22  ;;  %v849_v38 = vrot.slane %v847_v27, 5  ;;  %v244_v46 = vld [vmem:[%s5035_s17 + $0x14] sm:$0xf]  ;;  %v608_v54 = vsel %vm5042_vm7, %v297_v44, %v607_v40  ;;  %v246_v56 = vld [vmem:[%s5035_s17 + $0x1c] sm:$0xf]  ;;  %v302_v57 = vrot.slane %v300_v49, 7 }
  0x29   : > { %vm5054_vm9 = vmand %vm186_vm1, %vm271_vm4  ;;  %600 = vst [vmem:[#allocation2 + $0xc] sm:$0xf] %v599_v37  ;;  %v289_v47 = vsel %vm5048_vm8, %v281_v25, %v288_v36  ;;  %v312_v58 = vshll.u32 %v243_v41, 16  ;;  %v317_v59 = vshrl.u32 %v244_v46, 16  ;;  %v320_v60 = vshll.u32 %v244_v46, 16  ;;  %s4671_s8 = sshll.u32 %s6594_s13, 1 }
  0x2a   : > { %vm5061_vm10 = vmor %vm824_vm2, %vm825_vm3  ;;  %v605_v48 = vsel %vm5054_vm9, %v290_v39, %v604_v31  ;;  %601 = vst.msk [vmem:[#allocation2 + $0x10] sm:$0xf] %vm183_vm0, %v289_v47  ;;  %v611_v61 = vld [vmem:[#allocation2 + $0x20] sm:$0x1]  ;;  %v311_v62 = vrot.slane %v309_v55, 7  ;;  %v326_v63 = vshrl.u32 %v245_v51, 16  ;;  %v305_v2 = vor.u32 %v303_v50, %v302_v57  ;;  %s6472_s11 = scalar_lea.vmem %s6582_s3, %s4671_s8 }
  0x2b   : > { %v840_v52 = vsel %vm5061_vm10, %v835_v42, %v839_v19  ;;  %v850_v53 = vsel %vm5061_vm10, %v845_v43, %v849_v38  ;;  %606 = vst [vmem:[#allocation2 + $0x14] sm:$0x1] %v605_v48  ;;  %609 = vst [vmem:[#allocation2 + $0x18] sm:$0xf] %v608_v54  ;;  %v329_v0 = vshll.u32 %v245_v51, 16  ;;  %v334_v1 = vshrl.u32 %v246_v56, 16 }
  0x2c   : > { %1211 = vrot.lane.b32.xlu0 %v840_v52, %s4933_s18  ;;  %v307_v3 = vrot.slane %v302_v57, 4  ;;  %v319_v4 = vrot.slane %v317_v59, 7  ;;  %v614_v5 = vld [vmem:[#allocation2 + $0x24] sm:$0xf]  ;;  %v337_v6 = vshll.u32 %v246_v56, 16  ;;  %v314_v7 = vor.u32 %v312_v58, %v311_v62 }
  0x2d   : > { %v315_v8 = vrot.slane %v311_v62, 4  ;;  %v618_v9 = vld [vmem:[#allocation2 + $0x2c] sm:$0x1]  ;;  %v328_v10 = vrot.slane %v326_v63, 7  ;;  %v336_v11 = vrot.slane %v334_v1, 7  ;;  %v306_v13 = vsel %vm5048_vm8, %v298_v45, %v305_v2 }
  0x2e   : > { %v612_v14 = vsel %vm5054_vm9, %v307_v3, %v611_v61  ;;  %v322_v15 = vor.u32 %v320_v60, %v319_v4  ;;  %v324_v16 = vrot.slane %v319_v4, 4  ;;  %610 = vst.msk [vmem:[#allocation2 + $0x1c] sm:$0xf] %vm183_vm0, %v306_v13  ;;  %v615_v19 = vsel %vm5042_vm7, %v314_v7, %v614_v5  ;;  %v621_v22 = vld [vmem:[#allocation2 + $0x30] sm:$0xf] }
  0x2f   : > { %613 = vst [vmem:[#allocation2 + $0x20] sm:$0x1] %v612_v14  ;;  %v331_v20 = vor.u32 %v329_v0, %v328_v10  ;;  %616 = vst [vmem:[#allocation2 + $0x24] sm:$0xf] %v615_v19  ;;  %v332_v28 = vrot.slane %v328_v10, 4  ;;  %v339_v29 = vor.u32 %v337_v6, %v336_v11  ;;  %v341_v51 = vrot.slane %v336_v11, 4 }
  0x30   : > { %v779_v12 = vld [vmem:[#allocation2 + $0xc] sm:$0xf]  ;;  %1213 = vrot.lane.b32.xlu0 %v850_v53, %s4933_s18  ;;  %v323_v26 = vsel %vm5048_vm8, %v315_v8, %v322_v15  ;;  %v619_v27 = vsel %vm5054_vm9, %v324_v16, %v618_v9  ;;  %v5099_v41 = vld [vmem:[%s5035_s17 + $0x20] sm:$0xf]  ;;  %v625_v46 = vld [vmem:[#allocation2 + $0x38] sm:$0x1] }
  0x31   : > { %v852_v17 = vshrl.u32 %v779_v12, 16  ;;  %v855_v18 = vshll.u32 %v779_v12, 16  ;;  %v780_v24 = vld [vmem:[#allocation2 + $0x10] sm:$0xf]  ;;  %617 = vst.msk [vmem:[#allocation2 + $0x28] sm:$0xf] %vm183_vm0, %v323_v26  ;;  %v340_v40 = vsel %vm5048_vm8, %v332_v28, %v339_v29  ;;  %v622_v45 = vsel %vm5042_vm7, %v331_v20, %v621_v22 }
  0x32   : > { %v781_v25 = vld [vmem:[#allocation2 + $0x14] sm:$0x1]  ;;  %v861_v33 = vshll.u32 %v780_v24, 16  ;;  %v865_v34 = vshrl.u32 %v780_v24, 16  ;;  %v782_v36 = vld [vmem:[#allocation2 + $0x18] sm:$0xf]  ;;  %v626_v59 = vsel %vm5054_vm9, %v341_v51, %v625_v46 }
  0x33   : > { %v854_v31 = vrot.slane %v852_v17, 4  ;;  %v857_v32 = vrot.slane %v855_v18, 5  ;;  %620 = vst [vmem:[#allocation2 + $0x2c] sm:$0x1] %v619_v27  ;;  %v871_v37 = vshll.u32 %v781_v25, 16  ;;  %v876_v38 = vshrl.u32 %v782_v36, 16 }
  0x34   : > { %v879_v39 = vshll.u32 %v782_v36, 16  ;;  %v863_v43 = vrot.slane %v861_v33, 5  ;;  %v867_v44 = vrot.slane %v865_v34, 4  ;;  %624 = vst.msk [vmem:[#allocation2 + $0x34] sm:$0xf] %vm183_vm0, %v340_v40  ;;  %v343_v54 = vshrl.u32 %v5099_v41, 16 }
  0x35   : > { %v858_v42 = vor.u32 %v857_v32, %v854_v31  ;;  %v5105_v47 = vld [vmem:[%s5035_s17 + $0x24] sm:$0xf]  ;;  %v873_v48 = vrot.slane %v871_v37, 5  ;;  %v878_v49 = vrot.slane %v876_v38, 4  ;;  %623 = vst [vmem:[#allocation2 + $0x30] sm:$0xf] %v622_v45 }
  0x36   : > { %v881_v50 = vrot.slane %v879_v39, 5  ;;  %v868_v53 = vor.u32 %v867_v44, %v863_v43  ;;  %v346_v55 = vshll.u32 %v5099_v41, 16  ;;  %v783_v56 = vld [vmem:[#allocation2 + $0x1c] sm:$0xf]  ;;  %v784_v58 = vld [vmem:[#allocation2 + $0x20] sm:$0x1] }
  0x37   : > { %v859_v52 = vrot.slane %v858_v42, 4  ;;  %v351_v60 = vshrl.u32 %v5105_v47, 16  ;;  %v354_v61 = vshll.u32 %v5105_v47, 16  ;;  %v885_v0 = vshll.u32 %v783_v56, 16  ;;  %v785_v2 = vld [vmem:[#allocation2 + $0x24] sm:$0xf] }
  0x38   : > { %v882_v57 = vor.u32 %v881_v50, %v878_v49  ;;  %v869_v63 = vrot.slane %v868_v53, 4  ;;  %v889_v1 = vshrl.u32 %v783_v56, 16  ;;  %627 = vst [vmem:[#allocation2 + $0x38] sm:$0x1] %v626_v59  ;;  %v895_v4 = vshll.u32 %v784_v58, 16 }
  0x39   : > { %v864_v62 = vsel %vm5061_vm10, %v859_v52, %v863_v43  ;;  %v786_v5 = vld [vmem:[#allocation2 + $0x28] sm:$0xf]  ;;  %v900_v6 = vshrl.u32 %v785_v2, 16  ;;  %v903_v7 = vshll.u32 %v785_v2, 16  ;;  %v887_v9 = vrot.slane %v885_v0, 5 }
  0x3a   : > { %1215 = vrot.lane.b32.xlu1 %v864_v62, %s4933_s18  ;;  %v883_v3 = vrot.slane %v882_v57, 4  ;;  %v874_v8 = vsel %vm5061_vm10, %v869_v63, %v873_v48  ;;  %v891_v10 = vrot.slane %v889_v1, 4  ;;  %v909_v11 = vshll.u32 %v786_v5, 16  ;;  %v787_v12 = vld [vmem:[#allocation2 + $0x2c] sm:$0x1] }
  0x3b   : > { %v897_v13 = vrot.slane %v895_v4, 5  ;;  %v902_v14 = vrot.slane %v900_v6, 4  ;;  %v905_v15 = vrot.slane %v903_v7, 5  ;;  %v913_v16 = vshrl.u32 %v786_v5, 16  ;;  %v789_v17 = vld [vmem:[#allocation2 + $0x34] sm:$0xf] }
  0x3c   : > { %v888_v18 = vsel %vm5061_vm10, %v883_v3, %v887_v9  ;;  %v892_v19 = vor.u32 %v891_v10, %v887_v9  ;;  %v911_v20 = vrot.slane %v909_v11, 5  ;;  %v919_v22 = vshll.u32 %v787_v12, 16  ;;  %v788_v24 = vld [vmem:[#allocation2 + $0x30] sm:$0xf]  ;;  %v249_v34 = vld [vmem:[%s5035_s17 + $0x28] sm:$0xf] }
  0x3d   : > { %1219 = vrot.lane.b32.xlu0 %v888_v18, %s4933_s18  ;;  %v906_v25 = vor.u32 %v905_v15, %v902_v14  ;;  %v915_v26 = vrot.slane %v913_v16, 4  ;;  %v924_v27 = vshrl.u32 %v788_v24, 16  ;;  %v927_v28 = vshll.u32 %v788_v24, 16  ;;  %v628_v51 = vld [vmem:[#allocation2 + $0x3c] sm:$0xf] }
  0x3e   : > { %1217 = vrot.lane.b32.xlu1 %v874_v8, %s4933_s18  ;;  %v893_v29 = vrot.slane %v892_v19, 4  ;;  %v921_v31 = vrot.slane %v919_v22, 5  ;;  %v933_v32 = vshll.u32 %v789_v17, 16  ;;  %v937_v33 = vshrl.u32 %v789_v17, 16  ;;  %v250_v57 = vld [vmem:[%s5035_s17 + $0x2c] sm:$0xf] }
  0x3f   : > { %v907_v36 = vrot.slane %v906_v25, 4  ;;  %v916_v37 = vor.u32 %v915_v26, %v911_v20  ;;  %v926_v38 = vrot.slane %v924_v27, 4  ;;  %v929_v39 = vrot.slane %v927_v28, 5  ;;  %v790_v40 = vld [vmem:[#allocation2 + $0x38] sm:$0x1] }
  0x40   : > { %v898_v42 = vsel %vm5061_vm10, %v893_v29, %v897_v13  ;;  %v935_v43 = vrot.slane %v933_v32, 5  ;;  %v939_v44 = vrot.slane %v937_v33, 4  ;;  %v943_v45 = vshll.u32 %v790_v40, 16  ;;  %v253_v8 = vld [vmem:[%s5035_s17 + $0x38] sm:$0xf] }
  0x41   : > { %v912_v46 = vsel %vm5061_vm10, %v907_v36, %v911_v20  ;;  %v917_v48 = vrot.slane %v916_v37, 4  ;;  %v930_v49 = vor.u32 %v929_v39, %v926_v38  ;;  %v345_v50 = vrot.slane %v343_v54, 7  ;;  %v632_v54 = vld [vmem:[#allocation2 + $0x44] sm:$0x1]  ;;  %v635_v11 = vld [vmem:[#allocation2 + $0x48] sm:$0xf] }
  0x42   : > { %1221 = vrot.lane.b32.xlu1 %v898_v42, %s4933_s18  ;;  %1223 = vrot.lane.b32.xlu0 %v912_v46, %s4933_s18  ;;  %v940_v52 = vor.u32 %v939_v44, %v935_v43  ;;  %v945_v53 = vrot.slane %v943_v45, 5  ;;  %v353_v56 = vrot.slane %v351_v60, 7  ;;  %v360_v58 = vshrl.u32 %v249_v34, 16  ;;  %v251_v60 = vld [vmem:[%s5035_s17 + $0x30] sm:$0xf] }
  0x43   : > { %v922_v59 = vsel %vm5061_vm10, %v917_v48, %v921_v31  ;;  %v931_v62 = vrot.slane %v930_v49, 4  ;;  %v348_v63 = vor.u32 %v346_v55, %v345_v50  ;;  %v349_v0 = vrot.slane %v345_v50, 4  ;;  %v252_v55 = vld [vmem:[%s5035_s17 + $0x34] sm:$0xf]  ;;  %v254_v16 = vld [vmem:[%s5035_s17 + $0x3c] sm:$0xf] }
  0x44   : > { %v941_v1 = vrot.slane %v940_v52, 4  ;;  %v356_v2 = vor.u32 %v354_v61, %v353_v56  ;;  %v358_v3 = vrot.slane %v353_v56, 4  ;;  %v362_v4 = vrot.slane %v360_v58, 7  ;;  %v639_v17 = vld [vmem:[#allocation2 + $0x50] sm:$0x1] }
  0x45   : > { %v936_v5 = vsel %vm5061_vm10, %v931_v62, %v935_v43  ;;  %v629_v6 = vsel %vm5042_vm7, %v348_v63, %v628_v51  ;;  %v363_v7 = vshll.u32 %v249_v34, 16  ;;  %v368_v41 = vshrl.u32 %v250_v57, 16  ;;  %v642_v28 = vld [vmem:[#allocation2 + $0x54] sm:$0xf]  ;;  %v255_v34 = vld [vmem:[%s5035_s17 + $0x40] sm:$0xf] }
  0x46   : > { %1225 = vrot.lane.b32.xlu1 %v922_v59, %s4933_s18  ;;  %1227 = vrot.lane.b32.xlu0 %v936_v5, %s4933_s18  ;;  %v946_v47 = vsel %vm5061_vm10, %v941_v1, %v945_v53  ;;  %v357_v61 = vsel %vm5048_vm8, %v349_v0, %v356_v2  ;;  %630 = vst [vmem:[#allocation2 + $0x3c] sm:$0xf] %v629_v6  ;;  %v366_v10 = vrot.slane %v362_v4, 4  ;;  %v371_v14 = vshll.u32 %v250_v57, 16  ;;  %v646_v40 = vld [vmem:[#allocation2 + $0x5c] sm:$0x1] }
  0x47   : > { %v633_v9 = vsel %vm5054_vm9, %v358_v3, %v632_v54  ;;  %631 = vst.msk [vmem:[#allocation2 + $0x40] sm:$0xf] %vm183_vm0, %v357_v61  ;;  %v365_v12 = vor.u32 %v363_v7, %v362_v4  ;;  %v370_v13 = vrot.slane %v368_v41, 7  ;;  %v377_v15 = vshrl.u32 %v251_v60, 16  ;;  %v649_v46 = vld [vmem:[#allocation2 + $0x60] sm:$0xf] }
  0x48   : > { %634 = vst [vmem:[#allocation2 + $0x44] sm:$0x1] %v633_v9  ;;  %v380_v18 = vshll.u32 %v251_v60, 16  ;;  %v385_v19 = vshrl.u32 %v252_v55, 16  ;;  %v388_v20 = vshll.u32 %v252_v55, 16  ;;  %v394_v22 = vshrl.u32 %v253_v8, 16 }
  0x49   : > { %v373_v24 = vor.u32 %v371_v14, %v370_v13  ;;  %v636_v25 = vsel %vm5042_vm7, %v365_v12, %v635_v11  ;;  %v375_v26 = vrot.slane %v370_v13, 4  ;;  %v379_v27 = vrot.slane %v377_v15, 7  ;;  %v653_v2 = vld [vmem:[#allocation2 + $0x68] sm:$0x1] }
  0x4a   : > { %1229 = vrot.lane.b32.xlu1 %v946_v47, %s4933_s18  ;;  %637 = vst [vmem:[#allocation2 + $0x48] sm:$0xf] %v636_v25  ;;  %v387_v29 = vrot.slane %v385_v19, 7  ;;  %v396_v31 = vrot.slane %v394_v22, 7  ;;  %v397_v32 = vshll.u32 %v253_v8, 16  ;;  %v402_v33 = vshrl.u32 %v254_v16, 16 }
  0x4b   : > { %v374_v36 = vsel %vm5048_vm8, %v366_v10, %v373_v24  ;;  %v640_v37 = vsel %vm5054_vm9, %v375_v26, %v639_v17  ;;  %v382_v38 = vor.u32 %v380_v18, %v379_v27  ;;  %v383_v39 = vrot.slane %v379_v27, 4 }
  0x4c   : > { %638 = vst.msk [vmem:[#allocation2 + $0x4c] sm:$0xf] %vm183_vm0, %v374_v36  ;;  %641 = vst [vmem:[#allocation2 + $0x50] sm:$0x1] %v640_v37  ;;  %v390_v42 = vor.u32 %v388_v20, %v387_v29  ;;  %v392_v43 = vrot.slane %v387_v29, 4  ;;  %v399_v44 = vor.u32 %v397_v32, %v396_v31  ;;  %v400_v45 = vrot.slane %v396_v31, 4 }
  0x4d   : > { %v791_v48 = vld [vmem:[#allocation2 + $0x3c] sm:$0xf]  ;;  %v643_v49 = vsel %vm5042_vm7, %v382_v38, %v642_v28  ;;  %v404_v50 = vrot.slane %v402_v33, 7  ;;  %v405_v51 = vshll.u32 %v254_v16, 16  ;;  %v411_v52 = vshrl.u32 %v255_v34, 16 }
  0x4e   : > { %v792_v53 = vld [vmem:[#allocation2 + $0x40] sm:$0xf]  ;;  %v948_v56 = vshrl.u32 %v791_v48, 16  ;;  %v951_v57 = vshll.u32 %v791_v48, 16  ;;  %v391_v59 = vsel %vm5048_vm8, %v383_v39, %v390_v42  ;;  %644 = vst [vmem:[#allocation2 + $0x54] sm:$0xf] %v643_v49  ;;  %v647_v62 = vsel %vm5054_vm9, %v392_v43, %v646_v40 }
  0x4f   : > { %v793_v58 = vld [vmem:[#allocation2 + $0x44] sm:$0x1]  ;;  %v957_v63 = vshll.u32 %v792_v53, 16  ;;  %v961_v0 = vshrl.u32 %v792_v53, 16  ;;  %645 = vst.msk [vmem:[#allocation2 + $0x58] sm:$0xf] %vm183_vm0, %v391_v59  ;;  %v407_v1 = vor.u32 %v405_v51, %v404_v50  ;;  %v650_v60 = vsel %vm5042_vm7, %v399_v44, %v649_v46 }
  0x50   : > { %v967_v54 = vshll.u32 %v793_v58, 16  ;;  %648 = vst [vmem:[#allocation2 + $0x5c] sm:$0x1] %v647_v62  ;;  %v950_v3 = vrot.slane %v948_v56, 4  ;;  %v953_v4 = vrot.slane %v951_v57, 5  ;;  %v409_v5 = vrot.slane %v404_v50, 4 }
  0x51   : > { %v959_v6 = vrot.slane %v957_v63, 5  ;;  %v963_v7 = vrot.slane %v961_v0, 4  ;;  %v794_v55 = vld [vmem:[#allocation2 + $0x48] sm:$0xf]  ;;  %v408_v8 = vsel %vm5048_vm8, %v400_v45, %v407_v1  ;;  %651 = vst [vmem:[#allocation2 + $0x60] sm:$0xf] %v650_v60 }
  0x52   : > { %v969_v41 = vrot.slane %v967_v54, 5  ;;  %v954_v47 = vor.u32 %v953_v4, %v950_v3  ;;  %v972_v61 = vshrl.u32 %v794_v55, 16  ;;  %v975_v9 = vshll.u32 %v794_v55, 16  ;;  %652 = vst.msk [vmem:[#allocation2 + $0x64] sm:$0xf] %vm183_vm0, %v408_v8 }
  0x53   : > { %v654_v10 = vsel %vm5054_vm9, %v409_v5, %v653_v2  ;;  %v964_v11 = vor.u32 %v963_v7, %v959_v6  ;;  %v795_v12 = vld [vmem:[#allocation2 + $0x4c] sm:$0xf]  ;;  %v796_v13 = vld [vmem:[#allocation2 + $0x50] sm:$0x1]  ;;  %v5176_v14 = vrot.slane %v411_v52, 7  ;;  %v414_v15 = vshll.u32 %v255_v34, 16 }
  0x54   : > { %655 = vst [vmem:[#allocation2 + $0x68] sm:$0x1] %v654_v10  ;;  %v955_v16 = vrot.slane %v954_v47, 4  ;;  %v974_v17 = vrot.slane %v972_v61, 4  ;;  %v977_v18 = vrot.slane %v975_v9, 5  ;;  %v981_v19 = vshll.u32 %v795_v12, 16 }
  0x55   : > { %v965_v20 = vrot.slane %v964_v11, 4  ;;  %v985_v22 = vshrl.u32 %v795_v12, 16  ;;  %v991_v24 = vshll.u32 %v796_v13, 16  ;;  %v797_v25 = vld [vmem:[#allocation2 + $0x54] sm:$0xf]  ;;  %v416_v26 = vor.u32 %v414_v15, %v5176_v14 }
  0x56   : > { %v960_v27 = vsel %vm5061_vm10, %v955_v16, %v959_v6  ;;  %v978_v28 = vor.u32 %v977_v18, %v974_v17  ;;  %v983_v29 = vrot.slane %v981_v19, 5  ;;  %v798_v31 = vld [vmem:[#allocation2 + $0x58] sm:$0xf]  ;;  %v996_v32 = vshrl.u32 %v797_v25, 16  ;;  %v256_v0 = vld [vmem:[%s5035_s17 + $0x44] sm:$0xf] }
  0x57   : > { %v799_v33 = vld [vmem:[#allocation2 + $0x5c] sm:$0x1]  ;;  %1231 = vrot.lane.b32.xlu0 %v960_v27, %s4933_s18  ;;  %v970_v34 = vsel %vm5061_vm10, %v965_v20, %v969_v41  ;;  %v987_v36 = vrot.slane %v985_v22, 4  ;;  %v993_v37 = vrot.slane %v991_v24, 5  ;;  %v999_v38 = vshll.u32 %v797_v25, 16 }
  0x58   : > { %1233 = vrot.lane.b32.xlu1 %v970_v34, %s4933_s18  ;;  %v979_v39 = vrot.slane %v978_v28, 4  ;;  %v998_v40 = vrot.slane %v996_v32, 4  ;;  %v1005_v42 = vshll.u32 %v798_v31, 16  ;;  %v1009_v43 = vshrl.u32 %v798_v31, 16  ;;  %v800_v44 = vld [vmem:[#allocation2 + $0x60] sm:$0xf] }
  0x59   : > { %v988_v45 = vor.u32 %v987_v36, %v983_v29  ;;  %v1001_v46 = vrot.slane %v999_v38, 5  ;;  %v1015_v48 = vshll.u32 %v799_v33, 16  ;;  %v801_v49 = vld [vmem:[#allocation2 + $0x64] sm:$0xf]  ;;  %v1020_v50 = vshrl.u32 %v800_v44, 16 }
  0x5a   : > { %v984_v51 = vsel %vm5061_vm10, %v979_v39, %v983_v29  ;;  %v1007_v52 = vrot.slane %v1005_v42, 5  ;;  %v1011_v53 = vrot.slane %v1009_v43, 4  ;;  %v1023_v56 = vshll.u32 %v800_v44, 16  ;;  %v656_v4 = vld [vmem:[#allocation2 + $0x6c] sm:$0xf] }
  0x5b   : > { %v802_v57 = vld [vmem:[#allocation2 + $0x68] sm:$0x1]  ;;  %1235 = vrot.lane.b32.xlu0 %v984_v51, %s4933_s18  ;;  %v989_v58 = vrot.slane %v988_v45, 4  ;;  %v1002_v59 = vor.u32 %v1001_v46, %v998_v40  ;;  %v1017_v62 = vrot.slane %v1015_v48, 5  ;;  %v1022_v63 = vrot.slane %v1020_v50, 4 }
  0x5c   : > { %v1012_v54 = vor.u32 %v1011_v53, %v1007_v52  ;;  %v1025_v1 = vrot.slane %v1023_v56, 5  ;;  %v1029_v2 = vshll.u32 %v801_v49, 16  ;;  %v1033_v3 = vshrl.u32 %v801_v49, 16  ;;  %v257_v41 = vld [vmem:[%s5035_s17 + $0x48] sm:$0xf] }
  0x5d   : > { %v994_v60 = vsel %vm5061_vm10, %v989_v58, %v993_v37  ;;  %v1003_v5 = vrot.slane %v1002_v59, 4  ;;  %v1039_v6 = vshll.u32 %v802_v57, 16  ;;  %v417_v7 = vrot.slane %v5176_v14, 4  ;;  %v258_v9 = vld [vmem:[%s5035_s17 + $0x4c] sm:$0xf] }
  0x5e   : > { %1237 = vrot.lane.b32.xlu1 %v994_v60, %s4933_s18  ;;  %v1013_v55 = vrot.slane %v1012_v54, 4  ;;  %v1026_v8 = vor.u32 %v1025_v1, %v1022_v63  ;;  %v1031_v47 = vrot.slane %v1029_v2, 5  ;;  %v1035_v61 = vrot.slane %v1033_v3, 4  ;;  %v259_v15 = vld [vmem:[%s5035_s17 + $0x50] sm:$0xf] }
  0x5f   : > { %v1008_v10 = vsel %vm5061_vm10, %v1003_v5, %v1007_v52  ;;  %v1041_v11 = vrot.slane %v1039_v6, 5  ;;  %v419_v12 = vshrl.u32 %v256_v0, 16  ;;  %v422_v13 = vshll.u32 %v256_v0, 16  ;;  %v260_v25 = vld [vmem:[%s5035_s17 + $0x54] sm:$0xf] }
  0x60   : > { %1239 = vrot.lane.b32.xlu0 %v1008_v10, %s4933_s18  ;;  %v1018_v14 = vsel %vm5061_vm10, %v1013_v55, %v1017_v62  ;;  %v1027_v16 = vrot.slane %v1026_v8, 4  ;;  %v1036_v17 = vor.u32 %v1035_v61, %v1031_v47  ;;  %v657_v18 = vsel %vm5042_vm7, %v416_v26, %v656_v4  ;;  %v660_v29 = vld [vmem:[#allocation2 + $0x74] sm:$0x1]  ;;  %v663_v37 = vld [vmem:[#allocation2 + $0x78] sm:$0xf] }
  0x61   : > { %v421_v19 = vrot.slane %v419_v12, 7  ;;  %658 = vst [vmem:[#allocation2 + $0x6c] sm:$0xf] %v657_v18  ;;  %v428_v20 = vshrl.u32 %v257_v41, 16  ;;  %v431_v22 = vshll.u32 %v257_v41, 16  ;;  %v436_v24 = vshrl.u32 %v258_v9, 16 }
  0x62   : > { %1241 = vrot.lane.b32.xlu1 %v1018_v14, %s4933_s18  ;;  %v1032_v27 = vsel %vm5061_vm10, %v1027_v16, %v1031_v47  ;;  %v1037_v28 = vrot.slane %v1036_v17, 4  ;;  %v439_v31 = vshll.u32 %v258_v9, 16  ;;  %v445_v32 = vshrl.u32 %v259_v15, 16  ;;  %v261_v43 = vld [vmem:[%s5035_s17 + $0x58] sm:$0xf] }
  0x63   : > { %v424_v33 = vor.u32 %v422_v13, %v421_v19  ;;  %v426_v34 = vrot.slane %v421_v19, 4  ;;  %v430_v36 = vrot.slane %v428_v20, 7  ;;  %v438_v26 = vrot.slane %v436_v24, 7  ;;  %v667_v49 = vld [vmem:[#allocation2 + $0x80] sm:$0x1] }
  0x64   : > { %1243 = vrot.lane.b32.xlu0 %v1032_v27, %s4933_s18  ;;  %v1042_v38 = vsel %vm5061_vm10, %v1037_v28, %v1041_v11  ;;  %v447_v39 = vrot.slane %v445_v32, 7  ;;  %v448_v40 = vshll.u32 %v259_v15, 16  ;;  %v453_v42 = vshrl.u32 %v260_v25, 16  ;;  %v670_v50 = vld [vmem:[#allocation2 + $0x84] sm:$0xf] }
  0x65   : > { %v425_v44 = vsel %vm5048_vm8, %v417_v7, %v424_v33  ;;  %v661_v45 = vsel %vm5054_vm9, %v426_v34, %v660_v29  ;;  %v433_v46 = vor.u32 %v431_v22, %v430_v36  ;;  %v434_v48 = vrot.slane %v430_v36, 4  ;;  %v262_v57 = vld [vmem:[%s5035_s17 + $0x5c] sm:$0xf]  ;;  %v263_v0 = vld [vmem:[%s5035_s17 + $0x60] sm:$0xf] }
  0x66   : > { %1245 = vrot.lane.b32.xlu1 %v1042_v38, %s4933_s18  ;;  %659 = vst.msk [vmem:[#allocation2 + $0x70] sm:$0xf] %vm183_vm0, %v425_v44  ;;  %662 = vst [vmem:[#allocation2 + $0x74] sm:$0x1] %v661_v45  ;;  %v441_v51 = vor.u32 %v439_v31, %v438_v26  ;;  %v443_v52 = vrot.slane %v438_v26, 4  ;;  %v450_v53 = vor.u32 %v448_v40, %v447_v39  ;;  %v451_v56 = vrot.slane %v447_v39, 4 }
  0x67   : > { %v664_v58 = vsel %vm5042_vm7, %v433_v46, %v663_v37  ;;  %v455_v59 = vrot.slane %v453_v42, 7  ;;  %v456_v62 = vshll.u32 %v260_v25, 16  ;;  %v462_v63 = vshrl.u32 %v261_v43, 16  ;;  %v674_v4 = vld [vmem:[#allocation2 + $0x8c] sm:$0x1] }
  0x68   : > { %v803_v54 = vld [vmem:[#allocation2 + $0x6c] sm:$0xf]  ;;  %v442_v1 = vsel %vm5048_vm8, %v434_v48, %v441_v51  ;;  %665 = vst [vmem:[#allocation2 + $0x78] sm:$0xf] %v664_v58  ;;  %v668_v2 = vsel %vm5054_vm9, %v443_v52, %v667_v49  ;;  %v671_v3 = vsel %vm5042_vm7, %v450_v53, %v670_v50  ;;  %v465_v60 = vshll.u32 %v261_v43, 16 }
  0x69   : > { %v1044_v5 = vshrl.u32 %v803_v54, 16  ;;  %v1047_v6 = vshll.u32 %v803_v54, 16  ;;  %666 = vst.msk [vmem:[#allocation2 + $0x7c] sm:$0xf] %vm183_vm0, %v442_v1  ;;  %669 = vst [vmem:[#allocation2 + $0x80] sm:$0x1] %v668_v2  ;;  %v458_v7 = vor.u32 %v456_v62, %v455_v59 }
  0x6a   : > { %672 = vst [vmem:[#allocation2 + $0x84] sm:$0xf] %v671_v3  ;;  %v460_v41 = vrot.slane %v455_v59, 4  ;;  %v464_v55 = vrot.slane %v462_v63, 7  ;;  %v470_v8 = vshrl.u32 %v262_v57, 16  ;;  %v473_v47 = vshll.u32 %v262_v57, 16 }
  0x6b   : > { %v5229_v61 = vld [vmem:[%s5035_s17 + $0x64] sm:$0xf]  ;;  %v479_v9 = vshrl.u32 %v263_v0, 16  ;;  %v1046_v10 = vrot.slane %v1044_v5, 4  ;;  %v1049_v11 = vrot.slane %v1047_v6, 5  ;;  %v459_v12 = vsel %vm5048_vm8, %v451_v56, %v458_v7 }
  0x6c   : > { %v675_v13 = vsel %vm5054_vm9, %v460_v41, %v674_v4  ;;  %673 = vst.msk [vmem:[#allocation2 + $0x88] sm:$0xf] %vm183_vm0, %v459_v12  ;;  %v467_v15 = vor.u32 %v465_v60, %v464_v55  ;;  %v468_v14 = vrot.slane %v464_v55, 4  ;;  %v472_v16 = vrot.slane %v470_v8, 7  ;;  %v677_v17 = vld [vmem:[#allocation2 + $0x90] sm:$0xf] }
  0x6d   : > { %676 = vst [vmem:[#allocation2 + $0x8c] sm:$0x1] %v675_v13  ;;  %v5236_v18 = vrot.slane %v479_v9, 7  ;;  %v804_v19 = vld [vmem:[#allocation2 + $0x70] sm:$0xf]  ;;  %v1050_v20 = vor.u32 %v1049_v11, %v1046_v10  ;;  %v482_v24 = vshll.u32 %v263_v0, 16 }
  0x6e   : > { %v805_v22 = vld [vmem:[#allocation2 + $0x74] sm:$0x1]  ;;  %v487_v25 = vshrl.u32 %v5229_v61, 16  ;;  %v1053_v27 = vshll.u32 %v804_v19, 16  ;;  %v1057_v28 = vshrl.u32 %v804_v19, 16  ;;  %v475_v31 = vor.u32 %v473_v47, %v472_v16 }
  0x6f   : > { %v1063_v29 = vshll.u32 %v805_v22, 16  ;;  %v1051_v32 = vrot.slane %v1050_v20, 4  ;;  %v806_v33 = vld [vmem:[#allocation2 + $0x78] sm:$0xf]  ;;  %v678_v34 = vsel %vm5042_vm7, %v467_v15, %v677_v17  ;;  %v477_v36 = vrot.slane %v472_v16, 4 }
  0x70   : > { %v5242_v26 = vor.u32 %v482_v24, %v5236_v18  ;;  %v1055_v37 = vrot.slane %v1053_v27, 5  ;;  %v1059_v38 = vrot.slane %v1057_v28, 4  ;;  %v807_v40 = vld [vmem:[#allocation2 + $0x7c] sm:$0xf]  ;;  %v1068_v42 = vshrl.u32 %v806_v33, 16 }
  0x71   : > { %v1065_v39 = vrot.slane %v1063_v29, 5  ;;  %679 = vst [vmem:[#allocation2 + $0x90] sm:$0xf] %v678_v34  ;;  %v1071_v43 = vshll.u32 %v806_v33, 16  ;;  %v1077_v44 = vshll.u32 %v807_v40, 16  ;;  %v1081_v45 = vshrl.u32 %v807_v40, 16 }
  0x72   : > { %v808_v46 = vld [vmem:[#allocation2 + $0x80] sm:$0x1]  ;;  %v476_v48 = vsel %vm5048_vm8, %v468_v14, %v475_v31  ;;  %v1056_v49 = vsel %vm5061_vm10, %v1051_v32, %v1055_v37  ;;  %v1060_v50 = vor.u32 %v1059_v38, %v1055_v37  ;;  %v1070_v51 = vrot.slane %v1068_v42, 4  ;;  %v809_v53 = vld [vmem:[#allocation2 + $0x84] sm:$0xf] }
  0x73   : > { %v1087_v52 = vshll.u32 %v808_v46, 16  ;;  %680 = vst.msk [vmem:[#allocation2 + $0x94] sm:$0xf] %vm183_vm0, %v476_v48  ;;  %v681_v56 = vld [vmem:[#allocation2 + $0x98] sm:$0x1]  ;;  %1247 = vrot.lane.b32.xlu0 %v1056_v49, %s4933_s18  ;;  %v1073_v57 = vrot.slane %v1071_v43, 5 }
  0x74   : > { %v1079_v58 = vrot.slane %v1077_v44, 5  ;;  %v1083_v59 = vrot.slane %v1081_v45, 4  ;;  %v810_v62 = vld [vmem:[#allocation2 + $0x88] sm:$0xf]  ;;  %v1092_v63 = vshrl.u32 %v809_v53, 16  ;;  %v1061_v0 = vrot.slane %v1060_v50, 4 }
  0x75   : > { %v1089_v54 = vrot.slane %v1087_v52, 5  ;;  %v1095_v1 = vshll.u32 %v809_v53, 16  ;;  %v1101_v2 = vshll.u32 %v810_v62, 16  ;;  %v811_v3 = vld [vmem:[#allocation2 + $0x8c] sm:$0x1]  ;;  %v1074_v4 = vor.u32 %v1073_v57, %v1070_v51 }
  0x76   : > { %v1084_v60 = vor.u32 %v1083_v59, %v1079_v58  ;;  %v1094_v5 = vrot.slane %v1092_v63, 4  ;;  %v1105_v6 = vshrl.u32 %v810_v62, 16  ;;  %v1066_v7 = vsel %vm5061_vm10, %v1061_v0, %v1065_v39  ;;  %v684_v27 = vld [vmem:[#allocation2 + $0x9c] sm:$0xf]  ;;  %v265_v33 = vld [vmem:[%s5035_s17 + $0x68] sm:$0xf] }
  0x77   : > { %v1097_v41 = vrot.slane %v1095_v1, 5  ;;  %v1103_v55 = vrot.slane %v1101_v2, 5  ;;  %v1111_v8 = vshll.u32 %v811_v3, 16  ;;  %1249 = vrot.lane.b32.xlu1 %v1066_v7, %s4933_s18  ;;  %v1075_v47 = vrot.slane %v1074_v4, 4  ;;  %v266_v39 = vld [vmem:[%s5035_s17 + $0x6c] sm:$0xf] }
  0x78   : > { %v1085_v9 = vrot.slane %v1084_v60, 4  ;;  %v1107_v10 = vrot.slane %v1105_v6, 4  ;;  %v812_v11 = vld [vmem:[#allocation2 + $0x90] sm:$0xf]  ;;  %v682_v12 = vsel %vm5054_vm9, %v477_v36, %v681_v56  ;;  %v485_v24 = vrot.slane %v5236_v18, 4 }
  0x79   : > { %v1098_v13 = vor.u32 %v1097_v41, %v1094_v5  ;;  %v1113_v15 = vrot.slane %v1111_v8, 5  ;;  %v1116_v14 = vshrl.u32 %v812_v11, 16  ;;  %v1119_v16 = vshll.u32 %v812_v11, 16  ;;  %683 = vst [vmem:[#allocation2 + $0x98] sm:$0x1] %v682_v12 }
  0x7a   : > { %v1080_v17 = vsel %vm5061_vm10, %v1075_v47, %v1079_v58  ;;  %v1090_v19 = vsel %vm5061_vm10, %v1085_v9, %v1089_v54  ;;  %v1108_v20 = vor.u32 %v1107_v10, %v1103_v55  ;;  %v813_v22 = vld [vmem:[#allocation2 + $0x94] sm:$0xf]  ;;  %v489_v37 = vrot.slane %v487_v25, 7  ;;  %v688_v44 = vld [vmem:[#allocation2 + $0xa4] sm:$0x1] }
  0x7b   : > { %1251 = vrot.lane.b32.xlu0 %v1080_v17, %s4933_s18  ;;  %v1099_v28 = vrot.slane %v1098_v13, 4  ;;  %v1118_v29 = vrot.slane %v1116_v14, 4  ;;  %v1121_v31 = vrot.slane %v1119_v16, 5  ;;  %v1125_v32 = vshll.u32 %v813_v22, 16  ;;  %1253 = vrot.lane.b32.xlu1 %v1090_v19, %s4933_s18  ;;  %v268_v53 = vld [vmem:[%s5035_s17 + $0x74] sm:$0xf] }
  0x7c   : > { %v1109_v34 = vrot.slane %v1108_v20, 4  ;;  %v1129_v36 = vshrl.u32 %v813_v22, 16  ;;  %v490_v38 = vshll.u32 %v5229_v61, 16  ;;  %v685_v43 = vsel %vm5042_vm7, %v5242_v26, %v684_v27  ;;  %v267_v61 = vld [vmem:[%s5035_s17 + $0x70] sm:$0xf] }
  0x7d   : > { %v1104_v18 = vsel %vm5061_vm10, %v1099_v28, %v1103_v55  ;;  %v1122_v40 = vor.u32 %v1121_v31, %v1118_v29  ;;  %v1127_v42 = vrot.slane %v1125_v32, 5  ;;  %686 = vst [vmem:[#allocation2 + $0x9c] sm:$0xf] %v685_v43  ;;  %v494_v25 = vrot.slane %v489_v37, 4  ;;  %v691_v1 = vld [vmem:[#allocation2 + $0xa8] sm:$0xf] }
  0x7e   : > { %v1114_v45 = vsel %vm5061_vm10, %v1109_v34, %v1113_v15  ;;  %v1131_v46 = vrot.slane %v1129_v36, 4  ;;  %v492_v48 = vor.u32 %v490_v38, %v489_v37  ;;  %v496_v50 = vshrl.u32 %v265_v33, 16  ;;  %v712_v5 = vld [vmem:[#allocation2] sm:$0xf]  ;;  %v695_v8 = vld [vmem:[#allocation2 + $0xb0] sm:$0x1] }
  0x7f   : > { %1255 = vrot.lane.b32.xlu0 %v1104_v18, %s4933_s18  ;;  %v1123_v49 = vrot.slane %v1122_v40, 4  ;;  %v499_v51 = vshll.u32 %v265_v33, 16  ;;  %v504_v52 = vshrl.u32 %v266_v39, 16  ;;  %1257 = vrot.lane.b32.xlu1 %v1114_v45, %s4933_s18  ;;  %v689_v58 = vsel %vm5054_vm9, %v494_v25, %v688_v44  ;;  %744 = vst.msk [vmem:[#allocation3] sm:$0xf] %vm183_vm0, %v712_v5 }
  0x80   : > { %v814_v56 = vld [vmem:[#allocation2 + $0x98] sm:$0x1]  ;;  %v1132_v26 = vor.u32 %v1131_v46, %v1127_v42  ;;  %v493_v57 = vsel %vm5048_vm8, %v485_v24, %v492_v48  ;;  %v507_v59 = vshll.u32 %v266_v39, 16  ;;  %690 = vst [vmem:[#allocation2 + $0xa4] sm:$0x1] %v689_v58  ;;  %v498_v0 = vrot.slane %v496_v50, 7 }
  0x81   : > { %v1128_v62 = vsel %vm5061_vm10, %v1123_v49, %v1127_v42  ;;  %v1135_v63 = vshll.u32 %v814_v56, 16  ;;  %687 = vst.msk [vmem:[#allocation2 + $0xa0] sm:$0xf] %vm183_vm0, %v493_v57  ;;  %v506_v54 = vrot.slane %v504_v52, 7  ;;  %v513_v3 = vshrl.u32 %v267_v61, 16 }
  0x82   : > { %v1133_v2 = vrot.slane %v1132_v26, 4  ;;  %v516_v4 = vshll.u32 %v267_v61, 16  ;;  %v521_v60 = vshrl.u32 %v268_v53, 16  ;;  %v501_v7 = vor.u32 %v499_v51, %v498_v0  ;;  %v714_v47 = vld [vmem:[#allocation2 + $0xc] sm:$0xf] }
  0x83   : > { %1259 = vrot.lane.b32.xlu0 %v1128_v62, %s4933_s18  ;;  %v1137_v6 = vrot.slane %v1135_v63, 5  ;;  %v502_v41 = vrot.slane %v498_v0, 4  ;;  %v509_v55 = vor.u32 %v507_v59, %v506_v54  ;;  %v511_v9 = vrot.slane %v506_v54, 4  ;;  %746 = vst.msk [vmem:[#allocation3 + $0x8] sm:$0xf] %vm183_vm0, %v714_v47 }
  0x84   : > { %v515_v10 = vrot.slane %v513_v3, 7  ;;  %v523_v11 = vrot.slane %v521_v60, 7  ;;  %v524_v12 = vshll.u32 %v268_v53, 16  ;;  %v815_v15 = vld [vmem:[#allocation2 + $0x9c] sm:$0xf]  ;;  %v692_v16 = vsel %vm5042_vm7, %v501_v7, %v691_v1 }
  0x85   : > { %v1138_v13 = vsel %vm5061_vm10, %v1133_v2, %v1137_v6  ;;  %v510_v14 = vsel %vm5048_vm8, %v502_v41, %v509_v55  ;;  %v698_v17 = vld [vmem:[#allocation2 + $0xb4] sm:$0xf]  ;;  %v1140_v19 = vshrl.u32 %v815_v15, 16  ;;  %v1143_v20 = vshll.u32 %v815_v15, 16  ;;  %693 = vst [vmem:[#allocation2 + $0xa8] sm:$0xf] %v692_v16 }
  0x86   : > { %1261 = vrot.lane.b32.xlu1 %v1138_v13, %s4933_s18  ;;  %694 = vst.msk [vmem:[#allocation2 + $0xac] sm:$0xf] %vm183_vm0, %v510_v14  ;;  %v696_v22 = vsel %vm5054_vm9, %v511_v9, %v695_v8  ;;  %v518_v24 = vor.u32 %v516_v4, %v515_v10  ;;  %v713_v27 = vld [vmem:[#allocation2 + $0x4] sm:$0xf]  ;;  %v715_v28 = vld [vmem:[#allocation2 + $0x10] sm:$0xf]  ;;  %v526_v31 = vor.u32 %v524_v12, %v523_v11 }
  0x87   : > { %697 = vst [vmem:[#allocation2 + $0xb0] sm:$0x1] %v696_v22  ;;  %v519_v29 = vrot.slane %v515_v10, 4  ;;  %v528_v32 = vrot.slane %v523_v11, 4  ;;  %v702_v33 = vld [vmem:[#allocation2 + $0xbc] sm:$0x1] }
  0x88   : > { %745 = vst.msk [vmem:[#allocation3 + $0x4] sm:$0xf] %vm183_vm0, %v713_v27  ;;  %747 = vst.msk [vmem:[#allocation3 + $0xc] sm:$0xf] %vm183_vm0, %v715_v28  ;;  %v816_v34 = vld [vmem:[#allocation2 + $0xa0] sm:$0xf]  ;;  %v699_v39 = vsel %vm5042_vm7, %v518_v24, %v698_v17 }
  0x89   : > { %v1142_v36 = vrot.slane %v1140_v19, 4  ;;  %v1145_v37 = vrot.slane %v1143_v20, 5  ;;  %v817_v38 = vld [vmem:[#allocation2 + $0xa4] sm:$0x1]  ;;  %v1149_v18 = vshll.u32 %v816_v34, 16  ;;  %v1153_v40 = vshrl.u32 %v816_v34, 16 }
  0x8a   : > { %v1159_v42 = vshll.u32 %v817_v38, 16  ;;  %v527_v43 = vsel %vm5048_vm8, %v519_v29, %v526_v31  ;;  %700 = vst [vmem:[#allocation2 + $0xb4] sm:$0xf] %v699_v39  ;;  %v703_v45 = vsel %vm5054_vm9, %v528_v32, %v702_v33  ;;  %v716_v46 = vld [vmem:[#allocation2 + $0x18] sm:$0xf]  ;;  %vm1437_vm12 = vcmask 1046532  }
  0x8b   : > { %v1146_v44 = vor.u32 %v1145_v37, %v1142_v36  ;;  %701 = vst.msk [vmem:[#allocation2 + $0xb8] sm:$0xf] %vm183_vm0, %v527_v43  ;;  %v1151_v48 = vrot.slane %v1149_v18, 5  ;;  %v1155_v25 = vrot.slane %v1153_v40, 4  ;;  %704 = vst [vmem:[#allocation2 + $0xbc] sm:$0x1] %v703_v45 }
  0x8c   : > { %748 = vst.msk [vmem:[#allocation3 + $0x10] sm:$0xf] %vm183_vm0, %v716_v46  ;;  %v717_v61 = vld [vmem:[#allocation2 + $0x1c] sm:$0xf]  ;;  %v1161_v51 = vrot.slane %v1159_v42, 5  ;;  %vm5326_vm13 = vmor %vm1436_vm11, %vm1437_vm12  ;;  %vm1307_vm14 = vcmask 60448  }
  0x8d   : > { %v1147_v49 = vrot.slane %v1146_v44, 4  ;;  %749 = vst.msk [vmem:[#allocation3 + $0x14] sm:$0xf] %vm183_vm0, %v717_v61  ;;  %v1156_v50 = vor.u32 %v1155_v25, %v1151_v48  ;;  %v818_v52 = vld [vmem:[#allocation2 + $0xa8] sm:$0xf]  ;;  %vm4044_vm15 = vcmask 1041408  }
  0x8e   : > { %v819_v53 = vld [vmem:[#allocation2 + $0xac] sm:$0xf]  ;;  %v1164_v26 = vshrl.u32 %v818_v52, 16  ;;  %v1167_v57 = vshll.u32 %v818_v52, 16  ;;  %v820_v59 = vld [vmem:[#allocation2 + $0xb0] sm:$0x1] }
  0x8f   : > { %v1152_v56 = vsel %vm5061_vm10, %v1147_v49, %v1151_v48  ;;  %v1173_v58 = vshll.u32 %v819_v53, 16  ;;  %v1157_v62 = vrot.slane %v1156_v50, 4  ;;  %v1177_v63 = vshrl.u32 %v819_v53, 16  ;;  %v1341_v7 = vld [vmem:[#allocation2 + $0x4] sm:$0xf] }
  0x90   : > { %1263 = vrot.lane.b32.xlu0 %v1152_v56, %s4933_s18  ;;  %v1183_v0 = vshll.u32 %v820_v59, 16  ;;  %v1166_v54 = vrot.slane %v1164_v26, 4  ;;  %v1169_v1 = vrot.slane %v1167_v57, 5  ;;  %v718_v15 = vld [vmem:[#allocation2 + $0x24] sm:$0xf]  ;;  %v1441_v27 = vrot.slane %v1341_v7, 5 }
  0x91   : > { %v1175_v2 = vrot.slane %v1173_v58, 5  ;;  %v821_v3 = vld [vmem:[#allocation2 + $0xb4] sm:$0xf]  ;;  %v1162_v4 = vsel %vm5061_vm10, %v1157_v62, %v1161_v51  ;;  %v1179_v60 = vrot.slane %v1177_v63, 4  ;;  %750 = vst.msk [vmem:[#allocation3 + $0x18] sm:$0xf] %vm183_vm0, %v718_v15 }
  0x92   : > { %v822_v5 = vld [vmem:[#allocation2 + $0xb8] sm:$0xf]  ;;  %v1188_v6 = vshrl.u32 %v821_v3, 16  ;;  %1265 = vrot.lane.b32.xlu1 %v1162_v4, %s4933_s18  ;;  %v1170_v41 = vor.u32 %v1169_v1, %v1166_v54  ;;  %v1191_v55 = vshll.u32 %v821_v3, 16  ;;  %v823_v9 = vld [vmem:[#allocation2 + $0xbc] sm:$0x1] }
  0x93   : > { %v1197_v8 = vshll.u32 %v822_v5, 16  ;;  %v1201_v47 = vshrl.u32 %v822_v5, 16  ;;  %v1180_v10 = vor.u32 %v1179_v60, %v1175_v2  ;;  %v1185_v11 = vrot.slane %v1183_v0, 5  ;;  %v719_v20 = vld [vmem:[#allocation2 + $0x28] sm:$0xf] }
  0x94   : > { %v1190_v12 = vrot.slane %v1188_v6, 4  ;;  %v1207_v13 = vshll.u32 %v823_v9, 16  ;;  %v1171_v14 = vrot.slane %v1170_v41, 4  ;;  %v1193_v16 = vrot.slane %v1191_v55, 5  ;;  %v1340_v24 = vld [vmem:[#allocation2] sm:$0xe] }
  0x95   : > { %v1199_v17 = vrot.slane %v1197_v8, 5  ;;  %v1203_v19 = vrot.slane %v1201_v47, 4  ;;  %v1181_v22 = vrot.slane %v1180_v10, 4  ;;  %751 = vst.msk [vmem:[#allocation3 + $0x1c] sm:$0xf] %vm183_vm0, %v719_v20  ;;  %v4672_v18 = vrot.slane %v1340_v24, 9 }
  0x96   : > { %v1176_v28 = vsel %vm5061_vm10, %v1171_v14, %v1175_v2  ;;  %v1194_v29 = vor.u32 %v1193_v16, %v1190_v12  ;;  %v1209_v32 = vrot.slane %v1207_v13, 5  ;;  %v1342_v33 = vld [vmem:[#allocation2 + $0x8] sm:$0x1]  ;;  %v1344_v34 = vld [vmem:[#allocation2 + $0x10] sm:$0xf]  ;;  %v1443_v43 = vrot.slane %v1441_v27, 4 }
  0x97   : > { %v1204_v31 = vor.u32 %v1203_v19, %v1199_v17  ;;  %1267 = vrot.lane.b32.xlu0 %v1176_v28, %s4933_s18  ;;  %v1186_v36 = vsel %vm5061_vm10, %v1181_v22, %v1185_v11  ;;  %v720_v37 = vld [vmem:[#allocation2 + $0x30] sm:$0xf]  ;;  %v721_v40 = vld [vmem:[#allocation2 + $0x34] sm:$0xf]  ;;  %v1444_v44 = vrot.slane %v1342_v33, 5  ;;  %v1448_v46 = vrot.slane %v1344_v34, 5 }
  0x98   : > { %1269 = vrot.lane.b32.xlu1 %v1186_v36, %s4933_s18  ;;  %v1195_v38 = vrot.slane %v1194_v29, 4  ;;  %752 = vst.msk [vmem:[#allocation3 + $0x20] sm:$0xf] %vm183_vm0, %v720_v37  ;;  %v1343_v45 = vld [vmem:[#allocation2 + $0xc] sm:$0xe]  ;;  %v1442_v52 = vsel %vm5326_vm13, %v4672_v18, %v1441_v27  ;;  %vm1647_vm2 = vcmask 93248  }
  0x99   : > { %v1205_v39 = vrot.slane %v1204_v31, 4  ;;  %753 = vst.msk [vmem:[#allocation3 + $0x24] sm:$0xf] %vm183_vm0, %v721_v40  ;;  %v1345_v61 = vld [vmem:[#allocation2 + $0x14] sm:$0x1]  ;;  %v4673_v53 = vrot.slane %v1343_v45, 9  ;;  %v1445_v26 = vsel %vm5326_vm13, %v1443_v43, %v1444_v44 }
  0x9a   : > { %v1200_v48 = vsel %vm5061_vm10, %v1195_v38, %v1199_v17  ;;  %v1347_v49 = vld [vmem:[#allocation2 + $0x1c] sm:$0xf]  ;;  %v723_v51 = vld [vmem:[#allocation2 + $0x40] sm:$0xf]  ;;  %v1346_v56 = vld [vmem:[#allocation2 + $0x18] sm:$0xe] }
  0x9b   : > { %v1210_v25 = vsel %vm5061_vm10, %v1205_v39, %v1209_v32  ;;  %v722_v50 = vld [vmem:[#allocation2 + $0x3c] sm:$0xf]  ;;  %1271 = vrot.lane.b32.xlu0 %v1200_v48, %s4933_s18  ;;  %755 = vst.msk [vmem:[#allocation3 + $0x2c] sm:$0xf] %vm183_vm0, %v723_v51  ;;  %v1450_v57 = vrot.slane %v1448_v46, 4  ;;  %v1451_v58 = vrot.slane %v1345_v61, 5  ;;  %v1449_v2 = vsel %vm5326_vm13, %v4673_v53, %v1448_v46 }
  0x9c   : > { %754 = vst.msk [vmem:[#allocation3 + $0x28] sm:$0xf] %vm183_vm0, %v722_v50  ;;  %1273 = vrot.lane.b32.xlu1 %v1210_v25, %s4933_s18  ;;  %v1455_v59 = vrot.slane %v1347_v49, 5  ;;  %v724_v62 = vld [vmem:[#allocation2 + $0x48] sm:$0xf]  ;;  %v4674_v3 = vrot.slane %v1346_v56, 9 }
  0x9d   : > { %v1348_v63 = vld [vmem:[#allocation2 + $0x20] sm:$0x1]  ;;  %v1350_v0 = vld [vmem:[#allocation2 + $0x28] sm:$0xf]  ;;  %756 = vst.msk [vmem:[#allocation3 + $0x30] sm:$0xf] %vm183_vm0, %v724_v62  ;;  %v1452_v60 = vsel %vm5326_vm13, %v1450_v57, %v1451_v58 }
  0x9e   : > { %v1212_v54 = vpop.permute.xlu0 %1211  ;;  %v725_v1 = vld [vmem:[#allocation2 + $0x4c] sm:$0xf]  ;;  %v1349_v4 = vld [vmem:[#allocation2 + $0x24] sm:$0xe]  ;;  %v1457_v5 = vrot.slane %v1455_v59, 4  ;;  %v1458_v6 = vrot.slane %v1348_v63, 5  ;;  %v1456_v11 = vsel %vm5326_vm13, %v4674_v3, %v1455_v59 }
  0x9f   : > { %1551 = vrot.lane.b32.xlu0 %v1442_v52, %s4934_s19  ;;  %757 = vst.msk [vmem:[#allocation3 + $0x34] sm:$0xf] %vm183_vm0, %v725_v1  ;;  %v1462_v7 = vrot.slane %v1350_v0, 5  ;;  %v1353_v41 = vld [vmem:[#allocation2 + $0x34] sm:$0xf]  ;;  %v4675_v12 = vrot.slane %v1349_v4, 9 }
  0xa0   : > { %1553 = vrot.lane.b32.xlu1 %v1445_v26, %s4934_s19  ;;  %v1351_v55 = vld [vmem:[#allocation2 + $0x2c] sm:$0x1]  ;;  %v726_v47 = vld [vmem:[#allocation2 + $0x54] sm:$0xf]  ;;  %v1352_v9 = vld [vmem:[#allocation2 + $0x30] sm:$0xe]  ;;  %v1459_v14 = vsel %vm5326_vm13, %v1457_v5, %v1458_v6 }
  0xa1   : > { %758 = vst.msk [vmem:[#allocation3 + $0x38] sm:$0xf] %vm183_vm0, %v726_v47  ;;  %v727_v10 = vld [vmem:[#allocation2 + $0x58] sm:$0xf]  ;;  %v1469_v13 = vrot.slane %v1353_v41, 5  ;;  %v1464_v16 = vrot.slane %v1462_v7, 4  ;;  %v1463_v29 = vsel %vm5326_vm13, %v4675_v12, %v1462_v7 }
  0xa2   : > { %v1214_v8 = vpop.permute.xlu0 %1213  ;;  %v1873_v15 = vld [vmem:[#allocation2 + $0xc] sm:$0xf]  ;;  %759 = vst.msk [vmem:[#allocation3 + $0x3c] sm:$0xf] %vm183_vm0, %v727_v10  ;;  %v1465_v17 = vrot.slane %v1351_v55, 5  ;;  %v4676_v27 = vrot.slane %v1352_v9, 9 }
  0xa3   : > { %1555 = vrot.lane.b32.xlu0 %v1449_v2, %s4934_s19  ;;  %v1354_v19 = vld [vmem:[#allocation2 + $0x38] sm:$0x1]  ;;  %1308 = vst.msk [vmem:[#allocation3] sm:$0xf] %vm1307_vm14, %v1212_v54  ;;  %1309 = vst.msk [vmem:[#allocation3 + $0x4] sm:$0xf] %vm1307_vm14, %v1214_v8 }
  0xa4   : > { %1557 = vrot.lane.b32.xlu1 %v1452_v60, %s4934_s19  ;;  %v728_v20 = vld [vmem:[#allocation2 + $0x60] sm:$0xf]  ;;  %v1874_v22 = vld [vmem:[#allocation2 + $0x10] sm:$0xf]  ;;  %v729_v24 = vld [vmem:[#allocation2 + $0x64] sm:$0xf]  ;;  %v1466_v34 = vsel %vm5326_vm13, %v1464_v16, %v1465_v17  ;;  %v1470_v40 = vsel %vm5326_vm13, %v4676_v27, %v1469_v13 }
  0xa5   : > { %760 = vst.msk [vmem:[#allocation3 + $0x40] sm:$0xf] %vm183_vm0, %v728_v20  ;;  %v1922_v28 = vshrl.u32 %v1873_v15, 16  ;;  %761 = vst.msk [vmem:[#allocation3 + $0x44] sm:$0xf] %vm183_vm0, %v729_v24  ;;  %v1471_v31 = vrot.slane %v1469_v13, 4 }
  0xa6   : > { %v1472_v32 = vrot.slane %v1354_v19, 5  ;;  %v1925_v33 = vshll.u32 %v1873_v15, 16  ;;  %v1931_v36 = vshll.u32 %v1874_v22, 16  ;;  %v1935_v37 = vshrl.u32 %v1874_v22, 16  ;;  %v1876_v38 = vld [vmem:[#allocation2 + $0x18] sm:$0xf] }
  0xa7   : > { %1559 = vrot.lane.b32.xlu0 %v1456_v11, %s4934_s19  ;;  %v1877_v39 = vld [vmem:[#allocation2 + $0x1c] sm:$0xf]  ;;  %v730_v18 = vld [vmem:[#allocation2 + $0x6c] sm:$0xf]  ;;  %v1924_v43 = vrot.slane %v1922_v28, 4  ;;  %v1946_v48 = vshrl.u32 %v1876_v38, 16 }
  0xa8   : > { %1561 = vrot.lane.b32.xlu1 %v1459_v14, %s4934_s19  ;;  %762 = vst.msk [vmem:[#allocation3 + $0x48] sm:$0xf] %vm183_vm0, %v730_v18  ;;  %v731_v44 = vld [vmem:[#allocation2 + $0x70] sm:$0xf]  ;;  %v1473_v45 = vsel %vm5326_vm13, %v1471_v31, %v1472_v32  ;;  %v1927_v46 = vrot.slane %v1925_v33, 5  ;;  %v1949_v25 = vshll.u32 %v1876_v38, 16 }
  0xa9   : > { %763 = vst.msk [vmem:[#allocation3 + $0x4c] sm:$0xf] %vm183_vm0, %v731_v44  ;;  %v5377_v49 = vrot.slane %v1931_v36, 5  ;;  %v1937_v50 = vrot.slane %v1935_v37, 4  ;;  %v1955_v51 = vshll.u32 %v1877_v39, 16  ;;  %v1959_v52 = vshrl.u32 %v1877_v39, 16 }
  0xaa   : > { %v1875_v53 = vld [vmem:[#allocation2 + $0x14] sm:$0x1]  ;;  %v732_v56 = vld [vmem:[#allocation2 + $0x78] sm:$0xf]  ;;  %v1680_v26 = vld [vmem:[#allocation2 + $0xc] sm:$0xf]  ;;  %v1928_v59 = vor.u32 %v1927_v46, %v1924_v43 }
  0xab   : > { %1563 = vrot.lane.b32.xlu0 %v1463_v29, %s4934_s19  ;;  %764 = vst.msk [vmem:[#allocation3 + $0x50] sm:$0xf] %vm183_vm0, %v732_v56  ;;  %v733_v57 = vld [vmem:[#allocation2 + $0x7c] sm:$0xf]  ;;  %v1681_v58 = vld [vmem:[#allocation2 + $0x10] sm:$0xf]  ;;  %v1938_v2 = vor.u32 %v1937_v50, %v5377_v49 }
  0xac   : > { %1565 = vrot.lane.b32.xlu1 %v1466_v34, %s4934_s19  ;;  %v1216_v61 = vpop.permute.xlu1 %1215  ;;  %v1948_v62 = vrot.slane %v1946_v48, 4  ;;  %v1951_v63 = vrot.slane %v1949_v25, 5  ;;  %v1878_v0 = vld [vmem:[#allocation2 + $0x20] sm:$0x1]  ;;  %765 = vst.msk [vmem:[#allocation3 + $0x54] sm:$0xf] %vm183_vm0, %v733_v57 }
  0xad   : > { %1310 = vst.msk [vmem:[#allocation3 + $0x8] sm:$0xf] %vm1307_vm14, %v1216_v61  ;;  %v1941_v3 = vshll.u32 %v1875_v53, 16  ;;  %v5385_v4 = vrot.slane %v1955_v51, 5  ;;  %v1961_v60 = vrot.slane %v1959_v52, 4  ;;  %v1929_v41 = vrot.slane %v1928_v59, 4 }
  0xae   : > { %v734_v5 = vld [vmem:[#allocation2 + $0x84] sm:$0xf]  ;;  %v735_v6 = vld [vmem:[#allocation2 + $0x88] sm:$0xf]  ;;  %v1682_v7 = vld [vmem:[#allocation2 + $0x18] sm:$0xf]  ;;  %v1952_v55 = vor.u32 %v1951_v63, %v1948_v62 }
  0xaf   : > { %1567 = vrot.lane.b32.xlu0 %v1470_v40, %s4934_s19  ;;  %v1220_v1 = vpop.permute.xlu0 %1219  ;;  %766 = vst.msk [vmem:[#allocation3 + $0x58] sm:$0xf] %vm183_vm0, %v734_v5  ;;  %767 = vst.msk [vmem:[#allocation3 + $0x5c] sm:$0xf] %vm183_vm0, %v735_v6  ;;  %v1965_v8 = vshll.u32 %v1878_v0, 16  ;;  %v1939_v10 = vrot.slane %v1938_v2, 4  ;;  %v1962_v12 = vor.u32 %v1961_v60, %v5385_v4  ;;  %v1934_v17 = vsel %vm5061_vm10, %v1929_v41, %v5377_v49 }
  0xb0   : > { %1569 = vrot.lane.b32.xlu1 %v1473_v45, %s4934_s19  ;;  %v1218_v54 = vpop.permute.xlu1 %1217  ;;  %1312 = vst.msk [vmem:[#allocation3 + $0x10] sm:$0xf] %vm1307_vm14, %v1220_v1  ;;  %v1683_v9 = vld [vmem:[#allocation2 + $0x1c] sm:$0xf]  ;;  %v1943_v11 = vrot.slane %v1941_v3, 5  ;;  %v1953_v19 = vrot.slane %v1952_v55, 4 }
  0xb1   : > { %1311 = vst.msk [vmem:[#allocation3 + $0xc] sm:$0xf] %vm1307_vm14, %v1218_v54  ;;  %v736_v15 = vld [vmem:[#allocation2 + $0x90] sm:$0xf]  ;;  %v737_v16 = vld [vmem:[#allocation2 + $0x94] sm:$0xf] }
  0xb2   : > { %v2435_v14 = vld [vmem:[#allocation2 + $0x10] sm:$0xf]  ;;  %768 = vst.msk [vmem:[#allocation3 + $0x60] sm:$0xf] %vm183_vm0, %v736_v15  ;;  %769 = vst.msk [vmem:[#allocation3 + $0x64] sm:$0xf] %vm183_vm0, %v737_v16  ;;  %v1944_v28 = vsel %vm5061_vm10, %v1939_v10, %v1943_v11  ;;  %v1958_v38 = vsel %vm5061_vm10, %v1953_v19, %v5385_v4 }
  0xb3   : > { %1744 = vrot.lane.b32.xlu0 %v1680_v26, %s4935_s20  ;;  %v1967_v20 = vrot.slane %v1965_v8, 5  ;;  %v2434_v22 = vld [vmem:[#allocation2 + $0xc] sm:$0xe]  ;;  %v2438_v24 = vld [vmem:[#allocation2 + $0x1c] sm:$0xf]  ;;  %v1963_v29 = vrot.slane %v1962_v12, 4 }
  0xb4   : > { %1746 = vrot.lane.b32.xlu1 %v1681_v58, %s4935_s20  ;;  %v1222_v47 = vpop.permute.xlu1 %1221  ;;  %v1224_v13 = vpop.permute.xlu0 %1223  ;;  %v2532_v31 = vrot.slane %v2435_v14, 5  ;;  %v738_v33 = vld [vmem:[#allocation2 + $0x9c] sm:$0xf]  ;;  %v739_v34 = vld [vmem:[#allocation2 + $0xa0] sm:$0xf]  ;;  %v4688_v39 = vrot.slane %v2434_v22, 9 }
  0xb5   : > { %1313 = vst.msk [vmem:[#allocation3 + $0x14] sm:$0xf] %vm1307_vm14, %v1222_v47  ;;  %1314 = vst.msk [vmem:[#allocation3 + $0x18] sm:$0xf] %vm1307_vm14, %v1224_v13  ;;  %v2436_v36 = vld [vmem:[#allocation2 + $0x14] sm:$0x1]  ;;  %v1968_v45 = vsel %vm5061_vm10, %v1963_v29, %v1967_v20 }
  0xb6   : > { %770 = vst.msk [vmem:[#allocation3 + $0x68] sm:$0xf] %vm183_vm0, %v738_v33  ;;  %771 = vst.msk [vmem:[#allocation3 + $0x6c] sm:$0xf] %vm183_vm0, %v739_v34  ;;  %v2437_v37 = vld [vmem:[#allocation2 + $0x18] sm:$0xe]  ;;  %v2533_v52 = vsel %vm5326_vm13, %v4688_v39, %v2532_v31 }
  0xb7   : > { %1748 = vrot.lane.b32.xlu0 %v1682_v7, %s4935_s20  ;;  %v2539_v18 = vrot.slane %v2438_v24, 5  ;;  %v2965_v40 = vld [vmem:[#allocation2 + $0x18] sm:$0xf]  ;;  %v740_v44 = vld [vmem:[#allocation2 + $0xa8] sm:$0xf]  ;;  %v2534_v46 = vrot.slane %v2532_v31, 4 }
  0xb8   : > { %1750 = vrot.lane.b32.xlu1 %v1683_v9, %s4935_s20  ;;  %v1226_v27 = vpop.permute.xlu1 %1225  ;;  %v1228_v32 = vpop.permute.xlu0 %1227  ;;  %v2535_v48 = vrot.slane %v2436_v36, 5  ;;  %v2439_v25 = vld [vmem:[#allocation2 + $0x20] sm:$0x1]  ;;  %772 = vst.msk [vmem:[#allocation3 + $0x70] sm:$0xf] %vm183_vm0, %v740_v44  ;;  %v4689_v50 = vrot.slane %v2437_v37, 9 }
  0xb9   : > { %1315 = vst.msk [vmem:[#allocation3 + $0x1c] sm:$0xf] %vm1307_vm14, %v1226_v27  ;;  %1316 = vst.msk [vmem:[#allocation3 + $0x20] sm:$0xf] %vm1307_vm14, %v1228_v32  ;;  %v741_v61 = vld [vmem:[#allocation2 + $0xac] sm:$0xf] }
  0xba   : > { %v2966_v49 = vld [vmem:[#allocation2 + $0x1c] sm:$0xf]  ;;  %773 = vst.msk [vmem:[#allocation3 + $0x74] sm:$0xf] %vm183_vm0, %v741_v61  ;;  %v3014_v51 = vshrl.u32 %v2965_v40, 16  ;;  %v2541_v53 = vrot.slane %v2539_v18, 4  ;;  %v2536_v57 = vsel %vm5326_vm13, %v2534_v46, %v2535_v48  ;;  %v2540_v1 = vsel %vm5326_vm13, %v4689_v50, %v2539_v18 }
  0xbb   : > { %2305 = vrot.lane.b32.xlu0 %v1934_v17, %s4936_s21  ;;  %v2542_v56 = vrot.slane %v2439_v25, 5  ;;  %v3017_v26 = vshll.u32 %v2965_v40, 16  ;;  %v3023_v58 = vshll.u32 %v2966_v49, 16  ;;  %v3027_v59 = vshrl.u32 %v2966_v49, 16  ;;  %v2968_v62 = vld [vmem:[#allocation2 + $0x24] sm:$0xf] }
  0xbc   : > { %2307 = vrot.lane.b32.xlu1 %v1944_v28, %s4936_s21  ;;  %v1230_v43 = vpop.permute.xlu1 %1229  ;;  %v742_v63 = vld [vmem:[#allocation2 + $0xb4] sm:$0xf]  ;;  %v2969_v0 = vld [vmem:[#allocation2 + $0x28] sm:$0xf]  ;;  %v743_v54 = vld [vmem:[#allocation2 + $0xb8] sm:$0xf] }
  0xbd   : > { %1317 = vst.msk [vmem:[#allocation3 + $0x24] sm:$0xf] %vm1307_vm14, %v1230_v43  ;;  %v3016_v2 = vrot.slane %v3014_v51, 4  ;;  %v2543_v3 = vsel %vm5326_vm13, %v2541_v53, %v2542_v56  ;;  %v3019_v4 = vrot.slane %v3017_v26, 5  ;;  %v3038_v60 = vshrl.u32 %v2968_v62, 16 }
  0xbe   : > { %774 = vst.msk [vmem:[#allocation3 + $0x78] sm:$0xf] %vm183_vm0, %v742_v63  ;;  %775 = vst.msk [vmem:[#allocation3 + $0x7c] sm:$0xf] %vm183_vm0, %v743_v54  ;;  %v3041_v5 = vshll.u32 %v2968_v62, 16  ;;  %v3025_v6 = vrot.slane %v3023_v58, 5 }
  0xbf   : > { %2309 = vrot.lane.b32.xlu0 %v1958_v38, %s4936_s21  ;;  %v3029_v7 = vrot.slane %v3027_v59, 4  ;;  %v3047_v41 = vshll.u32 %v2969_v0, 16  ;;  %v3051_v55 = vshrl.u32 %v2969_v0, 16  ;;  %v2967_v8 = vld [vmem:[#allocation2 + $0x20] sm:$0x1]  ;;  %v3020_v9 = vor.u32 %v3019_v4, %v3016_v2 }
  0xc0   : > { %2311 = vrot.lane.b32.xlu1 %v1968_v45, %s4936_s21  ;;  %v2772_v47 = vld [vmem:[#allocation2 + $0x18] sm:$0xf]  ;;  %v3040_v10 = vrot.slane %v3038_v60, 4  ;;  %v3043_v11 = vrot.slane %v3041_v5, 5  ;;  %v2773_v12 = vld [vmem:[#allocation2 + $0x1c] sm:$0xf] }
  0xc1   : > { %v3030_v13 = vor.u32 %v3029_v7, %v3025_v6  ;;  %v3033_v15 = vshll.u32 %v2967_v8, 16  ;;  %v3049_v14 = vrot.slane %v3047_v41, 5  ;;  %v3053_v16 = vrot.slane %v3051_v55, 4  ;;  %v2970_v17 = vld [vmem:[#allocation2 + $0x2c] sm:$0x1] }
  0xc2   : > { %v2774_v22 = vld [vmem:[#allocation2 + $0x24] sm:$0xf]  ;;  %v3021_v24 = vrot.slane %v3020_v9, 4  ;;  %v3044_v27 = vor.u32 %v3043_v11, %v3040_v10  ;;  %v2775_v28 = vld [vmem:[#allocation2 + $0x28] sm:$0xf]  ;;  %v3057_v33 = vshll.u32 %v2970_v17, 16 }
  0xc3   : > { %2642 = vrot.lane.b32.xlu0 %v2533_v52, %s4937_s22  ;;  %v3031_v29 = vrot.slane %v3030_v13, 4  ;;  %v3035_v31 = vrot.slane %v3033_v15, 5  ;;  %v3054_v32 = vor.u32 %v3053_v16, %v3049_v14  ;;  %v3527_v34 = vld [vmem:[#allocation2 + $0x1c] sm:$0xf]  ;;  %v3526_v39 = vld [vmem:[#allocation2 + $0x18] sm:$0xe] }
  0xc4   : > { %2644 = vrot.lane.b32.xlu1 %v2536_v57, %s4937_s22  ;;  %v3026_v37 = vsel %vm5061_vm10, %v3021_v24, %v3025_v6  ;;  %v3045_v38 = vrot.slane %v3044_v27, 4  ;;  %v3059_v43 = vrot.slane %v3057_v33, 5  ;;  %v3624_v44 = vrot.slane %v3527_v34, 5  ;;  %v3530_v45 = vld [vmem:[#allocation2 + $0x28] sm:$0xf] }
  0xc5   : > { %v3036_v18 = vsel %vm5061_vm10, %v3031_v29, %v3035_v31  ;;  %v3055_v40 = vrot.slane %v3054_v32, 4  ;;  %v3528_v48 = vld [vmem:[#allocation2 + $0x20] sm:$0x1]  ;;  %v4704_v49 = vrot.slane %v3526_v39, 9  ;;  %v3529_v50 = vld [vmem:[#allocation2 + $0x24] sm:$0xe] }
  0xc6   : > { %v3050_v61 = vsel %vm5061_vm10, %v3045_v38, %v3049_v14  ;;  %v3631_v51 = vrot.slane %v3530_v45, 5  ;;  %v1879_v52 = vld [vmem:[#allocation2 + $0x24] sm:$0xf]  ;;  %v3626_v56 = vrot.slane %v3624_v44, 4  ;;  %v3627_v26 = vrot.slane %v3528_v48, 5  ;;  %v4906_v34 = vld [vmem:[%s6580_s1 + $0x8] sm:$0xff]  }
  0xc7   : > { %2646 = vrot.lane.b32.xlu0 %v2540_v1, %s4937_s22  ;;  %v3060_v53 = vsel %vm5061_vm10, %v3055_v40, %v3059_v43  ;;  %v3531_v57 = vld [vmem:[#allocation2 + $0x2c] sm:$0x1]  ;;  %v1880_v59 = vld [vmem:[#allocation2 + $0x28] sm:$0xf]  ;;  %v4705_v62 = vrot.slane %v3529_v50, 9  ;;  %v1970_v63 = vshrl.u32 %v1879_v52, 16  ;;  %v3625_v54 = vsel %vm5326_vm13, %v4704_v49, %v3624_v44 }
  0xc8   : > { %2648 = vrot.lane.b32.xlu1 %v2543_v3, %s4937_s22  ;;  %v3633_v1 = vrot.slane %v3631_v51, 4  ;;  %v3634_v2 = vrot.slane %v3531_v57, 5  ;;  %v1973_v3 = vshll.u32 %v1879_v52, 16  ;;  %v3628_v4 = vsel %vm5326_vm13, %v3626_v56, %v3627_v26  ;;  %v1882_v6 = vld [vmem:[#allocation2 + $0x30] sm:$0xf] }
  0xc9   : > { %v1232_v19 = vpop.permute.xlu0 %1231  ;;  %v1979_v60 = vshll.u32 %v1880_v59, 16  ;;  %v1983_v5 = vshrl.u32 %v1880_v59, 16  ;;  %v1883_v41 = vld [vmem:[#allocation2 + $0x34] sm:$0xf]  ;;  %v3632_v55 = vsel %vm5326_vm13, %v4705_v62, %v3631_v51  ;;  %v1972_v8 = vrot.slane %v1970_v63, 4 }
  0xca   : > { %1318 = vst.msk [vmem:[#allocation3 + $0x28] sm:$0xf] %vm1307_vm14, %v1232_v19  ;;  %v1234_v20 = vpop.permute.xlu1 %1233  ;;  %v1975_v9 = vrot.slane %v1973_v3, 5  ;;  %v1994_v10 = vshrl.u32 %v1882_v6, 16  ;;  %v1997_v11 = vshll.u32 %v1882_v6, 16  ;;  %v2003_v15 = vshll.u32 %v1883_v41, 16 }
  0xcb   : > { %2836 = vrot.lane.b32.xlu0 %v2772_v47, %s4938_s23  ;;  %1319 = vst.msk [vmem:[#allocation3 + $0x2c] sm:$0xf] %vm1307_vm14, %v1234_v20  ;;  %v3635_v47 = vsel %vm5326_vm13, %v3633_v1, %v3634_v2  ;;  %v1985_v13 = vrot.slane %v1983_v5, 4  ;;  %v2007_v14 = vshrl.u32 %v1883_v41, 16  ;;  %v1881_v16 = vld [vmem:[#allocation2 + $0x2c] sm:$0x1] }
  0xcc   : > { %2838 = vrot.lane.b32.xlu1 %v2773_v12, %s4938_s23  ;;  %v1981_v12 = vrot.slane %v1979_v60, 5  ;;  %v1684_v17 = vld [vmem:[#allocation2 + $0x24] sm:$0xf]  ;;  %v1976_v19 = vor.u32 %v1975_v9, %v1972_v8  ;;  %v1996_v20 = vrot.slane %v1994_v10, 4  ;;  %v1685_v24 = vld [vmem:[#allocation2 + $0x28] sm:$0xf] }
  0xcd   : > { %v1236_v36 = vpop.permute.xlu0 %1235  ;;  %v2005_v29 = vrot.slane %v2003_v15, 5  ;;  %v2009_v31 = vrot.slane %v2007_v14, 4  ;;  %v1884_v32 = vld [vmem:[#allocation2 + $0x38] sm:$0x1]  ;;  %v2440_v50 = vld [vmem:[#allocation2 + $0x24] sm:$0xe] }
  0xce   : > { %1320 = vst.msk [vmem:[#allocation3 + $0x30] sm:$0xf] %vm1307_vm14, %v1236_v36  ;;  %v1986_v27 = vor.u32 %v1985_v13, %v1981_v12  ;;  %v4905_v33 = vld [vmem:[%s6580_s1 + $0x10] ss:$0 sps:$4 sm:$0x33]   ;;  %v2013_v45 = vshll.u32 %v1884_v32, 16 }
  0xcf   : > { %2840 = vrot.lane.b32.xlu0 %v2774_v22, %s4938_s23  ;;  %v1999_v22 = vrot.slane %v1997_v11, 5  ;;  %v1686_v36 = vld [vmem:[#allocation2 + $0x30] sm:$0xf]  ;;  %4886 = vmatprep.subr.msk.bf16.mxu0 %vm4044_vm15, %v4905_v33  ;;  %v4046_v39 = vsel %vm4044_vm15, %v4905_v33, 0  ;;  %v2010_v44 = vor.u32 %v2009_v31, %v2005_v29  ;;  %v2444_v26 = vld [vmem:[#allocation2 + $0x34] sm:$0xf] }
  0xd0   : > { %2842 = vrot.lane.b32.xlu1 %v2775_v28, %s4938_s23  ;;  %v1238_v46 = vpop.permute.xlu1 %1237  ;;  %v1989_v28 = vshll.u32 %v1881_v16, 16  ;;  %v1987_v40 = vrot.slane %v1986_v27, 4  ;;  %4843 = vmatpush3.bf16.msra.mxu0 %v4046_v39  ;;  %v2442_v57 = vld [vmem:[#allocation2 + $0x2c] sm:$0x1]  ;;  %v4690_v62 = vrot.slane %v2440_v50, 9  ;;  %vm1840_vm3 = vcmask 126048  }
  0xd1   : > { %1321 = vst.msk [vmem:[#allocation3 + $0x34] sm:$0xf] %vm1307_vm14, %v1238_v46  ;;  %v2000_v38 = vor.u32 %v1999_v22, %v1996_v20  ;;  %4887 = vmatprep.subr.msk.bf16.mxu1 %vm4044_vm15, %v4905_v33  ;;  %v2441_v46 = vld [vmem:[#allocation2 + $0x28] sm:$0xf]  ;;  %4844 = vmatprep.subr.bf16.mxu0 %v4906_v34  ;;  %v2011_v52 = vrot.slane %v2010_v44, 4  ;;  %v2549_v3 = vrot.slane %v2442_v57, 5 }
  0xd2   : > { %v1240_v25 = vpop.permute.xlu0 %1239  ;;  %v1991_v43 = vrot.slane %v1989_v28, 5  ;;  %4883 = vmatpush3.bf16.msra.mxu1 %v4046_v39  ;;  %v2546_v56 = vrot.slane %v2441_v46, 5  ;;  %v2443_v63 = vld [vmem:[#allocation2 + $0x30] sm:$0xe]  ;;  %v2972_v6 = vld [vmem:[#allocation2 + $0x34] sm:$0xf] }
  0xd3   : > { %3397 = vrot.lane.b32.xlu0 %v3026_v37, %s4939_s24  ;;  %1322 = vst.msk [vmem:[#allocation3 + $0x38] sm:$0xf] %vm1307_vm14, %v1240_v25  ;;  %v1977_v37 = vrot.slane %v1976_v19, 4  ;;  %v4907_v25 = vld [vmem:[%s6580_s1] sm:$0xff]   ;;  %4881 = vmatprep.subr.bf16.mxu1 %v4906_v34  ;;  %v2001_v49 = vrot.slane %v2000_v38, 4  ;;  %v3075_v13 = vshrl.u32 %v2972_v6, 16 }
  0xd4   : > { %3399 = vrot.lane.b32.xlu1 %v3036_v18, %s4939_s24  ;;  %v1242_v58 = vpop.permute.xlu1 %1241  ;;  %v1687_v18 = vld [vmem:[#allocation2 + $0x34] sm:$0xf]  ;;  %v1992_v51 = vsel %vm5061_vm10, %v1987_v40, %v1991_v43  ;;  %4845 = vmatpush3.bf16.msra.mxu0 %v4906_v34  ;;  %v2548_v2 = vrot.slane %v2546_v56, 4  ;;  %v2974_v15 = vld [vmem:[#allocation2 + $0x3c] sm:$0xf]  ;;  %vm2401_vm4 = vcmask 158848  }
  0xd5   : > { %1323 = vst.msk [vmem:[#allocation3 + $0x3c] sm:$0xf] %vm1307_vm14, %v1242_v58  ;;  %4846 = vmatprep.subr.bf16.mxu0 %v4907_v25  ;;  %v2006_v59 = vsel %vm5061_vm10, %v2001_v49, %v2005_v29  ;;  %v2975_v16 = vld [vmem:[#allocation2 + $0x40] sm:$0xf]  ;;  %v3089_v27 = vshll.u32 %v2974_v15, 16  ;;  %v3077_v31 = vrot.slane %v3075_v13, 4 }
  0xd6   : > { %v1244_v0 = vpop.permute.xlu0 %1243  ;;  %4884 = vmatpush3.bf16.msra.mxu1 %v4906_v34  ;;  %v2550_v10 = vsel %vm5326_vm13, %v2548_v2, %v2549_v3  ;;  %v3095_v32 = vshll.u32 %v2975_v16, 16  ;;  %v3099_v33 = vshrl.u32 %v2975_v16, 16  ;;  %v2973_v34 = vld [vmem:[#allocation2 + $0x38] sm:$0x1]  ;;  %v2777_v40 = vld [vmem:[#allocation2 + $0x34] sm:$0xf] }
  0xd7   : > { %3401 = vrot.lane.b32.xlu0 %v3050_v61, %s4939_s24  ;;  %1324 = vst.msk [vmem:[#allocation3 + $0x40] sm:$0xf] %vm1307_vm14, %v1244_v0  ;;  %v1982_v61 = vsel %vm5061_vm10, %v1977_v37, %v1981_v12  ;;  %4882 = vmatprep.subr.bf16.mxu1 %v4907_v25  ;;  %v2553_v0 = vrot.slane %v2444_v26, 5  ;;  %v3071_v12 = vshll.u32 %v2972_v6, 16  ;;  %v3081_v44 = vshll.u32 %v2973_v34, 16 }
  0xd8   : > { %3403 = vrot.lane.b32.xlu1 %v3060_v53, %s4939_s24  ;;  %v1246_v7 = vpop.permute.xlu1 %1245  ;;  %v2015_v53 = vrot.slane %v2013_v45, 5  ;;  %4847 = vmatpush3.bf16.msra.mxu0 %v4907_v25  ;;  %v3097_v45 = vrot.slane %v3095_v32, 5  ;;  %v3101_v46 = vrot.slane %v3099_v33, 4  ;;  %v2779_v50 = vld [vmem:[#allocation2 + $0x40] sm:$0xf]  ;;  %vm2738_vm5 = vcmask 191648  }
  0xd9   : > { %1325 = vst.msk [vmem:[#allocation3 + $0x44] sm:$0xf] %vm1307_vm14, %v1246_v7  ;;  %v4691_v7 = vrot.slane %v2443_v63, 9  ;;  %v2555_v8 = vrot.slane %v2553_v0, 4  ;;  %v3073_v29 = vrot.slane %v3071_v12, 5  ;;  %vm2932_vm6 = vcmask 224448  }
  0xda   : > { %v2016_v1 = vsel %vm5061_vm10, %v2011_v52, %v2015_v53  ;;  %4885 = vmatpush3.bf16.msra.mxu1 %v4907_v25  ;;  %v2778_v25 = vld [vmem:[#allocation2 + $0x3c] sm:$0xf]  ;;  %v3083_v52 = vrot.slane %v3081_v44, 5  ;;  %v3102_v53 = vor.u32 %v3101_v46, %v3097_v45  ;;  %v3533_v26 = vld [vmem:[#allocation2 + $0x34] sm:$0xf]  ;;  %vm3493_vm11 = vcmask 257248  }
  0xdb   : > { %3734 = vrot.lane.b32.xlu0 %v3625_v54, %s4940_s25  ;;  %v2971_v54 = vld [vmem:[#allocation2 + $0x30] sm:$0xf]  ;;  %v3078_v43 = vor.u32 %v3077_v31, %v3073_v29  ;;  %v3534_v2 = vld [vmem:[#allocation2 + $0x38] sm:$0x1]  ;;  %v3536_v3 = vld [vmem:[#allocation2 + $0x40] sm:$0xf] }
  0xdc   : > { %3736 = vrot.lane.b32.xlu1 %v3628_v4, %s4940_s25  ;;  %v2445_v4 = vld [vmem:[#allocation2 + $0x38] sm:$0x1]  ;;  %v3062_v41 = vshrl.u32 %v2971_v54, 16  ;;  %v3065_v9 = vshll.u32 %v2971_v54, 16  ;;  %v3103_v63 = vrot.slane %v3102_v53, 4  ;;  %vm3830_vm12 = vcmask 290048  }
  0xdd   : > { %v3532_v54 = vld [vmem:[#allocation2 + $0x30] sm:$0xe]  ;;  %v1356_v6 = vld [vmem:[#allocation2 + $0x40] sm:$0xf]  ;;  %v1355_v13 = vld [vmem:[#allocation2 + $0x3c] sm:$0xe] }
  0xde   : > { %v3064_v19 = vrot.slane %v3062_v41, 4  ;;  %v3067_v22 = vrot.slane %v3065_v9, 5  ;;  %v3537_v9 = vld [vmem:[#allocation2 + $0x44] sm:$0x1] }
  0xdf   : > { %3738 = vrot.lane.b32.xlu0 %v3632_v55, %s4940_s25  ;;  %v2547_v55 = vsel %vm5326_vm13, %v4690_v62, %v2546_v56 }
  0xe0   : > { %3740 = vrot.lane.b32.xlu1 %v3635_v47, %s4940_s25  ;;  %v2556_v47 = vrot.slane %v2445_v4, 5  ;;  %v3068_v38 = vor.u32 %v3067_v22, %v3064_v19  ;;  %v3648_v19 = vrot.slane %v3537_v9, 5 }
  0xe2   : > { %v2557_v20 = vsel %vm5326_vm13, %v2555_v8, %v2556_v47  ;;  %v3535_v8 = vld [vmem:[#allocation2 + $0x3c] sm:$0xe]  ;;  %v3645_v47 = vrot.slane %v3536_v3, 5 }
  0xe3   : > { %1752 = vrot.lane.b32.xlu0 %v1684_v17, %s4935_s20  ;;  %v2554_v17 = vsel %vm5326_vm13, %v4691_v7, %v2553_v0  ;;  %v4707_v12 = vrot.slane %v3535_v8, 9 }
  0xe4   : > { %1754 = vrot.lane.b32.xlu1 %v1685_v24, %s4935_s20  ;;  %v3086_v24 = vshrl.u32 %v2974_v15, 16  ;;  %v1357_v15 = vld [vmem:[#allocation2 + $0x44] sm:$0x1] }
  0xe5   : > { %v1248_v48 = vpop.permute.xlu0 %1247  ;;  %v3646_v31 = vsel %vm5326_vm13, %v4707_v12, %v3645_v47 }
  0xe6   : > { %1326 = vst.msk [vmem:[#allocation3 + $0x48] sm:$0xf] %vm1307_vm14, %v1248_v48  ;;  %v3088_v39 = vrot.slane %v3086_v24, 4  ;;  %v2976_v48 = vld [vmem:[#allocation2 + $0x44] sm:$0x1] }
  0xe7   : > { %1756 = vrot.lane.b32.xlu0 %v1686_v36, %s4935_s20  ;;  %v2776_v36 = vld [vmem:[#allocation2 + $0x30] sm:$0xf]  ;;  %v3105_v56 = vshll.u32 %v2976_v48, 16  ;;  %v1886_v24 = vld [vmem:[#allocation2 + $0x40] sm:$0xf] }
  0xe8   : > { %1758 = vrot.lane.b32.xlu1 %v1687_v18, %s4935_s20  ;;  %v3091_v18 = vrot.slane %v3089_v27, 5  ;;  %v4677_v27 = vrot.slane %v1355_v13, 9 }
  0xe9   : > { %v1250_v58 = vpop.permute.xlu1 %1249  ;;  %v3107_v0 = vrot.slane %v3105_v56, 5  ;;  %v1887_v56 = vld [vmem:[#allocation2 + $0x44] sm:$0x1] }
  0xea   : > { %1327 = vst.msk [vmem:[#allocation3 + $0x4c] sm:$0xf] %vm1307_vm14, %v1250_v58  ;;  %v3092_v49 = vor.u32 %v3091_v18, %v3088_v39  ;;  %v1888_v39 = vld [vmem:[#allocation2 + $0x48] sm:$0xf] }
  0xeb   : > { %2313 = vrot.lane.b32.xlu0 %v1982_v61, %s4936_s21  ;;  %v3069_v61 = vrot.slane %v3068_v38, 4  ;;  %v3108_v7 = vsel %vm5061_vm10, %v3103_v63, %v3107_v0  ;;  %v2031_v38 = vshrl.u32 %v1886_v24, 16  ;;  %v2042_v48 = vshrl.u32 %v1888_v39, 16  ;;  %v1689_v63 = vld [vmem:[#allocation2 + $0x40] sm:$0xf] }
  0xec   : > { %2315 = vrot.lane.b32.xlu1 %v1992_v51, %s4936_s21  ;;  %v3079_v51 = vrot.slane %v3078_v43, 4  ;;  %v3093_v58 = vrot.slane %v3092_v49, 4 }
  0xed   : > { %v1252_v60 = vpop.permute.xlu0 %1251  ;;  %v1254_v5 = vpop.permute.xlu1 %1253  ;;  %v3074_v57 = vsel %vm5061_vm10, %v3069_v61, %v3073_v29  ;;  %v1479_v29 = vrot.slane %v1357_v15, 5  ;;  %v2450_v15 = vld [vmem:[#allocation2 + $0x4c] sm:$0xf] }
  0xee   : > { %1328 = vst.msk [vmem:[#allocation3 + $0x50] sm:$0xf] %vm1307_vm14, %v1252_v60  ;;  %1329 = vst.msk [vmem:[#allocation3 + $0x54] sm:$0xf] %vm1307_vm14, %v1254_v5  ;;  %v3098_v60 = vsel %vm5061_vm10, %v3093_v58, %v3097_v45  ;;  %v4706_v5 = vrot.slane %v3532_v54, 9  ;;  %v2044_v58 = vrot.slane %v2042_v48, 4 }
  0xef   : > { %2317 = vrot.lane.b32.xlu0 %v2006_v59, %s4936_s21  ;;  %v3084_v59 = vsel %vm5061_vm10, %v3079_v51, %v3083_v52  ;;  %v2037_v54 = vshll.u32 %v1887_v56, 16  ;;  %v2981_v56 = vld [vmem:[#allocation2 + $0x58] sm:$0xf] }
  0xf0   : > { %2319 = vrot.lane.b32.xlu1 %v2016_v1, %s4936_s21  ;;  %v3638_v1 = vrot.slane %v3533_v26, 5  ;;  %v1688_v26 = vld [vmem:[#allocation2 + $0x3c] sm:$0xf] }
  0xf1   : > { %v1256_v11 = vpop.permute.xlu0 %1255  ;;  %v1258_v14 = vpop.permute.xlu1 %1257  ;;  %v2039_v8 = vrot.slane %v2037_v54, 5 }
  0xf2   : > { %1330 = vst.msk [vmem:[#allocation3 + $0x58] sm:$0xf] %vm1307_vm14, %v1256_v11  ;;  %1331 = vst.msk [vmem:[#allocation3 + $0x5c] sm:$0xf] %vm1307_vm14, %v1258_v14  ;;  %v3640_v41 = vrot.slane %v3638_v1, 4  ;;  %v3639_v11 = vsel %vm5326_vm13, %v4706_v5, %v3638_v1 }
  0xf3   : > { %2650 = vrot.lane.b32.xlu0 %v2547_v55, %s4937_s22  ;;  %v3641_v55 = vrot.slane %v3534_v2, 5 }
  0xf4   : > { %2652 = vrot.lane.b32.xlu1 %v2550_v10, %s4937_s22  ;;  %v1476_v10 = vrot.slane %v1356_v6, 5 }
  0xf5   : > { %v1260_v28 = vpop.permute.xlu0 %1259  ;;  %v3642_v16 = vsel %vm5326_vm13, %v3640_v41, %v3641_v55  ;;  %v1691_v41 = vld [vmem:[#allocation2 + $0x4c] sm:$0xf] }
  0xf6   : > { %1332 = vst.msk [vmem:[#allocation3 + $0x60] sm:$0xf] %vm1307_vm14, %v1260_v28  ;;  %v1478_v28 = vrot.slane %v1476_v10, 4  ;;  %v1477_v43 = vsel %vm5326_vm13, %v4677_v27, %v1476_v10  ;;  %v2448_v27 = vld [vmem:[#allocation2 + $0x44] sm:$0x1] }
  0xf7   : > { %2654 = vrot.lane.b32.xlu0 %v2554_v17, %s4937_s22  ;;  %v3647_v17 = vrot.slane %v3645_v47, 4 }
  0xf8   : > { %2656 = vrot.lane.b32.xlu1 %v2557_v20, %s4937_s22  ;;  %v1262_v37 = vpop.permute.xlu1 %1261  ;;  %v1885_v20 = vld [vmem:[#allocation2 + $0x3c] sm:$0xf]  ;;  %v1480_v44 = vsel %vm5326_vm13, %v1478_v28, %v1479_v29  ;;  %v2567_v28 = vrot.slane %v2450_v15, 5  ;;  %v2782_v15 = vld [vmem:[#allocation2 + $0x54] sm:$0xf] }
  0xf9   : > { %1333 = vst.msk [vmem:[#allocation3 + $0x64] sm:$0xf] %vm1307_vm14, %v1262_v37  ;;  %v2018_v32 = vshrl.u32 %v1885_v20, 16  ;;  %v2021_v33 = vshll.u32 %v1885_v20, 16  ;;  %v2027_v37 = vshll.u32 %v1886_v24, 16 }
  0xfa   : > { %v2446_v20 = vld [vmem:[#allocation2 + $0x3c] sm:$0xe] }
  0xfb   : > { %2844 = vrot.lane.b32.xlu0 %v2776_v36, %s4938_s23  ;;  %v3649_v36 = vsel %vm5326_vm13, %v3647_v17, %v3648_v19  ;;  %v2020_v45 = vrot.slane %v2018_v32, 4  ;;  %v2023_v46 = vrot.slane %v2021_v33, 5  ;;  %v2029_v49 = vrot.slane %v2027_v37, 5  ;;  %v2449_v32 = vld [vmem:[#allocation2 + $0x48] sm:$0xe] }
  0xfc   : > { %2846 = vrot.lane.b32.xlu1 %v2777_v40, %s4938_s23  ;;  %v1889_v40 = vld [vmem:[#allocation2 + $0x4c] sm:$0xf]  ;;  %v2451_v33 = vld [vmem:[#allocation2 + $0x50] sm:$0x1] }
  0xfd   : > { %v2051_v51 = vshll.u32 %v1889_v40, 16  ;;  %v2055_v52 = vshrl.u32 %v1889_v40, 16  ;;  %v2978_v40 = vld [vmem:[#allocation2 + $0x4c] sm:$0xf] }
  0xff   : > { %2848 = vrot.lane.b32.xlu0 %v2778_v25, %s4938_s23  ;;  %v2045_v25 = vshll.u32 %v1888_v39, 16  ;;  %v2053_v1 = vrot.slane %v2051_v51, 5  ;;  %v2057_v2 = vrot.slane %v2055_v52, 4  ;;  %v2977_v39 = vld [vmem:[#allocation2 + $0x48] sm:$0xf]  ;;  %v3123_v51 = vshrl.u32 %v2978_v40, 16 }
 0x100   : > { %2850 = vrot.lane.b32.xlu1 %v2779_v50, %s4938_s23  ;;  %v2033_v50 = vrot.slane %v2031_v38, 4  ;;  %v2563_v38 = vrot.slane %v2448_v27, 5  ;;  %v3110_v48 = vshrl.u32 %v2977_v39, 16  ;;  %v2980_v52 = vld [vmem:[#allocation2 + $0x54] sm:$0xf] }
 0x101   : > { %v2058_v47 = vor.u32 %v2057_v2, %v2053_v1  ;;  %v3143_v2 = vshll.u32 %v2981_v56, 16 }
 0x102   : > { %v1264_v62 = vpop.permute.xlu0 %1263  ;;  %v2034_v0 = vor.u32 %v2033_v50, %v2029_v49  ;;  %v3119_v50 = vshll.u32 %v2978_v40, 16  ;;  %v3540_v40 = vld [vmem:[#allocation2 + $0x50] sm:$0x1] }
 0x103   : > { %1334 = vst.msk [vmem:[#allocation3 + $0x68] sm:$0xf] %vm1307_vm14, %v1264_v62  ;;  %3405 = vrot.lane.b32.xlu0 %v3074_v57, %s4939_s24  ;;  %v2024_v57 = vor.u32 %v2023_v46, %v2020_v45  ;;  %v2059_v17 = vrot.slane %v2058_v47, 4  ;;  %v2570_v45 = vrot.slane %v2451_v33, 5 }
 0x104   : > { %3407 = vrot.lane.b32.xlu1 %v3084_v59, %s4939_s24  ;;  %v1266_v4 = vpop.permute.xlu1 %1265  ;;  %v2047_v59 = vrot.slane %v2045_v25, 5  ;;  %v2035_v55 = vrot.slane %v2034_v0, 4  ;;  %v3113_v25 = vshll.u32 %v2977_v39, 16  ;;  %v3121_v54 = vrot.slane %v3119_v50, 5 }
 0x105   : > { %1335 = vst.msk [vmem:[#allocation3 + $0x6c] sm:$0xf] %vm1307_vm14, %v1266_v4  ;;  %v1890_v4 = vld [vmem:[#allocation2 + $0x50] sm:$0x1]  ;;  %v2025_v5 = vrot.slane %v2024_v57, 4 }
 0x106   : > { %v2048_v6 = vor.u32 %v2047_v59, %v2044_v58  ;;  %v2061_v9 = vshll.u32 %v1890_v4, 16  ;;  %v3112_v58 = vrot.slane %v3110_v48, 4  ;;  %v3115_v59 = vrot.slane %v3113_v25, 5 }
 0x107   : > { %3409 = vrot.lane.b32.xlu0 %v3098_v60, %s4939_s24  ;;  %v1690_v60 = vld [vmem:[#allocation2 + $0x48] sm:$0xf]  ;;  %v2030_v12 = vsel %vm5061_vm10, %v2025_v5, %v2029_v49 }
 0x108   : > { %3411 = vrot.lane.b32.xlu1 %v3108_v7, %s4939_s24  ;;  %v2049_v13 = vrot.slane %v2048_v6, 4  ;;  %v2063_v19 = vrot.slane %v2061_v9, 5  ;;  %v2780_v5 = vld [vmem:[#allocation2 + $0x48] sm:$0xf]  ;;  %v3116_v6 = vor.u32 %v3115_v59, %v3112_v58 }
 0x109   : > { %v1268_v14 = vpop.permute.xlu0 %1267 }
 0x10a   : > { %1336 = vst.msk [vmem:[#allocation3 + $0x70] sm:$0xf] %vm1307_vm14, %v1268_v14  ;;  %v1270_v22 = vpop.permute.xlu1 %1269  ;;  %v2054_v29 = vsel %vm5061_vm10, %v2049_v13, %v2053_v1  ;;  %v3125_v1 = vrot.slane %v3123_v51, 4  ;;  %v2982_v13 = vld [vmem:[#allocation2 + $0x5c] sm:$0x1] }
 0x10b   : > { %1337 = vst.msk [vmem:[#allocation3 + $0x74] sm:$0xf] %vm1307_vm14, %v1270_v22  ;;  %3742 = vrot.lane.b32.xlu0 %v3639_v11, %s4940_s25  ;;  %v2447_v11 = vld [vmem:[#allocation2 + $0x40] sm:$0xf]  ;;  %v3153_v27 = vshll.u32 %v2982_v13, 16 }
 0x10c   : > { %3744 = vrot.lane.b32.xlu1 %v3642_v16, %s4940_s25  ;;  %v2040_v16 = vsel %vm5061_vm10, %v2035_v55, %v2039_v8  ;;  %v2560_v22 = vrot.slane %v2447_v11, 5  ;;  %v2781_v8 = vld [vmem:[#allocation2 + $0x4c] sm:$0xf]  ;;  %v3126_v47 = vor.u32 %v3125_v1, %v3121_v54 }
 0x10d   : > { %v1272_v34 = vpop.permute.xlu0 %1271 }
 0x10e   : > { %1338 = vst.msk [vmem:[#allocation3 + $0x78] sm:$0xf] %vm1307_vm14, %v1272_v34  ;;  %v1274_v18 = vpop.permute.xlu1 %1273  ;;  %v2562_v37 = vrot.slane %v2560_v22, 4 }
 0x10f   : > { %1339 = vst.msk [vmem:[#allocation3 + $0x7c] sm:$0xf] %vm1307_vm14, %v1274_v18  ;;  %3746 = vrot.lane.b32.xlu0 %v3646_v31, %s4940_s25  ;;  %v4692_v31 = vrot.slane %v2446_v20, 9  ;;  %v3127_v20 = vrot.slane %v3126_v47, 4  ;;  %v1891_v47 = vld [vmem:[#allocation2 + $0x54] sm:$0xf] }
 0x110   : > { %3748 = vrot.lane.b32.xlu1 %v3649_v36, %s4940_s25  ;;  %v2064_v36 = vsel %vm5061_vm10, %v2059_v17, %v2063_v19  ;;  %v2564_v49 = vsel %vm5326_vm13, %v2562_v37, %v2563_v38  ;;  %v2783_v19 = vld [vmem:[#allocation2 + $0x58] sm:$0xf]  ;;  %v3155_v37 = vrot.slane %v3153_v27, 5  ;;  %v3538_v38 = vld [vmem:[#allocation2 + $0x48] sm:$0xe]  ;;  %vm3995_vm14 = vcmask 293888  }
 0x111   : > { %v1552_v61 = vpop.permute.xlu0 %1551  ;;  %v2561_v46 = vsel %vm5326_vm13, %v4692_v31, %v2560_v22 }
 0x112   : > { %1648 = vst.msk [vmem:[#allocation3] sm:$0xf] %vm1647_vm2, %v1552_v61  ;;  %v1554_v53 = vpop.permute.xlu1 %1553 }
 0x113   : > { %1649 = vst.msk [vmem:[#allocation3 + $0x4] sm:$0xf] %vm1647_vm2, %v1554_v53  ;;  %1571 = vrot.lane.b32.xlu0 %v1477_v43, %s4934_s19  ;;  %v4693_v43 = vrot.slane %v2449_v32, 9 }
 0x114   : > { %1573 = vrot.lane.b32.xlu1 %v1480_v44, %s4934_s19  ;;  %v2569_v44 = vrot.slane %v2567_v28, 4 }
 0x115   : > { %v1556_v62 = vpop.permute.xlu0 %1555 }
 0x116   : > { %1650 = vst.msk [vmem:[#allocation3 + $0x8] sm:$0xf] %vm1647_vm2, %v1556_v62  ;;  %v1558_v3 = vpop.permute.xlu1 %1557  ;;  %v2571_v57 = vsel %vm5326_vm13, %v2569_v44, %v2570_v45  ;;  %v3134_v62 = vshrl.u32 %v2980_v52, 16  ;;  %v4708_v45 = vrot.slane %v3538_v38, 9 }
 0x117   : > { %1651 = vst.msk [vmem:[#allocation3 + $0xc] sm:$0xf] %vm1647_vm2, %v1558_v3  ;;  %1760 = vrot.lane.b32.xlu0 %v1688_v26, %s4935_s20  ;;  %v2568_v26 = vsel %vm5326_vm13, %v4693_v43, %v2567_v28  ;;  %v3147_v3 = vshrl.u32 %v2981_v56, 16  ;;  %v3542_v43 = vld [vmem:[#allocation2 + $0x58] sm:$0xf] }
 0x118   : > { %1762 = vrot.lane.b32.xlu1 %v1689_v63, %s4935_s20  ;;  %v3137_v63 = vshll.u32 %v2980_v52, 16  ;;  %v3659_v50 = vrot.slane %v3542_v43, 5  ;;  %v3543_v52 = vld [vmem:[#allocation2 + $0x5c] sm:$0x1] }
 0x119   : > { %v1560_v7 = vpop.permute.xlu0 %1559  ;;  %v3149_v11 = vrot.slane %v3147_v3, 4 }
 0x11a   : > { %1652 = vst.msk [vmem:[#allocation3 + $0x10] sm:$0xf] %vm1647_vm2, %v1560_v7  ;;  %v1562_v10 = vpop.permute.xlu1 %1561  ;;  %v3136_v7 = vrot.slane %v3134_v62, 4  ;;  %v3661_v62 = vrot.slane %v3659_v50, 4 }
 0x11b   : > { %1653 = vst.msk [vmem:[#allocation3 + $0x14] sm:$0xf] %vm1647_vm2, %v1562_v10  ;;  %1764 = vrot.lane.b32.xlu0 %v1690_v60, %s4935_s20  ;;  %v2979_v60 = vld [vmem:[#allocation2 + $0x50] sm:$0x1]  ;;  %v3145_v10 = vrot.slane %v3143_v2, 5 }
 0x11c   : > { %1766 = vrot.lane.b32.xlu1 %v1691_v41, %s4935_s20  ;;  %v3139_v41 = vrot.slane %v3137_v63, 5  ;;  %v3129_v9 = vshll.u32 %v2979_v60, 16  ;;  %v3662_v63 = vrot.slane %v3543_v52, 5  ;;  %v1360_v2 = vld [vmem:[#allocation2 + $0x50] sm:$0x1] }
 0x11d   : > { %v1564_v14 = vpop.permute.xlu0 %1563 }
 0x11e   : > { %1654 = vst.msk [vmem:[#allocation3 + $0x18] sm:$0xf] %vm1647_vm2, %v1564_v14  ;;  %v1566_v24 = vpop.permute.xlu1 %1565  ;;  %v3117_v14 = vrot.slane %v3116_v6, 4  ;;  %v3131_v22 = vrot.slane %v3129_v9, 5  ;;  %v1363_v6 = vld [vmem:[#allocation2 + $0x5c] sm:$0x1] }
 0x11f   : > { %1655 = vst.msk [vmem:[#allocation3 + $0x1c] sm:$0xf] %vm1647_vm2, %v1566_v24  ;;  %2321 = vrot.lane.b32.xlu0 %v2030_v12, %s4936_s21  ;;  %v3150_v24 = vor.u32 %v3149_v11, %v3145_v10  ;;  %v1493_v13 = vrot.slane %v1363_v6, 5  ;;  %v2452_v6 = vld [vmem:[#allocation2 + $0x54] sm:$0xe] }
 0x120   : > { %2323 = vrot.lane.b32.xlu1 %v2040_v16, %s4936_s21  ;;  %v3140_v16 = vor.u32 %v3139_v41, %v3136_v7  ;;  %v3122_v31 = vsel %vm5061_vm10, %v3117_v14, %v3121_v54  ;;  %v3663_v41 = vsel %vm5326_vm13, %v3661_v62, %v3662_v63  ;;  %v2066_v14 = vshrl.u32 %v1891_v47, 16  ;;  %v1695_v63 = vld [vmem:[#allocation2 + $0x64] sm:$0xf] }
 0x121   : > { %v1568_v34 = vpop.permute.xlu0 %1567 }
 0x122   : > { %1656 = vst.msk [vmem:[#allocation3 + $0x20] sm:$0xf] %vm1647_vm2, %v1568_v34  ;;  %v1570_v18 = vpop.permute.xlu1 %1569  ;;  %v3141_v32 = vrot.slane %v3140_v16, 4  ;;  %v3132_v34 = vsel %vm5061_vm10, %v3127_v20, %v3131_v22  ;;  %v2069_v16 = vshll.u32 %v1891_v47, 16 }
 0x123   : > { %1657 = vst.msk [vmem:[#allocation3 + $0x24] sm:$0xf] %vm1647_vm2, %v1570_v18  ;;  %2325 = vrot.lane.b32.xlu0 %v2054_v29, %s4936_s21  ;;  %v3539_v29 = vld [vmem:[#allocation2 + $0x4c] sm:$0xf] }
 0x124   : > { %2327 = vrot.lane.b32.xlu1 %v2064_v36, %s4936_s21  ;;  %v3151_v36 = vrot.slane %v3150_v24, 4  ;;  %v3652_v39 = vrot.slane %v3539_v29, 5  ;;  %v3146_v44 = vsel %vm5061_vm10, %v3141_v32, %v3145_v10  ;;  %v1892_v10 = vld [vmem:[#allocation2 + $0x58] sm:$0xf]  ;;  %v1894_v24 = vld [vmem:[#allocation2 + $0x60] sm:$0xf] }
 0x125   : > { %v1745_v61 = vpop.permute.xlu0 %1744  ;;  %v2075_v20 = vshll.u32 %v1892_v10, 16  ;;  %v2079_v22 = vshrl.u32 %v1892_v10, 16  ;;  %v2068_v32 = vrot.slane %v2066_v14, 4  ;;  %v4694_v14 = vrot.slane %v2452_v6, 9 }
 0x126   : > { %1841 = vst.msk [vmem:[#allocation3] sm:$0xf] %vm1840_vm3, %v1745_v61  ;;  %v1747_v53 = vpop.permute.xlu1 %1746  ;;  %v3156_v48 = vsel %vm5061_vm10, %v3151_v36, %v3155_v37  ;;  %v3654_v25 = vrot.slane %v3652_v39, 4  ;;  %v3655_v61 = vrot.slane %v3540_v40, 5  ;;  %v3653_v56 = vsel %vm5326_vm13, %v4708_v45, %v3652_v39  ;;  %v1692_v45 = vld [vmem:[#allocation2 + $0x54] sm:$0xf] }
 0x127   : > { %1842 = vst.msk [vmem:[#allocation3 + $0x4] sm:$0xf] %vm1840_vm3, %v1747_v53  ;;  %2658 = vrot.lane.b32.xlu0 %v2561_v46, %s4937_s22  ;;  %v1359_v53 = vld [vmem:[#allocation2 + $0x4c] sm:$0xf]  ;;  %v2093_v36 = vshll.u32 %v1894_v24, 16  ;;  %v2077_v38 = vrot.slane %v2075_v20, 5 }
 0x128   : > { %2660 = vrot.lane.b32.xlu1 %v2564_v49, %s4937_s22  ;;  %v3541_v49 = vld [vmem:[#allocation2 + $0x54] sm:$0xe]  ;;  %v3656_v59 = vsel %vm5326_vm13, %v3654_v25, %v3655_v61  ;;  %v1483_v54 = vrot.slane %v1359_v53, 5  ;;  %v2081_v39 = vrot.slane %v2079_v22, 4 }
 0x129   : > { %v1749_v0 = vpop.permute.xlu0 %1748  ;;  %v2095_v25 = vrot.slane %v2093_v36, 5 }
 0x12a   : > { %1843 = vst.msk [vmem:[#allocation3 + $0x8] sm:$0xf] %vm1840_vm3, %v1749_v0  ;;  %v1751_v4 = vpop.permute.xlu1 %1750  ;;  %v1358_v0 = vld [vmem:[#allocation2 + $0x48] sm:$0xe] }
 0x12b   : > { %1844 = vst.msk [vmem:[#allocation3 + $0xc] sm:$0xf] %vm1840_vm3, %v1751_v4  ;;  %2662 = vrot.lane.b32.xlu0 %v2568_v26, %s4937_s22  ;;  %v4709_v26 = vrot.slane %v3541_v49, 9  ;;  %v4678_v60 = vrot.slane %v1358_v0, 9  ;;  %v1693_v49 = vld [vmem:[#allocation2 + $0x58] sm:$0xf] }
 0x12c   : > { %2664 = vrot.lane.b32.xlu1 %v2571_v57, %s4937_s22  ;;  %v1362_v57 = vld [vmem:[#allocation2 + $0x58] sm:$0xf] }
 0x12d   : > { %v2306_v55 = vpop.permute.xlu0 %2305  ;;  %v1490_v3 = vrot.slane %v1362_v57, 5  ;;  %v3660_v4 = vsel %vm5326_vm13, %v4709_v26, %v3659_v50  ;;  %v2082_v50 = vor.u32 %v2081_v39, %v2077_v38  ;;  %v1896_v26 = vld [vmem:[#allocation2 + $0x68] sm:$0x1]  ;;  %v1694_v57 = vld [vmem:[#allocation2 + $0x60] sm:$0xf] }
 0x12e   : > { %2402 = vst.msk [vmem:[#allocation3] sm:$0xf] %vm2401_vm4, %v2306_v55  ;;  %v2308_v12 = vpop.permute.xlu1 %2307  ;;  %v1485_v55 = vrot.slane %v1483_v54, 4 }
 0x12f   : > { %2403 = vst.msk [vmem:[#allocation3 + $0x4] sm:$0xf] %vm2401_vm4, %v2308_v12  ;;  %2852 = vrot.lane.b32.xlu0 %v2780_v5, %s4938_s23  ;;  %v1361_v5 = vld [vmem:[#allocation2 + $0x54] sm:$0xe]  ;;  %v1492_v12 = vrot.slane %v1490_v3, 4  ;;  %v2083_v0 = vrot.slane %v2082_v50, 4 }
 0x130   : > { %2854 = vrot.lane.b32.xlu1 %v2781_v8, %s4938_s23  ;;  %v1486_v8 = vrot.slane %v1360_v2, 5  ;;  %v4679_v11 = vrot.slane %v1361_v5, 9  ;;  %v2109_v2 = vshll.u32 %v1896_v26, 16 }
 0x131   : > { %v2310_v17 = vpop.permute.xlu0 %2309 }
 0x132   : > { %2404 = vst.msk [vmem:[#allocation3 + $0x8] sm:$0xf] %vm2401_vm4, %v2310_v17  ;;  %v2312_v28 = vpop.permute.xlu1 %2311  ;;  %v1491_v29 = vsel %vm5326_vm13, %v4679_v11, %v1490_v3  ;;  %v2111_v47 = vrot.slane %v2109_v2, 5  ;;  %v2785_v2 = vld [vmem:[#allocation2 + $0x64] sm:$0xf] }
 0x133   : > { %2405 = vst.msk [vmem:[#allocation3 + $0xc] sm:$0xf] %vm2401_vm4, %v2312_v28  ;;  %2856 = vrot.lane.b32.xlu0 %v2782_v15, %s4938_s23  ;;  %v1484_v15 = vsel %vm5326_vm13, %v4678_v60, %v1483_v54  ;;  %v1895_v28 = vld [vmem:[#allocation2 + $0x64] sm:$0xf] }
 0x134   : > { %2858 = vrot.lane.b32.xlu1 %v2783_v19, %s4938_s23  ;;  %v1487_v19 = vsel %vm5326_vm13, %v1485_v55, %v1486_v8  ;;  %v2103_v40 = vshrl.u32 %v1895_v28, 16 }
 0x135   : > { %v2643_v33 = vpop.permute.xlu0 %2642 }
 0x136   : > { %2739 = vst.msk [vmem:[#allocation3] sm:$0xf] %vm2738_vm5, %v2643_v33  ;;  %v2645_v18 = vpop.permute.xlu1 %2644  ;;  %v2071_v33 = vrot.slane %v2069_v16, 5  ;;  %v2105_v53 = vrot.slane %v2103_v40, 4  ;;  %v2455_v16 = vld [vmem:[#allocation2 + $0x60] sm:$0xe] }
 0x137   : > { %2740 = vst.msk [vmem:[#allocation3 + $0x4] sm:$0xf] %vm2738_vm5, %v2645_v18  ;;  %3413 = vrot.lane.b32.xlu0 %v3122_v31, %s4939_s24  ;;  %v1494_v31 = vsel %vm5326_vm13, %v1492_v12, %v1493_v13  ;;  %v2099_v18 = vshll.u32 %v1895_v28, 16  ;;  %v2454_v12 = vld [vmem:[#allocation2 + $0x5c] sm:$0x1] }
 0x138   : > { %3415 = vrot.lane.b32.xlu1 %v3132_v34, %s4939_s24  ;;  %v2090_v34 = vshrl.u32 %v1894_v24, 16  ;;  %v2577_v24 = vrot.slane %v2454_v12, 5 }
 0x139   : > { %v2647_v46 = vpop.permute.xlu0 %2646  ;;  %v2101_v52 = vrot.slane %v2099_v18, 5 }
 0x13a   : > { %2741 = vst.msk [vmem:[#allocation3 + $0x8] sm:$0xf] %vm2738_vm5, %v2647_v46  ;;  %v2649_v51 = vpop.permute.xlu1 %2648  ;;  %v2072_v46 = vor.u32 %v2071_v33, %v2068_v32  ;;  %v4695_v32 = vrot.slane %v2455_v16, 9 }
 0x13b   : > { %2742 = vst.msk [vmem:[#allocation3 + $0xc] sm:$0xf] %vm2738_vm5, %v2649_v51  ;;  %3417 = vrot.lane.b32.xlu0 %v3146_v44, %s4939_s24  ;;  %v1893_v44 = vld [vmem:[#allocation2 + $0x5c] sm:$0x1] }
 0x13c   : > { %3419 = vrot.lane.b32.xlu1 %v3156_v48, %s4939_s24  ;;  %v2092_v48 = vrot.slane %v2090_v34, 4  ;;  %v2085_v51 = vshll.u32 %v1893_v44, 16  ;;  %v2986_v44 = vld [vmem:[#allocation2 + $0x6c] sm:$0xf] }
 0x13d   : > { %v2837_v58 = vpop.permute.xlu0 %2836  ;;  %v3182_v50 = vshrl.u32 %v2986_v44, 16 }
 0x13e   : > { %2933 = vst.msk [vmem:[#allocation3] sm:$0xf] %vm2932_vm6, %v2837_v58  ;;  %v2839_v1 = vpop.permute.xlu1 %2838  ;;  %v2073_v58 = vrot.slane %v2072_v46, 4  ;;  %v2087_v54 = vrot.slane %v2085_v51, 5  ;;  %v2987_v46 = vld [vmem:[#allocation2 + $0x70] sm:$0xf] }
 0x13f   : > { %2934 = vst.msk [vmem:[#allocation3 + $0x4] sm:$0xf] %vm2932_vm6, %v2839_v1  ;;  %3750 = vrot.lane.b32.xlu0 %v3653_v56, %s4940_s25  ;;  %v2106_v1 = vor.u32 %v2105_v53, %v2101_v52  ;;  %v3185_v51 = vshll.u32 %v2986_v44, 16  ;;  %v3191_v26 = vshll.u32 %v2987_v46, 16  ;;  %v3549_v44 = vld [vmem:[#allocation2 + $0x74] sm:$0x1] }
 0x140   : > { %3752 = vrot.lane.b32.xlu1 %v3656_v59, %s4940_s25  ;;  %v2096_v59 = vor.u32 %v2095_v25, %v2092_v48  ;;  %v2078_v60 = vsel %vm5061_vm10, %v2073_v58, %v2077_v38  ;;  %v2088_v55 = vsel %vm5061_vm10, %v2083_v0, %v2087_v54  ;;  %v3184_v0 = vrot.slane %v3182_v50, 4 }
 0x141   : > { %v2841_v7 = vpop.permute.xlu0 %2840  ;;  %v2107_v8 = vrot.slane %v2106_v1, 4  ;;  %v3187_v54 = vrot.slane %v3185_v51, 5  ;;  %v3676_v51 = vrot.slane %v3549_v44, 5 }
 0x142   : > { %2935 = vst.msk [vmem:[#allocation3 + $0x8] sm:$0xf] %vm2932_vm6, %v2841_v7  ;;  %v2843_v9 = vpop.permute.xlu1 %2842  ;;  %v2097_v5 = vrot.slane %v2096_v59, 4  ;;  %v2456_v7 = vld [vmem:[#allocation2 + $0x64] sm:$0xf] }
 0x143   : > { %2936 = vst.msk [vmem:[#allocation3 + $0xc] sm:$0xf] %vm2932_vm6, %v2843_v9  ;;  %3754 = vrot.lane.b32.xlu0 %v3660_v4, %s4940_s25  ;;  %v2453_v4 = vld [vmem:[#allocation2 + $0x58] sm:$0xf]  ;;  %v2581_v13 = vrot.slane %v2456_v7, 5  ;;  %v2112_v20 = vsel %vm5061_vm10, %v2107_v8, %v2111_v47  ;;  %v3188_v8 = vor.u32 %v3187_v54, %v3184_v0 }
 0x144   : > { %3756 = vrot.lane.b32.xlu1 %v3663_v41, %s4940_s25  ;;  %v2574_v9 = vrot.slane %v2453_v4, 5  ;;  %v2985_v59 = vld [vmem:[#allocation2 + $0x68] sm:$0x1]  ;;  %v2988_v7 = vld [vmem:[#allocation2 + $0x74] sm:$0x1] }
 0x145   : > { %v3398_v17 = vpop.permute.xlu0 %3397  ;;  %v2583_v33 = vrot.slane %v2581_v13, 4  ;;  %v2582_v48 = vsel %vm5326_vm13, %v4695_v32, %v2581_v13  ;;  %v3177_v4 = vshll.u32 %v2985_v59, 16  ;;  %v3201_v13 = vshll.u32 %v2988_v7, 16  ;;  %v3548_v32 = vld [vmem:[#allocation2 + $0x70] sm:$0xf] }
 0x146   : > { %3494 = vst.msk [vmem:[#allocation3] sm:$0xf] %vm3493_vm11, %v3398_v17  ;;  %v3400_v27 = vpop.permute.xlu1 %3399  ;;  %v2457_v17 = vld [vmem:[#allocation2 + $0x68] sm:$0x1]  ;;  %v2576_v22 = vrot.slane %v2574_v9, 4  ;;  %v2575_v36 = vsel %vm5326_vm13, %v4694_v14, %v2574_v9 }
 0x147   : > { %3495 = vst.msk [vmem:[#allocation3 + $0x4] sm:$0xf] %vm3493_vm11, %v3400_v27  ;;  %1575 = vrot.lane.b32.xlu0 %v1484_v15, %s4934_s19  ;;  %v2102_v15 = vsel %vm5061_vm10, %v2097_v5, %v2101_v52  ;;  %v2983_v27 = vld [vmem:[#allocation2 + $0x60] sm:$0xf]  ;;  %v2584_v34 = vrot.slane %v2457_v17, 5  ;;  %v3189_v17 = vrot.slane %v3188_v8, 4 }
 0x148   : > { %1577 = vrot.lane.b32.xlu1 %v1487_v19, %s4934_s19  ;;  %v3161_v38 = vshll.u32 %v2983_v27, 16  ;;  %v2578_v18 = vsel %vm5326_vm13, %v2576_v22, %v2577_v24  ;;  %v2787_v9 = vld [vmem:[#allocation2 + $0x70] sm:$0xf]  ;;  %v3545_v14 = vld [vmem:[#allocation2 + $0x64] sm:$0xf]  ;;  %v3203_v24 = vrot.slane %v3201_v13, 5 }
 0x149   : > { %v3402_v37 = vpop.permute.xlu0 %3401  ;;  %v2585_v25 = vsel %vm5326_vm13, %v2583_v33, %v2584_v34 }
 0x14a   : > { %3496 = vst.msk [vmem:[#allocation3 + $0x8] sm:$0xf] %vm3493_vm11, %v3402_v37  ;;  %v3404_v43 = vpop.permute.xlu1 %3403  ;;  %v3158_v37 = vshrl.u32 %v2983_v27, 16  ;;  %v3544_v27 = vld [vmem:[#allocation2 + $0x60] sm:$0xe] }
 0x14b   : > { %3497 = vst.msk [vmem:[#allocation3 + $0xc] sm:$0xf] %vm3493_vm11, %v3404_v43  ;;  %1579 = vrot.lane.b32.xlu0 %v1491_v29, %s4934_s19  ;;  %v4710_v34 = vrot.slane %v3544_v27, 9 }
 0x14c   : > { %1581 = vrot.lane.b32.xlu1 %v1494_v31, %s4934_s19  ;;  %v2984_v31 = vld [vmem:[#allocation2 + $0x64] sm:$0xf] }
 0x14d   : > { %v3735_v61 = vpop.permute.xlu0 %3734  ;;  %v3167_v40 = vshll.u32 %v2984_v31, 16  ;;  %v3171_v43 = vshrl.u32 %v2984_v31, 16  ;;  %v3546_v31 = vld [vmem:[#allocation2 + $0x68] sm:$0x1] }
 0x14e   : > { %3831 = vst.msk [vmem:[#allocation3] sm:$0xf] %vm3830_vm12, %v3735_v61  ;;  %v3737_v56 = vpop.permute.xlu1 %3736  ;;  %v3160_v61 = vrot.slane %v3158_v37, 4 }
 0x14f   : > { %3832 = vst.msk [vmem:[#allocation3 + $0x4] sm:$0xf] %vm3830_vm12, %v3737_v56  ;;  %1768 = vrot.lane.b32.xlu0 %v1692_v45, %s4935_s20  ;;  %v3169_v53 = vrot.slane %v3167_v40, 5  ;;  %v3173_v56 = vrot.slane %v3171_v43, 4  ;;  %v3673_v40 = vrot.slane %v3548_v32, 5 }
 0x150   : > { %1770 = vrot.lane.b32.xlu1 %v1693_v49, %s4935_s20  ;;  %v3163_v49 = vrot.slane %v3161_v38, 5 }
 0x151   : > { %v3739_v62 = vpop.permute.xlu0 %3738  ;;  %v3675_v50 = vrot.slane %v3673_v40, 4 }
 0x152   : > { %3833 = vst.msk [vmem:[#allocation3 + $0x8] sm:$0xf] %vm3830_vm12, %v3739_v62  ;;  %v3741_v3 = vpop.permute.xlu1 %3740  ;;  %v2784_v62 = vld [vmem:[#allocation2 + $0x60] sm:$0xf] }
 0x153   : > { %3834 = vst.msk [vmem:[#allocation3 + $0xc] sm:$0xf] %vm3830_vm12, %v3741_v3  ;;  %1772 = vrot.lane.b32.xlu0 %v1694_v57, %s4935_s20  ;;  %v3195_v57 = vshrl.u32 %v2987_v46, 16  ;;  %v3174_v3 = vor.u32 %v3173_v56, %v3169_v53  ;;  %v3677_v54 = vsel %vm5326_vm13, %v3675_v50, %v3676_v51 }
 0x154   : > { %1774 = vrot.lane.b32.xlu1 %v1695_v63, %s4935_s20  ;;  %v3164_v63 = vor.u32 %v3163_v49, %v3160_v61 }
 0x155   : > { %v1753_v41 = vpop.permute.xlu0 %1752  ;;  %v3197_v5 = vrot.slane %v3195_v57, 4 }
 0x156   : > { %1845 = vst.msk [vmem:[#allocation3 + $0x10] sm:$0xf] %vm1840_vm3, %v1753_v41  ;;  %v1755_v10 = vpop.permute.xlu1 %1754  ;;  %v4908_v11 = vld [vmem:[#allocation3] sm:$0xff]   ;;  %v2786_v41 = vld [vmem:[#allocation2 + $0x6c] sm:$0xf] }
 0x157   : > { %1846 = vst.msk [vmem:[#allocation3 + $0x14] sm:$0xf] %vm1840_vm3, %v1755_v10  ;;  %2329 = vrot.lane.b32.xlu0 %v2078_v60, %s4936_s21  ;;  %4848 = vmatprep.mubr.msk.bf16.mxu0 %vm3995_vm14, %v4908_v11  ;;  %v3193_v60 = vrot.slane %v3191_v26, 5  ;;  %v3175_v10 = vrot.slane %v3174_v3, 4  ;;  %v3179_v11 = vrot.slane %v3177_v4, 5 }
 0x158   : > { %2331 = vrot.lane.b32.xlu1 %v2088_v55, %s4936_s21  ;;  %v3165_v55 = vrot.slane %v3164_v63, 4  ;;  %v1366_v26 = vld [vmem:[#allocation2 + $0x68] sm:$0x1]  ;;  %v1369_v63 = vld [vmem:[#allocation2 + $0x74] sm:$0x1] }
 0x159   : > { %v1757_v19 = vpop.permute.xlu0 %1756  ;;  %v3198_v12 = vor.u32 %v3197_v5, %v3193_v60  ;;  %v3194_v33 = vsel %vm5061_vm10, %v3189_v17, %v3193_v60  ;;  %v1897_v3 = vld [vmem:[#allocation2 + $0x6c] sm:$0xf]  ;;  %v1898_v60 = vld [vmem:[#allocation2 + $0x70] sm:$0xf]  ;;  %v1507_v7 = vrot.slane %v1369_v63, 5 }
 0x15a   : > { %1847 = vst.msk [vmem:[#allocation3 + $0x18] sm:$0xf] %vm1840_vm3, %v1757_v19  ;;  %v1759_v28 = vpop.permute.xlu1 %1758  ;;  %v4909_v29 = vld [vmem:[#allocation3 + $0x8] sm:$0xff]   ;;  %v3170_v16 = vsel %vm5061_vm10, %v3165_v55, %v3169_v53  ;;  %v2114_v55 = vshrl.u32 %v1897_v3, 16  ;;  %v2117_v8 = vshll.u32 %v1897_v3, 16 }
 0x15b   : > { %1848 = vst.msk [vmem:[#allocation3 + $0x1c] sm:$0xf] %vm1840_vm3, %v1759_v28  ;;  %2333 = vrot.lane.b32.xlu0 %v2102_v15, %s4936_s21  ;;  %4849 = vmatmul.mubr.msk.bf16.vlgmr.msra.gmra.mxu0 %vm3995_vm14, %v4909_v29  ;;  %v3199_v22 = vrot.slane %v3198_v12, 4  ;;  %v3666_v28 = vrot.slane %v3545_v14, 5  ;;  %v1900_v12 = vld [vmem:[#allocation2 + $0x78] sm:$0xf] }
 0x15c   : > { %2335 = vrot.lane.b32.xlu1 %v2112_v20, %s4936_s21  ;;  %v3180_v20 = vsel %vm5061_vm10, %v3175_v10, %v3179_v11  ;;  %v2123_v10 = vshll.u32 %v1898_v60, 16  ;;  %v2127_v11 = vshrl.u32 %v1898_v60, 16  ;;  %v2116_v17 = vrot.slane %v2114_v55, 4 }
 0x15d   : > { %v2314_v39 = vpop.permute.xlu0 %2313  ;;  %v3204_v37 = vsel %vm5061_vm10, %v3199_v22, %v3203_v24  ;;  %v3668_v38 = vrot.slane %v3666_v28, 4  ;;  %v3667_v46 = vsel %vm5326_vm13, %v4710_v34, %v3666_v28  ;;  %v2141_v22 = vshll.u32 %v1900_v12, 16  ;;  %v1696_v34 = vld [vmem:[#allocation2 + $0x6c] sm:$0xf] }
 0x15e   : > { %2406 = vst.msk [vmem:[#allocation3 + $0x10] sm:$0xf] %vm2401_vm4, %v2314_v39  ;;  %v2316_v45 = vpop.permute.xlu1 %2315  ;;  %v3669_v39 = vrot.slane %v3546_v31, 5  ;;  %v2125_v27 = vrot.slane %v2123_v10, 5  ;;  %v2129_v28 = vrot.slane %v2127_v11, 4 }
 0x15f   : > { %2407 = vst.msk [vmem:[#allocation3 + $0x14] sm:$0xf] %vm2401_vm4, %v2316_v45  ;;  %2666 = vrot.lane.b32.xlu0 %v2575_v36, %s4937_s22  ;;  %v1365_v45 = vld [vmem:[#allocation2 + $0x64] sm:$0xf] }
 0x160   : > { %2668 = vrot.lane.b32.xlu1 %v2578_v18, %s4937_s22  ;;  %v3547_v18 = vld [vmem:[#allocation2 + $0x6c] sm:$0xe]  ;;  %v3670_v49 = vsel %vm5326_vm13, %v3668_v38, %v3669_v39  ;;  %v1497_v53 = vrot.slane %v1365_v45, 5  ;;  %v2143_v39 = vrot.slane %v2141_v22, 5 }
 0x161   : > { %v2318_v52 = vpop.permute.xlu0 %2317 }
 0x162   : > { %2408 = vst.msk [vmem:[#allocation3 + $0x18] sm:$0xf] %vm2401_vm4, %v2318_v52  ;;  %v2320_v58 = vpop.permute.xlu1 %2319  ;;  %v1364_v52 = vld [vmem:[#allocation2 + $0x60] sm:$0xe] }
 0x163   : > { %2409 = vst.msk [vmem:[#allocation3 + $0x1c] sm:$0xf] %vm2401_vm4, %v2320_v58  ;;  %2670 = vrot.lane.b32.xlu0 %v2582_v48, %s4937_s22  ;;  %v4711_v48 = vrot.slane %v3547_v18, 9  ;;  %v4680_v59 = vrot.slane %v1364_v52, 9 }
 0x164   : > { %2672 = vrot.lane.b32.xlu1 %v2585_v25, %s4937_s22  ;;  %v1368_v25 = vld [vmem:[#allocation2 + $0x70] sm:$0xf] }
 0x165   : > { %v2651_v1 = vpop.permute.xlu0 %2650  ;;  %v1504_v57 = vrot.slane %v1368_v25, 5  ;;  %v3674_v58 = vsel %vm5326_vm13, %v4711_v48, %v3673_v40  ;;  %v2130_v40 = vor.u32 %v2129_v28, %v2125_v27  ;;  %v1902_v25 = vld [vmem:[#allocation2 + $0x80] sm:$0x1]  ;;  %v2992_v28 = vld [vmem:[#allocation2 + $0x84] sm:$0xf] }
 0x166   : > { %2743 = vst.msk [vmem:[#allocation3 + $0x10] sm:$0xf] %vm2738_vm5, %v2651_v1  ;;  %v2653_v6 = vpop.permute.xlu1 %2652  ;;  %v1499_v1 = vrot.slane %v1497_v53, 4 }
 0x167   : > { %2744 = vst.msk [vmem:[#allocation3 + $0x14] sm:$0xf] %vm2738_vm5, %v2653_v6  ;;  %2860 = vrot.lane.b32.xlu0 %v2784_v62, %s4938_s23  ;;  %v1367_v62 = vld [vmem:[#allocation2 + $0x6c] sm:$0xe]  ;;  %v1506_v6 = vrot.slane %v1504_v57, 4 }
 0x168   : > { %2862 = vrot.lane.b32.xlu1 %v2785_v2, %s4938_s23  ;;  %v1500_v2 = vrot.slane %v1366_v26, 5  ;;  %v4681_v5 = vrot.slane %v1367_v62, 9  ;;  %v2459_v62 = vld [vmem:[#allocation2 + $0x70] sm:$0xf] }
 0x169   : > { %v2655_v47 = vpop.permute.xlu0 %2654  ;;  %v2588_v60 = vrot.slane %v2459_v62, 5 }
 0x16a   : > { %2745 = vst.msk [vmem:[#allocation3 + $0x18] sm:$0xf] %vm2738_vm5, %v2655_v47  ;;  %v2657_v15 = vpop.permute.xlu1 %2656  ;;  %v1505_v14 = vsel %vm5326_vm13, %v4681_v5, %v1504_v57  ;;  %v2157_v57 = vshll.u32 %v1902_v25, 16  ;;  %v2462_v5 = vld [vmem:[#allocation2 + $0x7c] sm:$0xf] }
 0x16b   : > { %2746 = vst.msk [vmem:[#allocation3 + $0x1c] sm:$0xf] %vm2738_vm5, %v2657_v15  ;;  %2864 = vrot.lane.b32.xlu0 %v2786_v41, %s4938_s23  ;;  %v1498_v41 = vsel %vm5326_vm13, %v4680_v59, %v1497_v53  ;;  %v1901_v15 = vld [vmem:[#allocation2 + $0x7c] sm:$0xf]  ;;  %v2131_v53 = vrot.slane %v2130_v40, 4  ;;  %v2590_v11 = vrot.slane %v2588_v60, 4 }
 0x16c   : > { %2866 = vrot.lane.b32.xlu1 %v2787_v9, %s4938_s23  ;;  %v1501_v9 = vsel %vm5326_vm13, %v1499_v1, %v1500_v2  ;;  %v2151_v31 = vshrl.u32 %v1901_v15, 16 }
 0x16d   : > { %v2845_v19 = vpop.permute.xlu0 %2844 }
 0x16e   : > { %2937 = vst.msk [vmem:[#allocation3 + $0x10] sm:$0xf] %vm2932_vm6, %v2845_v19  ;;  %v2847_v29 = vpop.permute.xlu1 %2846  ;;  %v2119_v19 = vrot.slane %v2117_v8, 5  ;;  %v2153_v45 = vrot.slane %v2151_v31, 4  ;;  %v2461_v8 = vld [vmem:[#allocation2 + $0x78] sm:$0xe] }
 0x16f   : > { %2938 = vst.msk [vmem:[#allocation3 + $0x14] sm:$0xf] %vm2932_vm6, %v2847_v29  ;;  %3421 = vrot.lane.b32.xlu0 %v3170_v16, %s4939_s24  ;;  %v1508_v16 = vsel %vm5326_vm13, %v1506_v6, %v1507_v7  ;;  %v2147_v29 = vshll.u32 %v1901_v15, 16  ;;  %v2460_v7 = vld [vmem:[#allocation2 + $0x74] sm:$0x1] }
 0x170   : > { %3423 = vrot.lane.b32.xlu1 %v3180_v20, %s4939_s24  ;;  %v2138_v20 = vshrl.u32 %v1900_v12, 16  ;;  %v2591_v12 = vrot.slane %v2460_v7, 5  ;;  %v2989_v15 = vld [vmem:[#allocation2 + $0x78] sm:$0xf] }
 0x171   : > { %v2849_v36 = vpop.permute.xlu0 %2848  ;;  %v2149_v44 = vrot.slane %v2147_v29, 5 }
 0x172   : > { %2939 = vst.msk [vmem:[#allocation3 + $0x18] sm:$0xf] %vm2932_vm6, %v2849_v36  ;;  %v2851_v43 = vpop.permute.xlu1 %2850  ;;  %v1697_v36 = vld [vmem:[#allocation2 + $0x70] sm:$0xf]  ;;  %v2140_v38 = vrot.slane %v2138_v20, 4  ;;  %v2592_v31 = vsel %vm5326_vm13, %v2590_v11, %v2591_v12 }
 0x173   : > { %2940 = vst.msk [vmem:[#allocation3 + $0x1c] sm:$0xf] %vm2932_vm6, %v2851_v43  ;;  %3425 = vrot.lane.b32.xlu0 %v3194_v33, %s4939_s24  ;;  %v1899_v33 = vld [vmem:[#allocation2 + $0x74] sm:$0x1]  ;;  %v2154_v26 = vor.u32 %v2153_v45, %v2149_v44  ;;  %v3550_v11 = vld [vmem:[#allocation2 + $0x78] sm:$0xe] }
 0x174   : > { %3427 = vrot.lane.b32.xlu1 %v3204_v37, %s4939_s24  ;;  %v2120_v37 = vor.u32 %v2119_v19, %v2116_v17  ;;  %v2133_v43 = vshll.u32 %v1899_v33, 16  ;;  %v2144_v51 = vor.u32 %v2143_v39, %v2140_v38  ;;  %v4697_v19 = vrot.slane %v2461_v8, 9 }
 0x175   : > { %v3406_v61 = vpop.permute.xlu0 %3405  ;;  %v2155_v3 = vrot.slane %v2154_v26, 4  ;;  %v3233_v38 = vshll.u32 %v2992_v28, 16  ;;  %v2789_v26 = vld [vmem:[#allocation2 + $0x7c] sm:$0xf] }
 0x176   : > { %3498 = vst.msk [vmem:[#allocation3 + $0x10] sm:$0xf] %vm3493_vm11, %v3406_v61  ;;  %v3408_v56 = vpop.permute.xlu1 %3407  ;;  %v1698_v61 = vld [vmem:[#allocation2 + $0x78] sm:$0xf]  ;;  %v2121_v50 = vrot.slane %v2120_v37, 4  ;;  %v3230_v37 = vshrl.u32 %v2992_v28, 16 }
 0x177   : > { %3499 = vst.msk [vmem:[#allocation3 + $0x14] sm:$0xf] %vm3493_vm11, %v3408_v56  ;;  %3758 = vrot.lane.b32.xlu0 %v3667_v46, %s4940_s25  ;;  %v2135_v56 = vrot.slane %v2133_v43, 5 }
 0x178   : > { %3760 = vrot.lane.b32.xlu1 %v3670_v49, %s4940_s25  ;;  %v1699_v49 = vld [vmem:[#allocation2 + $0x7c] sm:$0xf]  ;;  %v2126_v63 = vsel %vm5061_vm10, %v2121_v50, %v2125_v27  ;;  %v3209_v27 = vshll.u32 %v2989_v15, 16  ;;  %v3232_v50 = vrot.slane %v3230_v37, 4 }
 0x179   : > { %v3410_v0 = vpop.permute.xlu0 %3409  ;;  %v2136_v2 = vsel %vm5061_vm10, %v2131_v53, %v2135_v56 }
 0x17a   : > { %3500 = vst.msk [vmem:[#allocation3 + $0x18] sm:$0xf] %vm3493_vm11, %v3410_v0  ;;  %v3412_v4 = vpop.permute.xlu1 %3411  ;;  %v2145_v0 = vrot.slane %v2144_v51, 4  ;;  %v3211_v43 = vrot.slane %v3209_v27, 5  ;;  %v3235_v51 = vrot.slane %v3233_v38, 5 }
 0x17b   : > { %3501 = vst.msk [vmem:[#allocation3 + $0x1c] sm:$0xf] %vm3493_vm11, %v3412_v4  ;;  %3762 = vrot.lane.b32.xlu0 %v3674_v58, %s4940_s25  ;;  %v2159_v4 = vrot.slane %v2157_v57, 5 }
 0x17c   : > { %3764 = vrot.lane.b32.xlu1 %v3677_v54, %s4940_s25  ;;  %v2458_v54 = vld [vmem:[#allocation2 + $0x6c] sm:$0xe]  ;;  %v2150_v55 = vsel %vm5061_vm10, %v2145_v0, %v2149_v44  ;;  %v2994_v0 = vld [vmem:[#allocation2 + $0x8c] sm:$0x1] }
 0x17d   : > { %v3743_v47 = vpop.permute.xlu0 %3742  ;;  %v2160_v10 = vsel %vm5061_vm10, %v2155_v3, %v2159_v4  ;;  %v2791_v4 = vld [vmem:[#allocation2 + $0x88] sm:$0xf]  ;;  %v3249_v7 = vshll.u32 %v2994_v0, 16 }
 0x17e   : > { %3835 = vst.msk [vmem:[#allocation3 + $0x10] sm:$0xf] %vm3830_vm12, %v3743_v47  ;;  %v3745_v13 = vpop.permute.xlu1 %3744  ;;  %v2595_v47 = vrot.slane %v2462_v5, 5 }
 0x17f   : > { %3836 = vst.msk [vmem:[#allocation3 + $0x14] sm:$0xf] %vm3830_vm12, %v3745_v13  ;;  %1583 = vrot.lane.b32.xlu0 %v1498_v41, %s4934_s19  ;;  %v4696_v41 = vrot.slane %v2458_v54, 9  ;;  %v2463_v13 = vld [vmem:[#allocation2 + $0x80] sm:$0x1]  ;;  %v3236_v54 = vor.u32 %v3235_v51, %v3232_v50 }
 0x180   : > { %1585 = vrot.lane.b32.xlu1 %v1501_v9, %s4934_s19  ;;  %v2597_v20 = vrot.slane %v2595_v47, 4  ;;  %v2598_v22 = vrot.slane %v2463_v13, 5  ;;  %v2596_v39 = vsel %vm5326_vm13, %v4697_v19, %v2595_v47  ;;  %v269_v47 = vld [vmem:[%s5035_s17 + $0x78] sm:$0xf] }
 0x181   : > { %v3747_v24 = vpop.permute.xlu0 %3746  ;;  %v2589_v17 = vsel %vm5326_vm13, %v4696_v41, %v2588_v60  ;;  %v3237_v8 = vrot.slane %v3236_v54, 4  ;;  %v530_v12 = vshrl.u32 %v269_v47, 16  ;;  %v533_v28 = vshll.u32 %v269_v47, 16 }
 0x182   : > { %3837 = vst.msk [vmem:[#allocation3 + $0x18] sm:$0xf] %vm3830_vm12, %v3747_v24  ;;  %v3749_v32 = vpop.permute.xlu1 %3748  ;;  %v3206_v24 = vshrl.u32 %v2989_v15, 16 }
 0x183   : > { %3838 = vst.msk [vmem:[#allocation3 + $0x1c] sm:$0xf] %vm3830_vm12, %v3749_v32  ;;  %1587 = vrot.lane.b32.xlu0 %v1505_v14, %s4934_s19  ;;  %v532_v27 = vrot.slane %v530_v12, 7 }
 0x184   : > { %1589 = vrot.lane.b32.xlu1 %v1508_v16, %s4934_s19  ;;  %v2990_v16 = vld [vmem:[#allocation2 + $0x7c] sm:$0xf]  ;;  %v3208_v40 = vrot.slane %v3206_v24, 4  ;;  %v3552_v24 = vld [vmem:[#allocation2 + $0x80] sm:$0x1] }
 0x185   : > { %v1572_v18 = vpop.permute.xlu0 %1571  ;;  %v3215_v32 = vshll.u32 %v2990_v16, 16  ;;  %v3219_v33 = vshrl.u32 %v2990_v16, 16  ;;  %v536_v37 = vrot.slane %v532_v27, 4 }
 0x186   : > { %1658 = vst.msk [vmem:[#allocation3 + $0x28] sm:$0xf] %vm1647_vm2, %v1572_v18  ;;  %v1574_v46 = vpop.permute.xlu1 %1573  ;;  %v4910_v48 = vld [vmem:[#allocation3 + $0x10] sm:$0xff]   ;;  %v2599_v18 = vsel %vm5326_vm13, %v2597_v20, %v2598_v22  ;;  %v3212_v53 = vor.u32 %v3211_v43, %v3208_v40  ;;  %v3683_v43 = vrot.slane %v3552_v24, 5 }
 0x187   : > { %1659 = vst.msk [vmem:[#allocation3 + $0x2c] sm:$0xf] %vm1647_vm2, %v1574_v46  ;;  %1776 = vrot.lane.b32.xlu0 %v1696_v34, %s4935_s20  ;;  %4852 = vmatprep.mubr.msk.bf16.mxu0 %vm3995_vm14, %v4910_v48  ;;  %v3217_v45 = vrot.slane %v3215_v32, 5  ;;  %v3221_v46 = vrot.slane %v3219_v33, 4  ;;  %v3554_v20 = vld [vmem:[#allocation2 + $0x88] sm:$0xf] }
 0x188   : > { %1778 = vrot.lane.b32.xlu1 %v1697_v36, %s4935_s20  ;;  %v2993_v36 = vld [vmem:[#allocation2 + $0x88] sm:$0xf]  ;;  %v4712_v33 = vrot.slane %v3550_v11, 9 }
 0x189   : > { %v1761_v52 = vpop.permute.xlu0 %1760  ;;  %v3239_v48 = vshll.u32 %v2993_v36, 16  ;;  %v3243_v25 = vshrl.u32 %v2993_v36, 16  ;;  %v3222_v57 = vor.u32 %v3221_v46, %v3217_v45  ;;  %v535_v36 = vor.u32 %v533_v28, %v532_v27 }
 0x18a   : > { %1849 = vst.msk [vmem:[#allocation3 + $0x20] sm:$0xf] %vm1840_vm3, %v1761_v52  ;;  %v1763_v58 = vpop.permute.xlu1 %1762  ;;  %v4911_v59 = vld [vmem:[#allocation3 + $0x18] sm:$0xff]   ;;  %v2788_v52 = vld [vmem:[#allocation2 + $0x78] sm:$0xf] }
 0x18b   : > { %1850 = vst.msk [vmem:[#allocation3 + $0x24] sm:$0xf] %vm1840_vm3, %v1763_v58  ;;  %1780 = vrot.lane.b32.xlu0 %v1698_v61, %s4935_s20  ;;  %4853 = vmatmul.mubr.msk.bf16.gmra.mxu0 %vm3995_vm14, %v4911_v59  ;;  %v5794_v59 = vrot.slane %v3239_v48, 5  ;;  %v3245_v62 = vrot.slane %v3243_v25, 4  ;;  %v3223_v60 = vrot.slane %v3222_v57, 4 }
 0x18c   : > { %1782 = vrot.lane.b32.xlu1 %v1699_v49, %s4935_s20  ;;  %v2991_v49 = vld [vmem:[#allocation2 + $0x80] sm:$0x1]  ;;  %v3555_v48 = vld [vmem:[#allocation2 + $0x8c] sm:$0x1]  ;;  %v1371_v25 = vld [vmem:[#allocation2 + $0x7c] sm:$0xf] }
 0x18d   : > { %v1765_v1 = vpop.permute.xlu0 %1764  ;;  %v3225_v58 = vshll.u32 %v2991_v49, 16  ;;  %v3242_v32 = vsel %vm5061_vm10, %v3237_v8, %v5794_v59  ;;  %v1370_v57 = vld [vmem:[#allocation2 + $0x78] sm:$0xe] }
 0x18e   : > { %1851 = vst.msk [vmem:[#allocation3 + $0x28] sm:$0xf] %vm1840_vm3, %v1765_v1  ;;  %v1767_v6 = vpop.permute.xlu1 %1766  ;;  %v2790_v1 = vld [vmem:[#allocation2 + $0x84] sm:$0xf] }
 0x18f   : > { %1852 = vst.msk [vmem:[#allocation3 + $0x2c] sm:$0xf] %vm1840_vm3, %v1767_v6  ;;  %2337 = vrot.lane.b32.xlu0 %v2126_v63, %s4936_s21  ;;  %v3227_v5 = vrot.slane %v3225_v58, 5  ;;  %v3246_v6 = vor.u32 %v3245_v62, %v5794_v59  ;;  %v1511_v58 = vrot.slane %v1371_v25, 5  ;;  %v709_v59 = vld [vmem:[#allocation2 + $0xc8] sm:$0x1] }
 0x190   : > { %2339 = vrot.lane.b32.xlu1 %v2136_v2, %s4936_s21  ;;  %v3213_v2 = vrot.slane %v3212_v53, 4  ;;  %v1374_v53 = vld [vmem:[#allocation2 + $0x88] sm:$0xf] }
 0x191   : > { %v2322_v9 = vpop.permute.xlu0 %2321  ;;  %v3247_v16 = vrot.slane %v3246_v6, 4  ;;  %v1518_v54 = vrot.slane %v1374_v53, 5  ;;  %v1513_v30 = vrot.slane %v1511_v58, 4  ;;  %v1908_v53 = vld [vmem:[#allocation2 + $0x98] sm:$0x1] }
 0x192   : > { %2410 = vst.msk [vmem:[#allocation3 + $0x20] sm:$0xf] %vm2401_vm4, %v2322_v9  ;;  %v2324_v14 = vpop.permute.xlu1 %2323  ;;  %v270_v9 = vld [vmem:[%s5035_s17 + $0x7c] sm:$0xf] }
 0x193   : > { %2411 = vst.msk [vmem:[#allocation3 + $0x24] sm:$0xf] %vm2401_vm4, %v2324_v14  ;;  %2341 = vrot.lane.b32.xlu0 %v2150_v55, %s4936_s21  ;;  %v3551_v55 = vld [vmem:[#allocation2 + $0x7c] sm:$0xf]  ;;  %v538_v13 = vshrl.u32 %v270_v9, 16  ;;  %v3228_v14 = vsel %vm5061_vm10, %v3223_v60, %v3227_v5  ;;  %v1520_v47 = vrot.slane %v1518_v54, 4 }
 0x194   : > { %2343 = vrot.lane.b32.xlu1 %v2160_v10, %s4936_s21  ;;  %v3218_v10 = vsel %vm5061_vm10, %v3213_v2, %v3217_v45  ;;  %v3680_v19 = vrot.slane %v3551_v55, 5  ;;  %v705_v45 = vld [vmem:[#allocation2 + $0xc0] sm:$0xf]  ;;  %v4682_v2 = vrot.slane %v1370_v57, 9  ;;  %v1904_v55 = vld [vmem:[#allocation2 + $0x88] sm:$0xf] }
 0x195   : > { %v2326_v29 = vpop.permute.xlu0 %2325  ;;  %v1703_v57 = vld [vmem:[#allocation2 + $0x94] sm:$0xf] }
 0x196   : > { %2412 = vst.msk [vmem:[#allocation3 + $0x28] sm:$0xf] %vm2401_vm4, %v2326_v29  ;;  %v2328_v34 = vpop.permute.xlu1 %2327  ;;  %v540_v29 = vrot.slane %v538_v13, 7  ;;  %v3682_v40 = vrot.slane %v3680_v19, 4  ;;  %v3681_v50 = vsel %vm5326_vm13, %v4712_v33, %v3680_v19 }
 0x197   : > { %2413 = vst.msk [vmem:[#allocation3 + $0x2c] sm:$0xf] %vm2401_vm4, %v2328_v34  ;;  %2674 = vrot.lane.b32.xlu0 %v2589_v17, %s4937_s22  ;;  %v3251_v17 = vrot.slane %v3249_v7, 5  ;;  %v3687_v34 = vrot.slane %v3554_v20, 5  ;;  %v1903_v7 = vld [vmem:[#allocation2 + $0x84] sm:$0xf] }
 0x198   : > { %2676 = vrot.lane.b32.xlu1 %v2592_v31, %s4937_s22  ;;  %v541_v31 = vshll.u32 %v270_v9, 16  ;;  %v545_v21 = vrot.slane %v540_v29, 4  ;;  %v3684_v23 = vsel %vm5326_vm13, %v3682_v40, %v3683_v43  ;;  %v2162_v11 = vshrl.u32 %v1903_v7, 16  ;;  %v1907_v20 = vld [vmem:[#allocation2 + $0x94] sm:$0xf] }
 0x199   : > { %v2659_v44 = vpop.permute.xlu0 %2658  ;;  %v2165_v12 = vshll.u32 %v1903_v7, 16  ;;  %v1700_v40 = vld [vmem:[#allocation2 + $0x84] sm:$0xf]  ;;  %v1701_v43 = vld [vmem:[#allocation2 + $0x88] sm:$0xf] }
 0x19a   : > { %2747 = vst.msk [vmem:[#allocation3 + $0x20] sm:$0xf] %vm2738_vm5, %v2659_v44  ;;  %v2661_v61 = vpop.permute.xlu1 %2660  ;;  %v543_v38 = vor.u32 %v541_v31, %v540_v29  ;;  %v3553_v44 = vld [vmem:[#allocation2 + $0x84] sm:$0xe]  ;;  %v710_v0 = vsel %vm5054_vm9, %v545_v21, %v709_v59  ;;  %v2164_v27 = vrot.slane %v2162_v11, 4 }
 0x19b   : > { %2748 = vst.msk [vmem:[#allocation3 + $0x24] sm:$0xf] %vm2738_vm5, %v2661_v61  ;;  %2678 = vrot.lane.b32.xlu0 %v2596_v39, %s4937_s22  ;;  %v706_v61 = vsel %vm5042_vm7, %v535_v36, %v705_v45  ;;  %v4713_v51 = vrot.slane %v3553_v44, 9  ;;  %711 = vst [vmem:[#allocation2 + $0xc8] sm:$0x1] %v710_v0  ;;  %v2167_v28 = vrot.slane %v2165_v12, 5 }
 0x19c   : > { %2680 = vrot.lane.b32.xlu1 %v2599_v18, %s4937_s22  ;;  %v3252_v18 = vsel %vm5061_vm10, %v3247_v16, %v3251_v17  ;;  %v544_v49 = vsel %vm5048_vm8, %v536_v37, %v543_v38  ;;  %707 = vst [vmem:[#allocation2 + $0xc0] sm:$0xf] %v706_v61  ;;  %v2175_v16 = vshrl.u32 %v1904_v55, 16  ;;  %v1906_v17 = vld [vmem:[#allocation2 + $0x90] sm:$0xf]  ;;  %v2195_v36 = vshll.u32 %v1907_v20, 16 }
 0x19d   : > { %v2663_v56 = vpop.permute.xlu0 %2662  ;;  %708 = vst.msk [vmem:[#allocation2 + $0xc4] sm:$0xf] %vm183_vm0, %v544_v49  ;;  %v2186_v29 = vshrl.u32 %v1906_v17, 16  ;;  %v2189_v31 = vshll.u32 %v1906_v17, 16  ;;  %v2199_v37 = vshrl.u32 %v1907_v20, 16  ;;  %v2168_v44 = vor.u32 %v2167_v28, %v2164_v27 }
 0x19e   : > { %2749 = vst.msk [vmem:[#allocation3 + $0x28] sm:$0xf] %vm2738_vm5, %v2663_v56  ;;  %v2665_v63 = vpop.permute.xlu1 %2664  ;;  %v2197_v49 = vrot.slane %v2195_v36, 5  ;;  %v1702_v21 = vld [vmem:[#allocation2 + $0x90] sm:$0xf]  ;;  %vm4209_vm7 = vcmask 31744  }
 0x19f   : > { %2750 = vst.msk [vmem:[#allocation3 + $0x2c] sm:$0xf] %vm2738_vm5, %v2665_v63  ;;  %2868 = vrot.lane.b32.xlu0 %v2788_v52, %s4938_s23  ;;  %v3689_v52 = vrot.slane %v3687_v34, 4  ;;  %v1372_v63 = vld [vmem:[#allocation2 + $0x80] sm:$0x1]  ;;  %v2188_v45 = vrot.slane %v2186_v29, 4 }
 0x1a0   : > { %2870 = vrot.lane.b32.xlu1 %v2789_v26, %s4938_s23  ;;  %v3690_v26 = vrot.slane %v3555_v48, 5  ;;  %v1514_v6 = vrot.slane %v1372_v63, 5  ;;  %v2205_v63 = vshll.u32 %v1908_v53, 16  ;;  %v2469_v11 = vld [vmem:[#allocation2 + $0x98] sm:$0x1] }
 0x1a1   : > { %v2853_v3 = vpop.permute.xlu0 %2852  ;;  %v2998_v36 = vld [vmem:[#allocation2 + $0x9c] sm:$0xf] }
 0x1a2   : > { %2941 = vst.msk [vmem:[#allocation3 + $0x20] sm:$0xf] %vm2932_vm6, %v2853_v3  ;;  %v2855_v41 = vpop.permute.xlu1 %2854  ;;  %v1373_v3 = vld [vmem:[#allocation2 + $0x84] sm:$0xe]  ;;  %v3691_v5 = vsel %vm5326_vm13, %v3689_v52, %v3690_v26 }
 0x1a3   : > { %2942 = vst.msk [vmem:[#allocation3 + $0x24] sm:$0xf] %vm2932_vm6, %v2855_v41  ;;  %2872 = vrot.lane.b32.xlu0 %v2790_v1, %s4938_s23  ;;  %v3688_v1 = vsel %vm5326_vm13, %v4713_v51, %v3687_v34  ;;  %v4683_v8 = vrot.slane %v1373_v3, 9  ;;  %v2177_v34 = vrot.slane %v2175_v16, 4  ;;  %v2468_v3 = vld [vmem:[#allocation2 + $0x94] sm:$0xf] }
 0x1a4   : > { %2874 = vrot.lane.b32.xlu1 %v2791_v4, %s4938_s23  ;;  %v1375_v4 = vld [vmem:[#allocation2 + $0x8c] sm:$0x1]  ;;  %v2995_v16 = vld [vmem:[#allocation2 + $0x90] sm:$0xf] }
 0x1a5   : > { %v2857_v15 = vpop.permute.xlu0 %2856  ;;  %v1521_v9 = vrot.slane %v1375_v4, 5  ;;  %v3254_v28 = vshrl.u32 %v2995_v16, 16  ;;  %v3257_v29 = vshll.u32 %v2995_v16, 16  ;;  %v3560_v16 = vld [vmem:[#allocation2 + $0xa0] sm:$0xf] }
 0x1a6   : > { %2943 = vst.msk [vmem:[#allocation3 + $0x28] sm:$0xf] %vm2932_vm6, %v2857_v15  ;;  %v2859_v22 = vpop.permute.xlu1 %2858  ;;  %v1515_v15 = vsel %vm5326_vm13, %v1513_v30, %v1514_v6  ;;  %v2207_v30 = vrot.slane %v2205_v63, 5  ;;  %v2464_v6 = vld [vmem:[#allocation2 + $0x84] sm:$0xe] }
 0x1a7   : > { %2944 = vst.msk [vmem:[#allocation3 + $0x2c] sm:$0xf] %vm2932_vm6, %v2859_v22  ;;  %3429 = vrot.lane.b32.xlu0 %v3218_v10, %s4939_s24  ;;  %v1512_v10 = vsel %vm5326_vm13, %v4682_v2, %v1511_v58  ;;  %v1519_v22 = vsel %vm5326_vm13, %v4683_v8, %v1518_v54  ;;  %v1522_v24 = vsel %vm5326_vm13, %v1520_v47, %v1521_v9  ;;  %v2465_v54 = vld [vmem:[#allocation2 + $0x88] sm:$0xf]  ;;  %v2609_v8 = vrot.slane %v2468_v3, 5 }
 0x1a8   : > { %3431 = vrot.lane.b32.xlu1 %v3228_v14, %s4939_s24  ;;  %v2171_v14 = vshll.u32 %v1904_v55, 16  ;;  %v2602_v7 = vrot.slane %v2465_v54, 5  ;;  %v2466_v55 = vld [vmem:[#allocation2 + $0x8c] sm:$0x1]  ;;  %v4698_v9 = vrot.slane %v2464_v6, 9 }
 0x1a9   : > { %v3414_v39 = vpop.permute.xlu0 %3413  ;;  %v2794_v54 = vld [vmem:[#allocation2 + $0x9c] sm:$0xf] }
 0x1aa   : > { %3502 = vst.msk [vmem:[#allocation3 + $0x20] sm:$0xf] %vm3493_vm11, %v3414_v39  ;;  %v3416_v46 = vpop.permute.xlu1 %3415  ;;  %v2173_v33 = vrot.slane %v2171_v14, 5  ;;  %v2605_v14 = vrot.slane %v2466_v55, 5  ;;  %v2603_v27 = vsel %vm5326_vm13, %v4698_v9, %v2602_v7 }
 0x1ab   : > { %3503 = vst.msk [vmem:[#allocation3 + $0x24] sm:$0xf] %vm3493_vm11, %v3416_v46  ;;  %3433 = vrot.lane.b32.xlu0 %v3242_v32, %s4939_s24  ;;  %v2191_v46 = vrot.slane %v2189_v31, 5 }
 0x1ac   : > { %3435 = vrot.lane.b32.xlu1 %v3252_v18, %s4939_s24  ;;  %v1905_v18 = vld [vmem:[#allocation2 + $0x8c] sm:$0x1]  ;;  %v2178_v25 = vor.u32 %v2177_v34, %v2173_v33 }
 0x1ad   : > { %v3418_v56 = vpop.permute.xlu0 %3417  ;;  %v2181_v61 = vshll.u32 %v1905_v18, 16 }
 0x1ae   : > { %3504 = vst.msk [vmem:[#allocation3 + $0x28] sm:$0xf] %vm3493_vm11, %v3418_v56  ;;  %v3420_v62 = vpop.permute.xlu1 %3419  ;;  %v2169_v56 = vrot.slane %v2168_v44, 4  ;;  %v2179_v58 = vrot.slane %v2178_v25, 4  ;;  %v3278_v44 = vshrl.u32 %v2998_v36, 16 }
 0x1af   : > { %3505 = vst.msk [vmem:[#allocation3 + $0x2c] sm:$0xf] %vm3493_vm11, %v3420_v62  ;;  %3766 = vrot.lane.b32.xlu0 %v3681_v50, %s4940_s25  ;;  %v2201_v50 = vrot.slane %v2199_v37, 4  ;;  %v2183_v59 = vrot.slane %v2181_v61, 5 }
 0x1b0   : > { %3768 = vrot.lane.b32.xlu1 %v3684_v23, %s4940_s25  ;;  %v2192_v23 = vor.u32 %v2191_v46, %v2188_v45  ;;  %v3281_v45 = vshll.u32 %v2998_v36, 16 }
 0x1b1   : > { %v3751_v60 = vpop.permute.xlu0 %3750  ;;  %v2202_v62 = vor.u32 %v2201_v50, %v2197_v49 }
 0x1b2   : > { %3839 = vst.msk [vmem:[#allocation3 + $0x20] sm:$0xf] %vm3830_vm12, %v3751_v60  ;;  %v3753_v41 = vpop.permute.xlu1 %3752  ;;  %v2193_v2 = vrot.slane %v2192_v23, 4  ;;  %v2184_v60 = vsel %vm5061_vm10, %v2179_v58, %v2183_v59 }
 0x1b3   : > { %3840 = vst.msk [vmem:[#allocation3 + $0x24] sm:$0xf] %vm3830_vm12, %v3753_v41  ;;  %3770 = vrot.lane.b32.xlu0 %v3688_v1, %s4940_s25  ;;  %v2174_v1 = vsel %vm5061_vm10, %v2169_v56, %v2173_v33  ;;  %v3283_v56 = vrot.slane %v3281_v45, 5 }
 0x1b4   : > { %3772 = vrot.lane.b32.xlu1 %v3691_v5, %s4940_s25  ;;  %v2203_v5 = vrot.slane %v2202_v62, 4  ;;  %v2198_v47 = vsel %vm5061_vm10, %v2193_v2, %v2197_v49 }
 0x1b5   : > { %v3755_v13 = vpop.permute.xlu0 %3754 }
 0x1b6   : > { %3841 = vst.msk [vmem:[#allocation3 + $0x28] sm:$0xf] %vm3830_vm12, %v3755_v13  ;;  %v3757_v19 = vpop.permute.xlu1 %3756  ;;  %v2208_v13 = vsel %vm5061_vm10, %v2203_v5, %v2207_v30 }
 0x1b7   : > { %3842 = vst.msk [vmem:[#allocation3 + $0x2c] sm:$0xf] %vm3830_vm12, %v3757_v19  ;;  %1591 = vrot.lane.b32.xlu0 %v1512_v10, %s4934_s19  ;;  %v2467_v10 = vld [vmem:[#allocation2 + $0x90] sm:$0xe]  ;;  %v2996_v19 = vld [vmem:[#allocation2 + $0x94] sm:$0xf] }
 0x1b8   : > { %1593 = vrot.lane.b32.xlu1 %v1515_v15, %s4934_s19  ;;  %v2604_v15 = vrot.slane %v2602_v7, 4  ;;  %v4699_v20 = vrot.slane %v2467_v10, 9  ;;  %v3263_v33 = vshll.u32 %v2996_v19, 16  ;;  %v3267_v34 = vshrl.u32 %v2996_v19, 16 }
 0x1b9   : > { %v1576_v32 = vpop.permute.xlu0 %1575 }
 0x1ba   : > { %1660 = vst.msk [vmem:[#allocation3 + $0x30] sm:$0xf] %vm1647_vm2, %v1576_v32  ;;  %v1578_v38 = vpop.permute.xlu1 %1577  ;;  %v4912_v39 = vld [vmem:[#allocation3 + $0x20] sm:$0xff]   ;;  %v2606_v32 = vsel %vm5326_vm13, %v2604_v15, %v2605_v14  ;;  %v3269_v25 = vrot.slane %v3267_v34, 4 }
 0x1bb   : > { %1661 = vst.msk [vmem:[#allocation3 + $0x34] sm:$0xf] %vm1647_vm2, %v1578_v38  ;;  %1595 = vrot.lane.b32.xlu0 %v1519_v22, %s4934_s19  ;;  %4856 = vmatprep.mubr.msk.bf16.mxu0 %vm3995_vm14, %v4912_v39  ;;  %v2611_v22 = vrot.slane %v2609_v8, 4  ;;  %v2999_v38 = vld [vmem:[#allocation2 + $0xa0] sm:$0xf]  ;;  %v2610_v39 = vsel %vm5326_vm13, %v4699_v20, %v2609_v8 }
 0x1bc   : > { %1597 = vrot.lane.b32.xlu1 %v1522_v24, %s4934_s19  ;;  %v2612_v24 = vrot.slane %v2469_v11, 5  ;;  %v3287_v61 = vshll.u32 %v2999_v38, 16  ;;  %v3291_v49 = vshrl.u32 %v2999_v38, 16  ;;  %v3558_v14 = vld [vmem:[#allocation2 + $0x98] sm:$0x1] }
 0x1bd   : > { %v1580_v48 = vpop.permute.xlu0 %1579 }
 0x1be   : > { %1662 = vst.msk [vmem:[#allocation3 + $0x38] sm:$0xf] %vm1647_vm2, %v1580_v48  ;;  %v1582_v51 = vpop.permute.xlu1 %1581  ;;  %v4913_v52 = vld [vmem:[#allocation3 + $0x28] sm:$0xff]   ;;  %v2613_v18 = vsel %vm5326_vm13, %v2611_v22, %v2612_v24  ;;  %v3265_v48 = vrot.slane %v3263_v33, 5  ;;  %v3289_v59 = vrot.slane %v3287_v61, 5  ;;  %v3293_v62 = vrot.slane %v3291_v49, 4 }
 0x1bf   : > { %1663 = vst.msk [vmem:[#allocation3 + $0x3c] sm:$0xf] %vm1647_vm2, %v1582_v51  ;;  %1784 = vrot.lane.b32.xlu0 %v1700_v40, %s4935_s20  ;;  %4857 = vmatmul.mubr.msk.bf16.gmra.mxu0 %vm3995_vm14, %v4913_v52  ;;  %v3256_v40 = vrot.slane %v3254_v28, 4  ;;  %v2997_v51 = vld [vmem:[#allocation2 + $0x98] sm:$0x1] }
 0x1c0   : > { %1786 = vrot.lane.b32.xlu1 %v1701_v43, %s4935_s20  ;;  %v3259_v43 = vrot.slane %v3257_v29, 5  ;;  %v2792_v52 = vld [vmem:[#allocation2 + $0x90] sm:$0xf]  ;;  %v3273_v58 = vshll.u32 %v2997_v51, 16  ;;  %v3294_v30 = vor.u32 %v3293_v62, %v3289_v59  ;;  %v3559_v28 = vld [vmem:[#allocation2 + $0x9c] sm:$0xe] }
 0x1c1   : > { %v1769_v26 = vpop.permute.xlu0 %1768  ;;  %v3701_v29 = vrot.slane %v3560_v16, 5  ;;  %v1377_v33 = vld [vmem:[#allocation2 + $0x94] sm:$0xf]  ;;  %v4715_v36 = vrot.slane %v3559_v28, 9  ;;  %v1379_v49 = vld [vmem:[#allocation2 + $0x9c] sm:$0xe] }
 0x1c2   : > { %1853 = vst.msk [vmem:[#allocation3 + $0x30] sm:$0xf] %vm1840_vm3, %v1769_v26  ;;  %v1771_v0 = vpop.permute.xlu1 %1770  ;;  %v3260_v53 = vor.u32 %v3259_v43, %v3256_v40  ;;  %v2793_v26 = vld [vmem:[#allocation2 + $0x94] sm:$0xf]  ;;  %v3275_v5 = vrot.slane %v3273_v58, 5  ;;  %v3295_v10 = vrot.slane %v3294_v30, 4 }
 0x1c3   : > { %1854 = vst.msk [vmem:[#allocation3 + $0x34] sm:$0xf] %vm1840_vm3, %v1771_v0  ;;  %1788 = vrot.lane.b32.xlu0 %v1702_v21, %s4935_s20  ;;  %v3280_v21 = vrot.slane %v3278_v44, 4  ;;  %v3000_v0 = vld [vmem:[#allocation2 + $0xa4] sm:$0x1]  ;;  %v1525_v44 = vrot.slane %v1377_v33, 5 }
 0x1c4   : > { %1790 = vrot.lane.b32.xlu1 %v1703_v57, %s4935_s20  ;;  %v3270_v57 = vor.u32 %v3269_v25, %v3265_v48  ;;  %v3297_v6 = vshll.u32 %v3000_v0, 16  ;;  %v1376_v43 = vld [vmem:[#allocation2 + $0x90] sm:$0xe]  ;;  %v3702_v25 = vsel %vm5326_vm13, %v4715_v36, %v3701_v29  ;;  %v1704_v16 = vld [vmem:[#allocation2 + $0x9c] sm:$0xf] }
 0x1c5   : > { %v1773_v4 = vpop.permute.xlu0 %1772  ;;  %v3284_v2 = vor.u32 %v3283_v56, %v3280_v21  ;;  %v4684_v61 = vrot.slane %v1376_v43, 9  ;;  %v1909_v56 = vld [vmem:[#allocation2 + $0x9c] sm:$0xf]  ;;  %v1706_v36 = vld [vmem:[#allocation2 + $0xa8] sm:$0xf] }
 0x1c6   : > { %1855 = vst.msk [vmem:[#allocation3 + $0x38] sm:$0xf] %vm1840_vm3, %v1773_v4  ;;  %v1775_v41 = vpop.permute.xlu1 %1774  ;;  %v2795_v4 = vld [vmem:[#allocation2 + $0xa0] sm:$0xf]  ;;  %v3299_v11 = vrot.slane %v3297_v6, 5  ;;  %v2213_v0 = vshll.u32 %v1909_v56, 16 }
 0x1c7   : > { %1856 = vst.msk [vmem:[#allocation3 + $0x3c] sm:$0xf] %vm1840_vm3, %v1775_v41  ;;  %2345 = vrot.lane.b32.xlu0 %v2174_v1, %s4936_s21  ;;  %v3261_v1 = vrot.slane %v3260_v53, 4  ;;  %v3557_v41 = vld [vmem:[#allocation2 + $0x94] sm:$0xf]  ;;  %v3285_v8 = vrot.slane %v3284_v2, 4  ;;  %v1526_v62 = vsel %vm5326_vm13, %v4684_v61, %v1525_v44 }
 0x1c8   : > { %2347 = vrot.lane.b32.xlu1 %v2184_v60, %s4936_s21  ;;  %v3271_v60 = vrot.slane %v3270_v57, 4  ;;  %v3300_v22 = vsel %vm5061_vm10, %v3295_v10, %v3299_v11  ;;  %v1527_v53 = vrot.slane %v1525_v44, 4  ;;  %v4685_v57 = vrot.slane %v1379_v49, 9  ;;  %v2474_v49 = vld [vmem:[#allocation2 + $0xac] sm:$0xf] }
 0x1c9   : > { %v2330_v12 = vpop.permute.xlu0 %2329  ;;  %v3266_v55 = vsel %vm5061_vm10, %v3261_v1, %v3265_v48 }
 0x1ca   : > { %2414 = vst.msk [vmem:[#allocation3 + $0x30] sm:$0xf] %vm2401_vm4, %v2330_v12  ;;  %v2332_v17 = vpop.permute.xlu1 %2331  ;;  %v3276_v9 = vsel %vm5061_vm10, %v3271_v60, %v3275_v5  ;;  %v3556_v12 = vld [vmem:[#allocation2 + $0x90] sm:$0xe]  ;;  %v1913_v5 = vld [vmem:[#allocation2 + $0xac] sm:$0xf] }
 0x1cb   : > { %2415 = vst.msk [vmem:[#allocation3 + $0x34] sm:$0xf] %vm2401_vm4, %v2332_v17  ;;  %2349 = vrot.lane.b32.xlu0 %v2198_v47, %s4936_s21  ;;  %v3290_v17 = vsel %vm5061_vm10, %v3285_v8, %v3289_v59  ;;  %v4714_v19 = vrot.slane %v3556_v12, 9  ;;  %v2243_v11 = vshll.u32 %v1913_v5, 16  ;;  %v2247_v12 = vshrl.u32 %v1913_v5, 16 }
 0x1cc   : > { %2351 = vrot.lane.b32.xlu1 %v2208_v13, %s4936_s21  ;;  %v3694_v13 = vrot.slane %v3557_v41, 5  ;;  %v2215_v41 = vrot.slane %v2213_v0, 5 }
 0x1cd   : > { %v2334_v31 = vpop.permute.xlu0 %2333 }
 0x1ce   : > { %2416 = vst.msk [vmem:[#allocation3 + $0x38] sm:$0xf] %vm2401_vm4, %v2334_v31  ;;  %v2336_v37 = vpop.permute.xlu1 %2335  ;;  %v3696_v24 = vrot.slane %v3694_v13, 4  ;;  %v3695_v34 = vsel %vm5326_vm13, %v4714_v19, %v3694_v13 }
 0x1cf   : > { %2417 = vst.msk [vmem:[#allocation3 + $0x3c] sm:$0xf] %vm2401_vm4, %v2336_v37  ;;  %2682 = vrot.lane.b32.xlu0 %v2603_v27, %s4937_s22  ;;  %v3697_v27 = vrot.slane %v3558_v14, 5  ;;  %v1380_v37 = vld [vmem:[#allocation2 + $0xa0] sm:$0xf] }
 0x1d0   : > { %2684 = vrot.lane.b32.xlu1 %v2606_v32, %s4937_s22  ;;  %v3561_v32 = vld [vmem:[#allocation2 + $0xa4] sm:$0x1]  ;;  %v1532_v48 = vrot.slane %v1380_v37, 5 }
 0x1d1   : > { %v2667_v46 = vpop.permute.xlu0 %2666  ;;  %v3704_v40 = vrot.slane %v3561_v32, 5  ;;  %v1911_v14 = vld [vmem:[#allocation2 + $0xa4] sm:$0x1] }
 0x1d2   : > { %2751 = vst.msk [vmem:[#allocation3 + $0x30] sm:$0xf] %vm2738_vm5, %v2667_v46  ;;  %v2669_v50 = vpop.permute.xlu1 %2668  ;;  %v1378_v46 = vld [vmem:[#allocation2 + $0x98] sm:$0x1]  ;;  %v1534_v58 = vrot.slane %v1532_v48, 4  ;;  %v1533_v30 = vsel %vm5326_vm13, %v4685_v57, %v1532_v48  ;;  %v2229_v28 = vshll.u32 %v1911_v14, 16 }
 0x1d3   : > { %2752 = vst.msk [vmem:[#allocation3 + $0x34] sm:$0xf] %vm2738_vm5, %v2669_v50  ;;  %2686 = vrot.lane.b32.xlu0 %v2610_v39, %s4937_s22  ;;  %v3698_v39 = vsel %vm5326_vm13, %v3696_v24, %v3697_v27  ;;  %v1381_v50 = vld [vmem:[#allocation2 + $0xa4] sm:$0x1]  ;;  %v1528_v21 = vrot.slane %v1378_v46, 5  ;;  %v2623_v57 = vrot.slane %v2474_v49, 5 }
 0x1d4   : > { %2688 = vrot.lane.b32.xlu1 %v2613_v18, %s4937_s22  ;;  %v3703_v18 = vrot.slane %v3701_v29, 4  ;;  %v1535_v59 = vrot.slane %v1381_v50, 5  ;;  %v2245_v29 = vrot.slane %v2243_v11, 5  ;;  %v2231_v43 = vrot.slane %v2229_v28, 5  ;;  %v2471_v48 = vld [vmem:[#allocation2 + $0xa0] sm:$0xf] }
 0x1d5   : > { %v2671_v23 = vpop.permute.xlu0 %2670  ;;  %v1529_v1 = vsel %vm5326_vm13, %v1527_v53, %v1528_v21  ;;  %v2470_v21 = vld [vmem:[#allocation2 + $0x9c] sm:$0xe]  ;;  %v3004_v11 = vld [vmem:[#allocation2 + $0xb4] sm:$0xf] }
 0x1d6   : > { %2753 = vst.msk [vmem:[#allocation3 + $0x38] sm:$0xf] %vm2738_vm5, %v2671_v23  ;;  %v2673_v63 = vpop.permute.xlu1 %2672  ;;  %v1536_v6 = vsel %vm5326_vm13, %v1534_v58, %v1535_v59  ;;  %v4700_v59 = vrot.slane %v2470_v21, 9 }
 0x1d7   : > { %2754 = vst.msk [vmem:[#allocation3 + $0x3c] sm:$0xf] %vm2738_vm5, %v2673_v63  ;;  %2876 = vrot.lane.b32.xlu0 %v2792_v52, %s4938_s23  ;;  %v3705_v52 = vsel %vm5326_vm13, %v3703_v18, %v3704_v40  ;;  %v2210_v63 = vshrl.u32 %v1909_v56, 16  ;;  %v1707_v18 = vld [vmem:[#allocation2 + $0xac] sm:$0xf]  ;;  %v2616_v56 = vrot.slane %v2471_v48, 5 }
 0x1d8   : > { %2878 = vrot.lane.b32.xlu1 %v2793_v26, %s4938_s23  ;;  %v1910_v26 = vld [vmem:[#allocation2 + $0xa0] sm:$0xf]  ;;  %v2798_v48 = vld [vmem:[#allocation2 + $0xb4] sm:$0xf] }
 0x1d9   : > { %v2861_v3 = vpop.permute.xlu0 %2860  ;;  %v2219_v2 = vshll.u32 %v1910_v26, 16 }
 0x1da   : > { %2945 = vst.msk [vmem:[#allocation3 + $0x30] sm:$0xf] %vm2932_vm6, %v2861_v3  ;;  %v2863_v7 = vpop.permute.xlu1 %2862  ;;  %v2223_v3 = vshrl.u32 %v1910_v26, 16  ;;  %v2472_v26 = vld [vmem:[#allocation2 + $0xa4] sm:$0x1] }
 0x1db   : > { %2946 = vst.msk [vmem:[#allocation3 + $0x34] sm:$0xf] %vm2932_vm6, %v2863_v7  ;;  %2880 = vrot.lane.b32.xlu0 %v2794_v54, %s4938_s23  ;;  %v2212_v7 = vrot.slane %v2210_v63, 4  ;;  %v2475_v63 = vld [vmem:[#allocation2 + $0xb0] sm:$0x1] }
 0x1dc   : > { %2882 = vrot.lane.b32.xlu1 %v2795_v4, %s4938_s23  ;;  %v1912_v4 = vld [vmem:[#allocation2 + $0xa8] sm:$0xf]  ;;  %v2225_v10 = vrot.slane %v2223_v3, 4 }
 0x1dd   : > { %v2865_v47 = vpop.permute.xlu0 %2864  ;;  %v2237_v8 = vshll.u32 %v1912_v4, 16  ;;  %v2216_v19 = vor.u32 %v2215_v41, %v2212_v7  ;;  %v3001_v3 = vld [vmem:[#allocation2 + $0xa8] sm:$0xf]  ;;  %v2617_v7 = vsel %vm5326_vm13, %v4700_v59, %v2616_v56 }
 0x1de   : > { %2947 = vst.msk [vmem:[#allocation3 + $0x38] sm:$0xf] %vm2932_vm6, %v2865_v47  ;;  %v2867_v15 = vpop.permute.xlu1 %2866  ;;  %v3302_v41 = vshrl.u32 %v3001_v3, 16 }
 0x1df   : > { %2948 = vst.msk [vmem:[#allocation3 + $0x3c] sm:$0xf] %vm2932_vm6, %v2867_v15  ;;  %3437 = vrot.lane.b32.xlu0 %v3266_v55, %s4939_s24  ;;  %v2234_v55 = vshrl.u32 %v1912_v4, 16  ;;  %v2217_v37 = vrot.slane %v2216_v19, 4  ;;  %v3326_v19 = vshrl.u32 %v3004_v11, 16 }
 0x1e0   : > { %3439 = vrot.lane.b32.xlu1 %v3276_v9, %s4939_s24  ;;  %v2221_v9 = vrot.slane %v2219_v2, 5  ;;  %v2619_v2 = vrot.slane %v2472_v26, 5 }
 0x1e1   : > { %v3422_v20 = vpop.permute.xlu0 %3421 }
 0x1e2   : > { %3506 = vst.msk [vmem:[#allocation3 + $0x30] sm:$0xf] %vm3493_vm11, %v3422_v20  ;;  %v3424_v31 = vpop.permute.xlu1 %3423  ;;  %v2236_v20 = vrot.slane %v2234_v55, 4  ;;  %v2226_v27 = vor.u32 %v2225_v10, %v2221_v9  ;;  %v3305_v55 = vshll.u32 %v3001_v3, 16  ;;  %v3566_v3 = vld [vmem:[#allocation2 + $0xb8] sm:$0xf] }
 0x1e3   : > { %3507 = vst.msk [vmem:[#allocation3 + $0x34] sm:$0xf] %vm3493_vm11, %v3424_v31  ;;  %3441 = vrot.lane.b32.xlu0 %v3290_v17, %s4939_s24  ;;  %v1705_v17 = vld [vmem:[#allocation2 + $0xa0] sm:$0xf]  ;;  %v2249_v31 = vrot.slane %v2247_v12, 4 }
 0x1e4   : > { %3443 = vrot.lane.b32.xlu1 %v3300_v22, %s4939_s24  ;;  %v2239_v22 = vrot.slane %v2237_v8, 5  ;;  %v2227_v40 = vrot.slane %v2226_v27, 4 }
 0x1e5   : > { %v3426_v38 = vpop.permute.xlu0 %3425  ;;  %v2250_v44 = vor.u32 %v2249_v31, %v2245_v29 }
 0x1e6   : > { %3508 = vst.msk [vmem:[#allocation3 + $0x38] sm:$0xf] %vm3493_vm11, %v3426_v38  ;;  %v3428_v45 = vpop.permute.xlu1 %3427  ;;  %v2240_v38 = vor.u32 %v2239_v22, %v2236_v20  ;;  %v3329_v20 = vshll.u32 %v3004_v11, 16 }
 0x1e7   : > { %3509 = vst.msk [vmem:[#allocation3 + $0x3c] sm:$0xf] %vm3493_vm11, %v3428_v45  ;;  %3774 = vrot.lane.b32.xlu0 %v3695_v34, %s4940_s25  ;;  %v1914_v34 = vld [vmem:[#allocation2 + $0xb0] sm:$0x1] }
 0x1e8   : > { %3776 = vrot.lane.b32.xlu1 %v3698_v39, %s4940_s25  ;;  %v2253_v45 = vshll.u32 %v1914_v34, 16  ;;  %v2241_v61 = vrot.slane %v2240_v38, 4 }
 0x1e9   : > { %v3759_v51 = vpop.permute.xlu0 %3758 }
 0x1ea   : > { %3843 = vst.msk [vmem:[#allocation3 + $0x30] sm:$0xf] %vm3830_vm12, %v3759_v51  ;;  %v3761_v23 = vpop.permute.xlu1 %3760  ;;  %v2232_v51 = vsel %vm5061_vm10, %v2227_v40, %v2231_v43  ;;  %v2255_v53 = vrot.slane %v2253_v45, 5  ;;  %v2246_v58 = vsel %vm5061_vm10, %v2241_v61, %v2245_v29 }
 0x1eb   : > { %3844 = vst.msk [vmem:[#allocation3 + $0x34] sm:$0xf] %vm3830_vm12, %v3761_v23  ;;  %3778 = vrot.lane.b32.xlu0 %v3702_v25, %s4940_s25  ;;  %v2222_v25 = vsel %vm5061_vm10, %v2217_v37, %v2221_v9  ;;  %v3331_v37 = vrot.slane %v3329_v20, 5  ;;  %v1382_v20 = vld [vmem:[#allocation2 + $0xa8] sm:$0xe] }
 0x1ec   : > { %3780 = vrot.lane.b32.xlu1 %v3705_v52, %s4940_s25  ;;  %v2251_v52 = vrot.slane %v2250_v44, 4 }
 0x1ed   : > { %v3763_v54 = vpop.permute.xlu0 %3762 }
 0x1ee   : > { %3845 = vst.msk [vmem:[#allocation3 + $0x38] sm:$0xf] %vm3830_vm12, %v3763_v54  ;;  %v3765_v60 = vpop.permute.xlu1 %3764  ;;  %v2256_v54 = vsel %vm5061_vm10, %v2251_v52, %v2255_v53 }
 0x1ef   : > { %3846 = vst.msk [vmem:[#allocation3 + $0x3c] sm:$0xf] %vm3830_vm12, %v3765_v60  ;;  %1599 = vrot.lane.b32.xlu0 %v1526_v62, %s4934_s19  ;;  %v2473_v62 = vld [vmem:[#allocation2 + $0xa8] sm:$0xe]  ;;  %v3002_v60 = vld [vmem:[#allocation2 + $0xac] sm:$0xf] }
 0x1f0   : > { %1601 = vrot.lane.b32.xlu1 %v1529_v1, %s4934_s19  ;;  %v2618_v1 = vrot.slane %v2616_v56, 4  ;;  %v4701_v5 = vrot.slane %v2473_v62, 9  ;;  %v3311_v9 = vshll.u32 %v3002_v60, 16  ;;  %v3315_v10 = vshrl.u32 %v3002_v60, 16  ;;  %v3563_v56 = vld [vmem:[#allocation2 + $0xac] sm:$0xf] }
 0x1f1   : > { %v1584_v47 = vpop.permute.xlu0 %1583 }
 0x1f2   : > { %1664 = vst.msk [vmem:[#allocation3 + $0x40] sm:$0xf] %vm1647_vm2, %v1584_v47  ;;  %v1586_v13 = vpop.permute.xlu1 %1585  ;;  %v4914_v15 = vld [vmem:[#allocation3 + $0x30] sm:$0xff]   ;;  %v2620_v47 = vsel %vm5326_vm13, %v2618_v1, %v2619_v2  ;;  %v3317_v27 = vrot.slane %v3315_v10, 4  ;;  %v3564_v1 = vld [vmem:[#allocation2 + $0xb0] sm:$0x1] }
 0x1f3   : > { %1665 = vst.msk [vmem:[#allocation3 + $0x44] sm:$0xf] %vm1647_vm2, %v1586_v13  ;;  %1603 = vrot.lane.b32.xlu0 %v1533_v30, %s4934_s19  ;;  %4860 = vmatprep.mubr.msk.bf16.mxu0 %vm3995_vm14, %v4914_v15  ;;  %v2625_v30 = vrot.slane %v2623_v57, 4  ;;  %v3005_v13 = vld [vmem:[#allocation2 + $0xb8] sm:$0xf]  ;;  %v2624_v15 = vsel %vm5326_vm13, %v4701_v5, %v2623_v57 }
 0x1f4   : > { %1605 = vrot.lane.b32.xlu1 %v1536_v6, %s4934_s19  ;;  %v2626_v6 = vrot.slane %v2475_v63, 5  ;;  %v3335_v28 = vshll.u32 %v3005_v13, 16  ;;  %v3339_v29 = vshrl.u32 %v3005_v13, 16 }
 0x1f5   : > { %v1588_v24 = vpop.permute.xlu0 %1587 }
 0x1f6   : > { %1666 = vst.msk [vmem:[#allocation3 + $0x48] sm:$0xf] %vm1647_vm2, %v1588_v24  ;;  %v1590_v32 = vpop.permute.xlu1 %1589  ;;  %v4915_v33 = vld [vmem:[#allocation3 + $0x38] sm:$0xff]   ;;  %v2627_v14 = vsel %vm5326_vm13, %v2625_v30, %v2626_v6  ;;  %v3313_v24 = vrot.slane %v3311_v9, 5  ;;  %v3337_v43 = vrot.slane %v3335_v28, 5  ;;  %v3341_v44 = vrot.slane %v3339_v29, 4 }
 0x1f7   : > { %1667 = vst.msk [vmem:[#allocation3 + $0x4c] sm:$0xf] %vm1647_vm2, %v1590_v32  ;;  %1792 = vrot.lane.b32.xlu0 %v1704_v16, %s4935_s20  ;;  %4861 = vmatmul.mubr.msk.bf16.gmra.mxu0 %vm3995_vm14, %v4915_v33  ;;  %v3304_v16 = vrot.slane %v3302_v41, 4  ;;  %v3003_v32 = vld [vmem:[#allocation2 + $0xb0] sm:$0x1]  ;;  %v3711_v30 = vrot.slane %v3564_v1, 5 }
 0x1f8   : > { %1794 = vrot.lane.b32.xlu1 %v1705_v17, %s4935_s20  ;;  %v3307_v17 = vrot.slane %v3305_v55, 5  ;;  %v2796_v33 = vld [vmem:[#allocation2 + $0xa8] sm:$0xf]  ;;  %v3321_v40 = vshll.u32 %v3003_v32, 16  ;;  %v3342_v53 = vor.u32 %v3341_v44, %v3337_v43  ;;  %v3565_v41 = vld [vmem:[#allocation2 + $0xb4] sm:$0xe] }
 0x1f9   : > { %v1777_v39 = vpop.permute.xlu0 %1776  ;;  %v3715_v55 = vrot.slane %v3566_v3, 5  ;;  %v1383_v9 = vld [vmem:[#allocation2 + $0xac] sm:$0xf]  ;;  %v4717_v13 = vrot.slane %v3565_v41, 9  ;;  %v1384_v28 = vld [vmem:[#allocation2 + $0xb0] sm:$0x1] }
 0x1fa   : > { %1857 = vst.msk [vmem:[#allocation3 + $0x40] sm:$0xf] %vm1840_vm3, %v1777_v39  ;;  %v1779_v46 = vpop.permute.xlu1 %1778  ;;  %v3308_v34 = vor.u32 %v3307_v17, %v3304_v16  ;;  %v2797_v39 = vld [vmem:[#allocation2 + $0xac] sm:$0xf]  ;;  %v3323_v52 = vrot.slane %v3321_v40, 5  ;;  %v3343_v63 = vrot.slane %v3342_v53, 4 }
 0x1fb   : > { %1858 = vst.msk [vmem:[#allocation3 + $0x44] sm:$0xf] %vm1840_vm3, %v1779_v46  ;;  %1796 = vrot.lane.b32.xlu0 %v1706_v36, %s4935_s20  ;;  %v3328_v36 = vrot.slane %v3326_v19, 4  ;;  %v3006_v46 = vld [vmem:[#allocation2 + $0xbc] sm:$0x1]  ;;  %v3717_v17 = vrot.slane %v3715_v55, 4 }
 0x1fc   : > { %1798 = vrot.lane.b32.xlu1 %v1707_v18, %s4935_s20  ;;  %v3318_v18 = vor.u32 %v3317_v27, %v3313_v24  ;;  %v3309_v61 = vrot.slane %v3308_v34, 4  ;;  %v3345_v21 = vshll.u32 %v3006_v46, 16  ;;  %v4686_v34 = vrot.slane %v1382_v20, 9  ;;  %v1915_v44 = vld [vmem:[#allocation2 + $0xb4] sm:$0xf] }
 0x1fd   : > { %v1781_v50 = vpop.permute.xlu0 %1780  ;;  %v3332_v49 = vor.u32 %v3331_v37, %v3328_v36  ;;  %v1385_v36 = vld [vmem:[#allocation2 + $0xb4] sm:$0xe]  ;;  %v1387_v37 = vld [vmem:[#allocation2 + $0xbc] sm:$0x1]  ;;  %v2261_v53 = vshll.u32 %v1915_v44, 16 }
 0x1fe   : > { %1859 = vst.msk [vmem:[#allocation3 + $0x48] sm:$0xf] %vm1840_vm3, %v1781_v50  ;;  %v1783_v23 = vpop.permute.xlu1 %1782  ;;  %v3314_v26 = vsel %vm5061_vm10, %v3309_v61, %v3313_v24  ;;  %v4687_v61 = vrot.slane %v1385_v36, 9  ;;  %v1917_v41 = vld [vmem:[#allocation2 + $0xbc] sm:$0x1] }
 0x1ff   : > { %1860 = vst.msk [vmem:[#allocation3 + $0x4c] sm:$0xf] %vm1840_vm3, %v1783_v23  ;;  %2353 = vrot.lane.b32.xlu0 %v2222_v25, %s4936_s21  ;;  %v2799_v25 = vld [vmem:[#allocation2 + $0xb8] sm:$0xf]  ;;  %v3333_v57 = vrot.slane %v3332_v49, 4 }
 0x200   : > { %2355 = vrot.lane.b32.xlu1 %v2232_v51, %s4936_s21  ;;  %v3319_v51 = vrot.slane %v3318_v18, 4  ;;  %v1920_v20 = vld [vmem:[#allocation2 + $0xc8] sm:$0x1] }
 0x201   : > { %v2338_v0 = vpop.permute.xlu0 %2337 }
 0x202   : > { %2418 = vst.msk [vmem:[#allocation3 + $0x40] sm:$0xf] %vm2401_vm4, %v2338_v0  ;;  %v2340_v4 = vpop.permute.xlu1 %2339  ;;  %v3324_v62 = vsel %vm5061_vm10, %v3319_v51, %v3323_v52  ;;  %v3347_v0 = vrot.slane %v3345_v21, 5  ;;  %v2258_v52 = vshrl.u32 %v1915_v44, 16 }
 0x203   : > { %2419 = vst.msk [vmem:[#allocation3 + $0x44] sm:$0xf] %vm2401_vm4, %v2340_v4  ;;  %2357 = vrot.lane.b32.xlu0 %v2246_v58, %s4936_s21  ;;  %v3708_v58 = vrot.slane %v3563_v56, 5  ;;  %v3338_v4 = vsel %vm5061_vm10, %v3333_v57, %v3337_v43  ;;  %v1542_v43 = vrot.slane %v1384_v28, 5  ;;  %v1918_v57 = vld [vmem:[#allocation2 + $0xc0] sm:$0xf] }
 0x204   : > { %2359 = vrot.lane.b32.xlu1 %v2256_v54, %s4936_s21  ;;  %v3562_v54 = vld [vmem:[#allocation2 + $0xa8] sm:$0xe]  ;;  %v2282_v1 = vshrl.u32 %v1918_v57, 16 }
 0x205   : > { %v2342_v8 = vpop.permute.xlu0 %2341  ;;  %v4716_v60 = vrot.slane %v3562_v54, 9  ;;  %v3710_v5 = vrot.slane %v3708_v58, 4  ;;  %v2263_v54 = vrot.slane %v2261_v53, 5 }
 0x206   : > { %2420 = vst.msk [vmem:[#allocation3 + $0x48] sm:$0xf] %vm2401_vm4, %v2342_v8  ;;  %v2344_v12 = vpop.permute.xlu1 %2343 }
 0x207   : > { %2421 = vst.msk [vmem:[#allocation3 + $0x4c] sm:$0xf] %vm2401_vm4, %v2344_v12  ;;  %2690 = vrot.lane.b32.xlu0 %v2617_v7, %s4937_s22  ;;  %v3348_v7 = vsel %vm5061_vm10, %v3343_v63, %v3347_v0  ;;  %v3709_v11 = vsel %vm5326_vm13, %v4716_v60, %v3708_v58  ;;  %v3712_v12 = vsel %vm5326_vm13, %v3710_v5, %v3711_v30  ;;  %v2260_v0 = vrot.slane %v2258_v52, 4 }
 0x208   : > { %2692 = vrot.lane.b32.xlu1 %v2620_v47, %s4937_s22  ;;  %v3567_v47 = vld [vmem:[#allocation2 + $0xbc] sm:$0x1] }
 0x209   : > { %v2675_v22 = vpop.permute.xlu0 %2674  ;;  %v3718_v19 = vrot.slane %v3567_v47, 5  ;;  %v2264_v47 = vor.u32 %v2263_v54, %v2260_v0  ;;  %v3008_v0 = vld [vmem:[#allocation2 + $0xc4] sm:$0xf] }
 0x20a   : > { %2755 = vst.msk [vmem:[#allocation3 + $0x40] sm:$0xf] %vm2738_vm5, %v2675_v22  ;;  %v2677_v31 = vpop.permute.xlu1 %2676  ;;  %v1539_v22 = vrot.slane %v1383_v9, 5  ;;  %v2284_v9 = vrot.slane %v2282_v1, 4 }
 0x20b   : > { %2756 = vst.msk [vmem:[#allocation3 + $0x44] sm:$0xf] %vm2738_vm5, %v2677_v31  ;;  %2694 = vrot.lane.b32.xlu0 %v2624_v15, %s4937_s22  ;;  %v1386_v15 = vld [vmem:[#allocation2 + $0xb8] sm:$0xf]  ;;  %v3719_v18 = vsel %vm5326_vm13, %v3717_v17, %v3718_v19 }
 0x20c   : > { %2696 = vrot.lane.b32.xlu1 %v2627_v14, %s4937_s22  ;;  %v1546_v31 = vrot.slane %v1386_v15, 5  ;;  %v1541_v40 = vrot.slane %v1539_v22, 4  ;;  %v1540_v51 = vsel %vm5326_vm13, %v4686_v34, %v1539_v22  ;;  %v2277_v15 = vshll.u32 %v1917_v41, 16  ;;  %v1710_v22 = vld [vmem:[#allocation2 + $0xc0] sm:$0xf] }
 0x20d   : > { %v2679_v38 = vpop.permute.xlu0 %2678  ;;  %v3010_v41 = vld [vmem:[#allocation2 + $0xcc] sm:$0xf] }
 0x20e   : > { %2757 = vst.msk [vmem:[#allocation3 + $0x48] sm:$0xf] %vm2738_vm5, %v2679_v38  ;;  %v2681_v45 = vpop.permute.xlu1 %2680  ;;  %v1548_v49 = vrot.slane %v1546_v31, 4  ;;  %v1543_v56 = vsel %vm5326_vm13, %v1541_v40, %v1542_v43  ;;  %v2279_v34 = vrot.slane %v2277_v15, 5  ;;  %v2480_v43 = vld [vmem:[#allocation2 + $0xc4] sm:$0xf] }
 0x20f   : > { %2758 = vst.msk [vmem:[#allocation3 + $0x4c] sm:$0xf] %vm2738_vm5, %v2681_v45  ;;  %2884 = vrot.lane.b32.xlu0 %v2796_v33, %s4938_s23  ;;  %v3716_v33 = vsel %vm5326_vm13, %v4717_v13, %v3715_v55  ;;  %v1708_v55 = vld [vmem:[#allocation2 + $0xb4] sm:$0xf]  ;;  %v2637_v52 = vrot.slane %v2480_v43, 5  ;;  %v3377_v15 = vshll.u32 %v3010_v41, 16 }
 0x210   : > { %2886 = vrot.lane.b32.xlu1 %v2797_v39, %s4938_s23  ;;  %v3012_v43 = vld [vmem:[#allocation2 + $0xd4] sm:$0x1] }
 0x211   : > { %v2869_v50 = vpop.permute.xlu0 %2868  ;;  %v2639_v1 = vrot.slane %v2637_v52, 4 }
 0x212   : > { %2949 = vst.msk [vmem:[#allocation3 + $0x40] sm:$0xf] %vm2932_vm6, %v2869_v50  ;;  %v2871_v23 = vpop.permute.xlu1 %2870  ;;  %v1549_v50 = vrot.slane %v1387_v37, 5  ;;  %v2301_v37 = vshll.u32 %v1920_v20, 16 }
 0x213   : > { %2950 = vst.msk [vmem:[#allocation3 + $0x44] sm:$0xf] %vm2932_vm6, %v2871_v23  ;;  %2888 = vrot.lane.b32.xlu0 %v2798_v48, %s4938_s23  ;;  %v1916_v48 = vld [vmem:[#allocation2 + $0xb8] sm:$0xf] }
 0x214   : > { %2890 = vrot.lane.b32.xlu1 %v2799_v25, %s4938_s23  ;;  %v2267_v23 = vshll.u32 %v1916_v48, 16  ;;  %v1550_v63 = vsel %vm5326_vm13, %v1548_v49, %v1549_v50 }
 0x215   : > { %v2873_v59 = vpop.permute.xlu0 %2872 }
 0x216   : > { %2951 = vst.msk [vmem:[#allocation3 + $0x48] sm:$0xf] %vm2932_vm6, %v2873_v59  ;;  %v2875_v2 = vpop.permute.xlu1 %2874  ;;  %v1919_v59 = vld [vmem:[#allocation2 + $0xc4] sm:$0xf] }
 0x217   : > { %2952 = vst.msk [vmem:[#allocation3 + $0x4c] sm:$0xf] %vm2932_vm6, %v2875_v2  ;;  %3445 = vrot.lane.b32.xlu0 %v3314_v26, %s4939_s24  ;;  %v2271_v26 = vshrl.u32 %v1916_v48, 16  ;;  %v2285_v2 = vshll.u32 %v1918_v57, 16  ;;  %v2291_v5 = vshll.u32 %v1919_v59, 16  ;;  %v2295_v30 = vshrl.u32 %v1919_v59, 16 }
 0x218   : > { %3447 = vrot.lane.b32.xlu1 %v3324_v62, %s4939_s24  ;;  %v1547_v62 = vsel %vm5326_vm13, %v4687_v61, %v1546_v31  ;;  %v1711_v31 = vld [vmem:[#allocation2 + $0xc4] sm:$0xf]  ;;  %v2476_v61 = vld [vmem:[#allocation2 + $0xb4] sm:$0xe] }
 0x219   : > { %v3430_v6 = vpop.permute.xlu0 %3429  ;;  %v2273_v60 = vrot.slane %v2271_v26, 4 }
 0x21a   : > { %3510 = vst.msk [vmem:[#allocation3 + $0x40] sm:$0xf] %vm3493_vm11, %v3430_v6  ;;  %v3432_v8 = vpop.permute.xlu1 %3431 }
 0x21b   : > { %3511 = vst.msk [vmem:[#allocation3 + $0x44] sm:$0xf] %vm3493_vm11, %v3432_v8  ;;  %3449 = vrot.lane.b32.xlu0 %v3338_v4, %s4939_s24  ;;  %v6034_v10 = vpop.f32.mrf.mxu0  ;;  %v2269_v4 = vrot.slane %v2267_v23, 5  ;;  %v1709_v8 = vld [vmem:[#allocation2 + $0xb8] sm:$0xf] }
 0x21c   : > { %3451 = vrot.lane.b32.xlu1 %v3348_v7, %s4939_s24  ;;  %v4793_v14 = vpack.c.bf16 %v6034_v10, %v6034_v10  ;;  %v2481_v23 = vld [vmem:[#allocation2 + $0xc8] sm:$0x1] }
 0x21d   : > { %v3434_v16 = vpop.permute.xlu0 %3433  ;;  %v6043_v27 = vpop.f32.mrf.mxu0  ;;  %v2274_v13 = vor.u32 %v2273_v60, %v2269_v4 }
 0x21e   : > { %3512 = vst.msk [vmem:[#allocation3 + $0x48] sm:$0xf] %vm3493_vm11, %v3434_v16  ;;  %v3436_v24 = vpop.permute.xlu1 %3435  ;;  %v4791_v29 = vpack.c.bf16 %v6043_v27, %v6043_v27  ;;  %v2297_v16 = vrot.slane %v2295_v30, 4 }
 0x21f   : > { %4546 = vst.msk [vmem:[%s6032_s7 + $0x8] sm:$0xf] %vm183_vm0, %v4793_v14  ;;  %3782 = vrot.lane.b32.xlu0 %v3709_v11, %s4940_s25  ;;  %v6052_v32 = vpop.f32.mrf.mxu0  ;;  %v2287_v11 = vrot.slane %v2285_v2, 5  ;;  %v2293_v14 = vrot.slane %v2291_v5, 5  ;;  %v2640_v2 = vrot.slane %v2481_v23, 5 }
 0x220   : > { %3513 = vst.msk [vmem:[#allocation3 + $0x4c] sm:$0xf] %vm3493_vm11, %v3436_v24  ;;  %3784 = vrot.lane.b32.xlu1 %v3712_v12, %s4940_s25  ;;  %v4794_v38 = vpack.c.bf16 %v6052_v32, %v6052_v32  ;;  %v2265_v24 = vrot.slane %v2264_v47, 4 }
 0x221   : > { %4544 = vst.msk [vmem:[%s6032_s7] sm:$0xf] %vm183_vm0, %v4791_v29  ;;  %v3767_v39 = vpop.permute.xlu0 %3766  ;;  %v6063_v46 = vpop.f32.mrf.mxu0  ;;  %v2288_v28 = vor.u32 %v2287_v11, %v2284_v9  ;;  %v2298_v36 = vor.u32 %v2297_v16, %v2293_v14  ;;  %v2641_v9 = vsel %vm5326_vm13, %v2639_v1, %v2640_v2 }
 0x222   : > { %3847 = vst.msk [vmem:[#allocation3 + $0x40] sm:$0xf] %vm3830_vm12, %v3767_v39  ;;  %v3769_v45 = vpop.permute.xlu1 %3768  ;;  %v4792_v25 = vpack.c.bf16 %v6063_v46, %v6063_v46  ;;  %v2477_v39 = vld [vmem:[#allocation2 + $0xb8] sm:$0xf] }
 0x223   : > { %4547 = vst.msk [vmem:[%s6032_s7 + $0xc] sm:$0xf] %vm183_vm0, %v4794_v38  ;;  %3786 = vrot.lane.b32.xlu0 %v3716_v33, %s4940_s25  ;;  %v2275_v33 = vrot.slane %v2274_v13, 4  ;;  %v2289_v40 = vrot.slane %v2288_v28, 4  ;;  %v2299_v48 = vrot.slane %v2298_v36, 4  ;;  %v2630_v49 = vrot.slane %v2477_v39, 5 }
 0x224   : > { %3848 = vst.msk [vmem:[#allocation3 + $0x44] sm:$0xf] %vm3830_vm12, %v3769_v45  ;;  %3788 = vrot.lane.b32.xlu1 %v3719_v18, %s4940_s25  ;;  %v2270_v18 = vsel %vm5061_vm10, %v2265_v24, %v2269_v4  ;;  %v3374_v13 = vshrl.u32 %v3010_v41, 16  ;;  %v3009_v24 = vld [vmem:[#allocation2 + $0xc8] sm:$0x1] }
 0x225   : > { %4545 = vst.msk [vmem:[%s6032_s7 + $0x4] sm:$0xf] %vm183_vm0, %v4792_v25  ;;  %v3771_v21 = vpop.permute.xlu0 %3770  ;;  %v2280_v45 = vsel %vm5061_vm10, %v2275_v33, %v2279_v34  ;;  %v2303_v25 = vrot.slane %v2301_v37, 5  ;;  %v2294_v53 = vsel %vm5061_vm10, %v2289_v40, %v2293_v14  ;;  %v2800_v28 = vld [vmem:[#allocation2 + $0xc0] sm:$0xf]  ;;  %v3379_v33 = vrot.slane %v3377_v15, 5 }
 0x226   : > { %3849 = vst.msk [vmem:[#allocation3 + $0x48] sm:$0xf] %vm3830_vm12, %v3771_v21  ;;  %v3773_v58 = vpop.permute.xlu1 %3772  ;;  %v4702_v21 = vrot.slane %v2476_v61, 9  ;;  %v2801_v36 = vld [vmem:[#allocation2 + $0xc4] sm:$0xf] }
 0x227   : > { %3850 = vst.msk [vmem:[#allocation3 + $0x4c] sm:$0xf] %vm3830_vm12, %v3773_v58  ;;  %1607 = vrot.lane.b32.xlu0 %v1540_v51, %s4934_s19  ;;  %v2478_v51 = vld [vmem:[#allocation2 + $0xbc] sm:$0x1]  ;;  %v2304_v57 = vsel %vm5061_vm10, %v2299_v48, %v2303_v25  ;;  %v2632_v58 = vrot.slane %v2630_v49, 4 }
 0x228   : > { %1609 = vrot.lane.b32.xlu1 %v1543_v56, %s4934_s19  ;;  %v2479_v56 = vld [vmem:[#allocation2 + $0xc0] sm:$0xe]  ;;  %v2633_v59 = vrot.slane %v2478_v51, 5  ;;  %v3573_v15 = vld [vmem:[#allocation2 + $0xd4] sm:$0x1] }
 0x229   : > { %v1592_v3 = vpop.permute.xlu0 %1591  ;;  %v4703_v54 = vrot.slane %v2479_v56, 9 }
 0x22a   : > { %1668 = vst.msk [vmem:[#allocation3 + $0x50] sm:$0xf] %vm1647_vm2, %v1592_v3  ;;  %v1594_v6 = vpop.permute.xlu1 %1593  ;;  %v2631_v3 = vsel %vm5326_vm13, %v4702_v21, %v2630_v49  ;;  %v2634_v30 = vsel %vm5326_vm13, %v2632_v58, %v2633_v59 }
 0x22b   : > { %v4916_v7 = vld [vmem:[#allocation3 + $0x40] sm:$0xff]   ;;  %1669 = vst.msk [vmem:[#allocation3 + $0x54] sm:$0xf] %vm1647_vm2, %v1594_v6  ;;  %1611 = vrot.lane.b32.xlu0 %v1547_v62, %s4934_s19  ;;  %v3007_v62 = vld [vmem:[#allocation2 + $0xc0] sm:$0xf]  ;;  %v3359_v6 = vshll.u32 %v3008_v0, 16  ;;  %v2638_v47 = vsel %vm5326_vm13, %v4703_v54, %v2637_v52 }
 0x22c   : > { %1613 = vrot.lane.b32.xlu1 %v1550_v63, %s4934_s19  ;;  %4864 = vmatprep.mubr.msk.bf16.mxu1 %vm3995_vm14, %v4916_v7  ;;  %v3350_v4 = vshrl.u32 %v3007_v62, 16  ;;  %v3353_v60 = vshll.u32 %v3007_v62, 16  ;;  %v3363_v7 = vshrl.u32 %v3008_v0, 16  ;;  %v3393_v52 = vshll.u32 %v3012_v43, 16  ;;  %v3568_v54 = vld [vmem:[#allocation2 + $0xc0] sm:$0xe] }
 0x22d   : > { %v1596_v12 = vpop.permute.xlu0 %1595  ;;  %v3361_v16 = vrot.slane %v3359_v6, 5  ;;  %v4718_v6 = vrot.slane %v3568_v54, 9 }
 0x22e   : > { %1670 = vst.msk [vmem:[#allocation3 + $0x58] sm:$0xf] %vm1647_vm2, %v1596_v12  ;;  %v1598_v17 = vpop.permute.xlu1 %1597  ;;  %v4917_v19 = vld [vmem:[#allocation3 + $0x48] sm:$0xff]   ;;  %v3352_v11 = vrot.slane %v3350_v4, 4  ;;  %v3355_v12 = vrot.slane %v3353_v60, 5  ;;  %v3395_v0 = vrot.slane %v3393_v52, 5 }
 0x22f   : > { %1671 = vst.msk [vmem:[#allocation3 + $0x5c] sm:$0xf] %vm1647_vm2, %v1598_v17  ;;  %1800 = vrot.lane.b32.xlu0 %v1708_v55, %s4935_s20  ;;  %4865 = vmatmul.mubr.msk.bf16.vlgmr.msra.gmra.mxu1 %vm3995_vm14, %v4917_v19  ;;  %v3365_v17 = vrot.slane %v3363_v7, 4  ;;  %v3572_v4 = vld [vmem:[#allocation2 + $0xd0] sm:$0xf] }
 0x230   : > { %1802 = vrot.lane.b32.xlu1 %v1709_v8, %s4935_s20  ;;  %v3011_v8 = vld [vmem:[#allocation2 + $0xd0] sm:$0xf] }
 0x231   : > { %v1785_v29 = vpop.permute.xlu0 %1784  ;;  %v3383_v19 = vshll.u32 %v3011_v8, 16  ;;  %v3387_v20 = vshrl.u32 %v3011_v8, 16  ;;  %v3366_v37 = vor.u32 %v3365_v17, %v3361_v16 }
 0x232   : > { %1861 = vst.msk [vmem:[#allocation3 + $0x50] sm:$0xf] %vm1840_vm3, %v1785_v29  ;;  %v1787_v38 = vpop.permute.xlu1 %1786  ;;  %v3356_v29 = vor.u32 %v3355_v12, %v3352_v11  ;;  %v3729_v11 = vrot.slane %v3572_v4, 5 }
 0x233   : > { %1862 = vst.msk [vmem:[#allocation3 + $0x54] sm:$0xf] %vm1840_vm3, %v1787_v38  ;;  %1804 = vrot.lane.b32.xlu0 %v1710_v22, %s4935_s20  ;;  %v3369_v38 = vshll.u32 %v3009_v24, 16  ;;  %v3385_v39 = vrot.slane %v3383_v19, 5  ;;  %v3367_v49 = vrot.slane %v3366_v37, 4 }
 0x234   : > { %1806 = vrot.lane.b32.xlu1 %v1711_v31, %s4935_s20  ;;  %v3376_v31 = vrot.slane %v3374_v13, 4  ;;  %v3357_v48 = vrot.slane %v3356_v29, 4 }
 0x235   : > { %v1789_v44 = vpop.permute.xlu0 %1788 }
 0x236   : > { %1863 = vst.msk [vmem:[#allocation3 + $0x58] sm:$0xf] %vm1840_vm3, %v1789_v44  ;;  %v1791_v50 = vpop.permute.xlu1 %1790  ;;  %v2802_v44 = vld [vmem:[#allocation2 + $0xcc] sm:$0xf]  ;;  %v3380_v25 = vor.u32 %v3379_v33, %v3376_v31  ;;  %v3362_v23 = vsel %vm5061_vm10, %v3357_v48, %v3361_v16 }
 0x237   : > { %1864 = vst.msk [vmem:[#allocation3 + $0x5c] sm:$0xf] %vm1840_vm3, %v1791_v50  ;;  %2361 = vrot.lane.b32.xlu0 %v2270_v18, %s4936_s21  ;;  %v3389_v18 = vrot.slane %v3387_v20, 4  ;;  %v3371_v50 = vrot.slane %v3369_v38, 5  ;;  %v3731_v20 = vrot.slane %v3729_v11, 4 }
 0x238   : > { %2363 = vrot.lane.b32.xlu1 %v2280_v45, %s4936_s21  ;;  %v2803_v45 = vld [vmem:[#allocation2 + $0xd0] sm:$0xf] }
 0x239   : > { %v2346_v26 = vpop.permute.xlu0 %2345  ;;  %v3390_v51 = vor.u32 %v3389_v18, %v3385_v39  ;;  %v3372_v62 = vsel %vm5061_vm10, %v3367_v49, %v3371_v50 }
 0x23a   : > { %2422 = vst.msk [vmem:[#allocation3 + $0x50] sm:$0xf] %vm2401_vm4, %v2346_v26  ;;  %v2348_v63 = vpop.permute.xlu1 %2347  ;;  %v3381_v26 = vrot.slane %v3380_v25, 4 }
 0x23b   : > { %2423 = vst.msk [vmem:[#allocation3 + $0x54] sm:$0xf] %vm2401_vm4, %v2348_v63  ;;  %2365 = vrot.lane.b32.xlu0 %v2294_v53, %s4936_s21  ;;  %v3569_v53 = vld [vmem:[#allocation2 + $0xc4] sm:$0xf]  ;;  %v3391_v63 = vrot.slane %v3390_v51, 4 }
 0x23c   : > { %2367 = vrot.lane.b32.xlu1 %v2304_v57, %s4936_s21  ;;  %v3722_v57 = vrot.slane %v3569_v53, 5 }
 0x23d   : > { %v2350_v5 = vpop.permute.xlu0 %2349  ;;  %v3396_v8 = vsel %vm5061_vm10, %v3391_v63, %v3395_v0 }
 0x23e   : > { %2424 = vst.msk [vmem:[#allocation3 + $0x58] sm:$0xf] %vm2401_vm4, %v2350_v5  ;;  %v2352_v55 = vpop.permute.xlu1 %2351  ;;  %v3724_v7 = vrot.slane %v3722_v57, 4  ;;  %v3723_v35 = vsel %vm5326_vm13, %v4718_v6, %v3722_v57 }
 0x23f   : > { %2425 = vst.msk [vmem:[#allocation3 + $0x5c] sm:$0xf] %vm2401_vm4, %v2352_v55  ;;  %2698 = vrot.lane.b32.xlu0 %v2631_v3, %s4937_s22  ;;  %v3570_v3 = vld [vmem:[#allocation2 + $0xc8] sm:$0x1] }
 0x240   : > { %2700 = vrot.lane.b32.xlu1 %v2634_v30, %s4937_s22  ;;  %v3386_v30 = vsel %vm5061_vm10, %v3381_v26, %v3385_v39 }
 0x241   : > { %v2683_v14 = vpop.permute.xlu0 %2682 }
 0x242   : > { %2759 = vst.msk [vmem:[#allocation3 + $0x50] sm:$0xf] %vm2738_vm5, %v2683_v14  ;;  %v2685_v22 = vpop.permute.xlu1 %2684 }
 0x243   : > { %2760 = vst.msk [vmem:[#allocation3 + $0x54] sm:$0xf] %vm2738_vm5, %v2685_v22  ;;  %2702 = vrot.lane.b32.xlu0 %v2638_v47, %s4937_s22  ;;  %v3725_v47 = vrot.slane %v3570_v3, 5  ;;  %v3732_v22 = vrot.slane %v3573_v15, 5 }
 0x244   : > { %2704 = vrot.lane.b32.xlu1 %v2641_v9, %s4937_s22  ;;  %v3571_v9 = vld [vmem:[#allocation2 + $0xcc] sm:$0xe] }
 0x245   : > { %v2687_v34 = vpop.permute.xlu0 %2686  ;;  %v4719_v16 = vrot.slane %v3571_v9, 9  ;;  %v3726_v19 = vsel %vm5326_vm13, %v3724_v7, %v3725_v47  ;;  %v3733_v31 = vsel %vm5326_vm13, %v3731_v20, %v3732_v22 }
 0x246   : > { %2761 = vst.msk [vmem:[#allocation3 + $0x58] sm:$0xf] %vm2738_vm5, %v2687_v34  ;;  %v2689_v40 = vpop.permute.xlu1 %2688 }
 0x247   : > { %2762 = vst.msk [vmem:[#allocation3 + $0x5c] sm:$0xf] %vm2738_vm5, %v2689_v40  ;;  %2892 = vrot.lane.b32.xlu0 %v2800_v28, %s4938_s23  ;;  %v3730_v28 = vsel %vm5326_vm13, %v4719_v16, %v3729_v11 }
 0x248   : > { %2894 = vrot.lane.b32.xlu1 %v2801_v36, %s4938_s23 }
 0x249   : > { %v2877_v61 = vpop.permute.xlu0 %2876 }
 0x24a   : > { %2953 = vst.msk [vmem:[#allocation3 + $0x50] sm:$0xf] %vm2932_vm6, %v2877_v61  ;;  %v2879_v21 = vpop.permute.xlu1 %2878 }
 0x24b   : > { %2954 = vst.msk [vmem:[#allocation3 + $0x54] sm:$0xf] %vm2932_vm6, %v2879_v21  ;;  %2896 = vrot.lane.b32.xlu0 %v2802_v44, %s4938_s23  ;;  %v6140_v56 = vpop.f32.mrf.mxu0 }
 0x24c   : > { %2898 = vrot.lane.b32.xlu1 %v2803_v45, %s4938_s23  ;;  %v4797_v58 = vpack.c.bf16 %v6140_v56, %v6140_v56 }
 0x24d   : > { %v2881_v59 = vpop.permute.xlu0 %2880  ;;  %v6149_v2 = vpop.f32.mrf.mxu0 }
 0x24e   : > { %2955 = vst.msk [vmem:[#allocation3 + $0x58] sm:$0xf] %vm2932_vm6, %v2881_v59  ;;  %v2883_v1 = vpop.permute.xlu1 %2882  ;;  %v4795_v60 = vpack.c.bf16 %v6149_v2, %v6149_v2 }
 0x24f   : > { %4550 = vst.msk [vmem:[%s6032_s7 + $0x18] sm:$0xf] %vm183_vm0, %v4797_v58  ;;  %3453 = vrot.lane.b32.xlu0 %v3362_v23, %s4939_s24  ;;  %v6158_v5 = vpop.f32.mrf.mxu0 }
 0x250   : > { %2956 = vst.msk [vmem:[#allocation3 + $0x5c] sm:$0xf] %vm2932_vm6, %v2883_v1  ;;  %3455 = vrot.lane.b32.xlu1 %v3372_v62, %s4939_s24  ;;  %v4798_v41 = vpack.c.bf16 %v6158_v5, %v6158_v5 }
 0x251   : > { %4548 = vst.msk [vmem:[%s6032_s7 + $0x10] sm:$0xf] %vm183_vm0, %v4795_v60  ;;  %v3438_v55 = vpop.permute.xlu0 %3437  ;;  %v6169_v13 = vpop.f32.mrf.mxu0 }
 0x252   : > { %3514 = vst.msk [vmem:[#allocation3 + $0x50] sm:$0xf] %vm3493_vm11, %v3438_v55  ;;  %v3440_v12 = vpop.permute.xlu1 %3439  ;;  %v4796_v14 = vpack.c.bf16 %v6169_v13, %v6169_v13 }
 0x253   : > { %4551 = vst.msk [vmem:[%s6032_s7 + $0x1c] sm:$0xf] %vm183_vm0, %v4798_v41  ;;  %3457 = vrot.lane.b32.xlu0 %v3386_v30, %s4939_s24 }
 0x254   : > { %3515 = vst.msk [vmem:[#allocation3 + $0x54] sm:$0xf] %vm3493_vm11, %v3440_v12  ;;  %3459 = vrot.lane.b32.xlu1 %v3396_v8, %s4939_s24 }
 0x255   : > { %4549 = vst.msk [vmem:[%s6032_s7 + $0x14] sm:$0xf] %vm183_vm0, %v4796_v14  ;;  %v3442_v17 = vpop.permute.xlu0 %3441 }
 0x256   : > { %3516 = vst.msk [vmem:[#allocation3 + $0x58] sm:$0xf] %vm3493_vm11, %v3442_v17  ;;  %v3444_v24 = vpop.permute.xlu1 %3443 }
 0x257   : > { %3517 = vst.msk [vmem:[#allocation3 + $0x5c] sm:$0xf] %vm3493_vm11, %v3444_v24  ;;  %3790 = vrot.lane.b32.xlu0 %v3723_v35, %s4940_s25 }
 0x258   : > { %3792 = vrot.lane.b32.xlu1 %v3726_v19, %s4940_s25 }
 0x259   : > { %v3775_v29 = vpop.permute.xlu0 %3774 }
 0x25a   : > { %3851 = vst.msk [vmem:[#allocation3 + $0x50] sm:$0xf] %vm3830_vm12, %v3775_v29  ;;  %v3777_v33 = vpop.permute.xlu1 %3776 }
 0x25b   : > { %3852 = vst.msk [vmem:[#allocation3 + $0x54] sm:$0xf] %vm3830_vm12, %v3777_v33  ;;  %3794 = vrot.lane.b32.xlu0 %v3730_v28, %s4940_s25 }
 0x25c   : > { %3796 = vrot.lane.b32.xlu1 %v3733_v31, %s4940_s25 }
 0x25d   : > { %v3779_v34 = vpop.permute.xlu0 %3778 }
 0x25e   : > { %3853 = vst.msk [vmem:[#allocation3 + $0x58] sm:$0xf] %vm3830_vm12, %v3779_v34  ;;  %v3781_v36 = vpop.permute.xlu1 %3780 }
 0x25f   : > { %3854 = vst.msk [vmem:[#allocation3 + $0x5c] sm:$0xf] %vm3830_vm12, %v3781_v36 }
 0x261   : > { %v1600_v37 = vpop.permute.xlu0 %1599 }
 0x262   : > { %1672 = vst.msk [vmem:[#allocation3 + $0x60] sm:$0xf] %vm1647_vm2, %v1600_v37  ;;  %v1602_v42 = vpop.permute.xlu1 %1601  ;;  %v4918_v38 = vld [vmem:[#allocation3 + $0x50] sm:$0xff]  }
 0x263   : > { %1673 = vst.msk [vmem:[#allocation3 + $0x64] sm:$0xf] %vm1647_vm2, %v1602_v42  ;;  %4868 = vmatprep.mubr.msk.bf16.mxu1 %vm3995_vm14, %v4918_v38 }
 0x265   : > { %v1604_v39 = vpop.permute.xlu0 %1603 }
 0x266   : > { %1674 = vst.msk [vmem:[#allocation3 + $0x68] sm:$0xf] %vm1647_vm2, %v1604_v39  ;;  %v1606_v18 = vpop.permute.xlu1 %1605  ;;  %v4919_v40 = vld [vmem:[#allocation3 + $0x58] sm:$0xff]  }
 0x267   : > { %1675 = vst.msk [vmem:[#allocation3 + $0x6c] sm:$0xf] %vm1647_vm2, %v1606_v18  ;;  %4869 = vmatmul.mubr.msk.bf16.gmra.mxu1 %vm3995_vm14, %v4919_v40 }
 0x269   : > { %v1793_v43 = vpop.permute.xlu0 %1792 }
 0x26a   : > { %1865 = vst.msk [vmem:[#allocation3 + $0x60] sm:$0xf] %vm1840_vm3, %v1793_v43  ;;  %v1795_v44 = vpop.permute.xlu1 %1794 }
 0x26b   : > { %1866 = vst.msk [vmem:[#allocation3 + $0x64] sm:$0xf] %vm1840_vm3, %v1795_v44 }
 0x26d   : > { %v1797_v45 = vpop.permute.xlu0 %1796 }
 0x26e   : > { %1867 = vst.msk [vmem:[#allocation3 + $0x68] sm:$0xf] %vm1840_vm3, %v1797_v45  ;;  %v1799_v48 = vpop.permute.xlu1 %1798 }
 0x26f   : > { %1868 = vst.msk [vmem:[#allocation3 + $0x6c] sm:$0xf] %vm1840_vm3, %v1799_v48 }
 0x271   : > { %v2354_v25 = vpop.permute.xlu0 %2353 }
 0x272   : > { %2426 = vst.msk [vmem:[#allocation3 + $0x60] sm:$0xf] %vm2401_vm4, %v2354_v25  ;;  %v2356_v61 = vpop.permute.xlu1 %2355 }
 0x273   : > { %2427 = vst.msk [vmem:[#allocation3 + $0x64] sm:$0xf] %vm2401_vm4, %v2356_v61 }
 0x275   : > { %v2358_v49 = vpop.permute.xlu0 %2357 }
 0x276   : > { %2428 = vst.msk [vmem:[#allocation3 + $0x68] sm:$0xf] %vm2401_vm4, %v2358_v49  ;;  %v2360_v50 = vpop.permute.xlu1 %2359 }
 0x277   : > { %2429 = vst.msk [vmem:[#allocation3 + $0x6c] sm:$0xf] %vm2401_vm4, %v2360_v50 }
 0x279   : > { %v2691_v51 = vpop.permute.xlu0 %2690 }
 0x27a   : > { %2763 = vst.msk [vmem:[#allocation3 + $0x60] sm:$0xf] %vm2738_vm5, %v2691_v51  ;;  %v2693_v52 = vpop.permute.xlu1 %2692 }
 0x27b   : > { %2764 = vst.msk [vmem:[#allocation3 + $0x64] sm:$0xf] %vm2738_vm5, %v2693_v52 }
 0x27d   : > { %v2695_v53 = vpop.permute.xlu0 %2694 }
 0x27e   : > { %2765 = vst.msk [vmem:[#allocation3 + $0x68] sm:$0xf] %vm2738_vm5, %v2695_v53  ;;  %v2697_v21 = vpop.permute.xlu1 %2696 }
 0x27f   : > { %2766 = vst.msk [vmem:[#allocation3 + $0x6c] sm:$0xf] %vm2738_vm5, %v2697_v21  ;;  %v6216_v23 = vpop.f32.mrf.mxu0 }
 0x280   : > { %v4801_v26 = vpack.c.bf16 %v6216_v23, %v6216_v23 }
 0x281   : > { %v2885_v57 = vpop.permute.xlu0 %2884  ;;  %v6221_v59 = vpop.f32.mrf.mxu0 }
 0x282   : > { %2957 = vst.msk [vmem:[#allocation3 + $0x60] sm:$0xf] %vm2932_vm6, %v2885_v57  ;;  %v2887_v58 = vpop.permute.xlu1 %2886  ;;  %v4799_v62 = vpack.c.bf16 %v6221_v59, %v6221_v59 }
 0x283   : > { %4554 = vst.msk [vmem:[%s6032_s7 + $0x28] sm:$0xf] %vm183_vm0, %v4801_v26  ;;  %v6228_v63 = vpop.f32.mrf.mxu0 }
 0x284   : > { %2958 = vst.msk [vmem:[#allocation3 + $0x64] sm:$0xf] %vm2932_vm6, %v2887_v58  ;;  %v4802_v0 = vpack.c.bf16 %v6228_v63, %v6228_v63 }
 0x285   : > { %4552 = vst.msk [vmem:[%s6032_s7 + $0x20] sm:$0xf] %vm183_vm0, %v4799_v62  ;;  %v2889_v54 = vpop.permute.xlu0 %2888  ;;  %v6235_v3 = vpop.f32.mrf.mxu0 }
 0x286   : > { %2959 = vst.msk [vmem:[#allocation3 + $0x68] sm:$0xf] %vm2932_vm6, %v2889_v54  ;;  %v2891_v1 = vpop.permute.xlu1 %2890  ;;  %v4800_v4 = vpack.c.bf16 %v6235_v3, %v6235_v3 }
 0x287   : > { %4555 = vst.msk [vmem:[%s6032_s7 + $0x2c] sm:$0xf] %vm183_vm0, %v4802_v0 }
 0x288   : > { %2960 = vst.msk [vmem:[#allocation3 + $0x6c] sm:$0xf] %vm2932_vm6, %v2891_v1 }
 0x289   : > { %4553 = vst.msk [vmem:[%s6032_s7 + $0x24] sm:$0xf] %vm183_vm0, %v4800_v4  ;;  %v3446_v60 = vpop.permute.xlu0 %3445 }
 0x28a   : > { %3518 = vst.msk [vmem:[#allocation3 + $0x60] sm:$0xf] %vm3493_vm11, %v3446_v60  ;;  %v3448_v30 = vpop.permute.xlu1 %3447 }
 0x28b   : > { %3519 = vst.msk [vmem:[#allocation3 + $0x64] sm:$0xf] %vm3493_vm11, %v3448_v30 }
 0x28d   : > { %v3450_v6 = vpop.permute.xlu0 %3449 }
 0x28e   : > { %3520 = vst.msk [vmem:[#allocation3 + $0x68] sm:$0xf] %vm3493_vm11, %v3450_v6  ;;  %v3452_v7 = vpop.permute.xlu1 %3451 }
 0x28f   : > { %3521 = vst.msk [vmem:[#allocation3 + $0x6c] sm:$0xf] %vm3493_vm11, %v3452_v7 }
 0x291   : > { %v3783_v41 = vpop.permute.xlu0 %3782 }
 0x292   : > { %3855 = vst.msk [vmem:[#allocation3 + $0x60] sm:$0xf] %vm3830_vm12, %v3783_v41  ;;  %v3785_v55 = vpop.permute.xlu1 %3784 }
 0x293   : > { %3856 = vst.msk [vmem:[#allocation3 + $0x64] sm:$0xf] %vm3830_vm12, %v3785_v55 }
 0x295   : > { %v3787_v8 = vpop.permute.xlu0 %3786 }
 0x296   : > { %3857 = vst.msk [vmem:[#allocation3 + $0x68] sm:$0xf] %vm3830_vm12, %v3787_v8  ;;  %v3789_v47 = vpop.permute.xlu1 %3788 }
 0x297   : > { %3858 = vst.msk [vmem:[#allocation3 + $0x6c] sm:$0xf] %vm3830_vm12, %v3789_v47 }
 0x299   : > { %v1608_v9 = vpop.permute.xlu0 %1607 }
 0x29a   : > { %1676 = vst.msk [vmem:[#allocation3 + $0x70] sm:$0xf] %vm1647_vm2, %v1608_v9  ;;  %v1610_v11 = vpop.permute.xlu1 %1609  ;;  %v4920_v12 = vld [vmem:[#allocation3 + $0x60] sm:$0xff]  }
 0x29b   : > { %1677 = vst.msk [vmem:[#allocation3 + $0x74] sm:$0xf] %vm1647_vm2, %v1610_v11  ;;  %4872 = vmatprep.mubr.msk.bf16.mxu1 %vm3995_vm14, %v4920_v12 }
 0x29d   : > { %v1612_v15 = vpop.permute.xlu0 %1611 }
 0x29e   : > { %1678 = vst.msk [vmem:[#allocation3 + $0x78] sm:$0xf] %vm1647_vm2, %v1612_v15  ;;  %v1614_v14 = vpop.permute.xlu1 %1613  ;;  %v4921_v35 = vld [vmem:[#allocation3 + $0x68] sm:$0xff]  }
 0x29f   : > { %1679 = vst.msk [vmem:[#allocation3 + $0x7c] sm:$0xf] %vm1647_vm2, %v1614_v14  ;;  %4873 = vmatmul.mubr.msk.bf16.gmra.mxu1 %vm3995_vm14, %v4921_v35  ;;  %v4211_v14 = vsel %vm4209_vm7, %v6063_v46, 0.0  ;;  %v4210_v35 = vsel %vm4209_vm7, %v6043_v27, 0.0 }
 0x2a1   : > { %v1801_v16 = vpop.permute.xlu0 %1800 }
 0x2a2   : > { %1869 = vst.msk [vmem:[#allocation3 + $0x70] sm:$0xf] %vm1840_vm3, %v1801_v16  ;;  %v1803_v17 = vpop.permute.xlu1 %1802  ;;  %v4212_v16 = vadd.f32 %v4211_v14, %v4210_v35 }
 0x2a3   : > { %1870 = vst.msk [vmem:[#allocation3 + $0x74] sm:$0xf] %vm1840_vm3, %v1803_v17  ;;  %v4213_v17 = vsel %vm4209_vm7, %v6034_v10, 0.0 }
 0x2a5   : > { %v1805_v19 = vpop.permute.xlu0 %1804 }
 0x2a6   : > { %1871 = vst.msk [vmem:[#allocation3 + $0x78] sm:$0xf] %vm1840_vm3, %v1805_v19  ;;  %v1807_v20 = vpop.permute.xlu1 %1806  ;;  %v4214_v19 = vadd.f32 %v4213_v17, %v4212_v16 }
 0x2a7   : > { %1872 = vst.msk [vmem:[#allocation3 + $0x7c] sm:$0xf] %vm1840_vm3, %v1807_v20  ;;  %v4215_v20 = vsel %vm4209_vm7, %v6052_v32, 0.0 }
 0x2a9   : > { %v2362_v22 = vpop.permute.xlu0 %2361 }
 0x2aa   : > { %2430 = vst.msk [vmem:[#allocation3 + $0x70] sm:$0xf] %vm2401_vm4, %v2362_v22  ;;  %v2364_v24 = vpop.permute.xlu1 %2363  ;;  %v4217_v22 = vsel %vm4209_vm7, %v6149_v2, 0.0 }
 0x2ab   : > { %2431 = vst.msk [vmem:[#allocation3 + $0x74] sm:$0xf] %vm2401_vm4, %v2364_v24  ;;  %v4216_v24 = vadd.f32 %v4215_v20, %v4214_v19 }
 0x2ad   : > { %v2366_v28 = vpop.permute.xlu0 %2365 }
 0x2ae   : > { %2432 = vst.msk [vmem:[#allocation3 + $0x78] sm:$0xf] %vm2401_vm4, %v2366_v28  ;;  %v2368_v29 = vpop.permute.xlu1 %2367  ;;  %v4219_v28 = vsel %vm4209_vm7, %v6169_v13, 0.0 }
 0x2af   : > { %2433 = vst.msk [vmem:[#allocation3 + $0x7c] sm:$0xf] %vm2401_vm4, %v2368_v29  ;;  %v4218_v29 = vadd.f32 %v4217_v22, %v4216_v24 }
 0x2b1   : > { %v2699_v31 = vpop.permute.xlu0 %2698 }
 0x2b2   : > { %2767 = vst.msk [vmem:[#allocation3 + $0x70] sm:$0xf] %vm2738_vm5, %v2699_v31  ;;  %v2701_v33 = vpop.permute.xlu1 %2700  ;;  %v4220_v31 = vadd.f32 %v4219_v28, %v4218_v29 }
 0x2b3   : > { %2768 = vst.msk [vmem:[#allocation3 + $0x74] sm:$0xf] %vm2738_vm5, %v2701_v33  ;;  %v4221_v33 = vsel %vm4209_vm7, %v6140_v56, 0.0 }
 0x2b5   : > { %v2703_v34 = vpop.permute.xlu0 %2702 }
 0x2b6   : > { %2769 = vst.msk [vmem:[#allocation3 + $0x78] sm:$0xf] %vm2738_vm5, %v2703_v34  ;;  %v2705_v36 = vpop.permute.xlu1 %2704  ;;  %v4222_v34 = vadd.f32 %v4221_v33, %v4220_v31 }
 0x2b7   : > { %2770 = vst.msk [vmem:[#allocation3 + $0x7c] sm:$0xf] %vm2738_vm5, %v2705_v36  ;;  %v6270_v37 = vpop.f32.mrf.mxu0  ;;  %v4223_v36 = vsel %vm4209_vm7, %v6158_v5, 0.0 }
 0x2b8   : > { %v4805_v42 = vpack.c.bf16 %v6270_v37, %v6270_v37 }
 0x2b9   : > { %v2893_v38 = vpop.permute.xlu0 %2892  ;;  %v6275_v18 = vpop.f32.mrf.mxu0 }
 0x2ba   : > { %2961 = vst.msk [vmem:[#allocation3 + $0x70] sm:$0xf] %vm2932_vm6, %v2893_v38  ;;  %v2895_v39 = vpop.permute.xlu1 %2894  ;;  %v4803_v40 = vpack.c.bf16 %v6275_v18, %v6275_v18  ;;  %v4224_v38 = vadd.f32 %v4223_v36, %v4222_v34 }
 0x2bb   : > { %4558 = vst.msk [vmem:[%s6032_s7 + $0x38] sm:$0xf] %vm183_vm0, %v4805_v42  ;;  %v6282_v43 = vpop.f32.mrf.mxu0  ;;  %v4225_v42 = vsel %vm4209_vm7, %v6221_v59, 0.0 }
 0x2bc   : > { %2962 = vst.msk [vmem:[#allocation3 + $0x74] sm:$0xf] %vm2932_vm6, %v2895_v39  ;;  %v4806_v44 = vpack.c.bf16 %v6282_v43, %v6282_v43 }
 0x2bd   : > { %4556 = vst.msk [vmem:[%s6032_s7 + $0x30] sm:$0xf] %vm183_vm0, %v4803_v40  ;;  %v2897_v45 = vpop.permute.xlu0 %2896  ;;  %v6289_v25 = vpop.f32.mrf.mxu0  ;;  %v4227_v40 = vsel %vm4209_vm7, %v6235_v3, 0.0 }
 0x2be   : > { %2963 = vst.msk [vmem:[#allocation3 + $0x78] sm:$0xf] %vm2932_vm6, %v2897_v45  ;;  %v2899_v48 = vpop.permute.xlu1 %2898  ;;  %v4804_v61 = vpack.c.bf16 %v6289_v25, %v6289_v25  ;;  %v4226_v45 = vadd.f32 %v4225_v42, %v4224_v38 }
 0x2bf   : > { %4559 = vst.msk [vmem:[%s6032_s7 + $0x3c] sm:$0xf] %vm183_vm0, %v4806_v44 }
 0x2c0   : > { %2964 = vst.msk [vmem:[#allocation3 + $0x7c] sm:$0xf] %vm2932_vm6, %v2899_v48 }
 0x2c1   : > { %4557 = vst.msk [vmem:[%s6032_s7 + $0x34] sm:$0xf] %vm183_vm0, %v4804_v61  ;;  %v3454_v49 = vpop.permute.xlu0 %3453 }
 0x2c2   : > { %3522 = vst.msk [vmem:[#allocation3 + $0x70] sm:$0xf] %vm3493_vm11, %v3454_v49  ;;  %v3456_v50 = vpop.permute.xlu1 %3455  ;;  %v4228_v49 = vadd.f32 %v4227_v40, %v4226_v45 }
 0x2c3   : > { %3523 = vst.msk [vmem:[#allocation3 + $0x74] sm:$0xf] %vm3493_vm11, %v3456_v50 }
 0x2c5   : > { %v3458_v51 = vpop.permute.xlu0 %3457 }
 0x2c6   : > { %3524 = vst.msk [vmem:[#allocation3 + $0x78] sm:$0xf] %vm3493_vm11, %v3458_v51  ;;  %v3460_v52 = vpop.permute.xlu1 %3459 }
 0x2c7   : > { %3525 = vst.msk [vmem:[#allocation3 + $0x7c] sm:$0xf] %vm3493_vm11, %v3460_v52 }
 0x2c9   : > { %v3791_v53 = vpop.permute.xlu0 %3790 }
 0x2ca   : > { %3859 = vst.msk [vmem:[#allocation3 + $0x70] sm:$0xf] %vm3830_vm12, %v3791_v53  ;;  %v3793_v21 = vpop.permute.xlu1 %3792  ;;  %v4229_v53 = vsel %vm4209_vm7, %v6216_v23, 0.0 }
 0x2cb   : > { %3860 = vst.msk [vmem:[#allocation3 + $0x74] sm:$0xf] %vm3830_vm12, %v3793_v21 }
 0x2cd   : > { %v3795_v26 = vpop.permute.xlu0 %3794 }
 0x2ce   : > { %3861 = vst.msk [vmem:[#allocation3 + $0x78] sm:$0xf] %vm3830_vm12, %v3795_v26  ;;  %v3797_v57 = vpop.permute.xlu1 %3796  ;;  %v4230_v26 = vadd.f32 %v4229_v53, %v4228_v49 }
 0x2cf   : > { %3862 = vst.msk [vmem:[#allocation3 + $0x7c] sm:$0xf] %vm3830_vm12, %v3797_v57  ;;  %v4231_v57 = vsel %vm4209_vm7, %v6228_v63, 0.0 }
 0x2d2   : > { %v4922_v58 = vld [vmem:[#allocation3 + $0x70] sm:$0xff]  }
 0x2d3   : > { %4876 = vmatprep.mubr.msk.bf16.mxu1 %vm3995_vm14, %v4922_v58  ;;  %v4233_v58 = vsel %vm4209_vm7, %v6275_v18, 0.0 }
 0x2d6   : > { %v4923_v62 = vld [vmem:[#allocation3 + $0x78] sm:$0xff]  }
 0x2d7   : > { %4877 = vmatmul.mubr.msk.bf16.gmra.mxu1 %vm3995_vm14, %v4923_v62  ;;  %v4232_v62 = vadd.f32 %v4231_v57, %v4230_v26 }
 0x2ef   : > { %v6308_v0 = vpop.f32.mrf.mxu1 }
 0x2f0   : > { %v4809_v54 = vpack.c.bf16 %v6308_v0, %v6308_v0  ;;  %v4245_v17 = vsel %vm4209_vm7, %v6308_v0, 0.0 }
 0x2f1   : > { %v6312_v1 = vpop.f32.mrf.mxu1 }
 0x2f2   : > { %4562 = vst.msk [vmem:[%s6032_s7 + $0x48] sm:$0xf] %vm183_vm0, %v4809_v54  ;;  %v4807_v4 = vpack.c.bf16 %v6312_v1, %v6312_v1  ;;  %v4235_v54 = vsel %vm4209_vm7, %v6289_v25, 0.0 }
 0x2f3   : > { %v6318_v60 = vpop.f32.mrf.mxu1 }
 0x2f4   : > { %4560 = vst.msk [vmem:[%s6032_s7 + $0x40] sm:$0xf] %vm183_vm0, %v4807_v4  ;;  %v4810_v30 = vpack.c.bf16 %v6318_v60, %v6318_v60  ;;  %v4234_v4 = vadd.f32 %v4233_v58, %v4232_v62  ;;  %v4247_v20 = vsel %vm4209_vm7, %v6318_v60, 0.0 }
 0x2f5   : > { %v6324_v6 = vpop.f32.mrf.mxu1 }
 0x2f6   : > { %4563 = vst.msk [vmem:[%s6032_s7 + $0x4c] sm:$0xf] %vm183_vm0, %v4810_v30  ;;  %v4808_v7 = vpack.c.bf16 %v6324_v6, %v6324_v6  ;;  %v4236_v30 = vadd.f32 %v4235_v54, %v4234_v4  ;;  %v4243_v14 = vsel %vm4209_vm7, %v6324_v6, 0.0 }
 0x2f8   : > { %4561 = vst.msk [vmem:[%s6032_s7 + $0x44] sm:$0xf] %vm183_vm0, %v4808_v7  ;;  %v4237_v7 = vsel %vm4209_vm7, %v6270_v37, 0.0 }
 0x327   : > { %v6332_v41 = vpop.f32.mrf.mxu1 }
 0x328   : > { %v4813_v55 = vpack.c.bf16 %v6332_v41, %v6332_v41  ;;  %v4253_v33 = vsel %vm4209_vm7, %v6332_v41, 0.0 }
 0x329   : > { %v6336_v8 = vpop.f32.mrf.mxu1 }
 0x32a   : > { %4566 = vst.msk [vmem:[%s6032_s7 + $0x58] sm:$0xf] %vm183_vm0, %v4813_v55  ;;  %v4811_v47 = vpack.c.bf16 %v6336_v8, %v6336_v8  ;;  %v4238_v55 = vadd.f32 %v4237_v7, %v4236_v30  ;;  %v4249_v22 = vsel %vm4209_vm7, %v6336_v8, 0.0 }
 0x32b   : > { %v6342_v9 = vpop.f32.mrf.mxu1 }
 0x32c   : > { %4564 = vst.msk [vmem:[%s6032_s7 + $0x50] sm:$0xf] %vm183_vm0, %v4811_v47  ;;  %v4814_v11 = vpack.c.bf16 %v6342_v9, %v6342_v9  ;;  %v4239_v47 = vsel %vm4209_vm7, %v6282_v43, 0.0  ;;  %v4255_v36 = vsel %vm4209_vm7, %v6342_v9, 0.0 }
 0x32d   : > { %v6348_v12 = vpop.f32.mrf.mxu1 }
 0x32e   : > { %4567 = vst.msk [vmem:[%s6032_s7 + $0x5c] sm:$0xf] %vm183_vm0, %v4814_v11  ;;  %v4812_v15 = vpack.c.bf16 %v6348_v12, %v6348_v12  ;;  %v4241_v11 = vsel %vm4209_vm7, %v6312_v1, 0.0  ;;  %v4251_v28 = vsel %vm4209_vm7, %v6348_v12, 0.0 }
 0x330   : > { %4565 = vst.msk [vmem:[%s6032_s7 + $0x54] sm:$0xf] %vm183_vm0, %v4812_v15  ;;  %v4240_v15 = vadd.f32 %v4239_v47, %v4238_v55 }
 0x332   : > { %v4242_v35 = vadd.f32 %v4241_v11, %v4240_v15 }
 0x334   : > { %v4244_v16 = vadd.f32 %v4243_v14, %v4242_v35 }
 0x336   : > { %v4246_v19 = vadd.f32 %v4245_v17, %v4244_v16 }
 0x338   : > { %v4248_v24 = vadd.f32 %v4247_v20, %v4246_v19 }
 0x33a   : > { %v4250_v29 = vadd.f32 %v4249_v22, %v4248_v24 }
 0x33c   : > { %v4252_v31 = vadd.f32 %v4251_v28, %v4250_v29 }
 0x33e   : > { %v4254_v34 = vadd.f32 %v4253_v33, %v4252_v31 }
 0x340   : > { %v4256_v38 = vadd.f32 %v4255_v36, %v4254_v34 }
 0x35f   : > { %v6374_v39 = vpop.f32.mrf.mxu1 }
 0x360   : > { %v4817_v44 = vpack.c.bf16 %v6374_v39, %v6374_v39 }
 0x361   : > { %v6380_v48 = vpop.f32.mrf.mxu1 }
 0x362   : > { %4570 = vst.msk [vmem:[%s6032_s7 + $0x68] sm:$0xf] %vm183_vm0, %v4817_v44  ;;  %v4815_v61 = vpack.c.bf16 %v6380_v48, %v6380_v48  ;;  %v4257_v42 = vsel %vm4209_vm7, %v6380_v48, 0.0 }
 0x363   : > { %v6386_v50 = vpop.f32.mrf.mxu1  ;;  %v4258_v44 = vadd.f32 %v4257_v42, %v4256_v38 }
 0x364   : > { %4568 = vst.msk [vmem:[%s6032_s7 + $0x60] sm:$0xf] %vm183_vm0, %v4815_v61  ;;  %v4818_v51 = vpack.c.bf16 %v6386_v50, %v6386_v50  ;;  %v4261_v61 = vsel %vm4209_vm7, %v6374_v39, 0.0  ;;  %v4263_v26 = vsel %vm4209_vm7, %v6386_v50, 0.0 }
 0x365   : > { %v6392_v52 = vpop.f32.mrf.mxu1 }
 0x366   : > { %4571 = vst.msk [vmem:[%s6032_s7 + $0x6c] sm:$0xf] %vm183_vm0, %v4818_v51  ;;  %v4816_v21 = vpack.c.bf16 %v6392_v52, %v6392_v52  ;;  %v4259_v40 = vsel %vm4209_vm7, %v6392_v52, 0.0 }
 0x367   : > { %v4260_v45 = vadd.f32 %v4259_v40, %v4258_v44 }
 0x368   : > { %4569 = vst.msk [vmem:[%s6032_s7 + $0x64] sm:$0xf] %vm183_vm0, %v4816_v21 }
 0x369   : > { %v4262_v49 = vadd.f32 %v4261_v61, %v4260_v45 }
 0x36b   : > { %v4264_v62 = vadd.f32 %v4263_v26, %v4262_v49 }
 0x397   : > { %v6434_v51 = vpop.f32.mrf.mxu1 }
 0x398   : > { %v4821_v53 = vpack.c.bf16 %v6434_v51, %v6434_v51  ;;  %v4269_v15 = vsel %vm4209_vm7, %v6434_v51, 0.0 }
 0x399   : > { %v6438_v21 = vpop.f32.mrf.mxu1 }
 0x39a   : > { %4574 = vst.msk [vmem:[%s6032_s7 + $0x78] sm:$0xf] %vm183_vm0, %v4821_v53  ;;  %v4265_v57 = vsel %vm4209_vm7, %v6438_v21, 0.0  ;;  %v4819_v58 = vpack.c.bf16 %v6438_v21, %v6438_v21 }
 0x39b   : > { %v6448_v54 = vpop.f32.mrf.mxu1  ;;  %v4266_v30 = vadd.f32 %v4265_v57, %v4264_v62 }
 0x39c   : > { %4572 = vst.msk [vmem:[%s6032_s7 + $0x70] sm:$0xf] %vm183_vm0, %v4819_v58  ;;  %v4822_v4 = vpack.c.bf16 %v6448_v54, %v6448_v54  ;;  %v4271_v35 = vsel %vm4209_vm7, %v6448_v54, 0.0 }
 0x39d   : > { %v6454_v7 = vpop.f32.mrf.mxu1 }
 0x39e   : > { %4575 = vst.msk [vmem:[%s6032_s7 + $0x7c] sm:$0xf] %vm183_vm0, %v4822_v4  ;;  %v4267_v55 = vsel %vm4209_vm7, %v6454_v7, 0.0  ;;  %v4820_v47 = vpack.c.bf16 %v6454_v7, %v6454_v7 }
 0x39f   : > { %v4268_v11 = vadd.f32 %v4267_v55, %v4266_v30 }
 0x3a0   : > { %4573 = vst.msk [vmem:[%s6032_s7 + $0x74] sm:$0xf] %vm183_vm0, %v4820_v47 }
 0x3a1   : > { %v4270_v14 = vadd.f32 %v4269_v15, %v4268_v11 }
 0x3a3   : > { %v4272_v16 = vadd.f32 %v4271_v35, %v4270_v14 }
 0x3a5   : > { %v4273_v17 = vrot.slane %v4272_v16, 4 }
 0x3a7   : > { %v4274_v19 = vadd.f32 %v4273_v17, %v4272_v16 }
 0x3a9   : > { %v4275_v20 = vrot.slane %v4274_v19, 2 }
 0x3ab   : > { %v4276_v22 = vadd.f32 %v4275_v20, %v4274_v19 }
 0x3ad   : > { %v4277_v24 = vrot.slane %v4276_v22, 1 }
 0x3af   : > { %v4278_v28 = vadd.f32 %v4277_v24, %v4276_v22 }
 0x3b1   : > { %4313 = vst.msk [vmem:[%s6472_s11] sm:$0x1] %vm186_vm1, %v4278_v28  ;;  %v6476_v29 = vmul.f32 0.00390625, %v4278_v28 }
 0x3b3   : > { %v4281_v31 = vsub.f32 %v6043_v27, %v6476_v29  ;;  %v4282_v33 = vsub.f32 %v6063_v46, %v6476_v29  ;;  %v4283_v34 = vsub.f32 %v6034_v10, %v6476_v29  ;;  %v4284_v36 = vsub.f32 %v6052_v32, %v6476_v29 }
 0x3b4   : > { %v4285_v40 = vsub.f32 %v6149_v2, %v6476_v29  ;;  %v4286_v45 = vsub.f32 %v6169_v13, %v6476_v29  ;;  %v4287_v10 = vsub.f32 %v6140_v56, %v6476_v29  ;;  %v4288_v2 = vsub.f32 %v6158_v5, %v6476_v29 }
 0x3b5   : > { %v4314_v42 = vmul.f32 %v4281_v31, %v4281_v31  ;;  %v4315_v38 = vmul.f32 %v4282_v33, %v4282_v33  ;;  %v4316_v44 = vmul.f32 %v4283_v34, %v4283_v34  ;;  %v4317_v61 = vmul.f32 %v4284_v36, %v4284_v36 }
 0x3b6   : > { %v4318_v53 = vmul.f32 %v4285_v40, %v4285_v40  ;;  %v4319_v57 = vmul.f32 %v4286_v45, %v4286_v45  ;;  %v4289_v62 = vsub.f32 %v6221_v59, %v6476_v29  ;;  %v4320_v4 = vmul.f32 %v4287_v10, %v4287_v10 }
 0x3b7   : > { %v4346_v27 = vsel %vm4209_vm7, %v4314_v42, 0.0  ;;  %v4347_v46 = vsel %vm4209_vm7, %v4315_v38, 0.0  ;;  %v4349_v32 = vsel %vm4209_vm7, %v4316_v44, 0.0  ;;  %v4351_v58 = vsel %vm4209_vm7, %v4317_v61, 0.0 }
 0x3b8   : > { %v4348_v49 = vadd.f32 %v4347_v46, %v4346_v27  ;;  %v4353_v30 = vsel %vm4209_vm7, %v4318_v53, 0.0  ;;  %v4290_v56 = vsub.f32 %v6235_v3, %v6476_v29  ;;  %v4321_v47 = vmul.f32 %v4288_v2, %v4288_v2 }
 0x3b9   : > { %v4355_v11 = vsel %vm4209_vm7, %v4319_v57, 0.0  ;;  %v4291_v5 = vsub.f32 %v6216_v23, %v6476_v29  ;;  %v4322_v14 = vmul.f32 %v4289_v62, %v4289_v62  ;;  %v4357_v35 = vsel %vm4209_vm7, %v4320_v4, 0.0 }
 0x3ba   : > { %v4350_v26 = vadd.f32 %v4349_v32, %v4348_v49  ;;  %v4292_v59 = vsub.f32 %v6228_v63, %v6476_v29  ;;  %v4323_v17 = vmul.f32 %v4290_v56, %v4290_v56  ;;  %v4359_v19 = vsel %vm4209_vm7, %v4321_v47, 0.0 }
 0x3bb   : > { %v4293_v3 = vsub.f32 %v6275_v18, %v6476_v29  ;;  %v4324_v22 = vmul.f32 %v4291_v5, %v4291_v5  ;;  %v4361_v24 = vsel %vm4209_vm7, %v4322_v14, 0.0  ;;  %v4294_v23 = vsub.f32 %v6289_v25, %v6476_v29 }
 0x3bc   : > { %v4352_v13 = vadd.f32 %v4351_v58, %v4350_v26  ;;  %v4325_v31 = vmul.f32 %v4292_v59, %v4292_v59  ;;  %v4363_v33 = vsel %vm4209_vm7, %v4323_v17, 0.0  ;;  %v4295_v63 = vsub.f32 %v6270_v37, %v6476_v29 }
 0x3bd   : > { %v4326_v36 = vmul.f32 %v4293_v3, %v4293_v3  ;;  %v4365_v42 = vsel %vm4209_vm7, %v4324_v22, 0.0  ;;  %v4296_v18 = vsub.f32 %v6282_v43, %v6476_v29  ;;  %v4327_v40 = vmul.f32 %v4294_v23, %v4294_v23 }
 0x3be   : > { %v4354_v55 = vadd.f32 %v4353_v30, %v4352_v13  ;;  %v4367_v44 = vsel %vm4209_vm7, %v4325_v31, 0.0  ;;  %v4297_v25 = vsub.f32 %v6312_v1, %v6476_v29  ;;  %v4328_v61 = vmul.f32 %v4295_v63, %v4295_v63 }
 0x3bf   : > { %v4369_v27 = vsel %vm4209_vm7, %v4326_v36, 0.0  ;;  %v4298_v37 = vsub.f32 %v6324_v6, %v6476_v29  ;;  %v4329_v49 = vmul.f32 %v4296_v18, %v4296_v18  ;;  %v4371_v10 = vsel %vm4209_vm7, %v4327_v40, 0.0 }
 0x3c0   : > { %v4356_v15 = vadd.f32 %v4355_v11, %v4354_v55  ;;  %v4299_v43 = vsub.f32 %v6308_v0, %v6476_v29  ;;  %v4330_v32 = vmul.f32 %v4297_v25, %v4297_v25  ;;  %v4373_v26 = vsel %vm4209_vm7, %v4328_v61, 0.0 }
 0x3c1   : > { %v4300_v1 = vsub.f32 %v6318_v60, %v6476_v29  ;;  %v4331_v57 = vmul.f32 %v4298_v37, %v4298_v37  ;;  %v4375_v58 = vsel %vm4209_vm7, %v4329_v49, 0.0  ;;  %v4301_v6 = vsub.f32 %v6336_v8, %v6476_v29 }
 0x3c2   : > { %v4358_v16 = vadd.f32 %v4357_v35, %v4356_v15  ;;  %v4332_v62 = vmul.f32 %v4299_v43, %v4299_v43  ;;  %v4377_v4 = vsel %vm4209_vm7, %v4330_v32, 0.0  ;;  %v4302_v0 = vsub.f32 %v6348_v12, %v6476_v29 }
 0x3c3   : > { %v4333_v55 = vmul.f32 %v4300_v1, %v4300_v1  ;;  %v4379_v56 = vsel %vm4209_vm7, %v4331_v57, 0.0  ;;  %v4303_v60 = vsub.f32 %v6332_v41, %v6476_v29  ;;  %v4334_v11 = vmul.f32 %v4301_v6, %v4301_v6 }
 0x3c4   : > { %v4360_v20 = vadd.f32 %v4359_v19, %v4358_v16  ;;  %v4381_v15 = vsel %vm4209_vm7, %v4332_v62, 0.0  ;;  %v4304_v8 = vsub.f32 %v6342_v9, %v6476_v29  ;;  %v4335_v14 = vmul.f32 %v4302_v0, %v4302_v0 }
 0x3c5   : > { %v4383_v35 = vsel %vm4209_vm7, %v4333_v55, 0.0  ;;  %v4305_v12 = vsub.f32 %v6380_v48, %v6476_v29  ;;  %v4336_v59 = vmul.f32 %v4303_v60, %v4303_v60  ;;  %v4385_v17 = vsel %vm4209_vm7, %v4334_v11, 0.0 }
 0x3c6   : > { %v4362_v28 = vadd.f32 %v4361_v24, %v4360_v20  ;;  %v4306_v41 = vsub.f32 %v6392_v52, %v6476_v29  ;;  %v4337_v20 = vmul.f32 %v4304_v8, %v4304_v8  ;;  %v4387_v3 = vsel %vm4209_vm7, %v4335_v14, 0.0 }
 0x3c7   : > { %v4307_v9 = vsub.f32 %v6374_v39, %v6476_v29  ;;  %v4338_v24 = vmul.f32 %v4305_v12, %v4305_v12  ;;  %v4308_v48 = vsub.f32 %v6386_v50, %v6476_v29  ;;  %v4309_v52 = vsub.f32 %v6438_v21, %v6476_v29 }
 0x3c8   : > { %v4364_v34 = vadd.f32 %v4363_v33, %v4362_v28  ;;  %v4389_v28 = vsel %vm4209_vm7, %v4336_v59, 0.0  ;;  %v4339_v31 = vmul.f32 %v4306_v41, %v4306_v41  ;;  %v4391_v33 = vsel %vm4209_vm7, %v4337_v20, 0.0 }
 0x3c9   : > { %v4340_v63 = vmul.f32 %v4307_v9, %v4307_v9  ;;  %v4393_v36 = vsel %vm4209_vm7, %v4338_v24, 0.0  ;;  %v4310_v39 = vsub.f32 %v6454_v7, %v6476_v29  ;;  %v4311_v50 = vsub.f32 %v6434_v51, %v6476_v29 }
 0x3ca   : > { %v4366_v38 = vadd.f32 %v4365_v42, %v4364_v34  ;;  %v4395_v18 = vsel %vm4209_vm7, %v4339_v31, 0.0  ;;  %v4312_v21 = vsub.f32 %v6448_v54, %v6476_v29 }
 0x3cb   : > { %v4343_v61 = vmul.f32 %v4310_v39, %v4310_v39  ;;  %v4344_v37 = vmul.f32 %v4311_v50, %v4311_v50 }
 0x3cc   : > { %v4368_v45 = vadd.f32 %v4367_v44, %v4366_v38  ;;  %v4341_v38 = vmul.f32 %v4308_v48, %v4308_v48  ;;  %v4342_v44 = vmul.f32 %v4309_v52, %v4309_v52 }
 0x3cd   : > { %v4405_v43 = vsel %vm4209_vm7, %v4344_v37, 0.0 }
 0x3ce   : > { %v4370_v46 = vadd.f32 %v4369_v27, %v4368_v45  ;;  %v4397_v45 = vsel %vm4209_vm7, %v4340_v63, 0.0  ;;  %v4399_v27 = vsel %vm4209_vm7, %v4341_v38, 0.0  ;;  %v4401_v7 = vsel %vm4209_vm7, %v4342_v44, 0.0 }
 0x3d0   : > { %v4372_v53 = vadd.f32 %v4371_v10, %v4370_v46  ;;  %v4345_v10 = vmul.f32 %v4312_v21, %v4312_v21 }
 0x3d2   : > { %v4374_v2 = vadd.f32 %v4373_v26, %v4372_v53  ;;  %v4403_v53 = vsel %vm4209_vm7, %v4343_v61, 0.0  ;;  %v4407_v26 = vsel %vm4209_vm7, %v4345_v10, 0.0 }
 0x3d4   : > { %v4376_v13 = vadd.f32 %v4375_v58, %v4374_v2 }
 0x3d6   : > { %v4378_v30 = vadd.f32 %v4377_v4, %v4376_v13 }
 0x3d8   : > { %v4380_v47 = vadd.f32 %v4379_v56, %v4378_v30 }
 0x3da   : > { %v4382_v5 = vadd.f32 %v4381_v15, %v4380_v47 }
 0x3dc   : > { %v4384_v16 = vadd.f32 %v4383_v35, %v4382_v5 }
 0x3de   : > { %v4386_v19 = vadd.f32 %v4385_v17, %v4384_v16 }
 0x3e0   : > { %v4388_v22 = vadd.f32 %v4387_v3, %v4386_v19 }
 0x3e2   : > { %v4390_v23 = vadd.f32 %v4389_v28, %v4388_v22 }
 0x3e4   : > { %v4392_v34 = vadd.f32 %v4391_v33, %v4390_v23 }
 0x3e6   : > { %v4394_v42 = vadd.f32 %v4393_v36, %v4392_v34 }
 0x3e8   : > { %v4396_v40 = vadd.f32 %v4395_v18, %v4394_v42 }
 0x3ea   : > { %v4398_v25 = vadd.f32 %v4397_v45, %v4396_v40 }
 0x3ec   : > { %v4400_v46 = vadd.f32 %v4399_v27, %v4398_v25 }
 0x3ee   : > { %v4402_v49 = vadd.f32 %v4401_v7, %v4400_v46 }
 0x3f0   : > { %v4404_v51 = vadd.f32 %v4403_v53, %v4402_v49 }
 0x3f2   : > { %v4406_v32 = vadd.f32 %v4405_v43, %v4404_v51 }
 0x3f4   : > { %v4408_v2 = vadd.f32 %v4407_v26, %v4406_v32 }
 0x3f6   : > { %v4409_v54 = vrot.slane %v4408_v2, 4 }
 0x3f8   : > { %v4410_v29 = vadd.f32 %v4409_v54, %v4408_v2 }
 0x3fa   : > { %v4411_v1 = vrot.slane %v4410_v29, 2 }
 0x3fc   : > { %v4412_v57 = vadd.f32 %v4411_v1, %v4410_v29 }
 0x3fe   : > { %v4413_v58 = vrot.slane %v4412_v57, 1 }
 0x400   : > { %v4414_v13 = vadd.f32 %v4413_v58, %v4412_v57 }
 0x402   : > { %4415 = vst.msk [vmem:[%s6472_s11 + $0x1] sm:$0x1] %vm186_vm1, %v4414_v13 }
 0x403 PF: > { %s14_s12 = sadd.s32 1, %s4930_s12  }
 0x404   : > { %p11_p4 = scmp.ge.s32.totalorder %s14_s12, 4  }
 0x406   :  { %13 = sbr.rel (!%p11_p4) target bundleno = 1 (0x1), region = 72 }

// kernel: basic_block_forward.4
= control target key start
LH: loop header
LB: loop body
LE: loop exit
PB: predicated region body
PF: predicated region fallthrough
CT: control target
= control target key end

     0   :  { %s5412_s18 = smov 0   ;;  %s7112_s0 = inlined_call_operand.vmem [shape: bf16[2,256,4], index: 0, kind: input, shape index: {}]   ;;  %s7113_s1 = inlined_call_operand.vmem [shape: f32[1,4], index: 1, kind: input, shape index: {}]   ;;  %s7114_s2 = inlined_call_operand.vmem [shape: f32[1,4], index: 2, kind: input, shape index: {}]   ;;  %s7115_s3 = inlined_call_operand.vmem [shape: bf16[36,4], index: 3, kind: input, shape index: {}]   ;;  %s7116_s4 = inlined_call_operand.vmem [shape: bf16[2,256,4], index: 4, kind: output, shape index: {0}]   ;;  %s7117_s5 = inlined_call_operand.vmem [shape: f32[2,2,4], index: 5, kind: output, shape index: {1}]  }
   0x1 LB: > { %s4954_s19 = sadd.s32 4294967295, %s5371_s18   ;;  %p4958_p0 = scmp.ge.s32.totalorder %s5371_s18, 1  ;;  %s5371_s18 = sphi %s5412_s18, %s16_s18  }
   0x2   : > { %p190_p1 = scmp.lt.s32.totalorder %s5371_s18, 3 }
   0x4   : > { %p191_p2 = pnand %p4958_p0, %p190_p1 }
   0x5   : > { %p222_p3 = scmp.lt.s32.totalorder (!%p191_p2), %s4954_s19, 1  ;;  %s5374_s28 = smov (!%p191_p2), 4  }
   0x6   : > { %194 = sbr.rel (%p191_p2) target bundleno = 1062 (0x426), region = 36  ;;  %s5375_s8 = smov (!%p191_p2), 8  }
   0x7   : > { %s5376_s9 = smov (!%p191_p2), 12   ;;  %s5377_s10 = smov (!%p191_p2), 16  }
   0x8   : > { %s5378_s11 = smov (!%p191_p2), 20   ;;  %s5379_s12 = smov (!%p191_p2), 24  }
   0x9   : > { %s5380_s13 = smov (!%p191_p2), 28   ;;  %s5381_s14 = smov (!%p191_p2), 32  }
   0xb   : > { %vm411_vm0 = vcmask 27648   ;;  %v5373_v0 = vmov 0   ;;  %s7129_s19 = smov (!%p222_p3, %s4954_s19), 1  ;;  %vm414_vm1 = vcmask 24576   ;;  %vm1116_vm2 = vsmask.f32 3328 }
   0xc   : > { %412 = vst.msk [vmem:[#allocation2] sm:$0xf] %vm411_vm0, %v5373_v0  ;;  %413 = vst.msk [vmem:[#allocation2 + $0x4] sm:$0xf] %vm411_vm0, %v5373_v0  ;;  %s5115_s20 = sshll.u32 %s7129_s19, 7  ;;  %vm1728_vm11 = vcmask 1042432  }
   0xd   : > { %416 = vst.msk [vmem:[#allocation2 + $0xc] sm:$0xf] %vm411_vm0, %v5373_v0  ;;  %417 = vst.msk [vmem:[#allocation2 + $0x10] sm:$0xf] %vm411_vm0, %v5373_v0  ;;  %s5486_s23 = scalar_lea.vmem %s7112_s0, %s5115_s20  ;;  %vm1117_vm3 = vsmask.f32 7440  ;;  %s6566_s30 = scalar_lea.vmem %s7116_s4, %s5115_s20 }
   0xe   : > { %419 = vst.msk [vmem:[#allocation2 + $0x18] sm:$0xf] %vm411_vm0, %v5373_v0  ;;  %420 = vst.msk [vmem:[#allocation2 + $0x1c] sm:$0xf] %vm411_vm0, %v5373_v0  ;;  %v5182_v1 = vld [vmem:[%s5486_s23] sm:$0xff]   ;;  %v5245_v3 = vld [vmem:[%s5486_s23 + $0x8] sm:$0xff]  }
   0xf   : > { %422 = vst.msk [vmem:[#allocation2 + $0x24] sm:$0xf] %vm411_vm0, %v5373_v0  ;;  %423 = vst.msk [vmem:[#allocation2 + $0x28] sm:$0xf] %vm411_vm0, %v5373_v0  ;;  %v5492_v2 = vld [vmem:[%s7113_s1] ss:$0 sm:$0xff]  ;;  %v5183_v6 = vunpack.c.l.bf16 %v5182_v1  ;;  %v5184_v7 = vunpack.c.h.bf16 %v5182_v1  ;;  %v5187_v8 = vunpack.c.l.bf16 %v5245_v3  ;;  %v5188_v9 = vunpack.c.h.bf16 %v5245_v3 }
  0x10   : > { %425 = vst.msk [vmem:[#allocation2 + $0x30] sm:$0xf] %vm411_vm0, %v5373_v0  ;;  %426 = vst.msk [vmem:[#allocation2 + $0x34] sm:$0xf] %vm411_vm0, %v5373_v0  ;;  %vm563_vm4 = vsmask.f32 256 }
  0x11   : > { %428 = vst.msk [vmem:[#allocation2 + $0x3c] sm:$0xf] %vm411_vm0, %v5373_v0  ;;  %429 = vst.msk [vmem:[#allocation2 + $0x40] sm:$0xf] %vm411_vm0, %v5373_v0  ;;  %vm564_vm5 = vsmask.f32 4368  ;;  %v308_v15 = vmul.f32 %v5183_v6, %v5492_v2  ;;  %v309_v16 = vmul.f32 %v5184_v7, %v5492_v2  ;;  %v310_v17 = vmul.f32 %v5187_v8, %v5492_v2 }
  0x12   : > { %431 = vst.msk [vmem:[#allocation2 + $0x48] sm:$0xf] %vm411_vm0, %v5373_v0  ;;  %432 = vst.msk [vmem:[#allocation2 + $0x4c] sm:$0xf] %vm411_vm0, %v5373_v0  ;;  %v5498_v14 = vld [vmem:[%s7114_s2] ss:$0 sm:$0xff]  ;;  %v311_v18 = vmul.f32 %v5188_v9, %v5492_v2 }
  0x13   : > { %434 = vst.msk [vmem:[#allocation2 + $0x54] sm:$0xf] %vm411_vm0, %v5373_v0  ;;  %435 = vst.msk [vmem:[#allocation2 + $0x58] sm:$0xf] %vm411_vm0, %v5373_v0  ;;  %v1068_v4 = vld [vmem:[#allocation2] sm:$0xf]  ;;  %v347_v25 = vadd.f32 %v5498_v14, %v308_v15  ;;  %v348_v26 = vadd.f32 %v5498_v14, %v309_v16  ;;  %v349_v28 = vadd.f32 %v5498_v14, %v310_v17 }
  0x14   : > { %437 = vst.msk [vmem:[#allocation2 + $0x60] sm:$0xf] %vm411_vm0, %v5373_v0  ;;  %438 = vst.msk [vmem:[#allocation2 + $0x64] sm:$0xf] %vm411_vm0, %v5373_v0  ;;  %v1069_v5 = vld [vmem:[#allocation2 + $0x4] sm:$0xf]  ;;  %v350_v31 = vadd.f32 %v5498_v14, %v311_v18 }
  0x15   : > { %440 = vst.msk [vmem:[#allocation2 + $0x6c] sm:$0xf] %vm411_vm0, %v5373_v0  ;;  %441 = vst.msk [vmem:[#allocation2 + $0x70] sm:$0xf] %vm411_vm0, %v5373_v0  ;;  %v1120_v10 = vshrl.u32 %v1068_v4, 16  ;;  %v1123_v11 = vshll.u32 %v1068_v4, 16 }
  0x16   : > { %443 = vst.msk [vmem:[#allocation2 + $0x78] sm:$0xf] %vm411_vm0, %v5373_v0  ;;  %444 = vst.msk [vmem:[#allocation2 + $0x7c] sm:$0xf] %vm411_vm0, %v5373_v0  ;;  %v1129_v12 = vshll.u32 %v1069_v5, 16  ;;  %v1133_v13 = vshrl.u32 %v1069_v5, 16 }
  0x17   : > { %446 = vst.msk [vmem:[#allocation2 + $0x84] sm:$0xf] %vm411_vm0, %v5373_v0  ;;  %447 = vst.msk [vmem:[#allocation2 + $0x88] sm:$0xf] %vm411_vm0, %v5373_v0  ;;  %vm888_vm6 = vsmask.f32 7938 }
  0x18   : > { %449 = vst.msk [vmem:[#allocation2 + $0x90] sm:$0xf] %vm411_vm0, %v5373_v0  ;;  %450 = vst.msk [vmem:[#allocation2 + $0x94] sm:$0xf] %vm411_vm0, %v5373_v0  ;;  %v5246_v19 = vld [vmem:[%s5486_s23 + $0x10] sm:$0xff]   ;;  %v1122_v20 = vrot.slane %v1120_v10, 4 }
  0x19   : > { %452 = vst.msk [vmem:[#allocation2 + $0x9c] sm:$0xf] %vm411_vm0, %v5373_v0  ;;  %453 = vst.msk [vmem:[#allocation2 + $0xa0] sm:$0xf] %vm411_vm0, %v5373_v0  ;;  %v1125_v21 = vrot.slane %v1123_v11, 5  ;;  %v1131_v22 = vrot.slane %v1129_v12, 5  ;;  %v5191_v32 = vunpack.c.l.bf16 %v5246_v19  ;;  %v5192_v41 = vunpack.c.h.bf16 %v5246_v19 }
  0x1a   : > { %455 = vst.msk [vmem:[#allocation2 + $0xa8] sm:$0xf] %vm411_vm0, %v5373_v0  ;;  %456 = vst.msk [vmem:[#allocation2 + $0xac] sm:$0xf] %vm411_vm0, %v5373_v0  ;;  %v1135_v23 = vrot.slane %v1133_v13, 4  ;;  %v379_v34 = vmax.f32 %v347_v25, 0.0 }
  0x1b   : > { %458 = vst.msk [vmem:[#allocation2 + $0xb4] sm:$0xf] %vm411_vm0, %v5373_v0  ;;  %459 = vst.msk [vmem:[#allocation2 + $0xb8] sm:$0xf] %vm411_vm0, %v5373_v0  ;;  %v1126_v29 = vor.u32 %v1125_v21, %v1122_v20  ;;  %v380_v35 = vmax.f32 %v348_v26, 0.0  ;;  %v381_v37 = vmax.f32 %v349_v28, 0.0  ;;  %v312_v45 = vmul.f32 %v5191_v32, %v5492_v2 }
  0x1c   : > { %461 = vst.msk [vmem:[#allocation2 + $0xc0] sm:$0xf] %vm411_vm0, %v5373_v0  ;;  %462 = vst.msk [vmem:[#allocation2 + $0xc4] sm:$0xf] %vm411_vm0, %v5373_v0  ;;  %v1136_v30 = vor.u32 %v1135_v23, %v1131_v22  ;;  %v382_v40 = vmax.f32 %v350_v31, 0.0  ;;  %v5117_v42 = vpack.c.bf16 %v379_v34, %v379_v34  ;;  %v313_v49 = vmul.f32 %v5192_v41, %v5492_v2  ;;  %v5247_v54 = vld [vmem:[%s5486_s23 + $0x18] sm:$0xff]  }
  0x1d   : > { %464 = vst.msk [vmem:[#allocation2 + $0xcc] sm:$0xf] %vm411_vm0, %v5373_v0  ;;  %465 = vst.msk [vmem:[#allocation2 + $0xd0] sm:$0xf] %vm411_vm0, %v5373_v0  ;;  %v1127_v38 = vrot.slane %v1126_v29, 4  ;;  %v5118_v43 = vpack.c.bf16 %v380_v35, %v380_v35  ;;  %v5119_v44 = vpack.c.bf16 %v381_v37, %v381_v37  ;;  %v351_v63 = vadd.f32 %v5498_v14, %v312_v45  ;;  %v5248_v20 = vld [vmem:[%s5486_s23 + $0x20] sm:$0xff]  }
  0x1e   : > { %415 = vst.msk [vmem:[#allocation2 + $0x8] sm:$0x1] %vm414_vm1, %v5373_v0  ;;  %418 = vst.msk [vmem:[#allocation2 + $0x14] sm:$0x1] %vm414_vm1, %v5373_v0  ;;  %v1137_v39 = vrot.slane %v1136_v30, 4  ;;  %v5120_v48 = vpack.c.bf16 %v382_v40, %v382_v40  ;;  %v567_v50 = vshrl.u32 %v5117_v42, 16  ;;  %v5195_v7 = vunpack.c.l.bf16 %v5247_v54 }
  0x1f   : > { %421 = vst.msk [vmem:[#allocation2 + $0x20] sm:$0x1] %vm414_vm1, %v5373_v0  ;;  %424 = vst.msk [vmem:[#allocation2 + $0x2c] sm:$0x1] %vm414_vm1, %v5373_v0  ;;  %v570_v51 = vshll.u32 %v5117_v42, 16  ;;  %v575_v52 = vshrl.u32 %v5118_v43, 16  ;;  %v5196_v8 = vunpack.c.h.bf16 %v5247_v54  ;;  %v5199_v34 = vunpack.c.l.bf16 %v5248_v20 }
  0x20   : > { %427 = vst.msk [vmem:[#allocation2 + $0x38] sm:$0x1] %vm414_vm1, %v5373_v0  ;;  %430 = vst.msk [vmem:[#allocation2 + $0x44] sm:$0x1] %vm414_vm1, %v5373_v0  ;;  %v578_v53 = vshll.u32 %v5118_v43, 16  ;;  %v584_v56 = vshrl.u32 %v5119_v44, 16  ;;  %v314_v31 = vmul.f32 %v5195_v7, %v5492_v2 }
  0x21   : > { %433 = vst.msk [vmem:[#allocation2 + $0x50] sm:$0x1] %vm414_vm1, %v5373_v0  ;;  %436 = vst.msk [vmem:[#allocation2 + $0x5c] sm:$0x1] %vm414_vm1, %v5373_v0  ;;  %v587_v57 = vshll.u32 %v5119_v44, 16  ;;  %v592_v58 = vshrl.u32 %v5120_v48, 16  ;;  %v315_v32 = vmul.f32 %v5196_v8, %v5492_v2  ;;  %v316_v45 = vmul.f32 %v5199_v34, %v5492_v2 }
  0x22   : > { %439 = vst.msk [vmem:[#allocation2 + $0x68] sm:$0x1] %vm414_vm1, %v5373_v0  ;;  %442 = vst.msk [vmem:[#allocation2 + $0x74] sm:$0x1] %vm414_vm1, %v5373_v0  ;;  %v595_v59 = vshll.u32 %v5120_v48, 16  ;;  %v569_v60 = vrot.slane %v567_v50, 7  ;;  %v353_v41 = vadd.f32 %v5498_v14, %v314_v31 }
  0x23   : > { %445 = vst.msk [vmem:[#allocation2 + $0x80] sm:$0x1] %vm414_vm1, %v5373_v0  ;;  %448 = vst.msk [vmem:[#allocation2 + $0x8c] sm:$0x1] %vm414_vm1, %v5373_v0  ;;  %v577_v61 = vrot.slane %v575_v52, 7  ;;  %v586_v5 = vrot.slane %v584_v56, 7  ;;  %v354_v42 = vadd.f32 %v5498_v14, %v315_v32  ;;  %v5568_v52 = vadd.f32 %v5498_v14, %v316_v45 }
  0x24   : > { %451 = vst.msk [vmem:[#allocation2 + $0x98] sm:$0x1] %vm414_vm1, %v5373_v0  ;;  %454 = vst.msk [vmem:[#allocation2 + $0xa4] sm:$0x1] %vm414_vm1, %v5373_v0  ;;  %v890_v1 = vld [vmem:[#allocation2 + $0xc] sm:$0xf]  ;;  %v572_v9 = vor.u32 %v570_v51, %v569_v60 }
  0x25   : > { %457 = vst.msk [vmem:[#allocation2 + $0xb0] sm:$0x1] %vm414_vm1, %v5373_v0  ;;  %460 = vst.msk [vmem:[#allocation2 + $0xbc] sm:$0x1] %vm414_vm1, %v5373_v0  ;;  %v1070_v24 = vld [vmem:[#allocation2 + $0x8] sm:$0x1]  ;;  %v580_v11 = vor.u32 %v578_v53, %v577_v61  ;;  %v589_v16 = vor.u32 %v587_v57, %v586_v5 }
  0x26   : > { %463 = vst.msk [vmem:[#allocation2 + $0xc8] sm:$0x1] %vm414_vm1, %v5373_v0  ;;  %466 = vst.msk [vmem:[#allocation2 + $0xd4] sm:$0x1] %vm414_vm1, %v5373_v0  ;;  %v1139_v27 = vshll.u32 %v1070_v24, 16  ;;  %v352_v0 = vadd.f32 %v5498_v14, %v313_v49  ;;  %v594_v6 = vrot.slane %v592_v58, 7 }
  0x27   : > { %vm5511_vm7 = vmor %vm1116_vm2, %vm1117_vm3  ;;  %v896_v4 = vld [vmem:[#allocation2 + $0x14] sm:$0x1]  ;;  %v573_v10 = vrot.slane %v569_v60, 4  ;;  %v582_v12 = vrot.slane %v577_v61, 4  ;;  %v899_v13 = vld [vmem:[#allocation2 + $0x18] sm:$0xf] }
  0x28   : > { %v1141_v36 = vrot.slane %v1139_v27, 5  ;;  %v1132_v46 = vsel %vm5511_vm7, %v1127_v38, %v1131_v22  ;;  %vm5525_vm8 = vmor %vm563_vm4, %vm564_vm5  ;;  %v903_v15 = vld [vmem:[#allocation2 + $0x20] sm:$0x1]  ;;  %v590_v17 = vrot.slane %v586_v5, 4  ;;  %v597_v18 = vor.u32 %v595_v59, %v594_v6  ;;  %v5249_v25 = vld [vmem:[%s5486_s23 + $0x28] sm:$0xff]   ;;  %s4963_s20 = sshll.u32 %s7129_s19, 1 }
  0x29   : > { %1503 = vrot.lane.b32.xlu0 %v1132_v46, %s5374_s28  ;;  %vm5531_vm9 = vmand %vm411_vm0, %vm888_vm6  ;;  %v599_v19 = vrot.slane %v594_v6, 4  ;;  %v581_v21 = vsel %vm5525_vm8, %v573_v10, %v580_v11  ;;  %v383_v24 = vmax.f32 %v351_v63, 0.0  ;;  %v384_v29 = vmax.f32 %v352_v0, 0.0  ;;  %v906_v7 = vld [vmem:[#allocation2 + $0x24] sm:$0xf] }
  0x2a   : > { %v1142_v47 = vsel %vm5511_vm7, %v1137_v39, %v1141_v36  ;;  %vm5539_vm10 = vmand %vm414_vm1, %vm563_vm4  ;;  %v891_v22 = vsel %vm5531_vm9, %v572_v9, %v890_v1  ;;  %893 = vst.msk [vmem:[#allocation2 + $0x10] sm:$0xf] %vm411_vm0, %v581_v21  ;;  %v598_v26 = vsel %vm5525_vm8, %v590_v17, %v597_v18  ;;  %v900_v27 = vsel %vm5531_vm9, %v589_v16, %v899_v13 }
  0x2b   : > { %v897_v23 = vsel %vm5539_vm10, %v582_v12, %v896_v4  ;;  %892 = vst [vmem:[#allocation2 + $0xc] sm:$0xf] %v891_v22  ;;  %v904_v28 = vsel %vm5539_vm10, %v599_v19, %v903_v15  ;;  %901 = vst [vmem:[#allocation2 + $0x18] sm:$0xf] %v900_v27  ;;  %v5121_v30 = vpack.c.bf16 %v383_v24, %v383_v24  ;;  %v5200_v36 = vunpack.c.h.bf16 %v5248_v20 }
  0x2c   : > { %898 = vst [vmem:[#allocation2 + $0x14] sm:$0x1] %v897_v23  ;;  %902 = vst.msk [vmem:[#allocation2 + $0x1c] sm:$0xf] %vm411_vm0, %v598_v26  ;;  %v5122_v35 = vpack.c.bf16 %v384_v29, %v384_v29  ;;  %v5203_v37 = vunpack.c.l.bf16 %v5249_v25  ;;  %v5204_v38 = vunpack.c.h.bf16 %v5249_v25  ;;  %v385_v48 = vmax.f32 %v353_v41, 0.0 }
  0x2d   : > { %1505 = vrot.lane.b32.xlu0 %v1142_v47, %s5374_s28  ;;  %905 = vst [vmem:[#allocation2 + $0x20] sm:$0x1] %v904_v28  ;;  %v601_v39 = vshrl.u32 %v5121_v30, 16  ;;  %v604_v40 = vshll.u32 %v5121_v30, 16  ;;  %v317_v46 = vmul.f32 %v5200_v36, %v5492_v2  ;;  %v386_v49 = vmax.f32 %v354_v42, 0.0 }
  0x2e   : > { %v609_v43 = vshrl.u32 %v5122_v35, 16  ;;  %v612_v44 = vshll.u32 %v5122_v35, 16  ;;  %v318_v50 = vmul.f32 %v5203_v37, %v5492_v2  ;;  %v5574_v54 = vmul.f32 %v5204_v38, %v5492_v2  ;;  %v910_v36 = vld [vmem:[#allocation2 + $0x2c] sm:$0x1] }
  0x2f   : > { %v603_v47 = vrot.slane %v601_v39, 7  ;;  %v5571_v53 = vadd.f32 %v5498_v14, %v317_v46  ;;  %v5123_v60 = vpack.c.bf16 %v385_v48, %v385_v48  ;;  %v5576_v61 = vpack.c.bf16 %v386_v49, %v386_v49 }
  0x30   : > { %v611_v51 = vrot.slane %v609_v43, 7  ;;  %v5579_v63 = vadd.f32 %v5498_v14, %v318_v50  ;;  %vm1729_vm12 = vcmask 1046532   ;;  %vm1599_vm14 = vcmask 60448  }
  0x31   : > { %v1072_v57 = vld [vmem:[#allocation2 + $0x10] sm:$0xf]  ;;  %v606_v59 = vor.u32 %v604_v40, %v603_v47  ;;  %v607_v12 = vrot.slane %v603_v47, 4  ;;  %v618_v40 = vshrl.u32 %v5123_v60, 16  ;;  %v626_v48 = vshrl.u32 %v5576_v61, 16  ;;  %vm5878_vm13 = vmor %vm1728_vm11, %vm1729_vm12 }
  0x32   : > { %v1071_v56 = vld [vmem:[#allocation2 + $0xc] sm:$0xf]  ;;  %v1153_v4 = vshll.u32 %v1072_v57, 16  ;;  %v1157_v5 = vshrl.u32 %v1072_v57, 16  ;;  %v1074_v6 = vld [vmem:[#allocation2 + $0x18] sm:$0xf]  ;;  %v614_v29 = vor.u32 %v612_v44, %v611_v51 }
  0x33   : > { %v1073_v58 = vld [vmem:[#allocation2 + $0x14] sm:$0x1]  ;;  %v1144_v0 = vshrl.u32 %v1071_v56, 16  ;;  %v1147_v1 = vshll.u32 %v1071_v56, 16  ;;  %v1075_v9 = vld [vmem:[#allocation2 + $0x1c] sm:$0xf]  ;;  %v907_v30 = vsel %vm5531_vm9, %v606_v59, %v906_v7 }
  0x34   : > { %v1163_v8 = vshll.u32 %v1073_v58, 16  ;;  %v1168_v10 = vshrl.u32 %v1074_v6, 16  ;;  %v1171_v11 = vshll.u32 %v1074_v6, 16  ;;  %v1155_v16 = vrot.slane %v1153_v4, 5  ;;  %v1076_v18 = vld [vmem:[#allocation2 + $0x20] sm:$0x1] }
  0x35   : > { %v1146_v13 = vrot.slane %v1144_v0, 4  ;;  %v1149_v15 = vrot.slane %v1147_v1, 5  ;;  %v1159_v17 = vrot.slane %v1157_v5, 4  ;;  %v1177_v22 = vshll.u32 %v1075_v9, 16  ;;  %908 = vst [vmem:[#allocation2 + $0x24] sm:$0xf] %v907_v30 }
  0x36   : > { %v1165_v19 = vrot.slane %v1163_v8, 5  ;;  %v1170_v20 = vrot.slane %v1168_v10, 4  ;;  %v1173_v21 = vrot.slane %v1171_v11, 5  ;;  %v1181_v25 = vshrl.u32 %v1075_v9, 16  ;;  %v917_v4 = vld [vmem:[#allocation2 + $0x38] sm:$0x1] }
  0x37   : > { %v1150_v23 = vor.u32 %v1149_v15, %v1146_v13  ;;  %v1160_v24 = vor.u32 %v1159_v17, %v1155_v16  ;;  %v1187_v26 = vshll.u32 %v1076_v18, 16  ;;  %v1179_v28 = vrot.slane %v1177_v22, 5 }
  0x38   : > { %v1174_v27 = vor.u32 %v1173_v21, %v1170_v20  ;;  %v1183_v34 = vrot.slane %v1181_v25, 4  ;;  %v615_v38 = vsel %vm5525_vm8, %v607_v12, %v614_v29  ;;  %v616_v39 = vrot.slane %v611_v51, 4  ;;  %v913_v51 = vld [vmem:[#allocation2 + $0x30] sm:$0xf]  ;;  %v920_v25 = vld [vmem:[#allocation2 + $0x3c] sm:$0xf] }
  0x39   : > { %v1151_v31 = vrot.slane %v1150_v23, 4  ;;  %v1161_v32 = vrot.slane %v1160_v24, 4  ;;  %v1189_v35 = vrot.slane %v1187_v26, 5  ;;  %909 = vst.msk [vmem:[#allocation2 + $0x28] sm:$0xf] %vm411_vm0, %v615_v38  ;;  %v621_v44 = vshll.u32 %v5123_v60, 16 }
  0x3a   : > { %v1175_v37 = vrot.slane %v1174_v27, 4  ;;  %v1184_v43 = vor.u32 %v1183_v34, %v1179_v28  ;;  %v911_v46 = vsel %vm5539_vm10, %v616_v39, %v910_v36  ;;  %v620_v47 = vrot.slane %v618_v40, 7 }
  0x3b   : > { %v1156_v41 = vsel %vm5511_vm7, %v1151_v31, %v1155_v16  ;;  %v1166_v42 = vsel %vm5511_vm7, %v1161_v32, %v1165_v19  ;;  %912 = vst [vmem:[#allocation2 + $0x2c] sm:$0x1] %v911_v46  ;;  %v629_v50 = vshll.u32 %v5576_v61, 16  ;;  %v387_v56 = vmax.f32 %v5568_v52, 0.0  ;;  %v924_v32 = vld [vmem:[#allocation2 + $0x44] sm:$0x1] }
  0x3c   : > { %1507 = vrot.lane.b32.xlu1 %v1156_v41, %s5374_s28  ;;  %v1180_v45 = vsel %vm5511_vm7, %v1175_v37, %v1179_v28  ;;  %v1185_v49 = vrot.slane %v1184_v43, 4  ;;  %v388_v57 = vmax.f32 %v5571_v53, 0.0  ;;  %v623_v58 = vor.u32 %v621_v44, %v620_v47  ;;  %v1077_v61 = vld [vmem:[#allocation2 + $0x24] sm:$0xf] }
  0x3d   : > { %1511 = vrot.lane.b32.xlu0 %v1180_v45, %s5374_s28  ;;  %v624_v59 = vrot.slane %v620_v47, 4  ;;  %v628_v60 = vrot.slane %v626_v48, 7  ;;  %v358_v0 = vadd.f32 %v5498_v14, %v5574_v54  ;;  %v5125_v5 = vpack.c.bf16 %v387_v56, %v387_v56 }
  0x3e   : > { %v1190_v1 = vsel %vm5511_vm7, %v1185_v49, %v1189_v35  ;;  %v5126_v6 = vpack.c.bf16 %v388_v57, %v388_v57  ;;  %v389_v7 = vmax.f32 %v5579_v63, 0.0  ;;  %v914_v53 = vsel %vm5531_vm9, %v623_v58, %v913_v51 }
  0x3f   : > { %v631_v52 = vor.u32 %v629_v50, %v628_v60  ;;  %v633_v8 = vrot.slane %v628_v60, 4  ;;  %v390_v9 = vmax.f32 %v358_v0, 0.0  ;;  %v1192_v10 = vshrl.u32 %v1077_v61, 16  ;;  %915 = vst [vmem:[#allocation2 + $0x30] sm:$0xf] %v914_v53 }
  0x40   : > { %1509 = vrot.lane.b32.xlu1 %v1166_v42, %s5374_s28  ;;  %v1195_v11 = vshll.u32 %v1077_v61, 16  ;;  %v635_v54 = vshrl.u32 %v5125_v5, 16  ;;  %v638_v12 = vshll.u32 %v5125_v5, 16  ;;  %v1078_v13 = vld [vmem:[#allocation2 + $0x28] sm:$0xf]  ;;  %v643_v16 = vshrl.u32 %v5126_v6, 16 }
  0x41   : > { %v632_v15 = vsel %vm5525_vm8, %v624_v59, %v631_v52  ;;  %v918_v63 = vsel %vm5539_vm10, %v633_v8, %v917_v4  ;;  %v646_v17 = vshll.u32 %v5126_v6, 16  ;;  %v1194_v18 = vrot.slane %v1192_v10, 4  ;;  %v5250_v42 = vld [vmem:[%s5486_s23 + $0x30] sm:$0xff]  }
  0x42   : > { %v1197_v19 = vrot.slane %v1195_v11, 5  ;;  %v1201_v20 = vshll.u32 %v1078_v13, 16  ;;  %v1205_v21 = vshrl.u32 %v1078_v13, 16  ;;  %916 = vst.msk [vmem:[#allocation2 + $0x34] sm:$0xf] %vm411_vm0, %v632_v15  ;;  %v637_v23 = vrot.slane %v635_v54, 7 }
  0x43   : > { %919 = vst [vmem:[#allocation2 + $0x38] sm:$0x1] %v918_v63  ;;  %v1079_v22 = vld [vmem:[#allocation2 + $0x2c] sm:$0x1]  ;;  %v645_v24 = vrot.slane %v643_v16, 7  ;;  %v5127_v26 = vpack.c.bf16 %v389_v7, %v389_v7  ;;  %v5128_v27 = vpack.c.bf16 %v390_v9, %v390_v9  ;;  %v5207_v60 = vunpack.c.l.bf16 %v5250_v42 }
  0x44   : > { %1513 = vrot.lane.b32.xlu1 %v1190_v1, %s5374_s28  ;;  %v1198_v28 = vor.u32 %v1197_v19, %v1194_v18  ;;  %v1203_v29 = vrot.slane %v1201_v20, 5  ;;  %v1207_v30 = vrot.slane %v1205_v21, 4  ;;  %v1211_v31 = vshll.u32 %v1079_v22, 16  ;;  %v927_v7 = vld [vmem:[#allocation2 + $0x48] sm:$0xf] }
  0x45   : > { %v640_v34 = vor.u32 %v638_v12, %v637_v23  ;;  %v641_v35 = vrot.slane %v637_v23, 4  ;;  %v648_v36 = vor.u32 %v646_v17, %v645_v24  ;;  %v650_v37 = vrot.slane %v645_v24, 4  ;;  %v5251_v12 = vld [vmem:[%s5486_s23 + $0x38] sm:$0xff]   ;;  %v931_v20 = vld [vmem:[#allocation2 + $0x50] sm:$0x1] }
  0x46   : > { %v1199_v38 = vrot.slane %v1198_v28, 4  ;;  %v1208_v39 = vor.u32 %v1207_v30, %v1203_v29  ;;  %v1213_v40 = vrot.slane %v1211_v31, 5  ;;  %v652_v41 = vshrl.u32 %v5127_v26, 16  ;;  %v1080_v43 = vld [vmem:[#allocation2 + $0x30] sm:$0xf] }
  0x47   : > { %v649_v44 = vsel %vm5525_vm8, %v641_v35, %v648_v36  ;;  %v921_v45 = vsel %vm5531_vm9, %v640_v34, %v920_v25  ;;  %v925_v46 = vsel %vm5539_vm10, %v650_v37, %v924_v32  ;;  %v655_v47 = vshll.u32 %v5127_v26, 16 }
  0x48   : > { %v1204_v48 = vsel %vm5511_vm7, %v1199_v38, %v1203_v29  ;;  %v1209_v49 = vrot.slane %v1208_v39, 4  ;;  %v1216_v50 = vshrl.u32 %v1080_v43, 16  ;;  %v1219_v51 = vshll.u32 %v1080_v43, 16  ;;  %922 = vst [vmem:[#allocation2 + $0x3c] sm:$0xf] %v921_v45 }
  0x49   : > { %923 = vst.msk [vmem:[#allocation2 + $0x40] sm:$0xf] %vm411_vm0, %v649_v44  ;;  %926 = vst [vmem:[#allocation2 + $0x44] sm:$0x1] %v925_v46  ;;  %1515 = vrot.lane.b32.xlu0 %v1204_v48, %s5374_s28  ;;  %v1081_v56 = vld [vmem:[#allocation2 + $0x34] sm:$0xf]  ;;  %v5208_v0 = vunpack.c.h.bf16 %v5250_v42  ;;  %v320_v16 = vmul.f32 %v5207_v60, %v5492_v2  ;;  %v5212_v28 = vunpack.c.h.bf16 %v5251_v12 }
  0x4a   : > { %v1082_v57 = vld [vmem:[#allocation2 + $0x38] sm:$0x1]  ;;  %v654_v58 = vrot.slane %v652_v41, 7  ;;  %v660_v59 = vshrl.u32 %v5128_v27, 16  ;;  %v1214_v1 = vsel %vm5511_vm7, %v1209_v49, %v1213_v40  ;;  %v1218_v4 = vrot.slane %v1216_v50, 4  ;;  %v5643_v42 = vld [vmem:[%s5486_s23 + $0x40] sm:$0xff]  }
  0x4b   : > { %v1221_v5 = vrot.slane %v1219_v51, 5  ;;  %v1225_v6 = vshll.u32 %v1081_v56, 16  ;;  %1517 = vrot.lane.b32.xlu1 %v1214_v1, %s5374_s28  ;;  %v1229_v61 = vshrl.u32 %v1081_v56, 16  ;;  %v1235_v52 = vshll.u32 %v1082_v57, 16 }
  0x4c   : > { %v657_v53 = vor.u32 %v655_v47, %v654_v58  ;;  %v658_v8 = vrot.slane %v654_v58, 4  ;;  %v662_v11 = vrot.slane %v660_v59, 7  ;;  %v663_v54 = vshll.u32 %v5128_v27, 16 }
  0x4d   : > { %v1222_v9 = vor.u32 %v1221_v5, %v1218_v4  ;;  %v1227_v10 = vrot.slane %v1225_v6, 5  ;;  %v1231_v13 = vrot.slane %v1229_v61, 4  ;;  %v1237_v15 = vrot.slane %v1235_v52, 5 }
  0x4e   : > { %v928_v63 = vsel %vm5531_vm9, %v657_v53, %v927_v7  ;;  %v665_v18 = vor.u32 %v663_v54, %v662_v11  ;;  %v667_v19 = vrot.slane %v662_v11, 4  ;;  %v321_v21 = vmul.f32 %v5208_v0, %v5492_v2 }
  0x4f   : > { %v1223_v17 = vrot.slane %v1222_v9, 4  ;;  %929 = vst [vmem:[#allocation2 + $0x48] sm:$0xf] %v928_v63  ;;  %v1232_v22 = vor.u32 %v1231_v13, %v1227_v10  ;;  %v1083_v23 = vld [vmem:[#allocation2 + $0x3c] sm:$0xf]  ;;  %v359_v26 = vadd.f32 %v5498_v14, %v320_v16  ;;  %v5211_v27 = vunpack.c.l.bf16 %v5251_v12 }
  0x50   : > { %v1084_v24 = vld [vmem:[#allocation2 + $0x40] sm:$0xf]  ;;  %v1085_v25 = vld [vmem:[#allocation2 + $0x44] sm:$0x1]  ;;  %v1240_v30 = vshrl.u32 %v1083_v23, 16  ;;  %v1243_v31 = vshll.u32 %v1083_v23, 16  ;;  %v666_v37 = vsel %vm5525_vm8, %v658_v8, %v665_v18  ;;  %v932_v41 = vsel %vm5539_vm10, %v667_v19, %v931_v20 }
  0x51   : > { %v1228_v29 = vsel %vm5511_vm7, %v1223_v17, %v1227_v10  ;;  %v1249_v32 = vshll.u32 %v1084_v24, 16  ;;  %v1233_v34 = vrot.slane %v1232_v22, 4  ;;  %v1253_v35 = vshrl.u32 %v1084_v24, 16  ;;  %930 = vst.msk [vmem:[#allocation2 + $0x4c] sm:$0xf] %vm411_vm0, %v666_v37 }
  0x52   : > { %1519 = vrot.lane.b32.xlu0 %v1228_v29, %s5374_s28  ;;  %v1259_v36 = vshll.u32 %v1085_v25, 16  ;;  %v1242_v38 = vrot.slane %v1240_v30, 4  ;;  %v1245_v39 = vrot.slane %v1243_v31, 5  ;;  %933 = vst [vmem:[#allocation2 + $0x50] sm:$0x1] %v932_v41  ;;  %v360_v46 = vadd.f32 %v5498_v14, %v321_v21 }
  0x53   : > { %v1251_v40 = vrot.slane %v1249_v32, 5  ;;  %v1238_v43 = vsel %vm5511_vm7, %v1233_v34, %v1237_v15  ;;  %v1255_v44 = vrot.slane %v1253_v35, 4  ;;  %v391_v48 = vmax.f32 %v359_v26, 0.0  ;;  %v934_v21 = vld [vmem:[#allocation2 + $0x54] sm:$0xf] }
  0x54   : > { %v1261_v45 = vrot.slane %v1259_v36, 5  ;;  %1521 = vrot.lane.b32.xlu1 %v1238_v43, %s5374_s28  ;;  %v1246_v47 = vor.u32 %v1245_v39, %v1242_v38  ;;  %v322_v49 = vmul.f32 %v5211_v27, %v5492_v2  ;;  %v323_v50 = vmul.f32 %v5212_v28, %v5492_v2  ;;  %v938_v28 = vld [vmem:[#allocation2 + $0x5c] sm:$0x1]  ;;  %v5253_v38 = vld [vmem:[%s5486_s23 + $0x48] sm:$0xff]  }
  0x55   : > { %v1256_v51 = vor.u32 %v1255_v44, %v1251_v40  ;;  %v392_v57 = vmax.f32 %v360_v46, 0.0  ;;  %v5215_v58 = vunpack.c.l.bf16 %v5643_v42  ;;  %v5216_v59 = vunpack.c.h.bf16 %v5643_v42 }
  0x56   : > { %v1086_v56 = vld [vmem:[#allocation2 + $0x48] sm:$0xf]  ;;  %v1247_v60 = vrot.slane %v1246_v47, 4  ;;  %v5129_v4 = vpack.c.bf16 %v391_v48, %v391_v48  ;;  %v361_v7 = vadd.f32 %v5498_v14, %v322_v49  ;;  %v362_v61 = vadd.f32 %v5498_v14, %v323_v50  ;;  %v5675_v47 = vld [vmem:[%s5486_s23 + $0x50] sm:$0xff]  }
  0x57   : > { %v1264_v0 = vshrl.u32 %v1086_v56, 16  ;;  %v1267_v1 = vshll.u32 %v1086_v56, 16  ;;  %v1257_v5 = vrot.slane %v1256_v51, 4  ;;  %v5130_v6 = vpack.c.bf16 %v392_v57, %v392_v57 }
  0x58   : > { %v1252_v52 = vsel %vm5511_vm7, %v1247_v60, %v1251_v40  ;;  %v669_v9 = vshrl.u32 %v5129_v4, 16  ;;  %v1087_v11 = vld [vmem:[#allocation2 + $0x4c] sm:$0xf]  ;;  %v672_v54 = vshll.u32 %v5129_v4, 16  ;;  %v393_v22 = vmax.f32 %v361_v7, 0.0 }
  0x59   : > { %v1266_v53 = vrot.slane %v1264_v0, 4  ;;  %v1269_v8 = vrot.slane %v1267_v1, 5  ;;  %1523 = vrot.lane.b32.xlu0 %v1252_v52, %s5374_s28  ;;  %v1262_v10 = vsel %vm5511_vm7, %v1257_v5, %v1261_v45  ;;  %v677_v12 = vshrl.u32 %v5130_v6, 16  ;;  %v1088_v17 = vld [vmem:[#allocation2 + $0x50] sm:$0x1] }
  0x5a   : > { %v680_v13 = vshll.u32 %v5130_v6, 16  ;;  %1525 = vrot.lane.b32.xlu1 %v1262_v10, %s5374_s28  ;;  %v1273_v63 = vshll.u32 %v1087_v11, 16  ;;  %v1277_v16 = vshrl.u32 %v1087_v11, 16  ;;  %v671_v18 = vrot.slane %v669_v9, 7  ;;  %v941_v1 = vld [vmem:[#allocation2 + $0x60] sm:$0xf] }
  0x5b   : > { %v1270_v15 = vor.u32 %v1269_v8, %v1266_v53  ;;  %v1283_v19 = vshll.u32 %v1088_v17, 16  ;;  %v679_v20 = vrot.slane %v677_v12, 7  ;;  %v394_v23 = vmax.f32 %v362_v61, 0.0  ;;  %v945_v61 = vld [vmem:[#allocation2 + $0x68] sm:$0x1] }
  0x5c   : > { %v1275_v25 = vrot.slane %v1273_v63, 5  ;;  %v1279_v26 = vrot.slane %v1277_v16, 4  ;;  %v674_v27 = vor.u32 %v672_v54, %v671_v18  ;;  %v675_v30 = vrot.slane %v671_v18, 4 }
  0x5d   : > { %v1271_v24 = vrot.slane %v1270_v15, 4  ;;  %v1285_v29 = vrot.slane %v1283_v19, 5  ;;  %v682_v31 = vor.u32 %v680_v13, %v679_v20  ;;  %v684_v32 = vrot.slane %v679_v20, 4 }
  0x5e   : > { %v1280_v35 = vor.u32 %v1279_v26, %v1275_v25  ;;  %v935_v36 = vsel %vm5531_vm9, %v674_v27, %v934_v21  ;;  %v5131_v37 = vpack.c.bf16 %v393_v22, %v393_v22  ;;  %v5132_v41 = vpack.c.bf16 %v394_v23, %v394_v23 }
  0x5f   : > { %v1276_v34 = vsel %vm5511_vm7, %v1271_v24, %v1275_v25  ;;  %v683_v39 = vsel %vm5525_vm8, %v675_v30, %v682_v31  ;;  %936 = vst [vmem:[#allocation2 + $0x54] sm:$0xf] %v935_v36  ;;  %v939_v40 = vsel %vm5539_vm10, %v684_v32, %v938_v28  ;;  %v324_v42 = vmul.f32 %v5215_v58, %v5492_v2 }
  0x60   : > { %1527 = vrot.lane.b32.xlu0 %v1276_v34, %s5374_s28  ;;  %v1281_v43 = vrot.slane %v1280_v35, 4  ;;  %937 = vst.msk [vmem:[#allocation2 + $0x58] sm:$0xf] %vm411_vm0, %v683_v39  ;;  %940 = vst [vmem:[#allocation2 + $0x5c] sm:$0x1] %v939_v40  ;;  %v686_v44 = vshrl.u32 %v5131_v37, 16  ;;  %v325_v46 = vmul.f32 %v5216_v59, %v5492_v2  ;;  %v5219_v51 = vunpack.c.l.bf16 %v5253_v38 }
  0x61   : > { %v689_v45 = vshll.u32 %v5131_v37, 16  ;;  %v694_v48 = vshrl.u32 %v5132_v41, 16  ;;  %v697_v49 = vshll.u32 %v5132_v41, 16  ;;  %v363_v50 = vadd.f32 %v5498_v14, %v324_v42 }
  0x62   : > { %v1286_v56 = vsel %vm5511_vm7, %v1281_v43, %v1285_v29  ;;  %v688_v57 = vrot.slane %v686_v44, 7  ;;  %v364_v58 = vadd.f32 %v5498_v14, %v325_v46  ;;  %v5220_v60 = vunpack.c.h.bf16 %v5253_v38  ;;  %v948_v38 = vld [vmem:[#allocation2 + $0x6c] sm:$0xf] }
  0x63   : > { %1529 = vrot.lane.b32.xlu1 %v1286_v56, %s5374_s28  ;;  %v696_v0 = vrot.slane %v694_v48, 7  ;;  %v395_v4 = vmax.f32 %v363_v50, 0.0  ;;  %v326_v59 = vmul.f32 %v5219_v51, %v5492_v2  ;;  %v5223_v5 = vunpack.c.l.bf16 %v5675_v47  ;;  %v952_v56 = vld [vmem:[#allocation2 + $0x74] sm:$0x1] }
  0x64   : > { %v691_v6 = vor.u32 %v689_v45, %v688_v57  ;;  %v692_v7 = vrot.slane %v688_v57, 4  ;;  %v396_v52 = vmax.f32 %v364_v58, 0.0  ;;  %v327_v53 = vmul.f32 %v5220_v60, %v5492_v2 }
  0x65   : > { %v699_v8 = vor.u32 %v697_v49, %v696_v0  ;;  %v701_v9 = vrot.slane %v696_v0, 4  ;;  %v5133_v10 = vpack.c.bf16 %v395_v4, %v395_v4  ;;  %v365_v11 = vadd.f32 %v5498_v14, %v326_v59 }
  0x66   : > { %v1089_v54 = vld [vmem:[#allocation2 + $0x54] sm:$0xf]  ;;  %v942_v12 = vsel %vm5531_vm9, %v691_v6, %v941_v1  ;;  %v5134_v13 = vpack.c.bf16 %v396_v52, %v396_v52  ;;  %v366_v15 = vadd.f32 %v5498_v14, %v327_v53  ;;  %v5224_v63 = vunpack.c.h.bf16 %v5675_v47  ;;  %v1007_v47 = vld [vmem:[#allocation2 + $0x10] sm:$0xf] }
  0x67   : > { %v1090_v16 = vld [vmem:[#allocation2 + $0x58] sm:$0xf]  ;;  %v1288_v17 = vshrl.u32 %v1089_v54, 16  ;;  %v1291_v18 = vshll.u32 %v1089_v54, 16  ;;  %v1091_v19 = vld [vmem:[#allocation2 + $0x5c] sm:$0x1]  ;;  %v700_v20 = vsel %vm5525_vm8, %v692_v7, %v699_v8  ;;  %v946_v21 = vsel %vm5539_vm10, %v701_v9, %v945_v61 }
  0x68   : > { %943 = vst [vmem:[#allocation2 + $0x60] sm:$0xf] %v942_v12  ;;  %v1297_v22 = vshll.u32 %v1090_v16, 16  ;;  %v1301_v23 = vshrl.u32 %v1090_v16, 16  ;;  %v1307_v24 = vshll.u32 %v1091_v19, 16  ;;  %v703_v25 = vshrl.u32 %v5133_v10, 16 }
  0x69   : > { %944 = vst.msk [vmem:[#allocation2 + $0x64] sm:$0xf] %vm411_vm0, %v700_v20  ;;  %947 = vst [vmem:[#allocation2 + $0x68] sm:$0x1] %v946_v21  ;;  %v1290_v26 = vrot.slane %v1288_v17, 4  ;;  %v1293_v27 = vrot.slane %v1291_v18, 5  ;;  %v328_v58 = vmul.f32 %v5223_v5, %v5492_v2 }
  0x6a   : > { %v706_v28 = vshll.u32 %v5133_v10, 16  ;;  %v711_v29 = vshrl.u32 %v5134_v13, 16  ;;  %v1299_v30 = vrot.slane %v1297_v22, 5  ;;  %v1303_v31 = vrot.slane %v1301_v23, 4  ;;  %v1004_v54 = vld [vmem:[#allocation2] sm:$0xf] }
  0x6b   : > { %v1309_v32 = vrot.slane %v1307_v24, 5  ;;  %v705_v34 = vrot.slane %v703_v25, 7  ;;  %v1294_v35 = vor.u32 %v1293_v27, %v1290_v26  ;;  %v714_v37 = vshll.u32 %v5134_v13, 16  ;;  %1036 = vst.msk [vmem:[#allocation3] sm:$0xf] %vm411_vm0, %v1004_v54 }
  0x6c   : > { %v713_v36 = vrot.slane %v711_v29, 7  ;;  %v397_v39 = vmax.f32 %v365_v11, 0.0  ;;  %v1304_v40 = vor.u32 %v1303_v31, %v1299_v30  ;;  %v398_v43 = vmax.f32 %v366_v15, 0.0  ;;  %v5710_v11 = vld [vmem:[%s5486_s23 + $0x58] sm:$0xff]   ;;  %v1006_v17 = vld [vmem:[#allocation2 + $0xc] sm:$0xf] }
  0x6d   : > { %v708_v41 = vor.u32 %v706_v28, %v705_v34  ;;  %v709_v42 = vrot.slane %v705_v34, 4  ;;  %v1295_v44 = vrot.slane %v1294_v35, 4  ;;  %1038 = vst.msk [vmem:[#allocation3 + $0x8] sm:$0xf] %vm411_vm0, %v1006_v17  ;;  %v955_v23 = vld [vmem:[#allocation2 + $0x78] sm:$0xf]  ;;  %v329_v24 = vmul.f32 %v5224_v63, %v5492_v2 }
  0x6e   : > { %v716_v45 = vor.u32 %v714_v37, %v713_v36  ;;  %v718_v46 = vrot.slane %v713_v36, 4  ;;  %v5135_v48 = vpack.c.bf16 %v397_v39, %v397_v39  ;;  %v1305_v49 = vrot.slane %v1304_v40, 4  ;;  %v1005_v31 = vld [vmem:[#allocation2 + $0x4] sm:$0xf]  ;;  %1039 = vst.msk [vmem:[#allocation3 + $0xc] sm:$0xf] %vm411_vm0, %v1007_v47 }
  0x6f   : > { %v1092_v50 = vld [vmem:[#allocation2 + $0x60] sm:$0xf]  ;;  %v949_v51 = vsel %vm5531_vm9, %v708_v41, %v948_v38  ;;  %v5136_v57 = vpack.c.bf16 %v398_v43, %v398_v43  ;;  %v1300_v60 = vsel %vm5511_vm7, %v1295_v44, %v1299_v30  ;;  %v367_v25 = vadd.f32 %v5498_v14, %v328_v58  ;;  %1037 = vst.msk [vmem:[#allocation3 + $0x4] sm:$0xf] %vm411_vm0, %v1005_v31 }
  0x70   : > { %v1093_v0 = vld [vmem:[#allocation2 + $0x64] sm:$0xf]  ;;  %v1312_v1 = vshrl.u32 %v1092_v50, 16  ;;  %v1315_v4 = vshll.u32 %v1092_v50, 16  ;;  %v1094_v59 = vld [vmem:[#allocation2 + $0x68] sm:$0x1]  ;;  %v717_v6 = vsel %vm5525_vm8, %v709_v42, %v716_v45  ;;  %1531 = vrot.lane.b32.xlu0 %v1300_v60, %s5374_s28  ;;  %v1310_v7 = vsel %vm5511_vm7, %v1305_v49, %v1309_v32 }
  0x71   : > { %950 = vst [vmem:[#allocation2 + $0x6c] sm:$0xf] %v949_v51  ;;  %v1321_v61 = vshll.u32 %v1093_v0, 16  ;;  %v1325_v52 = vshrl.u32 %v1093_v0, 16  ;;  %v1331_v5 = vshll.u32 %v1094_v59, 16  ;;  %1533 = vrot.lane.b32.xlu1 %v1310_v7, %s5374_s28  ;;  %v953_v9 = vsel %vm5539_vm10, %v718_v46, %v952_v56 }
  0x72   : > { %951 = vst.msk [vmem:[#allocation2 + $0x70] sm:$0xf] %vm411_vm0, %v717_v6  ;;  %v1314_v53 = vrot.slane %v1312_v1, 4  ;;  %v1317_v8 = vrot.slane %v1315_v4, 5  ;;  %v720_v10 = vshrl.u32 %v5135_v48, 16  ;;  %v723_v16 = vshll.u32 %v5135_v48, 16 }
  0x73   : > { %v1323_v12 = vrot.slane %v1321_v61, 5  ;;  %v1327_v13 = vrot.slane %v1325_v52, 4  ;;  %v1333_v15 = vrot.slane %v1331_v5, 5  ;;  %954 = vst [vmem:[#allocation2 + $0x74] sm:$0x1] %v953_v9  ;;  %v728_v20 = vshrl.u32 %v5136_v57, 16 }
  0x74   : > { %v1318_v18 = vor.u32 %v1317_v8, %v1314_v53  ;;  %v722_v19 = vrot.slane %v720_v10, 7  ;;  %v731_v21 = vshll.u32 %v5136_v57, 16  ;;  %v5227_v26 = vunpack.c.l.bf16 %v5710_v11  ;;  %v959_v44 = vld [vmem:[#allocation2 + $0x80] sm:$0x1]  ;;  %v1008_v60 = vld [vmem:[#allocation2 + $0x18] sm:$0xf] }
  0x75   : > { %v1328_v22 = vor.u32 %v1327_v13, %v1323_v12  ;;  %v730_v30 = vrot.slane %v728_v20, 7  ;;  %v368_v35 = vadd.f32 %v5498_v14, %v329_v24  ;;  %v399_v36 = vmax.f32 %v367_v25, 0.0  ;;  %v5739_v59 = vld [vmem:[%s7113_s1] ss:$0 sm:$0xff]  ;;  %1040 = vst.msk [vmem:[#allocation3 + $0x10] sm:$0xf] %vm411_vm0, %v1008_v60 }
  0x76   : > { %v1319_v27 = vrot.slane %v1318_v18, 4  ;;  %v725_v28 = vor.u32 %v723_v16, %v722_v19  ;;  %v726_v29 = vrot.slane %v722_v19, 4  ;;  %v5228_v37 = vunpack.c.h.bf16 %v5710_v11  ;;  %v1009_v7 = vld [vmem:[#allocation2 + $0x1c] sm:$0xf]  ;;  %v5745_v8 = vld [vmem:[%s5486_s23 + $0x60] sm:$0xff]  }
  0x77   : > { %v1329_v32 = vrot.slane %v1328_v22, 4  ;;  %v733_v40 = vor.u32 %v731_v21, %v730_v30  ;;  %v735_v50 = vrot.slane %v730_v30, 4  ;;  %v400_v58 = vmax.f32 %v368_v35, 0.0  ;;  %1041 = vst.msk [vmem:[#allocation3 + $0x14] sm:$0xf] %vm411_vm0, %v1009_v7 }
  0x78   : > { %v1095_v34 = vld [vmem:[#allocation2 + $0x6c] sm:$0xf]  ;;  %v1324_v2 = vsel %vm5511_vm7, %v1319_v27, %v1323_v12  ;;  %v956_v43 = vsel %vm5531_vm9, %v725_v28, %v955_v23  ;;  %v5137_v4 = vpack.c.bf16 %v399_v36, %v399_v36  ;;  %v330_v6 = vmul.f32 %v5739_v59, %v5227_v26  ;;  %v5751_v54 = vld [vmem:[%s7114_s2] ss:$0 sm:$0xff]  ;;  %v1010_v13 = vld [vmem:[#allocation2 + $0x24] sm:$0xf] }
  0x79   : > { %v1096_v63 = vld [vmem:[#allocation2 + $0x70] sm:$0xf]  ;;  %v1336_v38 = vshrl.u32 %v1095_v34, 16  ;;  %v1339_v39 = vshll.u32 %v1095_v34, 16  ;;  %1535 = vrot.lane.b32.xlu0 %v1324_v2, %s5374_s28  ;;  %v1334_v14 = vsel %vm5511_vm7, %v1329_v32, %v1333_v15  ;;  %v734_v49 = vsel %vm5525_vm8, %v726_v29, %v733_v40  ;;  %957 = vst [vmem:[#allocation2 + $0x78] sm:$0xf] %v956_v43 }
  0x7a   : > { %v1345_v41 = vshll.u32 %v1096_v63, 16  ;;  %v1349_v42 = vshrl.u32 %v1096_v63, 16  ;;  %1537 = vrot.lane.b32.xlu1 %v1334_v14, %s5374_s28  ;;  %v1097_v48 = vld [vmem:[#allocation2 + $0x74] sm:$0x1]  ;;  %958 = vst.msk [vmem:[#allocation2 + $0x7c] sm:$0xf] %vm411_vm0, %v734_v49  ;;  %v960_v1 = vsel %vm5539_vm10, %v735_v50, %v959_v44  ;;  %v5138_v5 = vpack.c.bf16 %v400_v58, %v400_v58 }
  0x7b   : > { %v1338_v45 = vrot.slane %v1336_v38, 4  ;;  %v1341_v46 = vrot.slane %v1339_v39, 5  ;;  %v1355_v57 = vshll.u32 %v1097_v48, 16  ;;  %961 = vst [vmem:[#allocation2 + $0x80] sm:$0x1] %v960_v1  ;;  %v331_v53 = vmul.f32 %v5739_v59, %v5228_v37 }
  0x7c   : > { %v1347_v51 = vrot.slane %v1345_v41, 5  ;;  %v1351_v56 = vrot.slane %v1349_v42, 4  ;;  %v737_v10 = vshrl.u32 %v5137_v4, 16  ;;  %v740_v11 = vshll.u32 %v5137_v4, 16  ;;  %1042 = vst.msk [vmem:[#allocation3 + $0x18] sm:$0xf] %vm411_vm0, %v1010_v13 }
  0x7d   : > { %v1342_v0 = vor.u32 %v1341_v46, %v1338_v45  ;;  %v1357_v52 = vrot.slane %v1355_v57, 5  ;;  %v369_v12 = vadd.f32 %v5751_v54, %v330_v6  ;;  %v745_v16 = vshrl.u32 %v5138_v5, 16  ;;  %v1011_v19 = vld [vmem:[#allocation2 + $0x28] sm:$0xf]  ;;  %v962_v22 = vld [vmem:[#allocation2 + $0x84] sm:$0xf] }
  0x7e   : > { %v1352_v61 = vor.u32 %v1351_v56, %v1347_v51  ;;  %v748_v17 = vshll.u32 %v5138_v5, 16  ;;  %v370_v18 = vadd.f32 %v5751_v54, %v331_v53  ;;  %v739_v21 = vrot.slane %v737_v10, 7  ;;  %1043 = vst.msk [vmem:[#allocation3 + $0x1c] sm:$0xf] %vm411_vm0, %v1011_v19  ;;  %v966_v28 = vld [vmem:[#allocation2 + $0x8c] sm:$0x1] }
  0x7f   : > { %v1343_v9 = vrot.slane %v1342_v0, 4  ;;  %v401_v23 = vmax.f32 %v369_v12, 0.0  ;;  %v5231_v24 = vunpack.c.l.bf16 %v5745_v8  ;;  %v747_v27 = vrot.slane %v745_v16, 7  ;;  %v1012_v38 = vld [vmem:[#allocation2 + $0x30] sm:$0xf]  ;;  %v5775_v57 = vld [vmem:[%s5486_s23 + $0x68] sm:$0xff]  }
  0x80   : > { %v1353_v15 = vrot.slane %v1352_v61, 4  ;;  %v1098_v26 = vld [vmem:[#allocation2 + $0x78] sm:$0xf]  ;;  %v402_v29 = vmax.f32 %v370_v18, 0.0  ;;  %v5232_v30 = vunpack.c.h.bf16 %v5745_v8  ;;  %v742_v35 = vor.u32 %v740_v11, %v739_v21  ;;  %1044 = vst.msk [vmem:[#allocation3 + $0x20] sm:$0xf] %vm411_vm0, %v1012_v38 }
  0x81   : > { %v1348_v20 = vsel %vm5511_vm7, %v1343_v9, %v1347_v51  ;;  %v1099_v31 = vld [vmem:[#allocation2 + $0x7c] sm:$0xf]  ;;  %v1360_v32 = vshrl.u32 %v1098_v26, 16  ;;  %v1363_v34 = vshll.u32 %v1098_v26, 16  ;;  %v743_v36 = vrot.slane %v739_v21, 4 }
  0x82   : > { %1539 = vrot.lane.b32.xlu0 %v1348_v20, %s5374_s28  ;;  %v1358_v25 = vsel %vm5511_vm7, %v1353_v15, %v1357_v52  ;;  %v1369_v37 = vshll.u32 %v1099_v31, 16  ;;  %v1373_v47 = vshrl.u32 %v1099_v31, 16  ;;  %v750_v2 = vor.u32 %v748_v17, %v747_v27  ;;  %v1100_v14 = vld [vmem:[#allocation2 + $0x80] sm:$0x1]  ;;  %v1013_v43 = vld [vmem:[#allocation2 + $0x34] sm:$0xf] }
  0x83   : > { %1541 = vrot.lane.b32.xlu1 %v1358_v25, %s5374_s28  ;;  %v752_v63 = vrot.slane %v747_v27, 4  ;;  %v1362_v39 = vrot.slane %v1360_v32, 4  ;;  %v1365_v40 = vrot.slane %v1363_v34, 5  ;;  %v963_v41 = vsel %vm5531_vm9, %v742_v35, %v962_v22  ;;  %1045 = vst.msk [vmem:[#allocation3 + $0x24] sm:$0xf] %vm411_vm0, %v1013_v43 }
  0x84   : > { %v5139_v42 = vpack.c.bf16 %v401_v23, %v401_v23  ;;  %v1371_v44 = vrot.slane %v1369_v37, 5  ;;  %v1375_v45 = vrot.slane %v1373_v47, 4  ;;  %v1379_v46 = vshll.u32 %v1100_v14, 16  ;;  %964 = vst [vmem:[#allocation2 + $0x84] sm:$0xf] %v963_v41 }
  0x85   : > { %v751_v48 = vsel %vm5525_vm8, %v743_v36, %v750_v2  ;;  %v1366_v49 = vor.u32 %v1365_v40, %v1362_v39  ;;  %v967_v50 = vsel %vm5539_vm10, %v752_v63, %v966_v28  ;;  %v5140_v51 = vpack.c.bf16 %v402_v29, %v402_v29  ;;  %v1014_v58 = vld [vmem:[#allocation2 + $0x3c] sm:$0xf]  ;;  %v1015_v6 = vld [vmem:[#allocation2 + $0x40] sm:$0xf]  ;;  %v969_v8 = vld [vmem:[#allocation2 + $0x90] sm:$0xf] }
  0x86   : > { %965 = vst.msk [vmem:[#allocation2 + $0x88] sm:$0xf] %vm411_vm0, %v751_v48  ;;  %v754_v56 = vshrl.u32 %v5139_v42, 16  ;;  %v1376_v60 = vor.u32 %v1375_v45, %v1371_v44  ;;  %v1381_v0 = vrot.slane %v1379_v46, 5  ;;  %968 = vst [vmem:[#allocation2 + $0x8c] sm:$0x1] %v967_v50  ;;  %v332_v4 = vmul.f32 %v5739_v59, %v5231_v24 }
  0x87   : > { %v757_v1 = vshll.u32 %v5139_v42, 16  ;;  %1046 = vst.msk [vmem:[#allocation3 + $0x28] sm:$0xf] %vm411_vm0, %v1014_v58  ;;  %v1367_v7 = vrot.slane %v1366_v49, 4  ;;  %v762_v52 = vshrl.u32 %v5140_v51, 16  ;;  %v765_v5 = vshll.u32 %v5140_v51, 16 }
  0x88   : > { %v756_v61 = vrot.slane %v754_v56, 7  ;;  %1047 = vst.msk [vmem:[#allocation3 + $0x2c] sm:$0xf] %vm411_vm0, %v1015_v6  ;;  %v1377_v53 = vrot.slane %v1376_v60, 4  ;;  %v333_v9 = vmul.f32 %v5739_v59, %v5232_v30  ;;  %v371_v10 = vadd.f32 %v5751_v54, %v332_v4  ;;  %v1016_v17 = vld [vmem:[#allocation2 + $0x48] sm:$0xf] }
  0x89   : > { %v5235_v11 = vunpack.c.l.bf16 %v5775_v57  ;;  %v1372_v12 = vsel %vm5511_vm7, %v1367_v7, %v1371_v44  ;;  %v764_v16 = vrot.slane %v762_v52, 7  ;;  %v1017_v18 = vld [vmem:[#allocation2 + $0x4c] sm:$0xf]  ;;  %v973_v20 = vld [vmem:[#allocation2 + $0x98] sm:$0x1]  ;;  %v5236_v23 = vunpack.c.h.bf16 %v5775_v57  ;;  %v5258_v46 = vld [vmem:[%s5486_s23 + $0x70] sm:$0xff]  }
  0x8a   : > { %v759_v13 = vor.u32 %v757_v1, %v756_v61  ;;  %v760_v15 = vrot.slane %v756_v61, 4  ;;  %1543 = vrot.lane.b32.xlu0 %v1372_v12, %s5374_s28  ;;  %v1382_v19 = vsel %vm5511_vm7, %v1377_v53, %v1381_v0  ;;  %v372_v21 = vadd.f32 %v5751_v54, %v333_v9  ;;  %1048 = vst.msk [vmem:[#allocation3 + $0x30] sm:$0xf] %vm411_vm0, %v1016_v17  ;;  %v1018_v63 = vld [vmem:[#allocation2 + $0x54] sm:$0xf] }
  0x8b   : > { %v403_v22 = vmax.f32 %v371_v10, 0.0  ;;  %1049 = vst.msk [vmem:[#allocation3 + $0x34] sm:$0xf] %vm411_vm0, %v1017_v18  ;;  %1545 = vrot.lane.b32.xlu1 %v1382_v19, %s5374_s28  ;;  %v1101_v24 = vld [vmem:[#allocation2 + $0x84] sm:$0xf]  ;;  %v767_v25 = vor.u32 %v765_v5, %v764_v16  ;;  %v769_v27 = vrot.slane %v764_v16, 4  ;;  %v334_v28 = vmul.f32 %v5739_v59, %v5235_v11 }
  0x8c   : > { %v970_v26 = vsel %vm5531_vm9, %v759_v13, %v969_v8  ;;  %v1384_v30 = vshrl.u32 %v1101_v24, 16  ;;  %v1387_v31 = vshll.u32 %v1101_v24, 16  ;;  %v404_v32 = vmax.f32 %v372_v21, 0.0  ;;  %1050 = vst.msk [vmem:[#allocation3 + $0x38] sm:$0xf] %vm411_vm0, %v1018_v63 }
  0x8d   : > { %v1102_v29 = vld [vmem:[#allocation2 + $0x88] sm:$0xf]  ;;  %971 = vst [vmem:[#allocation2 + $0x90] sm:$0xf] %v970_v26  ;;  %v5141_v34 = vpack.c.bf16 %v403_v22, %v403_v22  ;;  %v1103_v37 = vld [vmem:[#allocation2 + $0x8c] sm:$0x1]  ;;  %v768_v47 = vsel %vm5525_vm8, %v760_v15, %v767_v25  ;;  %v974_v2 = vsel %vm5539_vm10, %v769_v27, %v973_v20  ;;  %v335_v58 = vmul.f32 %v5739_v59, %v5236_v23 }
  0x8e   : > { %v1393_v35 = vshll.u32 %v1102_v29, 16  ;;  %v1397_v36 = vshrl.u32 %v1102_v29, 16  ;;  %v1386_v38 = vrot.slane %v1384_v30, 4  ;;  %v1389_v39 = vrot.slane %v1387_v31, 5  ;;  %972 = vst.msk [vmem:[#allocation2 + $0x94] sm:$0xf] %vm411_vm0, %v768_v47 }
  0x8f   : > { %v1403_v40 = vshll.u32 %v1103_v37, 16  ;;  %975 = vst [vmem:[#allocation2 + $0x98] sm:$0x1] %v974_v2  ;;  %v5142_v14 = vpack.c.bf16 %v404_v32, %v404_v32  ;;  %v1019_v41 = vld [vmem:[#allocation2 + $0x58] sm:$0xf]  ;;  %v771_v44 = vshrl.u32 %v5141_v34, 16  ;;  %v373_v60 = vadd.f32 %v5751_v54, %v334_v28 }
  0x90   : > { %v1395_v42 = vrot.slane %v1393_v35, 5  ;;  %v1399_v43 = vrot.slane %v1397_v36, 4  ;;  %v774_v45 = vshll.u32 %v5141_v34, 16  ;;  %1051 = vst.msk [vmem:[#allocation3 + $0x3c] sm:$0xf] %vm411_vm0, %v1019_v41  ;;  %v1390_v48 = vor.u32 %v1389_v39, %v1386_v38 }
  0x91   : > { %v1405_v49 = vrot.slane %v1403_v40, 5  ;;  %v779_v50 = vshrl.u32 %v5142_v14, 16  ;;  %v782_v51 = vshll.u32 %v5142_v14, 16  ;;  %v773_v57 = vrot.slane %v771_v44, 7  ;;  %v1020_v0 = vld [vmem:[#allocation2 + $0x60] sm:$0xf] }
  0x92   : > { %v1400_v56 = vor.u32 %v1399_v43, %v1395_v42  ;;  %v1021_v1 = vld [vmem:[#allocation2 + $0x64] sm:$0xf]  ;;  %v1391_v4 = vrot.slane %v1390_v48, 4  ;;  %v976_v7 = vld [vmem:[#allocation2 + $0x9c] sm:$0xf]  ;;  %v5239_v61 = vunpack.c.l.bf16 %v5258_v46  ;;  %v5240_v52 = vunpack.c.h.bf16 %v5258_v46 }
  0x93   : > { %v781_v6 = vrot.slane %v779_v50, 7  ;;  %1052 = vst.msk [vmem:[#allocation3 + $0x40] sm:$0xf] %vm411_vm0, %v1020_v0  ;;  %1053 = vst.msk [vmem:[#allocation3 + $0x44] sm:$0xf] %vm411_vm0, %v1021_v1  ;;  %v776_v8 = vor.u32 %v774_v45, %v773_v57  ;;  %v777_v9 = vrot.slane %v773_v57, 4  ;;  %v374_v10 = vadd.f32 %v5751_v54, %v335_v58 }
  0x94   : > { %v1401_v5 = vrot.slane %v1400_v56, 4  ;;  %v1104_v53 = vld [vmem:[#allocation2 + $0x90] sm:$0xf]  ;;  %v1396_v11 = vsel %vm5511_vm7, %v1391_v4, %v1395_v42  ;;  %v980_v16 = vld [vmem:[#allocation2 + $0xa4] sm:$0x1]  ;;  %v405_v22 = vmax.f32 %v373_v60, 0.0  ;;  %v336_v63 = vmul.f32 %v5739_v59, %v5239_v61 }
  0x95   : > { %v1408_v12 = vshrl.u32 %v1104_v53, 16  ;;  %v1411_v13 = vshll.u32 %v1104_v53, 16  ;;  %v784_v15 = vor.u32 %v782_v51, %v781_v6  ;;  %1547 = vrot.lane.b32.xlu0 %v1396_v11, %s5374_s28  ;;  %v1105_v18 = vld [vmem:[#allocation2 + $0x94] sm:$0xf]  ;;  %v977_v20 = vsel %vm5531_vm9, %v776_v8, %v976_v7  ;;  %v1022_v27 = vld [vmem:[#allocation2 + $0x6c] sm:$0xf] }
  0x96   : > { %v1406_v17 = vsel %vm5511_vm7, %v1401_v5, %v1405_v49  ;;  %v1106_v19 = vld [vmem:[#allocation2 + $0x98] sm:$0x1]  ;;  %v786_v21 = vrot.slane %v781_v6, 4  ;;  %v1417_v25 = vshll.u32 %v1105_v18, 16  ;;  %v1421_v26 = vshrl.u32 %v1105_v18, 16 }
  0x97   : > { %1549 = vrot.lane.b32.xlu1 %v1406_v17, %s5374_s28  ;;  %v1410_v23 = vrot.slane %v1408_v12, 4  ;;  %v1413_v24 = vrot.slane %v1411_v13, 5  ;;  %978 = vst [vmem:[#allocation2 + $0x9c] sm:$0xf] %v977_v20  ;;  %v1427_v28 = vshll.u32 %v1106_v19, 16  ;;  %v785_v29 = vsel %vm5525_vm8, %v777_v9, %v784_v15 }
  0x98   : > { %v981_v30 = vsel %vm5539_vm10, %v786_v21, %v980_v16  ;;  %v406_v31 = vmax.f32 %v374_v10, 0.0  ;;  %1054 = vst.msk [vmem:[#allocation3 + $0x48] sm:$0xf] %vm411_vm0, %v1022_v27  ;;  %v1023_v32 = vld [vmem:[#allocation2 + $0x70] sm:$0xf]  ;;  %v1419_v35 = vrot.slane %v1417_v25, 5  ;;  %v5143_v37 = vpack.c.bf16 %v405_v22, %v405_v22 }
  0x99   : > { %v1414_v34 = vor.u32 %v1413_v24, %v1410_v23  ;;  %v1423_v36 = vrot.slane %v1421_v26, 4  ;;  %979 = vst.msk [vmem:[#allocation2 + $0xa0] sm:$0xf] %vm411_vm0, %v785_v29  ;;  %982 = vst [vmem:[#allocation2 + $0xa4] sm:$0x1] %v981_v30  ;;  %v1429_v47 = vrot.slane %v1427_v28, 5  ;;  %v337_v38 = vmul.f32 %v5739_v59, %v5240_v52 }
  0x9a   : > { %1055 = vst.msk [vmem:[#allocation3 + $0x4c] sm:$0xf] %vm411_vm0, %v1023_v32  ;;  %v5144_v2 = vpack.c.bf16 %v406_v31, %v406_v31  ;;  %v1024_v39 = vld [vmem:[#allocation2 + $0x78] sm:$0xf]  ;;  %v1025_v40 = vld [vmem:[#allocation2 + $0x7c] sm:$0xf]  ;;  %v375_v46 = vadd.f32 %v5751_v54, %v336_v63 }
  0x9b   : > { %v1415_v14 = vrot.slane %v1414_v34, 4  ;;  %v1424_v41 = vor.u32 %v1423_v36, %v1419_v35  ;;  %v788_v42 = vshrl.u32 %v5143_v37, 16  ;;  %v791_v43 = vshll.u32 %v5143_v37, 16  ;;  %1056 = vst.msk [vmem:[#allocation3 + $0x50] sm:$0xf] %vm411_vm0, %v1024_v39 }
  0x9c   : > { %1057 = vst.msk [vmem:[#allocation3 + $0x54] sm:$0xf] %vm411_vm0, %v1025_v40  ;;  %v796_v44 = vshrl.u32 %v5144_v2, 16  ;;  %v799_v45 = vshll.u32 %v5144_v2, 16  ;;  %v376_v48 = vadd.f32 %v5751_v54, %v337_v38  ;;  %v983_v51 = vld [vmem:[#allocation2 + $0xa8] sm:$0xf] }
  0x9d   : > { %v1420_v49 = vsel %vm5511_vm7, %v1415_v14, %v1419_v35  ;;  %v1425_v59 = vrot.slane %v1424_v41, 4  ;;  %v790_v50 = vrot.slane %v788_v42, 7  ;;  %v987_v56 = vld [vmem:[#allocation2 + $0xb0] sm:$0x1]  ;;  %v407_v60 = vmax.f32 %v375_v46, 0.0 }
  0x9e   : > { %1551 = vrot.lane.b32.xlu0 %v1420_v49, %s5374_s28  ;;  %v1107_v57 = vld [vmem:[#allocation2 + $0x9c] sm:$0xf]  ;;  %v798_v58 = vrot.slane %v796_v44, 7  ;;  %v408_v0 = vmax.f32 %v376_v48, 0.0  ;;  %v1026_v54 = vld [vmem:[#allocation2 + $0x84] sm:$0xf] }
  0x9f   : > { %v1430_v1 = vsel %vm5511_vm7, %v1425_v59, %v1429_v47  ;;  %v1432_v4 = vshrl.u32 %v1107_v57, 16  ;;  %v1435_v6 = vshll.u32 %v1107_v57, 16  ;;  %v793_v7 = vor.u32 %v791_v43, %v790_v50  ;;  %v1027_v61 = vld [vmem:[#allocation2 + $0x88] sm:$0xf]  ;;  %1058 = vst.msk [vmem:[#allocation3 + $0x58] sm:$0xf] %vm411_vm0, %v1026_v54 }
  0xa0   : > { %1553 = vrot.lane.b32.xlu1 %v1430_v1, %s5374_s28  ;;  %v1108_v52 = vld [vmem:[#allocation2 + $0xa0] sm:$0xf]  ;;  %v1109_v5 = vld [vmem:[#allocation2 + $0xa4] sm:$0x1]  ;;  %v794_v53 = vrot.slane %v790_v50, 4  ;;  %v801_v8 = vor.u32 %v799_v45, %v798_v58  ;;  %v803_v9 = vrot.slane %v798_v58, 4  ;;  %v5145_v10 = vpack.c.bf16 %v407_v60, %v407_v60  ;;  %v5861_v60 = vpop.permute.xlu0 %1503 }
  0xa1   : > { %1059 = vst.msk [vmem:[#allocation3 + $0x5c] sm:$0xf] %vm411_vm0, %v1027_v61  ;;  %v1434_v11 = vrot.slane %v1432_v4, 4  ;;  %v1437_v12 = vrot.slane %v1435_v6, 5  ;;  %v1441_v13 = vshll.u32 %v1108_v52, 16  ;;  %v1445_v15 = vshrl.u32 %v1108_v52, 16 }
  0xa2   : > { %v1451_v16 = vshll.u32 %v1109_v5, 16  ;;  %v802_v17 = vsel %vm5525_vm8, %v794_v53, %v801_v8  ;;  %v984_v18 = vsel %vm5531_vm9, %v793_v7, %v983_v51  ;;  %v988_v19 = vsel %vm5539_vm10, %v803_v9, %v987_v56  ;;  %v1028_v20 = vld [vmem:[#allocation2 + $0x90] sm:$0xf]  ;;  %v1029_v25 = vld [vmem:[#allocation2 + $0x94] sm:$0xf] }
  0xa3   : > { %v1438_v21 = vor.u32 %v1437_v12, %v1434_v11  ;;  %v1443_v22 = vrot.slane %v1441_v13, 5  ;;  %v1447_v23 = vrot.slane %v1445_v15, 4  ;;  %985 = vst [vmem:[#allocation2 + $0xa8] sm:$0xf] %v984_v18  ;;  %986 = vst.msk [vmem:[#allocation2 + $0xac] sm:$0xf] %vm411_vm0, %v802_v17  ;;  %v5146_v24 = vpack.c.bf16 %v408_v0, %v408_v0 }
  0xa4   : > { %989 = vst [vmem:[#allocation2 + $0xb0] sm:$0x1] %v988_v19  ;;  %1060 = vst.msk [vmem:[#allocation3 + $0x60] sm:$0xf] %vm411_vm0, %v1028_v20  ;;  %v1453_v26 = vrot.slane %v1451_v16, 5  ;;  %v805_v27 = vshrl.u32 %v5145_v10, 16 }
  0xa5   : > { %v808_v28 = vshll.u32 %v5145_v10, 16  ;;  %1061 = vst.msk [vmem:[#allocation3 + $0x64] sm:$0xf] %vm411_vm0, %v1029_v25  ;;  %v1439_v29 = vrot.slane %v1438_v21, 4  ;;  %v1448_v30 = vor.u32 %v1447_v23, %v1443_v22  ;;  %v813_v31 = vshrl.u32 %v5146_v24, 16  ;;  %v5868_v10 = vpop.permute.xlu0 %1505 }
  0xa6   : > { %v816_v32 = vshll.u32 %v5146_v24, 16  ;;  %v807_v34 = vrot.slane %v805_v27, 7  ;;  %v1030_v35 = vld [vmem:[#allocation2 + $0x9c] sm:$0xf]  ;;  %v990_v2 = vld [vmem:[#allocation2 + $0xb4] sm:$0xf] }
  0xa7   : > { %v1444_v36 = vsel %vm5511_vm7, %v1439_v29, %v1443_v22  ;;  %v1449_v37 = vrot.slane %v1448_v30, 4  ;;  %v815_v47 = vrot.slane %v813_v31, 7  ;;  %1062 = vst.msk [vmem:[#allocation3 + $0x68] sm:$0xf] %vm411_vm0, %v1030_v35  ;;  %v1031_v63 = vld [vmem:[#allocation2 + $0xa0] sm:$0xf] }
  0xa8   : > { %1555 = vrot.lane.b32.xlu0 %v1444_v36, %s5374_s28  ;;  %v810_v38 = vor.u32 %v808_v28, %v807_v34  ;;  %v811_v39 = vrot.slane %v807_v34, 4  ;;  %1063 = vst.msk [vmem:[#allocation3 + $0x6c] sm:$0xf] %vm411_vm0, %v1031_v63  ;;  %v994_v42 = vld [vmem:[#allocation2 + $0xbc] sm:$0x1]  ;;  %vm4336_vm15 = vcmask 1041408  }
  0xa9   : > { %v1454_v40 = vsel %vm5511_vm7, %v1449_v37, %v1453_v26  ;;  %v818_v14 = vor.u32 %v816_v32, %v815_v47  ;;  %v820_v41 = vrot.slane %v815_v47, 4  ;;  %v1633_v19 = vld [vmem:[#allocation2 + $0x4] sm:$0xf]  ;;  %v1632_v27 = vld [vmem:[#allocation2] sm:$0xe]  ;;  %vm1939_vm2 = vcmask 93248  }
  0xaa   : > { %1557 = vrot.lane.b32.xlu1 %v1454_v40, %s5374_s28  ;;  %v1110_v43 = vld [vmem:[#allocation2 + $0xa8] sm:$0xf]  ;;  %v1111_v44 = vld [vmem:[#allocation2 + $0xac] sm:$0xf]  ;;  %v991_v46 = vsel %vm5531_vm9, %v810_v38, %v990_v2  ;;  %v1733_v31 = vrot.slane %v1633_v19, 5  ;;  %v4998_v2 = vrot.slane %v1632_v27, 9 }
  0xab   : > { %v1112_v45 = vld [vmem:[#allocation2 + $0xb0] sm:$0x1]  ;;  %v1456_v48 = vshrl.u32 %v1110_v43, 16  ;;  %v1459_v49 = vshll.u32 %v1110_v43, 16  ;;  %v1465_v59 = vshll.u32 %v1111_v44, 16  ;;  %v1469_v50 = vshrl.u32 %v1111_v44, 16 }
  0xac   : > { %992 = vst [vmem:[#allocation2 + $0xb4] sm:$0xf] %v991_v46  ;;  %v1032_v51 = vld [vmem:[#allocation2 + $0xa8] sm:$0xf]  ;;  %v1475_v56 = vshll.u32 %v1112_v45, 16  ;;  %v819_v57 = vsel %vm5525_vm8, %v811_v39, %v818_v14  ;;  %v995_v58 = vsel %vm5539_vm10, %v820_v41, %v994_v42  ;;  %v1735_v42 = vrot.slane %v1733_v31, 4 }
  0xad   : > { %1064 = vst.msk [vmem:[#allocation3 + $0x70] sm:$0xf] %vm411_vm0, %v1032_v51  ;;  %v1033_v0 = vld [vmem:[#allocation2 + $0xac] sm:$0xf]  ;;  %v1458_v1 = vrot.slane %v1456_v48, 4  ;;  %v1461_v4 = vrot.slane %v1459_v49, 5  ;;  %v1734_v48 = vsel %vm5878_vm13, %v4998_v2, %v1733_v31 }
  0xae   : > { %v1467_v6 = vrot.slane %v1465_v59, 5  ;;  %v1471_v7 = vrot.slane %v1469_v50, 4  ;;  %993 = vst.msk [vmem:[#allocation2 + $0xb8] sm:$0xf] %vm411_vm0, %v819_v57  ;;  %996 = vst [vmem:[#allocation2 + $0xbc] sm:$0x1] %v995_v58  ;;  %v5866_v54 = vpop.permute.xlu1 %1507 }
  0xaf   : > { %1065 = vst.msk [vmem:[#allocation3 + $0x74] sm:$0xf] %vm411_vm0, %v1033_v0  ;;  %v1462_v61 = vor.u32 %v1461_v4, %v1458_v1  ;;  %v1477_v5 = vrot.slane %v1475_v56, 5  ;;  %v1634_v32 = vld [vmem:[#allocation2 + $0x8] sm:$0x1]  ;;  %v1512_v35 = vpop.permute.xlu0 %1511  ;;  %vm2132_vm3 = vcmask 126048  }
  0xb0   : > { %v1472_v52 = vor.u32 %v1471_v7, %v1467_v6  ;;  %v1636_v34 = vld [vmem:[#allocation2 + $0x10] sm:$0xf]  ;;  %v1736_v38 = vrot.slane %v1634_v32, 5  ;;  %v1635_v39 = vld [vmem:[#allocation2 + $0xc] sm:$0xe]  ;;  %vm2693_vm4 = vcmask 158848  }
  0xb1   : > { %v1463_v53 = vrot.slane %v1462_v61, 4  ;;  %v1740_v43 = vrot.slane %v1636_v34, 5  ;;  %v1637_v44 = vld [vmem:[#allocation2 + $0x14] sm:$0x1]  ;;  %v1639_v45 = vld [vmem:[#allocation2 + $0x1c] sm:$0xf] }
  0xb2   : > { %v1473_v8 = vrot.slane %v1472_v52, 4  ;;  %v1510_v20 = vpop.permute.xlu1 %1509  ;;  %v4999_v49 = vrot.slane %v1635_v39, 9  ;;  %v1638_v59 = vld [vmem:[#allocation2 + $0x18] sm:$0xe]  ;;  %v1737_v51 = vsel %vm5878_vm13, %v1735_v42, %v1736_v38  ;;  %v1743_v57 = vrot.slane %v1637_v44, 5 }
  0xb3   : > { %v1113_v9 = vld [vmem:[#allocation2 + $0xb4] sm:$0xf]  ;;  %v1468_v12 = vsel %vm5511_vm7, %v1463_v53, %v1467_v6  ;;  %v1742_v56 = vrot.slane %v1740_v43, 4  ;;  %v1747_v58 = vrot.slane %v1639_v45, 5  ;;  %v1640_v0 = vld [vmem:[#allocation2 + $0x20] sm:$0x1] }
  0xb4   : > { %v1034_v11 = vld [vmem:[#allocation2 + $0xb4] sm:$0xf]  ;;  %v1478_v13 = vsel %vm5511_vm7, %v1473_v8, %v1477_v5  ;;  %v1480_v15 = vshrl.u32 %v1113_v9, 16  ;;  %v1483_v16 = vshll.u32 %v1113_v9, 16  ;;  %1559 = vrot.lane.b32.xlu0 %v1468_v12, %s5374_s28  ;;  %v1642_v1 = vld [vmem:[#allocation2 + $0x28] sm:$0xf]  ;;  %v1741_v6 = vsel %vm5878_vm13, %v4999_v49, %v1740_v43 }
  0xb5   : > { %1066 = vst.msk [vmem:[#allocation3 + $0x78] sm:$0xf] %vm411_vm0, %v1034_v11  ;;  %1561 = vrot.lane.b32.xlu1 %v1478_v13, %s5374_s28  ;;  %v1114_v17 = vld [vmem:[#allocation2 + $0xb8] sm:$0xf]  ;;  %v1115_v18 = vld [vmem:[#allocation2 + $0xbc] sm:$0x1]  ;;  %v1744_v52 = vsel %vm5878_vm13, %v1742_v56, %v1743_v57 }
  0xb6   : > { %v1482_v21 = vrot.slane %v1480_v15, 4  ;;  %v1485_v22 = vrot.slane %v1483_v16, 5  ;;  %v1489_v23 = vshll.u32 %v1114_v17, 16  ;;  %v1493_v24 = vshrl.u32 %v1114_v17, 16  ;;  %v1035_v25 = vld [vmem:[#allocation2 + $0xb8] sm:$0xf]  ;;  %v1514_v40 = vpop.permute.xlu1 %1513 }
  0xb7   : > { %v1499_v26 = vshll.u32 %v1115_v18, 16  ;;  %1067 = vst.msk [vmem:[#allocation3 + $0x7c] sm:$0xf] %vm411_vm0, %v1035_v25  ;;  %v5000_v7 = vrot.slane %v1638_v59, 9  ;;  %v1641_v61 = vld [vmem:[#allocation2 + $0x24] sm:$0xe] }
  0xb8   : > { %v1486_v28 = vor.u32 %v1485_v22, %v1482_v21  ;;  %v1491_v29 = vrot.slane %v1489_v23, 5  ;;  %v1495_v30 = vrot.slane %v1493_v24, 4  ;;  %v1749_v5 = vrot.slane %v1747_v58, 4  ;;  %v1645_v9 = vld [vmem:[#allocation2 + $0x34] sm:$0xf] }
  0xb9   : > { %v1501_v47 = vrot.slane %v1499_v26, 5  ;;  %v1750_v53 = vrot.slane %v1640_v0, 5  ;;  %v1754_v8 = vrot.slane %v1642_v1, 5  ;;  %1600 = vst.msk [vmem:[#allocation3] sm:$0xf] %vm1599_vm14, %v5861_v60  ;;  %v5001_v12 = vrot.slane %v1641_v61, 9 }
  0xba   : > { %v1487_v36 = vrot.slane %v1486_v28, 4  ;;  %v1496_v37 = vor.u32 %v1495_v30, %v1491_v29  ;;  %1602 = vst.msk [vmem:[#allocation3 + $0x8] sm:$0xf] %vm1599_vm14, %v5866_v54  ;;  %1601 = vst.msk [vmem:[#allocation3 + $0x4] sm:$0xf] %vm1599_vm14, %v5868_v10  ;;  %v1748_v54 = vsel %vm5878_vm13, %v5000_v7, %v1747_v58  ;;  %v1761_v10 = vrot.slane %v1645_v9, 5 }
  0xbb   : > { %v1516_v50 = vpop.permute.xlu0 %1515  ;;  %1603 = vst.msk [vmem:[#allocation3 + $0xc] sm:$0xf] %vm1599_vm14, %v1510_v20  ;;  %1604 = vst.msk [vmem:[#allocation3 + $0x10] sm:$0xf] %vm1599_vm14, %v1512_v35  ;;  %v1643_v11 = vld [vmem:[#allocation2 + $0x2c] sm:$0x1]  ;;  %v1751_v16 = vsel %vm5878_vm13, %v1749_v5, %v1750_v53  ;;  %v1755_v23 = vsel %vm5878_vm13, %v5001_v12, %v1754_v8 }
  0xbc   : > { %v1492_v14 = vsel %vm5511_vm7, %v1487_v36, %v1491_v29  ;;  %v1497_v41 = vrot.slane %v1496_v37, 4  ;;  %1605 = vst.msk [vmem:[#allocation3 + $0x14] sm:$0xf] %vm1599_vm14, %v1514_v40  ;;  %1606 = vst.msk [vmem:[#allocation3 + $0x18] sm:$0xf] %vm1599_vm14, %v1516_v50  ;;  %v1756_v17 = vrot.slane %v1754_v8, 4 }
  0xbd   : > { %1563 = vrot.lane.b32.xlu0 %v1492_v14, %s5374_s28  ;;  %v1518_v4 = vpop.permute.xlu1 %1517  ;;  %v1644_v13 = vld [vmem:[#allocation2 + $0x30] sm:$0xe]  ;;  %v2165_v15 = vld [vmem:[#allocation2 + $0xc] sm:$0xf]  ;;  %v1757_v18 = vrot.slane %v1643_v11, 5  ;;  %v1763_v26 = vrot.slane %v1761_v10, 4 }
  0xbe   : > { %v1502_v46 = vsel %vm5511_vm7, %v1497_v41, %v1501_v47  ;;  %1607 = vst.msk [vmem:[#allocation3 + $0x1c] sm:$0xf] %vm1599_vm14, %v1518_v4  ;;  %v1646_v19 = vld [vmem:[#allocation2 + $0x38] sm:$0x1]  ;;  %v5002_v21 = vrot.slane %v1644_v13, 9  ;;  %v2214_v24 = vshrl.u32 %v2165_v15, 16 }
  0xbf   : > { %1565 = vrot.lane.b32.xlu1 %v1502_v46, %s5374_s28  ;;  %v2166_v22 = vld [vmem:[#allocation2 + $0x10] sm:$0xf]  ;;  %v2217_v25 = vshll.u32 %v2165_v15, 16  ;;  %v1764_v27 = vrot.slane %v1646_v19, 5  ;;  %v2168_v28 = vld [vmem:[#allocation2 + $0x18] sm:$0xf]  ;;  %v1758_v29 = vsel %vm5878_vm13, %v1756_v17, %v1757_v18 }
  0xc0   : > { %v2223_v30 = vshll.u32 %v2166_v22, 16  ;;  %v2227_v31 = vshrl.u32 %v2166_v22, 16  ;;  %v1762_v32 = vsel %vm5878_vm13, %v5002_v21, %v1761_v10  ;;  %v2169_v34 = vld [vmem:[#allocation2 + $0x1c] sm:$0xf]  ;;  %v2216_v36 = vrot.slane %v2214_v24, 4 }
  0xc1   : > { %1843 = vrot.lane.b32.xlu0 %v1734_v48, %s5375_s8  ;;  %v2219_v37 = vrot.slane %v2217_v25, 5  ;;  %v2238_v47 = vshrl.u32 %v2168_v28, 16  ;;  %v2241_v2 = vshll.u32 %v2168_v28, 16  ;;  %v1765_v39 = vsel %vm5878_vm13, %v1763_v26, %v1764_v27  ;;  %v2167_v43 = vld [vmem:[#allocation2 + $0x14] sm:$0x1] }
  0xc2   : > { %v2225_v40 = vrot.slane %v2223_v30, 5  ;;  %v2229_v14 = vrot.slane %v2227_v31, 4  ;;  %v2247_v41 = vshll.u32 %v2169_v34, 16  ;;  %v2251_v42 = vshrl.u32 %v2169_v34, 16  ;;  %v1972_v44 = vld [vmem:[#allocation2 + $0xc] sm:$0xf] }
  0xc3   : > { %1845 = vrot.lane.b32.xlu1 %v1737_v51, %s5375_s8  ;;  %v2220_v45 = vor.u32 %v2219_v37, %v2216_v36  ;;  %v2240_v46 = vrot.slane %v2238_v47, 4  ;;  %v2243_v48 = vrot.slane %v2241_v2, 5  ;;  %v1973_v59 = vld [vmem:[#allocation2 + $0x10] sm:$0xf]  ;;  %v2233_v51 = vshll.u32 %v2167_v43, 16 }
  0xc4   : > { %v1520_v60 = vpop.permute.xlu0 %1519  ;;  %v2230_v50 = vor.u32 %v2229_v14, %v2225_v40  ;;  %v2249_v56 = vrot.slane %v2247_v41, 5  ;;  %v2253_v57 = vrot.slane %v2251_v42, 4  ;;  %v2170_v58 = vld [vmem:[#allocation2 + $0x20] sm:$0x1]  ;;  %v1974_v0 = vld [vmem:[#allocation2 + $0x18] sm:$0xf] }
  0xc5   : > { %1847 = vrot.lane.b32.xlu0 %v1741_v6, %s5375_s8  ;;  %1608 = vst.msk [vmem:[#allocation3 + $0x20] sm:$0xf] %vm1599_vm14, %v1520_v60  ;;  %v2221_v1 = vrot.slane %v2220_v45, 4  ;;  %v2244_v4 = vor.u32 %v2243_v48, %v2240_v46  ;;  %v1975_v7 = vld [vmem:[#allocation2 + $0x1c] sm:$0xf]  ;;  %v2257_v53 = vshll.u32 %v2170_v58, 16 }
  0xc6   : > { %v1522_v20 = vpop.permute.xlu1 %1521  ;;  %v2231_v61 = vrot.slane %v2230_v50, 4  ;;  %v2254_v5 = vor.u32 %v2253_v57, %v2249_v56  ;;  %v2727_v8 = vld [vmem:[#allocation2 + $0x10] sm:$0xf]  ;;  %v2726_v60 = vld [vmem:[#allocation2 + $0xc] sm:$0xe]  ;;  %vm3030_vm5 = vcmask 191648  }
  0xc7   : > { %1849 = vrot.lane.b32.xlu1 %v1744_v52, %s5375_s8  ;;  %1609 = vst.msk [vmem:[#allocation3 + $0x24] sm:$0xf] %vm1599_vm14, %v1522_v20  ;;  %v2235_v52 = vrot.slane %v2233_v51, 5  ;;  %v2226_v9 = vsel %vm5511_vm7, %v2221_v1, %v2225_v40  ;;  %v2245_v11 = vrot.slane %v2244_v4, 4  ;;  %v2259_v13 = vrot.slane %v2257_v53, 5 }
  0xc8   : > { %v2255_v12 = vrot.slane %v2254_v5, 4  ;;  %v2824_v10 = vrot.slane %v2727_v8, 5  ;;  %v2730_v15 = vld [vmem:[#allocation2 + $0x1c] sm:$0xf]  ;;  %v5014_v18 = vrot.slane %v2726_v60, 9  ;;  %vm3224_vm6 = vcmask 224448  }
  0xc9   : > { %1851 = vrot.lane.b32.xlu0 %v1748_v54, %s5375_s8  ;;  %v2236_v54 = vsel %vm5511_vm7, %v2231_v61, %v2235_v52  ;;  %v2250_v17 = vsel %vm5511_vm7, %v2245_v11, %v2249_v56  ;;  %v2729_v19 = vld [vmem:[#allocation2 + $0x18] sm:$0xe]  ;;  %v2831_v20 = vrot.slane %v2730_v15, 5  ;;  %v2731_v25 = vld [vmem:[#allocation2 + $0x20] sm:$0x1]  ;;  %vm3785_vm11 = vcmask 257248  }
  0xca   : > { %v3257_v21 = vld [vmem:[#allocation2 + $0x18] sm:$0xf]  ;;  %v2260_v22 = vsel %vm5511_vm7, %v2255_v12, %v2259_v13  ;;  %v5015_v26 = vrot.slane %v2729_v19, 9  ;;  %v3258_v27 = vld [vmem:[#allocation2 + $0x1c] sm:$0xf]  ;;  %v2825_v28 = vsel %vm5878_vm13, %v5014_v18, %v2824_v10  ;;  %vm4122_vm12 = vcmask 290048  }
  0xcb   : > { %1853 = vrot.lane.b32.xlu1 %v1751_v16, %s5375_s8  ;;  %v1524_v35 = vpop.permute.xlu0 %1523  ;;  %v2728_v16 = vld [vmem:[#allocation2 + $0x14] sm:$0x1]  ;;  %v3309_v30 = vshll.u32 %v3257_v21, 16  ;;  %v2833_v31 = vrot.slane %v2831_v20, 4  ;;  %v3260_v34 = vld [vmem:[#allocation2 + $0x24] sm:$0xf] }
  0xcc   : > { %1610 = vst.msk [vmem:[#allocation3 + $0x28] sm:$0xf] %vm1599_vm14, %v1524_v35  ;;  %v1526_v38 = vpop.permute.xlu1 %1525  ;;  %v2827_v24 = vrot.slane %v2728_v16, 5  ;;  %v3315_v36 = vshll.u32 %v3258_v27, 16  ;;  %v3319_v37 = vshrl.u32 %v3258_v27, 16  ;;  %v2832_v2 = vsel %vm5878_vm13, %v5015_v26, %v2831_v20 }
  0xcd   : > { %1855 = vrot.lane.b32.xlu0 %v1755_v23, %s5375_s8  ;;  %1611 = vst.msk [vmem:[#allocation3 + $0x2c] sm:$0xf] %vm1599_vm14, %v1526_v38  ;;  %v2826_v23 = vrot.slane %v2824_v10, 4  ;;  %v3261_v38 = vld [vmem:[#allocation2 + $0x28] sm:$0xf]  ;;  %v3311_v14 = vrot.slane %v3309_v30, 5 }
  0xce   : > { %v3330_v41 = vshrl.u32 %v3260_v34, 16  ;;  %v3333_v42 = vshll.u32 %v3260_v34, 16  ;;  %v3321_v45 = vrot.slane %v3319_v37, 4  ;;  %v3339_v46 = vshll.u32 %v3261_v38, 16  ;;  %v3065_v57 = vld [vmem:[#allocation2 + $0x1c] sm:$0xf] }
  0xcf   : > { %1857 = vrot.lane.b32.xlu1 %v1758_v29, %s5375_s8  ;;  %v3306_v29 = vshrl.u32 %v3257_v21, 16  ;;  %v2828_v35 = vsel %vm5878_vm13, %v2826_v23, %v2827_v24  ;;  %v3343_v48 = vshrl.u32 %v3261_v38, 16  ;;  %v3066_v52 = vld [vmem:[#allocation2 + $0x24] sm:$0xf]  ;;  %v3067_v8 = vld [vmem:[#allocation2 + $0x28] sm:$0xf] }
  0xd0   : > { %v3332_v51 = vrot.slane %v3330_v41, 4  ;;  %v3335_v56 = vrot.slane %v3333_v42, 5  ;;  %v3341_v1 = vrot.slane %v3339_v46, 5  ;;  %v3819_v12 = vld [vmem:[#allocation2 + $0x1c] sm:$0xf] }
  0xd1   : > { %1859 = vrot.lane.b32.xlu0 %v1762_v32, %s5375_s8  ;;  %v2834_v32 = vrot.slane %v2731_v25, 5  ;;  %v3308_v40 = vrot.slane %v3306_v29, 4  ;;  %v3345_v4 = vrot.slane %v3343_v48, 4  ;;  %v3818_v15 = vld [vmem:[#allocation2 + $0x18] sm:$0xe]  ;;  %v3916_v19 = vrot.slane %v3819_v12, 5 }
  0xd2   : > { %v1528_v49 = vpop.permute.xlu0 %1527  ;;  %v3336_v53 = vor.u32 %v3335_v56, %v3332_v51  ;;  %v3822_v20 = vld [vmem:[#allocation2 + $0x28] sm:$0xf]  ;;  %v5030_v25 = vrot.slane %v3818_v15, 9  ;;  %v2171_v26 = vld [vmem:[#allocation2 + $0x24] sm:$0xf] }
  0xd3   : > { %1861 = vrot.lane.b32.xlu1 %v1765_v39, %s5375_s8  ;;  %1612 = vst.msk [vmem:[#allocation3 + $0x30] sm:$0xf] %vm1599_vm14, %v1528_v49  ;;  %v2835_v43 = vsel %vm5878_vm13, %v2833_v31, %v2834_v32  ;;  %v3259_v49 = vld [vmem:[#allocation2 + $0x20] sm:$0x1]  ;;  %v3312_v50 = vor.u32 %v3311_v14, %v3308_v40  ;;  %v3346_v60 = vor.u32 %v3345_v4, %v3341_v1  ;;  %v3821_v27 = vld [vmem:[#allocation2 + $0x24] sm:$0xe] }
  0xd4   : > { %v3337_v10 = vrot.slane %v3336_v53, 4  ;;  %v3918_v30 = vrot.slane %v3916_v19, 4  ;;  %v3823_v32 = vld [vmem:[#allocation2 + $0x2c] sm:$0x1]  ;;  %v2172_v34 = vld [vmem:[#allocation2 + $0x28] sm:$0xf] }
  0xd5   : > { %2036 = vrot.lane.b32.xlu0 %v1972_v44, %s5376_s9  ;;  %v1530_v6 = vpop.permute.xlu1 %1529  ;;  %v3317_v44 = vrot.slane %v3315_v36, 5  ;;  %v3313_v5 = vrot.slane %v3312_v50, 4  ;;  %v3917_v36 = vsel %vm5878_vm13, %v5030_v25, %v3916_v19  ;;  %v5031_v37 = vrot.slane %v3821_v27, 9  ;;  %v2173_v4 = vld [vmem:[#allocation2 + $0x2c] sm:$0x1] }
  0xd6   : > { %1613 = vst.msk [vmem:[#allocation3 + $0x34] sm:$0xf] %vm1599_vm14, %v1530_v6  ;;  %v3342_v24 = vsel %vm5511_vm7, %v3337_v10, %v3341_v1  ;;  %v3926_v38 = vrot.slane %v3823_v32, 5  ;;  %v2271_v14 = vshll.u32 %v2172_v34, 16  ;;  %v2275_v41 = vshrl.u32 %v2172_v34, 16  ;;  %v5343_v1 = vld [vmem:[%s7115_s3 + $0x8] sm:$0xff]  }
  0xd7   : > { %2038 = vrot.lane.b32.xlu1 %v1973_v59, %s5376_s9  ;;  %v3064_v59 = vld [vmem:[#allocation2 + $0x18] sm:$0xf]  ;;  %v3322_v58 = vor.u32 %v3321_v45, %v3317_v44  ;;  %v3318_v13 = vsel %vm5511_vm7, %v3313_v5, %v3317_v44  ;;  %v1977_v53 = vld [vmem:[#allocation2 + $0x28] sm:$0xf]  ;;  %v2734_v32 = vld [vmem:[#allocation2 + $0x2c] sm:$0x1] }
  0xd8   : > { %v2273_v56 = vrot.slane %v2271_v14, 5  ;;  %v2176_v12 = vld [vmem:[#allocation2 + $0x38] sm:$0x1]  ;;  %v1664_v55 = vld [vmem:[#allocation2 + $0x80] sm:$0x1] }
  0xd9   : > { %2040 = vrot.lane.b32.xlu0 %v1974_v0, %s5376_s9  ;;  %v3325_v0 = vshll.u32 %v3259_v49, 16 }
  0xdb   : > { %2042 = vrot.lane.b32.xlu1 %v1975_v7, %s5376_s9  ;;  %v3262_v7 = vld [vmem:[#allocation2 + $0x2c] sm:$0x1]  ;;  %v3327_v11 = vrot.slane %v3325_v0, 5 }
  0xdd   : > { %2597 = vrot.lane.b32.xlu0 %v2226_v9, %s5377_s10  ;;  %v3323_v9 = vrot.slane %v3322_v58, 4 }
  0xdf   : > { %2599 = vrot.lane.b32.xlu1 %v2236_v54, %s5377_s10  ;;  %v3349_v54 = vshll.u32 %v3262_v7, 16  ;;  %v3328_v16 = vsel %vm5511_vm7, %v3323_v9, %v3327_v11  ;;  %v2281_v9 = vshll.u32 %v2173_v4, 16 }
  0xe1   : > { %2601 = vrot.lane.b32.xlu0 %v2250_v17, %s5377_s10  ;;  %v3347_v17 = vrot.slane %v3346_v60, 4  ;;  %v3351_v18 = vrot.slane %v3349_v54, 5  ;;  %v5344_v54 = vld [vmem:[%s7115_s3] sm:$0xff]  }
  0xe2   : > { %v1532_v47 = vpop.permute.xlu0 %1531 }
  0xe3   : > { %2603 = vrot.lane.b32.xlu1 %v2260_v22, %s5377_s10  ;;  %1614 = vst.msk [vmem:[#allocation3 + $0x38] sm:$0xf] %vm1599_vm14, %v1532_v47  ;;  %v1534_v39 = vpop.permute.xlu1 %1533  ;;  %v3820_v22 = vld [vmem:[#allocation2 + $0x20] sm:$0x1]  ;;  %v3352_v29 = vsel %vm5511_vm7, %v3347_v17, %v3351_v18  ;;  %v2265_v47 = vshll.u32 %v2171_v26, 16  ;;  %v2283_v18 = vrot.slane %v2281_v9, 5 }
  0xe4   : > { %1615 = vst.msk [vmem:[#allocation3 + $0x3c] sm:$0xf] %vm1599_vm14, %v1534_v39  ;;  %v3919_v31 = vrot.slane %v3820_v22, 5  ;;  %v2174_v39 = vld [vmem:[#allocation2 + $0x30] sm:$0xf] }
  0xe5   : > { %2934 = vrot.lane.b32.xlu0 %v2825_v28, %s5378_s11  ;;  %v3923_v28 = vrot.slane %v3822_v20, 5  ;;  %v2267_v45 = vrot.slane %v2265_v47, 5  ;;  %v2286_v46 = vshrl.u32 %v2174_v39, 16  ;;  %v2289_v48 = vshll.u32 %v2174_v39, 16  ;;  %v3263_v47 = vld [vmem:[#allocation2 + $0x30] sm:$0xf] }
  0xe6   : > { %v3920_v40 = vsel %vm5878_vm13, %v3918_v30, %v3919_v31  ;;  %v2305_v20 = vshll.u32 %v2176_v12, 16  ;;  %v2736_v31 = vld [vmem:[#allocation2 + $0x34] sm:$0xf]  ;;  %v2841_v39 = vrot.slane %v2734_v32, 5  ;;  %v3068_v9 = vld [vmem:[#allocation2 + $0x30] sm:$0xf] }
  0xe7   : > { %2936 = vrot.lane.b32.xlu1 %v2828_v35, %s5378_s11  ;;  %v2262_v35 = vshrl.u32 %v2171_v26, 16  ;;  %v3924_v44 = vsel %vm5878_vm13, %v5031_v37, %v3923_v28  ;;  %v2732_v26 = vld [vmem:[#allocation2 + $0x24] sm:$0xe]  ;;  %v2845_v37 = vrot.slane %v2736_v31, 5  ;;  %v3824_v31 = vld [vmem:[#allocation2 + $0x30] sm:$0xe] }
  0xe9   : > { %2938 = vrot.lane.b32.xlu0 %v2832_v2, %s5378_s11  ;;  %v3925_v2 = vrot.slane %v3923_v28, 4  ;;  %v2264_v42 = vrot.slane %v2262_v35, 4  ;;  %v5016_v35 = vrot.slane %v2732_v26, 9 }
  0xeb   : > { %2940 = vrot.lane.b32.xlu1 %v2835_v43, %s5378_s11  ;;  %v1536_v6 = vpop.permute.xlu0 %1535  ;;  %v2175_v43 = vld [vmem:[#allocation2 + $0x34] sm:$0xf]  ;;  %v3927_v50 = vsel %vm5878_vm13, %v3925_v2, %v3926_v38  ;;  %v2268_v7 = vor.u32 %v2267_v45, %v2264_v42  ;;  %v3357_v45 = vshll.u32 %v3263_v47, 16 }
  0xec   : > { %1616 = vst.msk [vmem:[#allocation3 + $0x40] sm:$0xf] %vm1599_vm14, %v1536_v6  ;;  %v1538_v61 = vpop.permute.xlu1 %1537  ;;  %v2295_v58 = vshll.u32 %v2175_v43, 16  ;;  %v2299_v0 = vshrl.u32 %v2175_v43, 16  ;;  %v1976_v6 = vld [vmem:[#allocation2 + $0x24] sm:$0xf] }
  0xed   : > { %3128 = vrot.lane.b32.xlu0 %v3064_v59, %s5379_s12  ;;  %1617 = vst.msk [vmem:[#allocation3 + $0x44] sm:$0xf] %vm1599_vm14, %v1538_v61  ;;  %v5342_v59 = vld [vmem:[%s7115_s3 + $0x10] ss:$0 sps:$4 sm:$0x33]   ;;  %v2288_v61 = vrot.slane %v2286_v46, 4 }
  0xee   : > { %5323 = vmatprep.subr.msk.bf16.mxu0 %vm4336_vm15, %v5342_v59  ;;  %v4338_v5 = vsel %vm4336_vm15, %v5342_v59, 0  ;;  %5324 = vmatprep.subr.msk.bf16.mxu1 %vm4336_vm15, %v5342_v59  ;;  %v2297_v11 = vrot.slane %v2295_v58, 5  ;;  %v2301_v60 = vrot.slane %v2299_v0, 4  ;;  %v2269_v10 = vrot.slane %v2268_v7, 4  ;;  %v3264_v42 = vld [vmem:[#allocation2 + $0x34] sm:$0xf] }
  0xef   : > { %3130 = vrot.lane.b32.xlu1 %v3065_v57, %s5379_s12  ;;  %v2277_v57 = vrot.slane %v2275_v41, 4  ;;  %5280 = vmatpush3.bf16.msra.mxu0 %v4338_v5  ;;  %v2847_v46 = vrot.slane %v2845_v37, 4  ;;  %v3266_v59 = vld [vmem:[#allocation2 + $0x3c] sm:$0xf]  ;;  %v3267_v58 = vld [vmem:[#allocation2 + $0x40] sm:$0xf] }
  0xf0   : > { %5281 = vmatprep.subr.bf16.mxu0 %v5343_v1  ;;  %5320 = vmatpush3.bf16.msra.mxu1 %v4338_v5  ;;  %v2302_v19 = vor.u32 %v2301_v60, %v2297_v11  ;;  %v3378_v4 = vshrl.u32 %v3266_v59, 16  ;;  %v3387_v5 = vshll.u32 %v3267_v58, 16 }
  0xf1   : > { %3132 = vrot.lane.b32.xlu0 %v3066_v52, %s5379_s12  ;;  %v2291_v52 = vrot.slane %v2289_v48, 5  ;;  %5318 = vmatprep.subr.bf16.mxu1 %v5343_v1 }
  0xf2   : > { %v2303_v28 = vrot.slane %v2302_v19, 4  ;;  %v3380_v60 = vrot.slane %v3378_v4, 4  ;;  %v3268_v19 = vld [vmem:[#allocation2 + $0x44] sm:$0x1] }
  0xf3   : > { %3134 = vrot.lane.b32.xlu1 %v3067_v8, %s5379_s12  ;;  %v2278_v8 = vor.u32 %v2277_v57, %v2273_v56  ;;  %v2292_v15 = vor.u32 %v2291_v52, %v2288_v61  ;;  %5282 = vmatpush3.bf16.msra.mxu0 %v5343_v1  ;;  %v1649_v4 = vld [vmem:[#allocation2 + $0x44] sm:$0x1] }
  0xf4   : > { %v1540_v21 = vpop.permute.xlu0 %1539  ;;  %5283 = vmatprep.subr.bf16.mxu0 %v5344_v54  ;;  %5321 = vmatpush3.bf16.msra.mxu1 %v5343_v1  ;;  %v3359_v1 = vrot.slane %v3357_v45, 5  ;;  %v3829_v45 = vld [vmem:[#allocation2 + $0x44] sm:$0x1] }
  0xf5   : > { %3689 = vrot.lane.b32.xlu0 %v3318_v13, %s5380_s13  ;;  %1618 = vst.msk [vmem:[#allocation3 + $0x48] sm:$0xf] %vm1599_vm14, %v1540_v21  ;;  %v1542_v23 = vpop.permute.xlu1 %1541  ;;  %v1978_v13 = vld [vmem:[#allocation2 + $0x30] sm:$0xf]  ;;  %v2279_v17 = vrot.slane %v2278_v8, 4  ;;  %5319 = vmatprep.subr.bf16.mxu1 %v5344_v54 }
  0xf6   : > { %1619 = vst.msk [vmem:[#allocation3 + $0x4c] sm:$0xf] %vm1599_vm14, %v1542_v23  ;;  %v2733_v21 = vld [vmem:[#allocation2 + $0x28] sm:$0xf]  ;;  %v2274_v23 = vsel %vm5511_vm7, %v2269_v10, %v2273_v56  ;;  %v3367_v56 = vshrl.u32 %v3264_v42, 16 }
  0xf7   : > { %3691 = vrot.lane.b32.xlu1 %v3328_v16, %s5380_s13  ;;  %v1979_v16 = vld [vmem:[#allocation2 + $0x34] sm:$0xf]  ;;  %5284 = vmatpush3.bf16.msra.mxu0 %v5344_v54  ;;  %v2284_v27 = vsel %vm5511_vm7, %v2279_v17, %v2283_v18  ;;  %v2838_v30 = vrot.slane %v2733_v21, 5  ;;  %v3265_v8 = vld [vmem:[#allocation2 + $0x38] sm:$0x1] }
  0xf8   : > { %5322 = vmatpush3.bf16.msra.mxu1 %v5344_v54  ;;  %v3369_v52 = vrot.slane %v3367_v56, 4 }
  0xf9   : > { %3693 = vrot.lane.b32.xlu0 %v3342_v24, %s5380_s13  ;;  %v2293_v24 = vrot.slane %v2292_v15, 4  ;;  %v2840_v38 = vrot.slane %v2838_v30, 4  ;;  %v2839_v43 = vsel %vm5878_vm13, %v5016_v35, %v2838_v30  ;;  %v3373_v15 = vshll.u32 %v3265_v8, 16 }
  0xfb   : > { %3695 = vrot.lane.b32.xlu1 %v3352_v29, %s5380_s13  ;;  %v2307_v29 = vrot.slane %v2305_v20, 5  ;;  %v2298_v34 = vsel %vm5511_vm7, %v2293_v24, %v2297_v11  ;;  %v3070_v20 = vld [vmem:[#allocation2 + $0x3c] sm:$0xf] }
  0xfc   : > { %v1544_v49 = vpop.permute.xlu0 %1543 }
  0xfd   : > { %4026 = vrot.lane.b32.xlu0 %v3917_v36, %s5381_s14  ;;  %1620 = vst.msk [vmem:[#allocation3 + $0x50] sm:$0xf] %vm1599_vm14, %v1544_v49  ;;  %v1546_v51 = vpop.permute.xlu1 %1545  ;;  %v2735_v36 = vld [vmem:[#allocation2 + $0x30] sm:$0xe]  ;;  %v2308_v2 = vsel %vm5511_vm7, %v2303_v28, %v2307_v29  ;;  %v3825_v28 = vld [vmem:[#allocation2 + $0x34] sm:$0xf] }
  0xfe   : > { %1621 = vst.msk [vmem:[#allocation3 + $0x54] sm:$0xf] %vm1599_vm14, %v1546_v51  ;;  %v5017_v14 = vrot.slane %v2735_v36, 9  ;;  %v3363_v51 = vshll.u32 %v3264_v42, 16  ;;  %v3930_v36 = vrot.slane %v3825_v28, 5 }
  0xff   : > { %4028 = vrot.lane.b32.xlu1 %v3920_v40, %s5381_s14  ;;  %v2737_v40 = vld [vmem:[#allocation2 + $0x38] sm:$0x1] }
 0x100   : > { %v2848_v48 = vrot.slane %v2737_v40, 5  ;;  %v2846_v57 = vsel %vm5878_vm13, %v5017_v14, %v2845_v37  ;;  %v3365_v61 = vrot.slane %v3363_v51, 5  ;;  %v3826_v37 = vld [vmem:[#allocation2 + $0x38] sm:$0x1]  ;;  %v3827_v14 = vld [vmem:[#allocation2 + $0x3c] sm:$0xe] }
 0x101   : > { %4030 = vrot.lane.b32.xlu0 %v3924_v44, %s5381_s14  ;;  %v3354_v44 = vshrl.u32 %v3263_v47, 16  ;;  %v3828_v47 = vld [vmem:[#allocation2 + $0x40] sm:$0xf]  ;;  %v3932_v42 = vrot.slane %v3930_v36, 4 }
 0x102   : > { %v2849_v7 = vsel %vm5878_vm13, %v2847_v46, %v2848_v48  ;;  %v3370_v10 = vor.u32 %v3369_v52, %v3365_v61  ;;  %v1648_v46 = vld [vmem:[#allocation2 + $0x40] sm:$0xf] }
 0x103   : > { %4032 = vrot.lane.b32.xlu1 %v3927_v50, %s5381_s14  ;;  %v2842_v50 = vsel %vm5878_vm13, %v2840_v38, %v2841_v39  ;;  %v3356_v0 = vrot.slane %v3354_v44, 4  ;;  %v5032_v38 = vrot.slane %v3824_v31, 9  ;;  %v3937_v44 = vrot.slane %v3828_v47, 5  ;;  %v1981_v31 = vld [vmem:[#allocation2 + $0x40] sm:$0xf] }
 0x104   : > { %v3371_v24 = vrot.slane %v3370_v10, 4  ;;  %v2182_v47 = vld [vmem:[#allocation2 + $0x50] sm:$0x1] }
 0x105   : > { %2044 = vrot.lane.b32.xlu0 %v1976_v6, %s5376_s9  ;;  %v3381_v6 = vshll.u32 %v3266_v59, 16  ;;  %v3360_v11 = vor.u32 %v3359_v1, %v3356_v0  ;;  %v3931_v48 = vsel %vm5878_vm13, %v5032_v38, %v3930_v36  ;;  %v1647_v59 = vld [vmem:[#allocation2 + $0x3c] sm:$0xe]  ;;  %v3939_v56 = vrot.slane %v3937_v44, 4  ;;  %v2178_v0 = vld [vmem:[#allocation2 + $0x40] sm:$0xf] }
 0x106   : > { %v5003_v1 = vrot.slane %v1647_v59, 9 }
 0x107   : > { %2046 = vrot.lane.b32.xlu1 %v1977_v53, %s5376_s9  ;;  %v1548_v22 = vpop.permute.xlu0 %1547  ;;  %v3391_v53 = vshrl.u32 %v3267_v58, 16  ;;  %v3383_v54 = vrot.slane %v3381_v6, 5  ;;  %v3361_v21 = vrot.slane %v3360_v11, 4  ;;  %v1768_v58 = vrot.slane %v1648_v46, 5  ;;  %v2739_v46 = vld [vmem:[#allocation2 + $0x40] sm:$0xf] }
 0x108   : > { %1622 = vst.msk [vmem:[#allocation3 + $0x58] sm:$0xf] %vm1599_vm14, %v1548_v22  ;;  %v1771_v11 = vrot.slane %v1649_v4, 5  ;;  %v2740_v4 = vld [vmem:[#allocation2 + $0x44] sm:$0x1] }
 0x109   : > { %2048 = vrot.lane.b32.xlu0 %v1978_v13, %s5376_s9  ;;  %v1550_v25 = vpop.permute.xlu1 %1549  ;;  %v3069_v13 = vld [vmem:[#allocation2 + $0x34] sm:$0xf]  ;;  %v3393_v17 = vrot.slane %v3391_v53, 4  ;;  %v3384_v22 = vor.u32 %v3383_v54, %v3380_v60  ;;  %v3366_v29 = vsel %vm5511_vm7, %v3361_v21, %v3365_v61  ;;  %v2180_v53 = vld [vmem:[#allocation2 + $0x48] sm:$0xf]  ;;  %v2323_v60 = vshrl.u32 %v2178_v0, 16 }
 0x10a   : > { %1623 = vst.msk [vmem:[#allocation3 + $0x5c] sm:$0xf] %vm1599_vm14, %v1550_v25  ;;  %v3375_v25 = vrot.slane %v3373_v15, 5 }
 0x10b   : > { %2050 = vrot.lane.b32.xlu1 %v1979_v16, %s5376_s9  ;;  %v3389_v16 = vrot.slane %v3387_v5, 5  ;;  %v3385_v30 = vrot.slane %v3384_v22, 4  ;;  %v2319_v5 = vshll.u32 %v2178_v0, 16  ;;  %v2325_v21 = vrot.slane %v2323_v60, 4  ;;  %v2742_v0 = vld [vmem:[#allocation2 + $0x4c] sm:$0xf] }
 0x10c   : > { %v3376_v32 = vsel %vm5511_vm7, %v3371_v24, %v3375_v25  ;;  %v2179_v25 = vld [vmem:[#allocation2 + $0x44] sm:$0x1]  ;;  %v2743_v60 = vld [vmem:[#allocation2 + $0x50] sm:$0x1] }
 0x10d   : > { %2605 = vrot.lane.b32.xlu0 %v2274_v23, %s5377_s10  ;;  %v3071_v23 = vld [vmem:[#allocation2 + $0x40] sm:$0xf]  ;;  %v3394_v26 = vor.u32 %v3393_v17, %v3389_v16  ;;  %v2337_v17 = vshll.u32 %v2180_v53, 16 }
 0x10f   : > { %2607 = vrot.lane.b32.xlu1 %v2284_v27, %s5377_s10  ;;  %v3397_v27 = vshll.u32 %v3268_v19, 16  ;;  %v2321_v19 = vrot.slane %v2319_v5, 5  ;;  %v2859_v5 = vrot.slane %v2742_v0, 5 }
 0x110   : > { %v1552_v41 = vpop.permute.xlu0 %1551 }
 0x111   : > { %2609 = vrot.lane.b32.xlu0 %v2298_v34, %s5377_s10  ;;  %1624 = vst.msk [vmem:[#allocation3 + $0x60] sm:$0xf] %vm1599_vm14, %v1552_v41  ;;  %v3395_v34 = vrot.slane %v3394_v26, 4  ;;  %v3399_v35 = vrot.slane %v3397_v27, 5  ;;  %v1980_v26 = vld [vmem:[#allocation2 + $0x3c] sm:$0xf] }
 0x112   : > { %v1554_v49 = vpop.permute.xlu1 %1553 }
 0x113   : > { %2611 = vrot.lane.b32.xlu1 %v2308_v2, %s5377_s10  ;;  %1625 = vst.msk [vmem:[#allocation3 + $0x64] sm:$0xf] %vm1599_vm14, %v1554_v49  ;;  %v3390_v2 = vsel %vm5511_vm7, %v3385_v30, %v3389_v16  ;;  %v3400_v41 = vsel %vm5511_vm7, %v3395_v34, %v3399_v35  ;;  %v5033_v49 = vrot.slane %v3827_v14, 9  ;;  %v2334_v16 = vshrl.u32 %v2180_v53, 16  ;;  %v1983_v14 = vld [vmem:[#allocation2 + $0x4c] sm:$0xf] }
 0x114   : > { %v2329_v34 = vshll.u32 %v2179_v25, 16  ;;  %v3269_v53 = vld [vmem:[#allocation2 + $0x48] sm:$0xf] }
 0x115   : > { %2942 = vrot.lane.b32.xlu0 %v2839_v43, %s5378_s11  ;;  %v3933_v43 = vrot.slane %v3826_v37, 5  ;;  %v3938_v6 = vsel %vm5878_vm13, %v5033_v49, %v3937_v44  ;;  %v2336_v28 = vrot.slane %v2334_v16, 4  ;;  %v2353_v44 = vshll.u32 %v2182_v47, 16 }
 0x116   : > { %v3405_v16 = vshll.u32 %v3269_v53, 16 }
 0x117   : > { %2944 = vrot.lane.b32.xlu1 %v2842_v50, %s5378_s11  ;;  %v2177_v50 = vld [vmem:[#allocation2 + $0x3c] sm:$0xf]  ;;  %v3934_v51 = vsel %vm5878_vm13, %v3932_v42, %v3933_v43  ;;  %v2331_v42 = vrot.slane %v2329_v34, 5 }
 0x118   : > { %v2313_v61 = vshll.u32 %v2177_v50, 16 }
 0x119   : > { %2946 = vrot.lane.b32.xlu0 %v2846_v57, %s5378_s11  ;;  %v3940_v57 = vrot.slane %v3829_v45, 5 }
 0x11a   : > { %v1556_v12 = vpop.permute.xlu0 %1555  ;;  %v2315_v15 = vrot.slane %v2313_v61, 5  ;;  %v2741_v61 = vld [vmem:[#allocation2 + $0x48] sm:$0xe] }
 0x11b   : > { %2948 = vrot.lane.b32.xlu1 %v2849_v7, %s5378_s11  ;;  %1626 = vst.msk [vmem:[#allocation3 + $0x68] sm:$0xf] %vm1599_vm14, %v1556_v12  ;;  %v2310_v7 = vshrl.u32 %v2177_v50, 16  ;;  %v3941_v8 = vsel %vm5878_vm13, %v3939_v56, %v3940_v57  ;;  %v1769_v12 = vsel %vm5878_vm13, %v5003_v1, %v1768_v58  ;;  %v2738_v50 = vld [vmem:[#allocation2 + $0x3c] sm:$0xe]  ;;  %v2355_v57 = vrot.slane %v2353_v44, 5 }
 0x11c   : > { %v1558_v18 = vpop.permute.xlu1 %1557 }
 0x11d   : > { %3136 = vrot.lane.b32.xlu0 %v3068_v9, %s5379_s12  ;;  %1627 = vst.msk [vmem:[#allocation3 + $0x6c] sm:$0xf] %vm1599_vm14, %v1558_v18  ;;  %v1770_v9 = vrot.slane %v1768_v58, 4  ;;  %v2312_v10 = vrot.slane %v2310_v7, 4  ;;  %v2852_v58 = vrot.slane %v2739_v46, 5  ;;  %v5018_v7 = vrot.slane %v2738_v50, 9 }
 0x11f   : > { %3138 = vrot.lane.b32.xlu1 %v3069_v13, %s5379_s12  ;;  %v2181_v13 = vld [vmem:[#allocation2 + $0x4c] sm:$0xf]  ;;  %v2316_v27 = vor.u32 %v2315_v15, %v2312_v10  ;;  %v2853_v10 = vsel %vm5878_vm13, %v5018_v7, %v2852_v58  ;;  %v3402_v15 = vshrl.u32 %v3269_v53, 16  ;;  %v3830_v53 = vld [vmem:[#allocation2 + $0x48] sm:$0xe] }
 0x120   : > { %v2343_v22 = vshll.u32 %v2181_v13, 16  ;;  %v3831_v7 = vld [vmem:[#allocation2 + $0x4c] sm:$0xf] }
 0x121   : > { %3140 = vrot.lane.b32.xlu0 %v3070_v20, %s5379_s12  ;;  %v1772_v20 = vsel %vm5878_vm13, %v1770_v9, %v1771_v11  ;;  %v2317_v38 = vrot.slane %v2316_v27, 4  ;;  %v2854_v9 = vrot.slane %v2852_v58, 4  ;;  %v2855_v11 = vrot.slane %v2740_v4, 5 }
 0x122   : > { %v2345_v35 = vrot.slane %v2343_v22, 5  ;;  %v3404_v27 = vrot.slane %v3402_v15, 4  ;;  %v5034_v15 = vrot.slane %v3830_v53, 9 }
 0x123   : > { %3142 = vrot.lane.b32.xlu1 %v3071_v23, %s5379_s12  ;;  %v2347_v23 = vshrl.u32 %v2181_v13, 16  ;;  %v3270_v13 = vld [vmem:[#allocation2 + $0x4c] sm:$0xf] }
 0x124   : > { %v3411_v22 = vshll.u32 %v3270_v13, 16 }
 0x125   : > { %3697 = vrot.lane.b32.xlu0 %v3366_v29, %s5380_s13  ;;  %v2339_v29 = vrot.slane %v2337_v17, 5  ;;  %v2349_v36 = vrot.slane %v2347_v23, 4  ;;  %v3415_v23 = vshrl.u32 %v3270_v13, 16  ;;  %v3834_v13 = vld [vmem:[#allocation2 + $0x58] sm:$0xf] }
 0x126   : > { %v1560_v39 = vpop.permute.xlu0 %1559  ;;  %v3413_v34 = vrot.slane %v3411_v22, 5 }
 0x127   : > { %3699 = vrot.lane.b32.xlu1 %v3376_v32, %s5380_s13  ;;  %v1562_v40 = vpop.permute.xlu1 %1561  ;;  %1628 = vst.msk [vmem:[#allocation3 + $0x70] sm:$0xf] %vm1599_vm14, %v1560_v39  ;;  %v2326_v32 = vor.u32 %v2325_v21, %v2321_v19  ;;  %v2340_v39 = vor.u32 %v2339_v29, %v2336_v28  ;;  %v2350_v43 = vor.u32 %v2349_v36, %v2345_v35  ;;  %v3407_v28 = vrot.slane %v3405_v16, 5 }
 0x128   : > { %1629 = vst.msk [vmem:[#allocation3 + $0x74] sm:$0xf] %vm1599_vm14, %v1562_v40  ;;  %v2856_v21 = vsel %vm5878_vm13, %v2854_v9, %v2855_v11 }
 0x129   : > { %3701 = vrot.lane.b32.xlu0 %v3390_v2, %s5380_s13  ;;  %v1982_v2 = vld [vmem:[#allocation2 + $0x48] sm:$0xf]  ;;  %v2341_v49 = vrot.slane %v2340_v39, 4  ;;  %v2351_v56 = vrot.slane %v2350_v43, 4  ;;  %v3408_v39 = vor.u32 %v3407_v28, %v3404_v27 }
 0x12a   : > { %v1650_v28 = vld [vmem:[#allocation2 + $0x48] sm:$0xe] }
 0x12b   : > { %3703 = vrot.lane.b32.xlu1 %v3400_v41, %s5380_s13  ;;  %v2327_v41 = vrot.slane %v2326_v32, 4  ;;  %v3409_v50 = vrot.slane %v3408_v39, 4 }
 0x12d   : > { %4034 = vrot.lane.b32.xlu0 %v3931_v48, %s5381_s14  ;;  %v2322_v48 = vsel %vm5511_vm7, %v2317_v38, %v2321_v19  ;;  %v2862_v19 = vrot.slane %v2743_v60, 5  ;;  %v3072_v38 = vld [vmem:[#allocation2 + $0x48] sm:$0xf]  ;;  %v3944_v60 = vrot.slane %v3831_v7, 5  ;;  %v2187_v7 = vld [vmem:[#allocation2 + $0x64] sm:$0xf] }
 0x12f   : > { %4036 = vrot.lane.b32.xlu1 %v3934_v51, %s5381_s14  ;;  %v1564_v52 = vpop.permute.xlu0 %1563  ;;  %v2332_v51 = vsel %vm5511_vm7, %v2327_v41, %v2331_v42  ;;  %v3073_v42 = vld [vmem:[#allocation2 + $0x4c] sm:$0xf] }
 0x130   : > { %1630 = vst.msk [vmem:[#allocation3 + $0x78] sm:$0xf] %vm1599_vm14, %v1564_v52 }
 0x131   : > { %v1566_v54 = vpop.permute.xlu1 %1565  ;;  %4038 = vrot.lane.b32.xlu0 %v3938_v6, %s5381_s14  ;;  %v2346_v6 = vsel %vm5511_vm7, %v2341_v49, %v2345_v35  ;;  %v3417_v35 = vrot.slane %v3415_v23, 4  ;;  %v3274_v49 = vld [vmem:[#allocation2 + $0x5c] sm:$0x1] }
 0x132   : > { %1631 = vst.msk [vmem:[#allocation3 + $0x7c] sm:$0xf] %vm1599_vm14, %v1566_v54  ;;  %v3445_v4 = vshll.u32 %v3274_v49, 16  ;;  %v3835_v23 = vld [vmem:[#allocation2 + $0x5c] sm:$0x1]  ;;  %vm4287_vm14 = vcmask 293888  }
 0x133   : > { %4040 = vrot.lane.b32.xlu1 %v3941_v8, %s5381_s14  ;;  %v1844_v18 = vpop.permute.xlu0 %1843  ;;  %v2356_v8 = vsel %vm5511_vm7, %v2351_v56, %v2355_v57  ;;  %v3418_v43 = vor.u32 %v3417_v35, %v3413_v34  ;;  %v3075_v57 = vld [vmem:[#allocation2 + $0x58] sm:$0xf] }
 0x134   : > { %1940 = vst.msk [vmem:[#allocation3] sm:$0xf] %vm1939_vm2, %v1844_v18  ;;  %v2861_v18 = vrot.slane %v2859_v5, 4  ;;  %v3447_v11 = vrot.slane %v3445_v4, 5 }
 0x135   : > { %v1846_v24 = vpop.permute.xlu1 %1845  ;;  %1863 = vrot.lane.b32.xlu0 %v1769_v12, %s5375_s8  ;;  %v5019_v12 = vrot.slane %v2741_v61, 9  ;;  %v3419_v58 = vrot.slane %v3418_v43, 4  ;;  %v3414_v61 = vsel %vm5511_vm7, %v3409_v50, %v3413_v34  ;;  %v1654_v34 = vld [vmem:[#allocation2 + $0x58] sm:$0xf]  ;;  %v1655_v43 = vld [vmem:[#allocation2 + $0x5c] sm:$0x1] }
 0x136   : > { %1941 = vst.msk [vmem:[#allocation3 + $0x4] sm:$0xf] %vm1939_vm2, %v1846_v24  ;;  %v2863_v32 = vsel %vm5878_vm13, %v2861_v18, %v2862_v19  ;;  %v3946_v19 = vrot.slane %v3944_v60, 4  ;;  %v1782_v39 = vrot.slane %v1654_v34, 5 }
 0x137   : > { %1865 = vrot.lane.b32.xlu1 %v1772_v20, %s5375_s8  ;;  %v1848_v30 = vpop.permute.xlu0 %1847  ;;  %v3272_v20 = vld [vmem:[#allocation2 + $0x54] sm:$0xf]  ;;  %v2860_v25 = vsel %vm5878_vm13, %v5019_v12, %v2859_v5  ;;  %v3832_v12 = vld [vmem:[#allocation2 + $0x50] sm:$0x1] }
 0x138   : > { %1942 = vst.msk [vmem:[#allocation3 + $0x8] sm:$0xf] %vm1939_vm2, %v1848_v30  ;;  %v3426_v29 = vshrl.u32 %v3272_v20, 16  ;;  %v3429_v30 = vshll.u32 %v3272_v20, 16  ;;  %v3947_v20 = vrot.slane %v3832_v12, 5  ;;  %v2395_v12 = vshrl.u32 %v2187_v7, 16 }
 0x139   : > { %v1850_v37 = vpop.permute.xlu1 %1849  ;;  %2052 = vrot.lane.b32.xlu0 %v1980_v26, %s5376_s9  ;;  %v3273_v26 = vld [vmem:[#allocation2 + $0x58] sm:$0xf] }
 0x13a   : > { %1943 = vst.msk [vmem:[#allocation3 + $0xc] sm:$0xf] %vm1939_vm2, %v1850_v37  ;;  %v3435_v36 = vshll.u32 %v3273_v26, 16  ;;  %v3439_v37 = vshrl.u32 %v3273_v26, 16 }
 0x13b   : > { %2054 = vrot.lane.b32.xlu1 %v1981_v31, %s5376_s9  ;;  %v1852_v40 = vpop.permute.xlu0 %1851 }
 0x13c   : > { %1944 = vst.msk [vmem:[#allocation3 + $0x10] sm:$0xf] %vm1939_vm2, %v1852_v40  ;;  %v3428_v40 = vrot.slane %v3426_v29, 4  ;;  %v3441_v46 = vrot.slane %v3439_v37, 4  ;;  %v3948_v29 = vsel %vm5878_vm13, %v3946_v19, %v3947_v20  ;;  %v1985_v20 = vld [vmem:[#allocation2 + $0x58] sm:$0xf] }
 0x13d   : > { %v1854_v45 = vpop.permute.xlu1 %1853  ;;  %2056 = vrot.lane.b32.xlu0 %v1982_v2, %s5376_s9  ;;  %v3271_v2 = vld [vmem:[#allocation2 + $0x50] sm:$0x1] }
 0x13e   : > { %1945 = vst.msk [vmem:[#allocation3 + $0x14] sm:$0xf] %vm1939_vm2, %v1854_v45  ;;  %v3421_v44 = vshll.u32 %v3271_v2, 16  ;;  %v3437_v45 = vrot.slane %v3435_v36, 5  ;;  %v1652_v36 = vld [vmem:[#allocation2 + $0x50] sm:$0x1] }
 0x13f   : > { %2058 = vrot.lane.b32.xlu1 %v1983_v14, %s5376_s9  ;;  %v1856_v59 = vpop.permute.xlu0 %1855  ;;  %v3431_v14 = vrot.slane %v3429_v30, 5  ;;  %v1653_v2 = vld [vmem:[#allocation2 + $0x54] sm:$0xe] }
 0x140   : > { %1946 = vst.msk [vmem:[#allocation3 + $0x18] sm:$0xf] %vm1939_vm2, %v1856_v59  ;;  %v3074_v59 = vld [vmem:[#allocation2 + $0x54] sm:$0xf]  ;;  %v3423_v0 = vrot.slane %v3421_v44, 5 }
 0x141   : > { %v1858_v1 = vpop.permute.xlu1 %1857  ;;  %2613 = vrot.lane.b32.xlu0 %v2322_v48, %s5377_s10 }
 0x142   : > { %1947 = vst.msk [vmem:[#allocation3 + $0x1c] sm:$0xf] %vm1939_vm2, %v1858_v1  ;;  %v3442_v1 = vor.u32 %v3441_v46, %v3437_v45  ;;  %v2184_v46 = vld [vmem:[#allocation2 + $0x58] sm:$0xf] }
 0x143   : > { %2615 = vrot.lane.b32.xlu1 %v2332_v51, %s5377_s10  ;;  %v1860_v52 = vpop.permute.xlu0 %1859  ;;  %v3432_v51 = vor.u32 %v3431_v14, %v3428_v40  ;;  %v2183_v40 = vld [vmem:[#allocation2 + $0x54] sm:$0xf] }
 0x144   : > { %1948 = vst.msk [vmem:[#allocation3 + $0x20] sm:$0xf] %vm1939_vm2, %v1860_v52  ;;  %v3443_v9 = vrot.slane %v3442_v1, 4  ;;  %v2358_v49 = vshrl.u32 %v2183_v40, 16  ;;  %v2371_v1 = vshrl.u32 %v2184_v46, 16 }
 0x145   : > { %v1862_v54 = vpop.permute.xlu1 %1861  ;;  %2617 = vrot.lane.b32.xlu0 %v2346_v6, %s5377_s10  ;;  %v3433_v52 = vrot.slane %v3432_v51, 4  ;;  %v1784_v51 = vrot.slane %v1782_v39, 4 }
 0x146   : > { %1949 = vst.msk [vmem:[#allocation3 + $0x24] sm:$0xf] %vm1939_vm2, %v1862_v54  ;;  %v3448_v18 = vsel %vm5511_vm7, %v3443_v9, %v3447_v11 }
 0x147   : > { %2619 = vrot.lane.b32.xlu1 %v2356_v8, %s5377_s10  ;;  %v2037_v17 = vpop.permute.xlu0 %2036  ;;  %v3424_v8 = vsel %vm5511_vm7, %v3419_v58, %v3423_v0  ;;  %v2367_v0 = vshll.u32 %v2184_v46, 16 }
 0x148   : > { %2133 = vst.msk [vmem:[#allocation3] sm:$0xf] %vm2132_vm3, %v2037_v17  ;;  %v3833_v17 = vld [vmem:[#allocation2 + $0x54] sm:$0xe] }
 0x149   : > { %v2039_v24 = vpop.permute.xlu1 %2038  ;;  %2950 = vrot.lane.b32.xlu0 %v2853_v10, %s5378_s11  ;;  %v3438_v10 = vsel %vm5511_vm7, %v3433_v52, %v3437_v45  ;;  %v5035_v26 = vrot.slane %v3833_v17, 9  ;;  %v5005_v45 = vrot.slane %v1653_v2, 9  ;;  %v2369_v11 = vrot.slane %v2367_v0, 5 }
 0x14a   : > { %2134 = vst.msk [vmem:[#allocation3 + $0x4] sm:$0xf] %vm2132_vm3, %v2039_v24  ;;  %v1651_v24 = vld [vmem:[#allocation2 + $0x4c] sm:$0xf] }
 0x14b   : > { %2952 = vrot.lane.b32.xlu1 %v2856_v21, %s5378_s11  ;;  %v2041_v31 = vpop.permute.xlu0 %2040  ;;  %v3951_v21 = vrot.slane %v3834_v13, 5 }
 0x14c   : > { %2135 = vst.msk [vmem:[#allocation3 + $0x8] sm:$0xf] %vm2132_vm3, %v2041_v31  ;;  %v3954_v31 = vrot.slane %v3835_v23, 5 }
 0x14d   : > { %v2043_v47 = vpop.permute.xlu1 %2042  ;;  %2954 = vrot.lane.b32.xlu0 %v2860_v25, %s5378_s11  ;;  %v3945_v25 = vsel %vm5878_vm13, %v5034_v15, %v3944_v60  ;;  %v3953_v30 = vrot.slane %v3951_v21, 4  ;;  %v3952_v37 = vsel %vm5878_vm13, %v5035_v26, %v3951_v21  ;;  %v2373_v60 = vrot.slane %v2371_v1, 4  ;;  %v1984_v15 = vld [vmem:[#allocation2 + $0x54] sm:$0xf]  ;;  %v2188_v26 = vld [vmem:[#allocation2 + $0x68] sm:$0x1] }
 0x14e   : > { %2136 = vst.msk [vmem:[#allocation3 + $0xc] sm:$0xf] %vm2132_vm3, %v2043_v47  ;;  %v5004_v47 = vrot.slane %v1650_v28, 9 }
 0x14f   : > { %2956 = vrot.lane.b32.xlu1 %v2863_v32, %s5378_s11  ;;  %v2598_v41 = vpop.permute.xlu0 %2597  ;;  %v1775_v32 = vrot.slane %v1651_v24, 5  ;;  %v3955_v14 = vsel %vm5878_vm13, %v3953_v30, %v3954_v31  ;;  %v2374_v21 = vor.u32 %v2373_v60, %v2369_v11  ;;  %v2397_v24 = vrot.slane %v2395_v12, 4  ;;  %v1987_v31 = vld [vmem:[#allocation2 + $0x64] sm:$0xf] }
 0x150   : > { %2694 = vst.msk [vmem:[#allocation3] sm:$0xf] %vm2693_vm4, %v2598_v41 }
 0x151   : > { %v2600_v48 = vpop.permute.xlu1 %2599  ;;  %3144 = vrot.lane.b32.xlu0 %v3072_v38, %s5379_s12  ;;  %v1777_v41 = vrot.slane %v1775_v32, 4 }
 0x152   : > { %2695 = vst.msk [vmem:[#allocation3 + $0x4] sm:$0xf] %vm2693_vm4, %v2600_v48  ;;  %v1776_v48 = vsel %vm5878_vm13, %v5004_v47, %v1775_v32  ;;  %v2375_v32 = vrot.slane %v2374_v21, 4  ;;  %v2745_v47 = vld [vmem:[#allocation2 + $0x58] sm:$0xf] }
 0x153   : > { %3146 = vrot.lane.b32.xlu1 %v3073_v42, %s5379_s12  ;;  %v2602_v56 = vpop.permute.xlu0 %2601  ;;  %v1778_v42 = vrot.slane %v1652_v36, 5  ;;  %v2401_v36 = vshll.u32 %v2188_v26, 16 }
 0x154   : > { %2696 = vst.msk [vmem:[#allocation3 + $0x8] sm:$0xf] %vm2693_vm4, %v2602_v56  ;;  %v1785_v56 = vrot.slane %v1655_v43, 5  ;;  %v2866_v43 = vrot.slane %v2745_v47, 5 }
 0x155   : > { %v2604_v6 = vpop.permute.xlu1 %2603  ;;  %3148 = vrot.lane.b32.xlu0 %v3074_v59, %s5379_s12  ;;  %v2361_v59 = vshll.u32 %v2183_v40, 16  ;;  %v1779_v58 = vsel %vm5878_vm13, %v1777_v41, %v1778_v42  ;;  %v2744_v40 = vld [vmem:[#allocation2 + $0x54] sm:$0xe]  ;;  %v2403_v42 = vrot.slane %v2401_v36, 5  ;;  %v3077_v36 = vld [vmem:[#allocation2 + $0x64] sm:$0xf] }
 0x156   : > { %2697 = vst.msk [vmem:[#allocation3 + $0xc] sm:$0xf] %vm2693_vm4, %v2604_v6  ;;  %v1783_v6 = vsel %vm5878_vm13, %v5005_v45, %v1782_v39  ;;  %v1786_v9 = vsel %vm5878_vm13, %v1784_v51, %v1785_v56  ;;  %v2868_v0 = vrot.slane %v2866_v43, 4 }
 0x157   : > { %3150 = vrot.lane.b32.xlu1 %v3075_v57, %s5379_s12  ;;  %v2935_v5 = vpop.permute.xlu0 %2934  ;;  %v2186_v57 = vld [vmem:[#allocation2 + $0x60] sm:$0xf]  ;;  %v2363_v52 = vrot.slane %v2361_v59, 5  ;;  %v5020_v59 = vrot.slane %v2744_v40, 9  ;;  %v3280_v40 = vld [vmem:[#allocation2 + $0x74] sm:$0x1] }
 0x158   : > { %3031 = vst.msk [vmem:[#allocation3] sm:$0xf] %vm3030_vm5, %v2935_v5  ;;  %v2382_v5 = vshrl.u32 %v2186_v57, 16  ;;  %v2385_v53 = vshll.u32 %v2186_v57, 16  ;;  %v3275_v57 = vld [vmem:[#allocation2 + $0x60] sm:$0xf] }
 0x159   : > { %v2937_v54 = vpop.permute.xlu1 %2936  ;;  %3705 = vrot.lane.b32.xlu0 %v3414_v61, %s5380_s13  ;;  %v2360_v61 = vrot.slane %v2358_v49, 4 }
 0x15a   : > { %3032 = vst.msk [vmem:[#allocation3 + $0x4] sm:$0xf] %vm3030_vm5, %v2937_v54  ;;  %v2391_v54 = vshll.u32 %v2187_v7, 16  ;;  %v2384_v17 = vrot.slane %v2382_v5, 4  ;;  %v2867_v5 = vsel %vm5878_vm13, %v5020_v59, %v2866_v43 }
 0x15b   : > { %3707 = vrot.lane.b32.xlu1 %v3424_v8, %s5380_s13  ;;  %v2939_v16 = vpop.permute.xlu0 %2938 }
 0x15c   : > { %3033 = vst.msk [vmem:[#allocation3 + $0x8] sm:$0xf] %vm3030_vm5, %v2939_v16  ;;  %v2364_v16 = vor.u32 %v2363_v52, %v2360_v61  ;;  %v2393_v23 = vrot.slane %v2391_v54, 5  ;;  %v3276_v52 = vld [vmem:[#allocation2 + $0x64] sm:$0xf] }
 0x15d   : > { %v2941_v22 = vpop.permute.xlu1 %2940  ;;  %3709 = vrot.lane.b32.xlu0 %v3438_v10, %s5380_s13  ;;  %v2185_v10 = vld [vmem:[#allocation2 + $0x5c] sm:$0x1]  ;;  %v3278_v54 = vld [vmem:[#allocation2 + $0x6c] sm:$0xf] }
 0x15e   : > { %3034 = vst.msk [vmem:[#allocation3 + $0xc] sm:$0xf] %vm3030_vm5, %v2941_v22  ;;  %v2377_v22 = vshll.u32 %v2185_v10, 16  ;;  %v2365_v28 = vrot.slane %v2364_v16, 4  ;;  %v3463_v10 = vshrl.u32 %v3276_v52, 16  ;;  %v3477_v21 = vshll.u32 %v3278_v54, 16 }
 0x15f   : > { %3711 = vrot.lane.b32.xlu1 %v3448_v18, %s5380_s13  ;;  %v3129_v27 = vpop.permute.xlu0 %3128  ;;  %v2387_v18 = vrot.slane %v2385_v53, 5  ;;  %v3450_v53 = vshrl.u32 %v3275_v57, 16 }
 0x160   : > { %3225 = vst.msk [vmem:[#allocation3] sm:$0xf] %vm3224_vm6, %v3129_v27  ;;  %v1986_v27 = vld [vmem:[#allocation2 + $0x60] sm:$0xf]  ;;  %v2379_v34 = vrot.slane %v2377_v22, 5  ;;  %v2370_v2 = vsel %vm5511_vm7, %v2365_v28, %v2369_v11 }
 0x161   : > { %v3131_v35 = vpop.permute.xlu1 %3130  ;;  %4042 = vrot.lane.b32.xlu0 %v3945_v25, %s5381_s14 }
 0x162   : > { %3226 = vst.msk [vmem:[#allocation3 + $0x4] sm:$0xf] %vm3224_vm6, %v3131_v35  ;;  %v2398_v35 = vor.u32 %v2397_v24, %v2393_v23 }
 0x163   : > { %4044 = vrot.lane.b32.xlu1 %v3948_v29, %s5381_s14  ;;  %v3133_v38 = vpop.permute.xlu0 %3132  ;;  %v2388_v29 = vor.u32 %v2387_v18, %v2384_v17  ;;  %v3279_v17 = vld [vmem:[#allocation2 + $0x70] sm:$0xf]  ;;  %v3452_v18 = vrot.slane %v3450_v53, 4 }
 0x164   : > { %3227 = vst.msk [vmem:[#allocation3 + $0x8] sm:$0xf] %vm3224_vm6, %v3133_v38  ;;  %v2399_v41 = vrot.slane %v2398_v35, 4  ;;  %v3483_v26 = vshll.u32 %v3279_v17, 16 }
 0x165   : > { %v3135_v44 = vpop.permute.xlu1 %3134  ;;  %4046 = vrot.lane.b32.xlu0 %v3952_v37, %s5381_s14  ;;  %v2389_v38 = vrot.slane %v2388_v29, 4  ;;  %v3277_v29 = vld [vmem:[#allocation2 + $0x68] sm:$0x1] }
 0x166   : > { %3228 = vst.msk [vmem:[#allocation3 + $0xc] sm:$0xf] %vm3224_vm6, %v3135_v44  ;;  %v2748_v44 = vld [vmem:[#allocation2 + $0x64] sm:$0xf]  ;;  %v3469_v47 = vshll.u32 %v3277_v29, 16 }
 0x167   : > { %4048 = vrot.lane.b32.xlu1 %v3955_v14, %s5381_s14  ;;  %v3690_v50 = vpop.permute.xlu0 %3689  ;;  %v2380_v14 = vsel %vm5511_vm7, %v2375_v32, %v2379_v34  ;;  %v2394_v49 = vsel %vm5511_vm7, %v2389_v38, %v2393_v23  ;;  %v2873_v56 = vrot.slane %v2748_v44, 5  ;;  %v3479_v34 = vrot.slane %v3477_v21, 5  ;;  %v3079_v44 = vld [vmem:[#allocation2 + $0x70] sm:$0xf]  ;;  %v1659_v29 = vld [vmem:[#allocation2 + $0x6c] sm:$0xe] }
 0x168   : > { %3786 = vst.msk [vmem:[#allocation3] sm:$0xf] %vm3785_vm11, %v3690_v50  ;;  %v2747_v50 = vld [vmem:[#allocation2 + $0x60] sm:$0xe] }
 0x169   : > { %v3692_v4 = vpop.permute.xlu1 %3691  ;;  %1867 = vrot.lane.b32.xlu0 %v1776_v48, %s5375_s8  ;;  %v2746_v48 = vld [vmem:[#allocation2 + $0x5c] sm:$0x1]  ;;  %v5021_v61 = vrot.slane %v2747_v50, 9  ;;  %v2875_v11 = vrot.slane %v2873_v56, 4  ;;  %v3837_v50 = vld [vmem:[#allocation2 + $0x64] sm:$0xf] }
 0x16a   : > { %3787 = vst.msk [vmem:[#allocation3 + $0x4] sm:$0xf] %vm3785_vm11, %v3692_v4  ;;  %v2869_v1 = vrot.slane %v2746_v48, 5  ;;  %v2749_v4 = vld [vmem:[#allocation2 + $0x68] sm:$0x1] }
 0x16b   : > { %1869 = vrot.lane.b32.xlu1 %v1779_v58, %s5375_s8  ;;  %v3694_v8 = vpop.permute.xlu0 %3693  ;;  %v2404_v58 = vsel %vm5511_vm7, %v2399_v41, %v2403_v42  ;;  %v2876_v60 = vrot.slane %v2749_v4, 5  ;;  %v2874_v16 = vsel %vm5878_vm13, %v5021_v61, %v2873_v56  ;;  %v3838_v61 = vld [vmem:[#allocation2 + $0x68] sm:$0x1] }
 0x16c   : > { %3788 = vst.msk [vmem:[#allocation3 + $0x8] sm:$0xf] %vm3785_vm11, %v3694_v8  ;;  %v3453_v8 = vshll.u32 %v3275_v57, 16  ;;  %v2870_v12 = vsel %vm5878_vm13, %v2868_v0, %v2869_v1 }
 0x16d   : > { %v3696_v13 = vpop.permute.xlu1 %3695  ;;  %1871 = vrot.lane.b32.xlu0 %v1783_v6, %s5375_s8  ;;  %v2877_v23 = vsel %vm5878_vm13, %v2875_v11, %v2876_v60 }
 0x16e   : > { %3789 = vst.msk [vmem:[#allocation3 + $0xc] sm:$0xf] %vm3785_vm11, %v3696_v13  ;;  %v3459_v13 = vshll.u32 %v3276_v52, 16  ;;  %v3840_v52 = vld [vmem:[#allocation2 + $0x70] sm:$0xf] }
 0x16f   : > { %1873 = vrot.lane.b32.xlu1 %v1786_v9, %s5375_s8  ;;  %v4027_v19 = vpop.permute.xlu0 %4026 }
 0x170   : > { %4123 = vst.msk [vmem:[#allocation3] sm:$0xf] %vm4122_vm12, %v4027_v19  ;;  %v3455_v19 = vrot.slane %v3453_v8, 5  ;;  %v3461_v24 = vrot.slane %v3459_v13, 5 }
 0x171   : > { %v4029_v25 = vpop.permute.xlu1 %4028  ;;  %2060 = vrot.lane.b32.xlu0 %v1984_v15, %s5376_s9 }
 0x172   : > { %4124 = vst.msk [vmem:[#allocation3 + $0x4] sm:$0xf] %vm4122_vm12, %v4029_v25  ;;  %v3465_v25 = vrot.slane %v3463_v10, 4  ;;  %v3841_v10 = vld [vmem:[#allocation2 + $0x74] sm:$0x1] }
 0x173   : > { %2062 = vrot.lane.b32.xlu1 %v1985_v20, %s5376_s9  ;;  %v4031_v30 = vpop.permute.xlu0 %4030  ;;  %v3474_v20 = vshrl.u32 %v3278_v54, 16  ;;  %v3961_v54 = vrot.slane %v3838_v61, 5 }
 0x174   : > { %4125 = vst.msk [vmem:[#allocation3 + $0x8] sm:$0xf] %vm4122_vm12, %v4031_v30  ;;  %v3076_v30 = vld [vmem:[#allocation2 + $0x60] sm:$0xf] }
 0x175   : > { %v4033_v37 = vpop.permute.xlu1 %4032  ;;  %2064 = vrot.lane.b32.xlu0 %v1986_v27, %s5376_s9  ;;  %v3487_v27 = vshrl.u32 %v3279_v17, 16  ;;  %v3476_v32 = vrot.slane %v3474_v20, 4 }
 0x176   : > { %4126 = vst.msk [vmem:[#allocation3 + $0xc] sm:$0xf] %vm4122_vm12, %v4033_v37  ;;  %v3466_v37 = vor.u32 %v3465_v25, %v3461_v24 }
 0x177   : > { %2066 = vrot.lane.b32.xlu1 %v1987_v31, %s5376_s9  ;;  %v2045_v39 = vpop.permute.xlu0 %2044  ;;  %v3456_v31 = vor.u32 %v3455_v19, %v3452_v18  ;;  %v3489_v38 = vrot.slane %v3487_v27, 4  ;;  %v3480_v42 = vor.u32 %v3479_v34, %v3476_v32  ;;  %v1656_v19 = vld [vmem:[#allocation2 + $0x60] sm:$0xe]  ;;  %v2189_v32 = vld [vmem:[#allocation2 + $0x6c] sm:$0xf] }
 0x178   : > { %2137 = vst.msk [vmem:[#allocation3 + $0x10] sm:$0xf] %vm2132_vm3, %v2045_v39 }
 0x179   : > { %v2047_v45 = vpop.permute.xlu1 %2046  ;;  %2621 = vrot.lane.b32.xlu0 %v2370_v2, %s5377_s10  ;;  %v5345_v46 = vld [vmem:[#allocation3] sm:$0xff]   ;;  %v3485_v2 = vrot.slane %v3483_v26, 5  ;;  %v3457_v41 = vrot.slane %v3456_v31, 4  ;;  %v3481_v56 = vrot.slane %v3480_v42, 4  ;;  %v1658_v26 = vld [vmem:[#allocation2 + $0x68] sm:$0x1] }
 0x17a   : > { %2138 = vst.msk [vmem:[#allocation3 + $0x14] sm:$0xf] %vm2132_vm3, %v2047_v45  ;;  %5285 = vmatprep.mubr.msk.bf16.mxu0 %vm4287_vm14, %v5345_v46  ;;  %v3467_v45 = vrot.slane %v3466_v37, 4  ;;  %v3471_v46 = vrot.slane %v3469_v47, 5  ;;  %v1661_v37 = vld [vmem:[#allocation2 + $0x74] sm:$0x1] }
 0x17b   : > { %2623 = vrot.lane.b32.xlu1 %v2380_v14, %s5377_s10  ;;  %v2049_v51 = vpop.permute.xlu0 %2048  ;;  %v3078_v14 = vld [vmem:[#allocation2 + $0x6c] sm:$0xf]  ;;  %v3490_v48 = vor.u32 %v3489_v38, %v3485_v2  ;;  %v2190_v38 = vld [vmem:[#allocation2 + $0x70] sm:$0xf] }
 0x17c   : > { %2139 = vst.msk [vmem:[#allocation3 + $0x18] sm:$0xf] %vm2132_vm3, %v2049_v51  ;;  %v3462_v51 = vsel %vm5511_vm7, %v3457_v41, %v3461_v24  ;;  %v3472_v0 = vsel %vm5511_vm7, %v3467_v45, %v3471_v46  ;;  %v1660_v24 = vld [vmem:[#allocation2 + $0x70] sm:$0xf]  ;;  %v2415_v46 = vshll.u32 %v2190_v38, 16 }
 0x17d   : > { %v2051_v6 = vpop.permute.xlu1 %2050  ;;  %2625 = vrot.lane.b32.xlu0 %v2394_v49, %s5377_s10  ;;  %v5346_v7 = vld [vmem:[#allocation3 + $0x8] sm:$0xff]   ;;  %v3493_v49 = vshll.u32 %v3280_v40, 16  ;;  %v3491_v1 = vrot.slane %v3490_v48, 4  ;;  %v1796_v31 = vrot.slane %v1660_v24, 5  ;;  %v2406_v40 = vshrl.u32 %v2189_v32, 16 }
 0x17e   : > { %2140 = vst.msk [vmem:[#allocation3 + $0x1c] sm:$0xf] %vm2132_vm3, %v2051_v6  ;;  %5286 = vmatmul.mubr.msk.bf16.vlgmr.msra.gmra.mxu0 %vm4287_vm14, %v5346_v7  ;;  %v3958_v6 = vrot.slane %v3837_v50, 5  ;;  %v2419_v48 = vshrl.u32 %v2190_v38, 16  ;;  %v2193_v50 = vld [vmem:[#allocation2 + $0x7c] sm:$0xf] }
 0x17f   : > { %2627 = vrot.lane.b32.xlu1 %v2404_v58, %s5377_s10  ;;  %v2606_v9 = vpop.permute.xlu0 %2605  ;;  %v3836_v58 = vld [vmem:[#allocation2 + $0x60] sm:$0xe]  ;;  %v3495_v4 = vrot.slane %v3493_v49, 5  ;;  %v1798_v42 = vrot.slane %v1796_v31, 4  ;;  %v2443_v61 = vshrl.u32 %v2193_v50, 16 }
 0x180   : > { %2698 = vst.msk [vmem:[#allocation3 + $0x10] sm:$0xf] %vm2693_vm4, %v2606_v9  ;;  %v5036_v53 = vrot.slane %v3836_v58, 9  ;;  %v3839_v9 = vld [vmem:[#allocation2 + $0x6c] sm:$0xe]  ;;  %v3960_v60 = vrot.slane %v3958_v6, 4 }
 0x181   : > { %v2608_v15 = vpop.permute.xlu1 %2607  ;;  %2958 = vrot.lane.b32.xlu0 %v2867_v5, %s5378_s11  ;;  %v3486_v5 = vsel %vm5511_vm7, %v3481_v56, %v3485_v2  ;;  %v3496_v11 = vsel %vm5511_vm7, %v3491_v1, %v3495_v4  ;;  %v5037_v17 = vrot.slane %v3839_v9, 9  ;;  %v5007_v2 = vrot.slane %v1659_v29, 9 }
 0x182   : > { %2699 = vst.msk [vmem:[#allocation3 + $0x14] sm:$0xf] %vm2693_vm4, %v2608_v15  ;;  %v1657_v15 = vld [vmem:[#allocation2 + $0x64] sm:$0xf]  ;;  %v3962_v20 = vsel %vm5878_vm13, %v3960_v60, %v3961_v54  ;;  %v2417_v4 = vrot.slane %v2415_v46, 5 }
 0x183   : > { %2960 = vrot.lane.b32.xlu1 %v2870_v12, %s5378_s11  ;;  %v2610_v22 = vpop.permute.xlu0 %2609  ;;  %v3965_v12 = vrot.slane %v3840_v52, 5  ;;  %v1989_v54 = vld [vmem:[#allocation2 + $0x70] sm:$0xf] }
 0x184   : > { %2700 = vst.msk [vmem:[#allocation3 + $0x18] sm:$0xf] %vm2693_vm4, %v2610_v22  ;;  %v3968_v22 = vrot.slane %v3841_v10, 5 }
 0x185   : > { %v2612_v28 = vpop.permute.xlu1 %2611  ;;  %2962 = vrot.lane.b32.xlu0 %v2874_v16, %s5378_s11  ;;  %v3959_v16 = vsel %vm5878_vm13, %v5036_v53, %v3958_v6  ;;  %v3967_v21 = vrot.slane %v3965_v12, 4  ;;  %v3966_v27 = vsel %vm5878_vm13, %v5037_v17, %v3965_v12  ;;  %v2421_v6 = vrot.slane %v2419_v48, 4  ;;  %v1988_v53 = vld [vmem:[#allocation2 + $0x6c] sm:$0xf] }
 0x186   : > { %2701 = vst.msk [vmem:[#allocation3 + $0x1c] sm:$0xf] %vm2693_vm4, %v2612_v28  ;;  %v5006_v28 = vrot.slane %v1656_v19, 9  ;;  %v1990_v19 = vld [vmem:[#allocation2 + $0x78] sm:$0xf] }
 0x187   : > { %2964 = vrot.lane.b32.xlu1 %v2877_v23, %s5378_s11  ;;  %v2943_v35 = vpop.permute.xlu0 %2942  ;;  %v1789_v23 = vrot.slane %v1657_v15, 5  ;;  %v3969_v34 = vsel %vm5878_vm13, %v3967_v21, %v3968_v22  ;;  %v2422_v12 = vor.u32 %v2421_v6, %v2417_v4  ;;  %v2445_v15 = vrot.slane %v2443_v61, 4 }
 0x188   : > { %3035 = vst.msk [vmem:[#allocation3 + $0x10] sm:$0xf] %vm3030_vm5, %v2943_v35 }
 0x189   : > { %v2945_v39 = vpop.permute.xlu1 %2944  ;;  %3152 = vrot.lane.b32.xlu0 %v3076_v30, %s5379_s12  ;;  %v1791_v35 = vrot.slane %v1789_v23, 4  ;;  %v2423_v24 = vrot.slane %v2422_v12, 4 }
 0x18a   : > { %3036 = vst.msk [vmem:[#allocation3 + $0x14] sm:$0xf] %vm3030_vm5, %v2945_v39  ;;  %v1790_v39 = vsel %vm5878_vm13, %v5006_v28, %v1789_v23  ;;  %v1991_v23 = vld [vmem:[#allocation2 + $0x7c] sm:$0xf] }
 0x18b   : > { %3154 = vrot.lane.b32.xlu1 %v3077_v36, %s5379_s12  ;;  %v2947_v43 = vpop.permute.xlu0 %2946  ;;  %v1792_v36 = vrot.slane %v1658_v26, 5 }
 0x18c   : > { %3037 = vst.msk [vmem:[#allocation3 + $0x18] sm:$0xf] %vm3030_vm5, %v2947_v43  ;;  %v1799_v43 = vrot.slane %v1661_v37, 5 }
 0x18d   : > { %v2949_v59 = vpop.permute.xlu1 %2948  ;;  %3156 = vrot.lane.b32.xlu0 %v3078_v14, %s5379_s12  ;;  %v2409_v14 = vshll.u32 %v2189_v32, 16  ;;  %v1793_v45 = vsel %vm5878_vm13, %v1791_v35, %v1792_v36  ;;  %v2750_v35 = vld [vmem:[#allocation2 + $0x6c] sm:$0xe] }
 0x18e   : > { %3038 = vst.msk [vmem:[#allocation3 + $0x1c] sm:$0xf] %vm3030_vm5, %v2949_v59  ;;  %v1797_v59 = vsel %vm5878_vm13, %v5007_v2, %v1796_v31  ;;  %v1800_v1 = vsel %vm5878_vm13, %v1798_v42, %v1799_v43  ;;  %v2753_v42 = vld [vmem:[#allocation2 + $0x78] sm:$0xe] }
 0x18f   : > { %3158 = vrot.lane.b32.xlu1 %v3079_v44, %s5379_s12  ;;  %v3137_v57 = vpop.permute.xlu0 %3136  ;;  %v2192_v44 = vld [vmem:[#allocation2 + $0x78] sm:$0xf]  ;;  %v2411_v56 = vrot.slane %v2409_v14, 5 }
 0x190   : > { %3229 = vst.msk [vmem:[#allocation3 + $0x10] sm:$0xf] %vm3224_vm6, %v3137_v57  ;;  %v2430_v57 = vshrl.u32 %v2192_v44, 16  ;;  %v2433_v58 = vshll.u32 %v2192_v44, 16  ;;  %v3281_v44 = vld [vmem:[#allocation2 + $0x78] sm:$0xf] }
 0x191   : > { %v3139_v7 = vpop.permute.xlu1 %3138  ;;  %3713 = vrot.lane.b32.xlu0 %v3462_v51, %s5380_s13  ;;  %v2408_v51 = vrot.slane %v2406_v40, 4  ;;  %v2754_v40 = vld [vmem:[#allocation2 + $0x7c] sm:$0xf] }
 0x192   : > { %3230 = vst.msk [vmem:[#allocation3 + $0x14] sm:$0xf] %vm3224_vm6, %v3139_v7  ;;  %v2439_v7 = vshll.u32 %v2193_v50, 16  ;;  %v2432_v9 = vrot.slane %v2430_v57, 4 }
 0x193   : > { %3715 = vrot.lane.b32.xlu1 %v3472_v0, %s5380_s13  ;;  %v3141_v8 = vpop.permute.xlu0 %3140 }
 0x194   : > { %3231 = vst.msk [vmem:[#allocation3 + $0x18] sm:$0xf] %vm3224_vm6, %v3141_v8  ;;  %v2412_v8 = vor.u32 %v2411_v56, %v2408_v51  ;;  %v2441_v10 = vrot.slane %v2439_v7, 5  ;;  %v5023_v51 = vrot.slane %v2753_v42, 9  ;;  %v2755_v56 = vld [vmem:[#allocation2 + $0x80] sm:$0x1] }
 0x195   : > { %v3143_v13 = vpop.permute.xlu1 %3142  ;;  %3717 = vrot.lane.b32.xlu0 %v3486_v5, %s5380_s13  ;;  %v2191_v5 = vld [vmem:[#allocation2 + $0x74] sm:$0x1]  ;;  %v3284_v7 = vld [vmem:[#allocation2 + $0x84] sm:$0xf] }
 0x196   : > { %3232 = vst.msk [vmem:[#allocation3 + $0x1c] sm:$0xf] %vm3224_vm6, %v3143_v13  ;;  %v2425_v13 = vshll.u32 %v2191_v5, 16  ;;  %v2446_v26 = vor.u32 %v2445_v15, %v2441_v10  ;;  %v2890_v5 = vrot.slane %v2755_v56, 5  ;;  %v3525_v12 = vshll.u32 %v3284_v7, 16 }
 0x197   : > { %3719 = vrot.lane.b32.xlu1 %v3496_v11, %s5380_s13  ;;  %v3698_v18 = vpop.permute.xlu0 %3697  ;;  %v2435_v11 = vrot.slane %v2433_v58, 5  ;;  %v3498_v58 = vshrl.u32 %v3281_v44, 16  ;;  %v3843_v56 = vld [vmem:[#allocation2 + $0x7c] sm:$0xf] }
 0x198   : > { %3790 = vst.msk [vmem:[#allocation3 + $0x10] sm:$0xf] %vm3785_vm11, %v3698_v18  ;;  %v2194_v18 = vld [vmem:[#allocation2 + $0x80] sm:$0x1]  ;;  %v2447_v37 = vrot.slane %v2446_v26, 4 }
 0x199   : > { %v3700_v25 = vpop.permute.xlu1 %3699  ;;  %4050 = vrot.lane.b32.xlu0 %v3959_v16, %s5381_s14  ;;  %v2436_v21 = vor.u32 %v2435_v11, %v2432_v9  ;;  %v3285_v9 = vld [vmem:[#allocation2 + $0x88] sm:$0xf]  ;;  %v3500_v11 = vrot.slane %v3498_v58, 4 }
 0x19a   : > { %3791 = vst.msk [vmem:[#allocation3 + $0x14] sm:$0xf] %vm3785_vm11, %v3700_v25  ;;  %v2427_v25 = vrot.slane %v2425_v13, 5 }
 0x19b   : > { %4052 = vrot.lane.b32.xlu1 %v3962_v20, %s5381_s14  ;;  %v3702_v30 = vpop.permute.xlu0 %3701  ;;  %v2413_v20 = vrot.slane %v2412_v8, 4  ;;  %v2437_v32 = vrot.slane %v2436_v21, 4 }
 0x19c   : > { %3792 = vst.msk [vmem:[#allocation3 + $0x18] sm:$0xf] %vm3785_vm11, %v3702_v30  ;;  %v2751_v30 = vld [vmem:[#allocation2 + $0x70] sm:$0xf]  ;;  %v2428_v36 = vsel %vm5511_vm7, %v2423_v24, %v2427_v25  ;;  %v3080_v24 = vld [vmem:[#allocation2 + $0x78] sm:$0xf] }
 0x19d   : > { %v3704_v47 = vpop.permute.xlu1 %3703  ;;  %4054 = vrot.lane.b32.xlu0 %v3966_v27, %s5381_s14  ;;  %v2449_v27 = vshll.u32 %v2194_v18, 16  ;;  %v2418_v31 = vsel %vm5511_vm7, %v2413_v20, %v2417_v4  ;;  %v2880_v2 = vrot.slane %v2751_v30, 5  ;;  %v2442_v14 = vsel %vm5511_vm7, %v2437_v32, %v2441_v10  ;;  %v5259_v20 = vld [vmem:[%s5486_s23 + $0x78] sm:$0xff]  }
 0x19e   : > { %3793 = vst.msk [vmem:[#allocation3 + $0x1c] sm:$0xf] %vm3785_vm11, %v3704_v47  ;;  %v3531_v18 = vshll.u32 %v3285_v9, 16 }
 0x19f   : > { %4056 = vrot.lane.b32.xlu1 %v3969_v34, %s5381_s14  ;;  %v4035_v41 = vpop.permute.xlu0 %4034  ;;  %v2451_v47 = vrot.slane %v2449_v27, 5  ;;  %v2882_v46 = vrot.slane %v2880_v2, 4  ;;  %v3527_v27 = vrot.slane %v3525_v12, 5 }
 0x1a0   : > { %4127 = vst.msk [vmem:[#allocation3 + $0x10] sm:$0xf] %vm4122_vm12, %v4035_v41  ;;  %v5022_v41 = vrot.slane %v2750_v35, 9  ;;  %v6326_v35 = vrot.slane %v3531_v18, 5  ;;  %v3845_v18 = vld [vmem:[#allocation2 + $0x84] sm:$0xe] }
 0x1a1   : > { %v4037_v49 = vpop.permute.xlu1 %4036  ;;  %1875 = vrot.lane.b32.xlu0 %v1790_v39, %s5375_s8  ;;  %v2752_v39 = vld [vmem:[#allocation2 + $0x74] sm:$0x1] }
 0x1a2   : > { %4128 = vst.msk [vmem:[#allocation3 + $0x14] sm:$0xf] %vm4122_vm12, %v4037_v49  ;;  %v2883_v48 = vrot.slane %v2752_v39, 5  ;;  %v2887_v49 = vrot.slane %v2754_v40, 5  ;;  %v2881_v57 = vsel %vm5878_vm13, %v5022_v41, %v2880_v2  ;;  %v3286_v2 = vld [vmem:[#allocation2 + $0x8c] sm:$0x1] }
 0x1a3   : > { %1877 = vrot.lane.b32.xlu1 %v1793_v45, %s5375_s8  ;;  %v4039_v0 = vpop.permute.xlu0 %4038  ;;  %v2452_v45 = vsel %vm5511_vm7, %v2447_v37, %v2451_v47  ;;  %v3082_v40 = vld [vmem:[#allocation2 + $0x84] sm:$0xf] }
 0x1a4   : > { %4129 = vst.msk [vmem:[#allocation3 + $0x18] sm:$0xf] %vm4122_vm12, %v4039_v0  ;;  %v3501_v0 = vshll.u32 %v3281_v44, 16  ;;  %v2884_v61 = vsel %vm5878_vm13, %v2882_v46, %v2883_v48  ;;  %v2888_v8 = vsel %vm5878_vm13, %v5023_v51, %v2887_v49  ;;  %v3083_v48 = vld [vmem:[#allocation2 + $0x88] sm:$0xf] }
 0x1a5   : > { %v4041_v52 = vpop.permute.xlu1 %4040  ;;  %1879 = vrot.lane.b32.xlu0 %v1797_v59, %s5375_s8  ;;  %v3282_v59 = vld [vmem:[#allocation2 + $0x7c] sm:$0xf] }
 0x1a6   : > { %4130 = vst.msk [vmem:[#allocation3 + $0x1c] sm:$0xf] %vm4122_vm12, %v4041_v52  ;;  %v3507_v4 = vshll.u32 %v3282_v59, 16  ;;  %v3511_v6 = vshrl.u32 %v3282_v59, 16  ;;  %v2889_v52 = vrot.slane %v2887_v49, 4  ;;  %v3541_v59 = vshll.u32 %v3286_v2, 16 }
 0x1a7   : > { %1881 = vrot.lane.b32.xlu1 %v1800_v1, %s5375_s8  ;;  %v1864_v60 = vpop.permute.xlu0 %1863 }
 0x1a8   : > { %1950 = vst.msk [vmem:[#allocation3 + $0x28] sm:$0xf] %vm1939_vm2, %v1864_v60  ;;  %v3503_v60 = vrot.slane %v3501_v0, 5  ;;  %v6312_v10 = vrot.slane %v3507_v4, 5  ;;  %v3513_v15 = vrot.slane %v3511_v6, 4 }
 0x1a9   : > { %v1866_v16 = vpop.permute.xlu1 %1865  ;;  %2068 = vrot.lane.b32.xlu0 %v1988_v53, %s5376_s9  ;;  %v5347_v17 = vld [vmem:[#allocation3 + $0x10] sm:$0xff]  }
 0x1aa   : > { %1951 = vst.msk [vmem:[#allocation3 + $0x2c] sm:$0xf] %vm1939_vm2, %v1866_v16  ;;  %5289 = vmatprep.mubr.msk.bf16.mxu0 %vm4287_vm14, %v5347_v17  ;;  %v2891_v16 = vsel %vm5878_vm13, %v2889_v52, %v2890_v5  ;;  %v3283_v17 = vld [vmem:[#allocation2 + $0x80] sm:$0x1]  ;;  %v3504_v25 = vor.u32 %v3503_v60, %v3500_v11  ;;  %v3543_v5 = vrot.slane %v3541_v59, 5  ;;  %v1806_v59 = vrot.slane %v1664_v55, 5 }
 0x1ab   : > { %2070 = vrot.lane.b32.xlu1 %v1989_v54, %s5376_s9  ;;  %v2053_v22 = vpop.permute.xlu0 %2052  ;;  %v3522_v54 = vshrl.u32 %v3284_v7, 16  ;;  %v3517_v30 = vshll.u32 %v3283_v17, 16  ;;  %v3842_v7 = vld [vmem:[#allocation2 + $0x78] sm:$0xe]  ;;  %v3844_v60 = vld [vmem:[#allocation2 + $0x80] sm:$0x1] }
 0x1ac   : > { %2141 = vst.msk [vmem:[#allocation3 + $0x20] sm:$0xf] %vm2132_vm3, %v2053_v22  ;;  %v5243_v22 = vunpack.c.l.bf16 %v5259_v20 }
 0x1ad   : > { %v2055_v28 = vpop.permute.xlu1 %2054  ;;  %2072 = vrot.lane.b32.xlu0 %v1990_v19, %s5376_s9  ;;  %v5348_v29 = vld [vmem:[#allocation3 + $0x18] sm:$0xff]   ;;  %v3535_v19 = vshrl.u32 %v3285_v9, 16  ;;  %v3524_v26 = vrot.slane %v3522_v54, 4 }
 0x1ae   : > { %2142 = vst.msk [vmem:[#allocation3 + $0x24] sm:$0xf] %vm2132_vm3, %v2055_v28  ;;  %5290 = vmatmul.mubr.msk.bf16.gmra.mxu0 %vm4287_vm14, %v5348_v29  ;;  %v3514_v29 = vor.u32 %v3513_v15, %v6312_v10  ;;  %v5038_v15 = vrot.slane %v3842_v7, 9 }
 0x1af   : > { %2074 = vrot.lane.b32.xlu1 %v1991_v23, %s5376_s9  ;;  %v2057_v34 = vpop.permute.xlu0 %2056  ;;  %v5244_v23 = vunpack.c.h.bf16 %v5259_v20  ;;  %v3528_v41 = vor.u32 %v3527_v27, %v3524_v26 }
 0x1b0   : > { %2143 = vst.msk [vmem:[#allocation3 + $0x28] sm:$0xf] %vm2132_vm3, %v2057_v34  ;;  %v3081_v34 = vld [vmem:[#allocation2 + $0x7c] sm:$0xf]  ;;  %v3515_v44 = vrot.slane %v3514_v29, 4 }
 0x1b1   : > { %v2059_v38 = vpop.permute.xlu1 %2058  ;;  %2629 = vrot.lane.b32.xlu0 %v2418_v31, %s5377_s10  ;;  %v5363_v31 = vld [vmem:[%s7113_s1] ss:$0 sm:$0xff]  ;;  %v3529_v0 = vrot.slane %v3528_v41, 4  ;;  %v1663_v29 = vld [vmem:[#allocation2 + $0x7c] sm:$0xf] }
 0x1b2   : > { %2144 = vst.msk [vmem:[#allocation3 + $0x2c] sm:$0xf] %vm2132_vm3, %v2059_v38  ;;  %v338_v32 = vmul.f32 %v5363_v31, %v5243_v22  ;;  %v339_v37 = vmul.f32 %v5363_v31, %v5244_v23  ;;  %v5364_v38 = vld [vmem:[%s7114_s2] ss:$0 sm:$0xff] }
 0x1b3   : > { %2631 = vrot.lane.b32.xlu1 %v2428_v36, %s5377_s10  ;;  %v2614_v43 = vpop.permute.xlu0 %2613  ;;  %v3537_v36 = vrot.slane %v3535_v19, 4 }
 0x1b4   : > { %2702 = vst.msk [vmem:[#allocation3 + $0x20] sm:$0xf] %vm2693_vm4, %v2614_v43  ;;  %v377_v39 = vadd.f32 %v5364_v38, %v338_v32  ;;  %v378_v42 = vadd.f32 %v5364_v38, %v339_v37  ;;  %v5039_v32 = vrot.slane %v3845_v18, 9  ;;  %v1662_v37 = vld [vmem:[#allocation2 + $0x78] sm:$0xe]  ;;  %v1803_v38 = vrot.slane %v1663_v29, 5 }
 0x1b5   : > { %v2616_v50 = vpop.permute.xlu1 %2615  ;;  %2633 = vrot.lane.b32.xlu0 %v2442_v14, %s5377_s10  ;;  %v3505_v14 = vrot.slane %v3504_v25, 4  ;;  %v3538_v49 = vor.u32 %v3537_v36, %v6326_v35  ;;  %v997_v25 = vld [vmem:[#allocation2 + $0xc0] sm:$0xf] }
 0x1b6   : > { %2703 = vst.msk [vmem:[#allocation3 + $0x24] sm:$0xf] %vm2693_vm4, %v2616_v50  ;;  %v409_v46 = vmax.f32 %v377_v39, 0.0  ;;  %v410_v50 = vmax.f32 %v378_v42, 0.0  ;;  %v1666_v39 = vld [vmem:[#allocation2 + $0x88] sm:$0xf] }
 0x1b7   : > { %2635 = vrot.lane.b32.xlu1 %v2452_v45, %s5377_s10  ;;  %v2618_v1 = vpop.permute.xlu0 %2617  ;;  %v3519_v45 = vrot.slane %v3517_v30, 5  ;;  %v3510_v58 = vsel %vm5511_vm7, %v3505_v14, %v6312_v10  ;;  %v3539_v52 = vrot.slane %v3538_v49, 4  ;;  %v3534_v10 = vsel %vm5511_vm7, %v3529_v0, %v6326_v35 }
 0x1b8   : > { %2704 = vst.msk [vmem:[#allocation3 + $0x28] sm:$0xf] %vm2693_vm4, %v2618_v1  ;;  %v5148_v1 = vpack.c.bf16 %v410_v50, %v410_v50  ;;  %v1805_v3 = vrot.slane %v1803_v38, 4  ;;  %v1667_v50 = vld [vmem:[#allocation2 + $0x8c] sm:$0x1] }
 0x1b9   : > { %v2620_v53 = vpop.permute.xlu1 %2619  ;;  %2966 = vrot.lane.b32.xlu0 %v2881_v57, %s5378_s11  ;;  %v5147_v57 = vpack.c.bf16 %v409_v46, %v409_v46  ;;  %v3520_v6 = vsel %vm5511_vm7, %v3515_v44, %v3519_v45  ;;  %v3544_v22 = vsel %vm5511_vm7, %v3539_v52, %v3543_v5  ;;  %v1665_v44 = vld [vmem:[#allocation2 + $0x84] sm:$0xe]  ;;  %v1810_v46 = vrot.slane %v1666_v39, 5 }
 0x1ba   : > { %2705 = vst.msk [vmem:[#allocation3 + $0x2c] sm:$0xf] %vm2693_vm4, %v2620_v53  ;;  %v3972_v53 = vrot.slane %v3843_v56, 5  ;;  %v830_v9 = vshrl.u32 %v5148_v1, 16  ;;  %v5009_v56 = vrot.slane %v1665_v44, 9  ;;  %v1813_v7 = vrot.slane %v1667_v50, 5 }
 0x1bb   : > { %2968 = vrot.lane.b32.xlu1 %v2884_v61, %s5378_s11  ;;  %v2951_v13 = vpop.permute.xlu0 %2950  ;;  %v822_v61 = vshrl.u32 %v5147_v57, 16  ;;  %v825_v12 = vshll.u32 %v5147_v57, 16  ;;  %v2196_v57 = vld [vmem:[#allocation2 + $0x88] sm:$0xf]  ;;  %v1807_v52 = vsel %vm5878_vm13, %v1805_v3, %v1806_v59  ;;  %v2760_v50 = vld [vmem:[#allocation2 + $0x94] sm:$0xf] }
 0x1bc   : > { %3039 = vst.msk [vmem:[#allocation3 + $0x20] sm:$0xf] %vm3030_vm5, %v2951_v13  ;;  %v833_v13 = vshll.u32 %v5148_v1, 16  ;;  %v3974_v23 = vrot.slane %v3972_v53, 4  ;;  %v3973_v31 = vsel %vm5878_vm13, %v5038_v15, %v3972_v53  ;;  %v2463_v5 = vshll.u32 %v2196_v57, 16 }
 0x1bd   : > { %v2953_v21 = vpop.permute.xlu1 %2952  ;;  %2970 = vrot.lane.b32.xlu0 %v2888_v8, %s5378_s11  ;;  %v3846_v8 = vld [vmem:[#allocation2 + $0x88] sm:$0xf]  ;;  %v824_v54 = vrot.slane %v822_v61, 7  ;;  %v2198_v61 = vld [vmem:[#allocation2 + $0x90] sm:$0xf]  ;;  %v2467_v53 = vshrl.u32 %v2196_v57, 16 }
 0x1be   : > { %3040 = vst.msk [vmem:[#allocation3 + $0x24] sm:$0xf] %vm3030_vm5, %v2953_v21  ;;  %v3979_v19 = vrot.slane %v3846_v8, 5 }
 0x1bf   : > { %2972 = vrot.lane.b32.xlu1 %v2891_v16, %s5378_s11  ;;  %v2955_v28 = vpop.permute.xlu0 %2954  ;;  %v832_v16 = vrot.slane %v830_v9, 7  ;;  %v827_v20 = vor.u32 %v825_v12, %v824_v54  ;;  %v828_v21 = vrot.slane %v824_v54, 4  ;;  %v1811_v9 = vsel %vm5878_vm13, %v5009_v56, %v1810_v46  ;;  %v2758_v56 = vld [vmem:[#allocation2 + $0x8c] sm:$0x1] }
 0x1c0   : > { %3041 = vst.msk [vmem:[#allocation3 + $0x28] sm:$0xf] %vm3030_vm5, %v2955_v28  ;;  %v3847_v28 = vld [vmem:[#allocation2 + $0x8c] sm:$0x1]  ;;  %v3981_v36 = vrot.slane %v3979_v19, 4  ;;  %v3980_v42 = vsel %vm5878_vm13, %v5039_v32, %v3979_v19  ;;  %v2478_v12 = vshrl.u32 %v2198_v61, 16 }
 0x1c1   : > { %v2957_v47 = vpop.permute.xlu1 %2956  ;;  %3160 = vrot.lane.b32.xlu0 %v3080_v24, %s5379_s12  ;;  %v3975_v24 = vrot.slane %v3844_v60, 5  ;;  %v835_v26 = vor.u32 %v833_v13, %v832_v16  ;;  %v998_v30 = vsel %vm5531_vm9, %v827_v20, %v997_v25  ;;  %v3982_v2 = vrot.slane %v3847_v28, 5  ;;  %v1993_v28 = vld [vmem:[#allocation2 + $0x88] sm:$0xf] }
 0x1c2   : > { %3042 = vst.msk [vmem:[#allocation3 + $0x2c] sm:$0xf] %vm3030_vm5, %v2957_v47  ;;  %999 = vst [vmem:[#allocation2 + $0xc0] sm:$0xf] %v998_v30  ;;  %v837_v47 = vrot.slane %v832_v16, 4  ;;  %v2481_v13 = vshll.u32 %v2198_v61, 16 }
 0x1c3   : > { %3162 = vrot.lane.b32.xlu1 %v3081_v34, %s5379_s12  ;;  %v3145_v43 = vpop.permute.xlu0 %3144  ;;  %v836_v34 = vsel %vm5525_vm8, %v828_v21, %v835_v26  ;;  %v3976_v62 = vsel %vm5878_vm13, %v3974_v23, %v3975_v24  ;;  %v3983_v49 = vsel %vm5878_vm13, %v3981_v36, %v3982_v2  ;;  %v2465_v16 = vrot.slane %v2463_v5, 5  ;;  %v1992_v23 = vld [vmem:[#allocation2 + $0x84] sm:$0xf]  ;;  %v2200_v36 = vld [vmem:[#allocation2 + $0x98] sm:$0x1] }
 0x1c4   : > { %3233 = vst.msk [vmem:[#allocation3 + $0x20] sm:$0xf] %vm3224_vm6, %v3145_v43  ;;  %v5008_v43 = vrot.slane %v1662_v37, 9  ;;  %v2480_v25 = vrot.slane %v2478_v12, 4  ;;  %v2483_v26 = vrot.slane %v2481_v13, 5  ;;  %v2497_v55 = vshll.u32 %v2200_v36, 16 }
 0x1c5   : > { %v3147_v51 = vpop.permute.xlu1 %3146  ;;  %3164 = vrot.lane.b32.xlu0 %v3082_v40, %s5379_s12  ;;  %1000 = vst.msk [vmem:[#allocation2 + $0xc4] sm:$0xf] %vm411_vm0, %v836_v34  ;;  %v1001_v40 = vld [vmem:[#allocation2 + $0xc8] sm:$0x1]  ;;  %v1994_v37 = vld [vmem:[#allocation2 + $0x90] sm:$0xf] }
 0x1c6   : > { %3234 = vst.msk [vmem:[#allocation3 + $0x24] sm:$0xf] %vm3224_vm6, %v3147_v51  ;;  %v1002_v41 = vsel %vm5539_vm10, %v837_v47, %v1001_v40  ;;  %v2499_v3 = vrot.slane %v2497_v55, 5  ;;  %v2761_v5 = vld [vmem:[#allocation2 + $0x98] sm:$0x1] }
 0x1c7   : > { %3166 = vrot.lane.b32.xlu1 %v3083_v48, %s5379_s12  ;;  %v3149_v4 = vpop.permute.xlu0 %3148  ;;  %1003 = vst [vmem:[#allocation2 + $0xc8] sm:$0x1] %v1002_v41  ;;  %v2195_v48 = vld [vmem:[#allocation2 + $0x84] sm:$0xf] }
 0x1c8   : > { %3235 = vst.msk [vmem:[#allocation3 + $0x28] sm:$0xf] %vm3224_vm6, %v3149_v4  ;;  %v2454_v0 = vshrl.u32 %v2195_v48, 16  ;;  %v2457_v1 = vshll.u32 %v2195_v48, 16 }
 0x1c9   : > { %v3151_v11 = vpop.permute.xlu1 %3150  ;;  %3721 = vrot.lane.b32.xlu0 %v3510_v58, %s5380_s13  ;;  %v1804_v58 = vsel %vm5878_vm13, %v5008_v43, %v1803_v38  ;;  %v1995_v38 = vld [vmem:[#allocation2 + $0x94] sm:$0xf] }
 0x1ca   : > { %3236 = vst.msk [vmem:[#allocation3 + $0x2c] sm:$0xf] %vm3224_vm6, %v3151_v11  ;;  %v2199_v11 = vld [vmem:[#allocation2 + $0x94] sm:$0xf]  ;;  %v2456_v60 = vrot.slane %v2454_v0, 4  ;;  %v2459_v54 = vrot.slane %v2457_v1, 5 }
 0x1cb   : > { %3723 = vrot.lane.b32.xlu1 %v3520_v6, %s5380_s13  ;;  %v3706_v17 = vpop.permute.xlu0 %3705  ;;  %v1812_v6 = vrot.slane %v1810_v46, 4  ;;  %v2487_v18 = vshll.u32 %v2199_v11, 16  ;;  %v2491_v19 = vshrl.u32 %v2199_v11, 16  ;;  %v2756_v46 = vld [vmem:[#allocation2 + $0x84] sm:$0xe] }
 0x1cc   : > { %3794 = vst.msk [vmem:[#allocation3 + $0x20] sm:$0xf] %vm3785_vm11, %v3706_v17  ;;  %v2469_v17 = vrot.slane %v2467_v53, 4  ;;  %v2460_v24 = vor.u32 %v2459_v54, %v2456_v60  ;;  %v2759_v0 = vld [vmem:[#allocation2 + $0x90] sm:$0xe] }
 0x1cd   : > { %v3708_v27 = vpop.permute.xlu1 %3707  ;;  %3725 = vrot.lane.b32.xlu0 %v3534_v10, %s5380_s13  ;;  %v1814_v15 = vsel %vm5878_vm13, %v1812_v6, %v1813_v7  ;;  %v2493_v32 = vrot.slane %v2491_v19, 4  ;;  %v3287_v6 = vld [vmem:[#allocation2 + $0x90] sm:$0xf] }
 0x1ce   : > { %3795 = vst.msk [vmem:[#allocation3 + $0x24] sm:$0xf] %vm3785_vm11, %v3708_v27  ;;  %v2470_v29 = vor.u32 %v2469_v17, %v2465_v16  ;;  %v2461_v47 = vrot.slane %v2460_v24, 4  ;;  %v3546_v60 = vshrl.u32 %v3287_v6, 16  ;;  %v3549_v54 = vshll.u32 %v3287_v6, 16 }
 0x1cf   : > { %3727 = vrot.lane.b32.xlu1 %v3544_v22, %s5380_s13  ;;  %v3710_v35 = vpop.permute.xlu0 %3709  ;;  %v2197_v22 = vld [vmem:[#allocation2 + $0x8c] sm:$0x1] }
 0x1d0   : > { %3796 = vst.msk [vmem:[#allocation3 + $0x28] sm:$0xf] %vm3785_vm11, %v3710_v35  ;;  %v2473_v30 = vshll.u32 %v2197_v22, 16  ;;  %v2471_v39 = vrot.slane %v2470_v29, 4  ;;  %v2466_v43 = vsel %vm5511_vm7, %v2461_v47, %v2465_v16  ;;  %v3548_v22 = vrot.slane %v3546_v60, 4 }
 0x1d1   : > { %v3712_v14 = vpop.permute.xlu1 %3711  ;;  %4058 = vrot.lane.b32.xlu0 %v3973_v31, %s5381_s14  ;;  %v2489_v31 = vrot.slane %v2487_v18, 5 }
 0x1d2   : > { %3797 = vst.msk [vmem:[#allocation3 + $0x2c] sm:$0xf] %vm3785_vm11, %v3712_v14  ;;  %v2475_v40 = vrot.slane %v2473_v30, 5 }
 0x1d3   : > { %4060 = vrot.lane.b32.xlu1 %v3976_v62, %s5381_s14  ;;  %v4043_v45 = vpop.permute.xlu0 %4042  ;;  %v2484_v62 = vor.u32 %v2483_v26, %v2480_v25  ;;  %v2494_v14 = vor.u32 %v2493_v32, %v2489_v31 }
 0x1d4   : > { %4131 = vst.msk [vmem:[#allocation3 + $0x20] sm:$0xf] %vm4122_vm12, %v4043_v45  ;;  %v2476_v48 = vsel %vm5511_vm7, %v2471_v39, %v2475_v40 }
 0x1d5   : > { %v4045_v51 = vpop.permute.xlu1 %4044  ;;  %4062 = vrot.lane.b32.xlu0 %v3980_v42, %s5381_s14  ;;  %v2757_v42 = vld [vmem:[#allocation2 + $0x88] sm:$0xf]  ;;  %v2485_v44 = vrot.slane %v2484_v62, 4 }
 0x1d6   : > { %4132 = vst.msk [vmem:[#allocation3 + $0x24] sm:$0xf] %vm4122_vm12, %v4045_v51  ;;  %v2894_v59 = vrot.slane %v2757_v42, 5  ;;  %v3086_v42 = vld [vmem:[#allocation2 + $0x9c] sm:$0xf] }
 0x1d7   : > { %4064 = vrot.lane.b32.xlu1 %v3983_v49, %s5381_s14  ;;  %v4047_v4 = vpop.permute.xlu0 %4046  ;;  %v2495_v49 = vrot.slane %v2494_v14, 4  ;;  %v2490_v57 = vsel %vm5511_vm7, %v2485_v44, %v2489_v31 }
 0x1d8   : > { %4133 = vst.msk [vmem:[#allocation3 + $0x28] sm:$0xf] %vm4122_vm12, %v4047_v4  ;;  %v2901_v4 = vrot.slane %v2760_v50, 5  ;;  %v2896_v61 = vrot.slane %v2894_v59, 4 }
 0x1d9   : > { %v4049_v8 = vpop.permute.xlu1 %4048  ;;  %1883 = vrot.lane.b32.xlu0 %v1804_v58, %s5375_s8  ;;  %v5024_v58 = vrot.slane %v2756_v46, 9  ;;  %v2500_v7 = vsel %vm5511_vm7, %v2495_v49, %v2499_v3  ;;  %v3087_v46 = vld [vmem:[#allocation2 + $0xa0] sm:$0xf] }
 0x1da   : > { %4134 = vst.msk [vmem:[#allocation3 + $0x2c] sm:$0xf] %vm4122_vm12, %v4049_v8  ;;  %v5025_v8 = vrot.slane %v2759_v0, 9  ;;  %v2903_v13 = vrot.slane %v2901_v4, 4  ;;  %v3848_v0 = vld [vmem:[#allocation2 + $0x90] sm:$0xe] }
 0x1db   : > { %1885 = vrot.lane.b32.xlu1 %v1807_v52, %s5375_s8  ;;  %v1868_v10 = vpop.permute.xlu0 %1867  ;;  %v2897_v52 = vrot.slane %v2758_v56, 5  ;;  %v2895_v11 = vsel %vm5878_vm13, %v5024_v58, %v2894_v59 }
 0x1dc   : > { %1952 = vst.msk [vmem:[#allocation3 + $0x30] sm:$0xf] %vm1939_vm2, %v1868_v10  ;;  %v2904_v10 = vrot.slane %v2761_v5, 5  ;;  %v3852_v5 = vld [vmem:[#allocation2 + $0xa0] sm:$0xf] }
 0x1dd   : > { %v1870_v20 = vpop.permute.xlu1 %1869  ;;  %1887 = vrot.lane.b32.xlu0 %v1811_v9, %s5375_s8  ;;  %v5349_v21 = vld [vmem:[#allocation3 + $0x20] sm:$0xff]   ;;  %v3288_v9 = vld [vmem:[#allocation2 + $0x94] sm:$0xf]  ;;  %v2898_v16 = vsel %vm5878_vm13, %v2896_v61, %v2897_v52 }
 0x1de   : > { %1953 = vst.msk [vmem:[#allocation3 + $0x34] sm:$0xf] %vm1939_vm2, %v1870_v20  ;;  %5293 = vmatprep.mubr.msk.bf16.mxu0 %vm4287_vm14, %v5349_v21  ;;  %v3555_v17 = vshll.u32 %v3288_v9, 16  ;;  %v3559_v18 = vshrl.u32 %v3288_v9, 16  ;;  %v2902_v20 = vsel %vm5878_vm13, %v5025_v8, %v2901_v4  ;;  %v3291_v21 = vld [vmem:[#allocation2 + $0xa0] sm:$0xf] }
 0x1df   : > { %1889 = vrot.lane.b32.xlu1 %v1814_v15, %s5375_s8  ;;  %v1872_v27 = vpop.permute.xlu0 %1871  ;;  %v3290_v15 = vld [vmem:[#allocation2 + $0x9c] sm:$0xf]  ;;  %v3579_v30 = vshll.u32 %v3291_v21, 16  ;;  %v3583_v31 = vshrl.u32 %v3291_v21, 16  ;;  %v3850_v52 = vld [vmem:[#allocation2 + $0x98] sm:$0x1] }
 0x1e0   : > { %1954 = vst.msk [vmem:[#allocation3 + $0x38] sm:$0xf] %vm1939_vm2, %v1872_v27  ;;  %v3570_v24 = vshrl.u32 %v3290_v15, 16  ;;  %v3573_v25 = vshll.u32 %v3290_v15, 16  ;;  %v2905_v27 = vsel %vm5878_vm13, %v2903_v13, %v2904_v10  ;;  %v3561_v29 = vrot.slane %v3559_v18, 4 }
 0x1e1   : > { %v1874_v34 = vpop.permute.xlu1 %1873  ;;  %2076 = vrot.lane.b32.xlu0 %v1992_v23, %s5376_s9  ;;  %v5350_v35 = vld [vmem:[#allocation3 + $0x28] sm:$0xff]   ;;  %v3551_v23 = vrot.slane %v3549_v54, 5  ;;  %v3581_v40 = vrot.slane %v3579_v30, 5  ;;  %v3585_v14 = vrot.slane %v3583_v31, 4  ;;  %v5040_v8 = vrot.slane %v3848_v0, 9 }
 0x1e2   : > { %1955 = vst.msk [vmem:[#allocation3 + $0x3c] sm:$0xf] %vm1939_vm2, %v1874_v34  ;;  %5294 = vmatmul.mubr.msk.bf16.gmra.mxu0 %vm4287_vm14, %v5350_v35  ;;  %v3289_v34 = vld [vmem:[#allocation2 + $0x98] sm:$0x1]  ;;  %v3084_v35 = vld [vmem:[#allocation2 + $0x90] sm:$0xf] }
 0x1e3   : > { %2078 = vrot.lane.b32.xlu1 %v1993_v28, %s5376_s9  ;;  %v2061_v2 = vpop.permute.xlu0 %2060  ;;  %v3557_v28 = vrot.slane %v3555_v17, 5  ;;  %v3552_v36 = vor.u32 %v3551_v23, %v3548_v22  ;;  %v3575_v47 = vrot.slane %v3573_v25, 5  ;;  %v3565_v39 = vshll.u32 %v3289_v34, 16  ;;  %v3853_v15 = vld [vmem:[#allocation2 + $0xa4] sm:$0x1] }
 0x1e4   : > { %2145 = vst.msk [vmem:[#allocation3 + $0x30] sm:$0xf] %vm2132_vm3, %v2061_v2  ;;  %v3085_v2 = vld [vmem:[#allocation2 + $0x94] sm:$0xf]  ;;  %v3586_v3 = vor.u32 %v3585_v14, %v3581_v40  ;;  %v3993_v13 = vrot.slane %v3852_v5, 5  ;;  %v3996_v23 = vrot.slane %v3853_v15, 5 }
 0x1e5   : > { %v2063_v41 = vpop.permute.xlu1 %2062  ;;  %2080 = vrot.lane.b32.xlu0 %v1994_v37, %s5376_s9  ;;  %v3572_v37 = vrot.slane %v3570_v24, 4  ;;  %v3567_v49 = vrot.slane %v3565_v39, 5  ;;  %v1672_v25 = vld [vmem:[#allocation2 + $0xa0] sm:$0xf]  ;;  %v1671_v30 = vld [vmem:[#allocation2 + $0x9c] sm:$0xe] }
 0x1e6   : > { %2146 = vst.msk [vmem:[#allocation3 + $0x34] sm:$0xf] %vm2132_vm3, %v2063_v41  ;;  %v3292_v41 = vld [vmem:[#allocation2 + $0xa4] sm:$0x1]  ;;  %v3587_v4 = vrot.slane %v3586_v3, 4  ;;  %v3995_v22 = vrot.slane %v3993_v13, 4 }
 0x1e7   : > { %2082 = vrot.lane.b32.xlu1 %v1995_v38, %s5376_s9  ;;  %v2065_v45 = vpop.permute.xlu0 %2064  ;;  %v3562_v38 = vor.u32 %v3561_v29, %v3557_v28  ;;  %v3576_v44 = vor.u32 %v3575_v47, %v3572_v37  ;;  %v3589_v59 = vshll.u32 %v3292_v41, 16  ;;  %v2201_v34 = vld [vmem:[#allocation2 + $0x9c] sm:$0xf]  ;;  %v1673_v47 = vld [vmem:[#allocation2 + $0xa4] sm:$0x1] }
 0x1e8   : > { %2147 = vst.msk [vmem:[#allocation3 + $0x38] sm:$0xf] %vm2132_vm3, %v2065_v45  ;;  %v2505_v14 = vshll.u32 %v2201_v34, 16  ;;  %v2205_v3 = vld [vmem:[#allocation2 + $0xac] sm:$0xf] }
 0x1e9   : > { %v2067_v51 = vpop.permute.xlu1 %2066  ;;  %2637 = vrot.lane.b32.xlu0 %v2466_v43, %s5377_s10  ;;  %v3553_v43 = vrot.slane %v3552_v36, 4  ;;  %v3591_v6 = vrot.slane %v3589_v59, 5  ;;  %v1996_v5 = vld [vmem:[#allocation2 + $0x9c] sm:$0xf] }
 0x1ea   : > { %2148 = vst.msk [vmem:[#allocation3 + $0x3c] sm:$0xf] %vm2132_vm3, %v2067_v51  ;;  %v3849_v51 = vld [vmem:[#allocation2 + $0x94] sm:$0xf] }
 0x1eb   : > { %2639 = vrot.lane.b32.xlu1 %v2476_v48, %s5377_s10  ;;  %v2622_v1 = vpop.permute.xlu0 %2621  ;;  %v3563_v48 = vrot.slane %v3562_v38, 4  ;;  %v3558_v56 = vsel %vm5511_vm7, %v3553_v43, %v3557_v28  ;;  %v3592_v60 = vsel %vm5511_vm7, %v3587_v4, %v3591_v6  ;;  %v2202_v38 = vld [vmem:[#allocation2 + $0xa0] sm:$0xf]  ;;  %v2204_v43 = vld [vmem:[#allocation2 + $0xa8] sm:$0xf]  ;;  %v2535_v4 = vshll.u32 %v2205_v3, 16 }
 0x1ec   : > { %2706 = vst.msk [vmem:[#allocation3 + $0x30] sm:$0xf] %vm2693_vm4, %v2622_v1  ;;  %v2539_v6 = vshrl.u32 %v2205_v3, 16 }
 0x1ed   : > { %v2624_v53 = vpop.permute.xlu1 %2623  ;;  %2641 = vrot.lane.b32.xlu0 %v2490_v57, %s5377_s10  ;;  %v3577_v57 = vrot.slane %v3576_v44, 4  ;;  %v3568_v1 = vsel %vm5511_vm7, %v3563_v48, %v3567_v49 }
 0x1ee   : > { %2707 = vst.msk [vmem:[#allocation3 + $0x34] sm:$0xf] %vm2693_vm4, %v2624_v53 }
 0x1ef   : > { %2643 = vrot.lane.b32.xlu1 %v2500_v7, %s5377_s10  ;;  %v2626_v12 = vpop.permute.xlu0 %2625  ;;  %v3986_v7 = vrot.slane %v3849_v51, 5  ;;  %v3582_v53 = vsel %vm5511_vm7, %v3577_v57, %v3581_v40  ;;  %v2502_v40 = vshrl.u32 %v2201_v34, 16  ;;  %v2526_v51 = vshrl.u32 %v2204_v43, 16 }
 0x1f0   : > { %2708 = vst.msk [vmem:[#allocation3 + $0x38] sm:$0xf] %vm2693_vm4, %v2626_v12  ;;  %v3989_v12 = vrot.slane %v3850_v52, 5  ;;  %v2203_v52 = vld [vmem:[#allocation2 + $0xa4] sm:$0x1] }
 0x1f1   : > { %v2628_v19 = vpop.permute.xlu1 %2627  ;;  %2974 = vrot.lane.b32.xlu0 %v2895_v11, %s5378_s11  ;;  %v3851_v11 = vld [vmem:[#allocation2 + $0x9c] sm:$0xe]  ;;  %v3988_v54 = vrot.slane %v3986_v7, 4  ;;  %v3987_v17 = vsel %vm5878_vm13, %v5040_v8, %v3986_v7  ;;  %v2504_v59 = vrot.slane %v2502_v40, 4  ;;  %v2528_v8 = vrot.slane %v2526_v51, 4 }
 0x1f2   : > { %2709 = vst.msk [vmem:[#allocation3 + $0x3c] sm:$0xf] %vm2693_vm4, %v2628_v19  ;;  %v5041_v18 = vrot.slane %v3851_v11, 9  ;;  %v2765_v40 = vld [vmem:[#allocation2 + $0xa8] sm:$0xe] }
 0x1f3   : > { %2976 = vrot.lane.b32.xlu1 %v2898_v16, %s5378_s11  ;;  %v2959_v26 = vpop.permute.xlu0 %2958  ;;  %v1669_v16 = vld [vmem:[#allocation2 + $0x94] sm:$0xf]  ;;  %v3990_v21 = vsel %vm5878_vm13, %v3988_v54, %v3989_v12  ;;  %v2521_v12 = vshll.u32 %v2203_v52, 16 }
 0x1f4   : > { %3043 = vst.msk [vmem:[#allocation3 + $0x30] sm:$0xf] %vm3030_vm5, %v2959_v26  ;;  %v1817_v24 = vrot.slane %v1669_v16, 5  ;;  %v3994_v28 = vsel %vm5878_vm13, %v5041_v18, %v3993_v13  ;;  %v2537_v13 = vrot.slane %v2535_v4, 5  ;;  %v1998_v18 = vld [vmem:[#allocation2 + $0xa8] sm:$0xf] }
 0x1f5   : > { %v2961_v32 = vpop.permute.xlu1 %2960  ;;  %2978 = vrot.lane.b32.xlu0 %v2902_v20, %s5378_s11  ;;  %v1668_v20 = vld [vmem:[#allocation2 + $0x90] sm:$0xe] }
 0x1f6   : > { %3044 = vst.msk [vmem:[#allocation3 + $0x34] sm:$0xf] %vm3030_vm5, %v2961_v32  ;;  %v5010_v29 = vrot.slane %v1668_v20, 9  ;;  %v1824_v32 = vrot.slane %v1672_v25, 5  ;;  %v1819_v36 = vrot.slane %v1817_v24, 4 }
 0x1f7   : > { %2980 = vrot.lane.b32.xlu1 %v2905_v27, %s5378_s11  ;;  %v2963_v62 = vpop.permute.xlu0 %2962  ;;  %v1670_v27 = vld [vmem:[#allocation2 + $0x98] sm:$0x1] }
 0x1f8   : > { %3045 = vst.msk [vmem:[#allocation3 + $0x38] sm:$0xf] %vm3030_vm5, %v2963_v62  ;;  %v1820_v37 = vrot.slane %v1670_v27, 5  ;;  %v1818_v39 = vsel %vm5878_vm13, %v5010_v29, %v1817_v24  ;;  %v1826_v41 = vrot.slane %v1824_v32, 4  ;;  %v2523_v24 = vrot.slane %v2521_v12, 5 }
 0x1f9   : > { %v2965_v55 = vpop.permute.xlu1 %2964  ;;  %3168 = vrot.lane.b32.xlu0 %v3084_v35, %s5379_s12  ;;  %v3997_v35 = vsel %vm5878_vm13, %v3995_v22, %v3996_v23  ;;  %v1999_v22 = vld [vmem:[#allocation2 + $0xac] sm:$0xf] }
 0x1fa   : > { %3046 = vst.msk [vmem:[#allocation3 + $0x3c] sm:$0xf] %vm3030_vm5, %v2965_v55  ;;  %v1821_v44 = vsel %vm5878_vm13, %v1819_v36, %v1820_v37 }
 0x1fb   : > { %3170 = vrot.lane.b32.xlu1 %v3085_v2, %s5379_s12  ;;  %v3153_v45 = vpop.permute.xlu0 %3152  ;;  %v5011_v2 = vrot.slane %v1671_v30, 9 }
 0x1fc   : > { %3237 = vst.msk [vmem:[#allocation3 + $0x30] sm:$0xf] %vm3224_vm6, %v3153_v45  ;;  %v2511_v45 = vshll.u32 %v2202_v38, 16 }
 0x1fd   : > { %v3155_v50 = vpop.permute.xlu1 %3154  ;;  %3172 = vrot.lane.b32.xlu0 %v3086_v42, %s5379_s12  ;;  %v1827_v42 = vrot.slane %v1673_v47, 5  ;;  %v1825_v49 = vsel %vm5878_vm13, %v5011_v2, %v1824_v32  ;;  %v2762_v32 = vld [vmem:[#allocation2 + $0x9c] sm:$0xe]  ;;  %v2766_v47 = vld [vmem:[#allocation2 + $0xac] sm:$0xf] }
 0x1fe   : > { %3238 = vst.msk [vmem:[#allocation3 + $0x34] sm:$0xf] %vm3224_vm6, %v3155_v50  ;;  %v2507_v50 = vrot.slane %v2505_v14, 5  ;;  %v2513_v0 = vrot.slane %v2511_v45, 5  ;;  %v2764_v2 = vld [vmem:[#allocation2 + $0xa4] sm:$0x1] }
 0x1ff   : > { %3174 = vrot.lane.b32.xlu1 %v3087_v46, %s5379_s12  ;;  %v3157_v58 = vpop.permute.xlu0 %3156  ;;  %v2515_v46 = vshrl.u32 %v2202_v38, 16  ;;  %v2767_v45 = vld [vmem:[#allocation2 + $0xb0] sm:$0x1] }
 0x200   : > { %3239 = vst.msk [vmem:[#allocation3 + $0x38] sm:$0xf] %vm3224_vm6, %v3157_v58  ;;  %v1828_v58 = vsel %vm5878_vm13, %v1826_v41, %v1827_v42  ;;  %v3293_v41 = vld [vmem:[#allocation2 + $0xa8] sm:$0xf] }
 0x201   : > { %v3159_v61 = vpop.permute.xlu1 %3158  ;;  %3729 = vrot.lane.b32.xlu0 %v3558_v56, %s5380_s13  ;;  %v2529_v56 = vshll.u32 %v2204_v43, 16 }
 0x202   : > { %3240 = vst.msk [vmem:[#allocation3 + $0x3c] sm:$0xf] %vm3224_vm6, %v3159_v61 }
 0x203   : > { %3731 = vrot.lane.b32.xlu1 %v3568_v1, %s5380_s13  ;;  %v3714_v9 = vpop.permute.xlu0 %3713  ;;  %v2517_v1 = vrot.slane %v2515_v46, 4 }
 0x204   : > { %3798 = vst.msk [vmem:[#allocation3 + $0x30] sm:$0xf] %vm3785_vm11, %v3714_v9  ;;  %v2531_v9 = vrot.slane %v2529_v56, 5 }
 0x205   : > { %v3716_v10 = vpop.permute.xlu1 %3715  ;;  %3733 = vrot.lane.b32.xlu0 %v3582_v53, %s5380_s13  ;;  %v2508_v53 = vor.u32 %v2507_v50, %v2504_v59  ;;  %v2518_v54 = vor.u32 %v2517_v1, %v2513_v0  ;;  %v3594_v59 = vshrl.u32 %v3293_v41, 16  ;;  %v3597_v50 = vshll.u32 %v3293_v41, 16 }
 0x206   : > { %3799 = vst.msk [vmem:[#allocation3 + $0x34] sm:$0xf] %vm3785_vm11, %v3716_v10  ;;  %v2541_v10 = vrot.slane %v2539_v6, 4  ;;  %v2532_v20 = vor.u32 %v2531_v9, %v2528_v8 }
 0x207   : > { %3735 = vrot.lane.b32.xlu1 %v3592_v60, %s5380_s13  ;;  %v3718_v19 = vpop.permute.xlu0 %3717  ;;  %v1997_v60 = vld [vmem:[#allocation2 + $0xa0] sm:$0xf]  ;;  %v2519_v23 = vrot.slane %v2518_v54, 4  ;;  %v3596_v52 = vrot.slane %v3594_v59, 4 }
 0x208   : > { %3800 = vst.msk [vmem:[#allocation3 + $0x38] sm:$0xf] %vm3785_vm11, %v3718_v19  ;;  %v2509_v19 = vrot.slane %v2508_v53, 4  ;;  %v2542_v25 = vor.u32 %v2541_v10, %v2537_v13  ;;  %v2533_v30 = vrot.slane %v2532_v20, 4 }
 0x209   : > { %v3720_v26 = vpop.permute.xlu1 %3719  ;;  %4066 = vrot.lane.b32.xlu0 %v3987_v17, %s5381_s14  ;;  %v2206_v17 = vld [vmem:[#allocation2 + $0xb0] sm:$0x1]  ;;  %v2524_v34 = vsel %vm5511_vm7, %v2519_v23, %v2523_v24 }
 0x20a   : > { %3801 = vst.msk [vmem:[#allocation3 + $0x3c] sm:$0xf] %vm3785_vm11, %v3720_v26  ;;  %v2545_v26 = vshll.u32 %v2206_v17, 16  ;;  %v2514_v29 = vsel %vm5511_vm7, %v2509_v19, %v2513_v0  ;;  %v2538_v38 = vsel %vm5511_vm7, %v2533_v30, %v2537_v13 }
 0x20b   : > { %4068 = vrot.lane.b32.xlu1 %v3990_v21, %s5381_s14  ;;  %v4051_v31 = vpop.permute.xlu0 %4050 }
 0x20c   : > { %4135 = vst.msk [vmem:[#allocation3 + $0x30] sm:$0xf] %vm4122_vm12, %v4051_v31  ;;  %v2547_v36 = vrot.slane %v2545_v26, 5 }
 0x20d   : > { %v4053_v62 = vpop.permute.xlu1 %4052  ;;  %4070 = vrot.lane.b32.xlu0 %v3994_v28, %s5381_s14  ;;  %v2763_v28 = vld [vmem:[#allocation2 + $0xa0] sm:$0xf] }
 0x20e   : > { %4136 = vst.msk [vmem:[#allocation3 + $0x34] sm:$0xf] %vm4122_vm12, %v4053_v62  ;;  %v2908_v37 = vrot.slane %v2763_v28, 5  ;;  %v3090_v28 = vld [vmem:[#allocation2 + $0xb4] sm:$0xf] }
 0x20f   : > { %4072 = vrot.lane.b32.xlu1 %v3997_v35, %s5381_s14  ;;  %v4055_v55 = vpop.permute.xlu0 %4054  ;;  %v2543_v35 = vrot.slane %v2542_v25, 4 }
 0x210   : > { %4137 = vst.msk [vmem:[#allocation3 + $0x38] sm:$0xf] %vm4122_vm12, %v4055_v55  ;;  %v2915_v55 = vrot.slane %v2766_v47, 5  ;;  %v2910_v43 = vrot.slane %v2908_v37, 4  ;;  %v3855_v47 = vld [vmem:[#allocation2 + $0xac] sm:$0xf] }
 0x211   : > { %v4057_v48 = vpop.permute.xlu1 %4056  ;;  %1891 = vrot.lane.b32.xlu0 %v1818_v39, %s5375_s8  ;;  %v5026_v39 = vrot.slane %v2762_v32, 9  ;;  %v2548_v42 = vsel %vm5511_vm7, %v2543_v35, %v2547_v36  ;;  %v3091_v32 = vld [vmem:[#allocation2 + $0xb8] sm:$0xf] }
 0x212   : > { %4138 = vst.msk [vmem:[#allocation3 + $0x3c] sm:$0xf] %vm4122_vm12, %v4057_v48  ;;  %v5027_v48 = vrot.slane %v2765_v40, 9  ;;  %v2917_v56 = vrot.slane %v2915_v55, 4  ;;  %v3854_v40 = vld [vmem:[#allocation2 + $0xa8] sm:$0xe] }
 0x213   : > { %1893 = vrot.lane.b32.xlu1 %v1821_v44, %s5375_s8  ;;  %v1876_v57 = vpop.permute.xlu0 %1875  ;;  %v2911_v44 = vrot.slane %v2764_v2, 5  ;;  %v2909_v3 = vsel %vm5878_vm13, %v5026_v39, %v2908_v37 }
 0x214   : > { %1956 = vst.msk [vmem:[#allocation3 + $0x40] sm:$0xf] %vm1939_vm2, %v1876_v57  ;;  %v2918_v57 = vrot.slane %v2767_v45, 5  ;;  %v3858_v45 = vld [vmem:[#allocation2 + $0xb8] sm:$0xf] }
 0x215   : > { %v1878_v7 = vpop.permute.xlu1 %1877  ;;  %1895 = vrot.lane.b32.xlu0 %v1825_v49, %s5375_s8  ;;  %v5351_v61 = vld [vmem:[#allocation3 + $0x30] sm:$0xff]   ;;  %v2912_v0 = vsel %vm5878_vm13, %v2910_v43, %v2911_v44  ;;  %v3856_v43 = vld [vmem:[#allocation2 + $0xb0] sm:$0x1] }
 0x216   : > { %1957 = vst.msk [vmem:[#allocation3 + $0x44] sm:$0xf] %vm1939_vm2, %v1878_v7  ;;  %5297 = vmatprep.mubr.msk.bf16.mxu0 %vm4287_vm14, %v5351_v61  ;;  %v3294_v49 = vld [vmem:[#allocation2 + $0xac] sm:$0xf]  ;;  %v2916_v7 = vsel %vm5878_vm13, %v5027_v48, %v2915_v55  ;;  %v3297_v61 = vld [vmem:[#allocation2 + $0xb8] sm:$0xf] }
 0x217   : > { %1897 = vrot.lane.b32.xlu1 %v1828_v58, %s5375_s8  ;;  %v1880_v11 = vpop.permute.xlu0 %1879  ;;  %v3296_v58 = vld [vmem:[#allocation2 + $0xb4] sm:$0xf]  ;;  %v3603_v1 = vshll.u32 %v3294_v49, 16  ;;  %v3607_v4 = vshrl.u32 %v3294_v49, 16  ;;  %v3627_v12 = vshll.u32 %v3297_v61, 16  ;;  %v3631_v13 = vshrl.u32 %v3297_v61, 16 }
 0x218   : > { %1958 = vst.msk [vmem:[#allocation3 + $0x48] sm:$0xf] %vm1939_vm2, %v1880_v11  ;;  %v3618_v53 = vshrl.u32 %v3296_v58, 16  ;;  %v3621_v8 = vshll.u32 %v3296_v58, 16  ;;  %v2919_v11 = vsel %vm5878_vm13, %v2917_v56, %v2918_v57  ;;  %v5042_v48 = vrot.slane %v3854_v40, 9 }
 0x219   : > { %v1882_v15 = vpop.permute.xlu1 %1881  ;;  %2084 = vrot.lane.b32.xlu0 %v1996_v5, %s5376_s9  ;;  %v5352_v16 = vld [vmem:[#allocation3 + $0x38] sm:$0xff]   ;;  %v3599_v5 = vrot.slane %v3597_v50, 5  ;;  %v3609_v54 = vrot.slane %v3607_v4, 4  ;;  %v3629_v24 = vrot.slane %v3627_v12, 5  ;;  %v3633_v25 = vrot.slane %v3631_v13, 4 }
 0x21a   : > { %1959 = vst.msk [vmem:[#allocation3 + $0x4c] sm:$0xf] %vm1939_vm2, %v1882_v15  ;;  %5298 = vmatmul.mubr.msk.bf16.gmra.mxu0 %vm4287_vm14, %v5352_v16  ;;  %v3295_v15 = vld [vmem:[#allocation2 + $0xb0] sm:$0x1]  ;;  %v3088_v16 = vld [vmem:[#allocation2 + $0xa8] sm:$0xf] }
 0x21b   : > { %2086 = vrot.lane.b32.xlu1 %v1997_v60, %s5376_s9  ;;  %v2069_v21 = vpop.permute.xlu0 %2068  ;;  %v3605_v60 = vrot.slane %v3603_v1, 5  ;;  %v3600_v17 = vor.u32 %v3599_v5, %v3596_v52  ;;  %v3623_v19 = vrot.slane %v3621_v8, 5  ;;  %v3613_v23 = vshll.u32 %v3295_v15, 16  ;;  %v3857_v50 = vld [vmem:[#allocation2 + $0xb4] sm:$0xe] }
 0x21c   : > { %2149 = vst.msk [vmem:[#allocation3 + $0x40] sm:$0xf] %vm2132_vm3, %v2069_v21  ;;  %v3089_v21 = vld [vmem:[#allocation2 + $0xac] sm:$0xf]  ;;  %v3634_v36 = vor.u32 %v3633_v25, %v3629_v24  ;;  %v4003_v59 = vrot.slane %v3856_v43, 5  ;;  %v4007_v56 = vrot.slane %v3858_v45, 5 }
 0x21d   : > { %v2071_v27 = vpop.permute.xlu1 %2070  ;;  %2088 = vrot.lane.b32.xlu0 %v1998_v18, %s5376_s9  ;;  %v3620_v18 = vrot.slane %v3618_v53, 4  ;;  %v3615_v35 = vrot.slane %v3613_v23, 5  ;;  %v3859_v58 = vld [vmem:[#allocation2 + $0xbc] sm:$0x1]  ;;  %v5043_v4 = vrot.slane %v3857_v50, 9 }
 0x21e   : > { %2150 = vst.msk [vmem:[#allocation3 + $0x44] sm:$0xf] %vm2132_vm3, %v2071_v27  ;;  %v3298_v27 = vld [vmem:[#allocation2 + $0xbc] sm:$0x1]  ;;  %v3635_v41 = vrot.slane %v3634_v36, 4  ;;  %v4009_v53 = vrot.slane %v4007_v56, 4 }
 0x21f   : > { %2090 = vrot.lane.b32.xlu1 %v1999_v22, %s5376_s9  ;;  %v2073_v31 = vpop.permute.xlu0 %2072  ;;  %v3610_v22 = vor.u32 %v3609_v54, %v3605_v60  ;;  %v3624_v30 = vor.u32 %v3623_v19, %v3620_v18  ;;  %v3637_v37 = vshll.u32 %v3298_v27, 16  ;;  %v1674_v52 = vld [vmem:[#allocation2 + $0xa8] sm:$0xe]  ;;  %v4010_v8 = vrot.slane %v3859_v58, 5  ;;  %v1676_v12 = vld [vmem:[#allocation2 + $0xb0] sm:$0x1] }
 0x220   : > { %2151 = vst.msk [vmem:[#allocation3 + $0x48] sm:$0xf] %vm2132_vm3, %v2073_v31  ;;  %v5012_v15 = vrot.slane %v1674_v52, 9  ;;  %v1679_v25 = vld [vmem:[#allocation2 + $0xbc] sm:$0x1] }
 0x221   : > { %v2075_v62 = vpop.permute.xlu1 %2074  ;;  %2645 = vrot.lane.b32.xlu0 %v2514_v29, %s5377_s10  ;;  %v3601_v29 = vrot.slane %v3600_v17, 4 }
 0x222   : > { %2152 = vst.msk [vmem:[#allocation3 + $0x4c] sm:$0xf] %vm2132_vm3, %v2075_v62 }
 0x223   : > { %2647 = vrot.lane.b32.xlu1 %v2524_v34, %s5377_s10  ;;  %v2630_v14 = vpop.permute.xlu0 %2629  ;;  %v3611_v34 = vrot.slane %v3610_v22, 4  ;;  %v3606_v2 = vsel %vm5511_vm7, %v3601_v29, %v3605_v60  ;;  %v4011_v22 = vsel %vm5878_vm13, %v4009_v53, %v4010_v8  ;;  %v2208_v29 = vld [vmem:[#allocation2 + $0xb8] sm:$0xf] }
 0x224   : > { %2710 = vst.msk [vmem:[#allocation3 + $0x40] sm:$0xf] %vm2693_vm4, %v2630_v14  ;;  %v4000_v14 = vrot.slane %v3855_v47, 5  ;;  %v2210_v47 = vld [vmem:[#allocation2 + $0xc0] sm:$0xf] }
 0x225   : > { %v2632_v46 = vpop.permute.xlu1 %2631  ;;  %2649 = vrot.lane.b32.xlu0 %v2538_v38, %s5377_s10  ;;  %v3625_v38 = vrot.slane %v3624_v30, 4  ;;  %v3616_v55 = vsel %vm5511_vm7, %v3611_v34, %v3615_v35  ;;  %v2577_v43 = vshll.u32 %v2210_v47, 16 }
 0x226   : > { %2711 = vst.msk [vmem:[#allocation3 + $0x44] sm:$0xf] %vm2693_vm4, %v2632_v46  ;;  %v4001_v1 = vsel %vm5878_vm13, %v5042_v48, %v4000_v14 }
 0x227   : > { %2651 = vrot.lane.b32.xlu1 %v2548_v42, %s5377_s10  ;;  %v2634_v51 = vpop.permute.xlu0 %2633  ;;  %v3639_v42 = vrot.slane %v3637_v37, 5  ;;  %v3630_v46 = vsel %vm5511_vm7, %v3625_v38, %v3629_v24  ;;  %v1834_v24 = vrot.slane %v1676_v12, 5  ;;  %v1841_v37 = vrot.slane %v1679_v25, 5  ;;  %v2768_v25 = vld [vmem:[#allocation2 + $0xb4] sm:$0xe] }
 0x228   : > { %2712 = vst.msk [vmem:[#allocation3 + $0x48] sm:$0xf] %vm2693_vm4, %v2634_v51  ;;  %v2563_v38 = vshrl.u32 %v2208_v29, 16 }
 0x229   : > { %v2636_v6 = vpop.permute.xlu1 %2635  ;;  %2982 = vrot.lane.b32.xlu0 %v2909_v3, %s5378_s11  ;;  %v4002_v3 = vrot.slane %v4000_v14, 4  ;;  %v3640_v51 = vsel %vm5511_vm7, %v3635_v41, %v3639_v42  ;;  %v2211_v14 = vld [vmem:[#allocation2 + $0xc4] sm:$0xf]  ;;  %v2574_v42 = vshrl.u32 %v2210_v47, 16 }
 0x22a   : > { %2713 = vst.msk [vmem:[#allocation3 + $0x4c] sm:$0xf] %vm2693_vm4, %v2636_v6  ;;  %v2565_v48 = vrot.slane %v2563_v38, 4 }
 0x22b   : > { %2984 = vrot.lane.b32.xlu1 %v2912_v0, %s5378_s11  ;;  %v2967_v9 = vpop.permute.xlu0 %2966  ;;  %v1675_v0 = vld [vmem:[#allocation2 + $0xac] sm:$0xf]  ;;  %v4004_v61 = vsel %vm5878_vm13, %v4002_v3, %v4003_v59  ;;  %v2587_v3 = vshrl.u32 %v2211_v14, 16  ;;  %v2576_v58 = vrot.slane %v2574_v42, 4  ;;  %v3300_v42 = vld [vmem:[#allocation2 + $0xc4] sm:$0xf] }
 0x22c   : > { %3047 = vst.msk [vmem:[#allocation3 + $0x40] sm:$0xf] %vm3030_vm5, %v2967_v9  ;;  %v1831_v9 = vrot.slane %v1675_v0, 5  ;;  %v2579_v0 = vrot.slane %v2577_v43, 5 }
 0x22d   : > { %v2969_v10 = vpop.permute.xlu1 %2968  ;;  %2986 = vrot.lane.b32.xlu0 %v2916_v7, %s5378_s11 }
 0x22e   : > { %3048 = vst.msk [vmem:[#allocation3 + $0x44] sm:$0xf] %vm3030_vm5, %v2969_v10  ;;  %v4008_v10 = vsel %vm5878_vm13, %v5043_v4, %v4007_v56  ;;  %v1833_v23 = vrot.slane %v1831_v9, 4  ;;  %v2000_v56 = vld [vmem:[#allocation2 + $0xb4] sm:$0xf]  ;;  %v2580_v12 = vor.u32 %v2579_v0, %v2576_v58 }
 0x22f   : > { %2988 = vrot.lane.b32.xlu1 %v2919_v11, %s5378_s11  ;;  %v2971_v20 = vpop.permute.xlu0 %2970  ;;  %v1678_v11 = vld [vmem:[#allocation2 + $0xb8] sm:$0xf]  ;;  %v3303_v58 = vld [vmem:[#allocation2 + $0xd0] sm:$0xf] }
 0x230   : > { %3049 = vst.msk [vmem:[#allocation3 + $0x48] sm:$0xf] %vm3030_vm5, %v2971_v20  ;;  %v1838_v19 = vrot.slane %v1678_v11, 5  ;;  %v2207_v20 = vld [vmem:[#allocation2 + $0xb4] sm:$0xf] }
 0x231   : > { %v2973_v26 = vpop.permute.xlu1 %2972  ;;  %3176 = vrot.lane.b32.xlu0 %v3088_v16, %s5379_s12  ;;  %v1677_v16 = vld [vmem:[#allocation2 + $0xb4] sm:$0xe]  ;;  %v2553_v34 = vshll.u32 %v2207_v20, 16  ;;  %v2001_v4 = vld [vmem:[#allocation2 + $0xb8] sm:$0xf] }
 0x232   : > { %3050 = vst.msk [vmem:[#allocation3 + $0x4c] sm:$0xf] %vm3030_vm5, %v2973_v26  ;;  %v1840_v36 = vrot.slane %v1838_v19, 4  ;;  %v2002_v11 = vld [vmem:[#allocation2 + $0xc0] sm:$0xf] }
 0x233   : > { %3178 = vrot.lane.b32.xlu1 %v3089_v21, %s5379_s12  ;;  %v3161_v31 = vpop.permute.xlu0 %3160  ;;  %v2555_v41 = vrot.slane %v2553_v34, 5  ;;  %v2770_v34 = vld [vmem:[#allocation2 + $0xbc] sm:$0x1] }
 0x234   : > { %3241 = vst.msk [vmem:[#allocation3 + $0x40] sm:$0xf] %vm3224_vm6, %v3161_v31  ;;  %v1832_v31 = vsel %vm5878_vm13, %v5012_v15, %v1831_v9  ;;  %v1842_v45 = vsel %vm5878_vm13, %v1840_v36, %v1841_v37  ;;  %v2212_v9 = vld [vmem:[#allocation2 + $0xc8] sm:$0x1]  ;;  %v5028_v36 = vrot.slane %v2768_v25, 9 }
 0x235   : > { %v3163_v62 = vpop.permute.xlu1 %3162  ;;  %3180 = vrot.lane.b32.xlu0 %v3090_v28, %s5379_s12  ;;  %v5013_v28 = vrot.slane %v1677_v16, 9  ;;  %v2771_v37 = vld [vmem:[#allocation2 + $0xc0] sm:$0xe]  ;;  %v3094_v25 = vld [vmem:[#allocation2 + $0xcc] sm:$0xf] }
 0x236   : > { %3242 = vst.msk [vmem:[#allocation3 + $0x44] sm:$0xf] %vm3224_vm6, %v3163_v62  ;;  %v1835_v62 = vsel %vm5878_vm13, %v1833_v23, %v1834_v24  ;;  %v2581_v23 = vrot.slane %v2580_v12, 4  ;;  %v3092_v12 = vld [vmem:[#allocation2 + $0xc0] sm:$0xf] }
 0x237   : > { %3182 = vrot.lane.b32.xlu1 %v3091_v32, %s5379_s12  ;;  %v3165_v39 = vpop.permute.xlu0 %3164  ;;  %v2550_v32 = vshrl.u32 %v2207_v20, 16  ;;  %v1839_v40 = vsel %vm5878_vm13, %v5013_v28, %v1838_v19  ;;  %v2593_v19 = vshll.u32 %v2212_v9, 16  ;;  %v3679_v9 = vshrl.u32 %v3303_v58, 16 }
 0x238   : > { %3243 = vst.msk [vmem:[#allocation3 + $0x48] sm:$0xf] %vm3224_vm6, %v3165_v39 }
 0x239   : > { %v3167_v44 = vpop.permute.xlu1 %3166  ;;  %3737 = vrot.lane.b32.xlu0 %v3606_v2, %s5380_s13  ;;  %v2559_v2 = vshll.u32 %v2208_v29, 16  ;;  %v2595_v29 = vrot.slane %v2593_v19, 5 }
 0x23a   : > { %3244 = vst.msk [vmem:[#allocation3 + $0x4c] sm:$0xf] %vm3224_vm6, %v3167_v44 }
 0x23b   : > { %3739 = vrot.lane.b32.xlu1 %v3616_v55, %s5380_s13  ;;  %v3722_v49 = vpop.permute.xlu0 %3721  ;;  %v2552_v55 = vrot.slane %v2550_v32, 4 }
 0x23c   : > { %3802 = vst.msk [vmem:[#allocation3 + $0x40] sm:$0xf] %vm3785_vm11, %v3722_v49  ;;  %v2583_v49 = vshll.u32 %v2211_v14, 16  ;;  %v2773_v14 = vld [vmem:[#allocation2 + $0xc8] sm:$0x1] }
 0x23d   : > { %v3724_v57 = vpop.permute.xlu1 %3723  ;;  %3741 = vrot.lane.b32.xlu0 %v3630_v46, %s5380_s13  ;;  %v2561_v46 = vrot.slane %v2559_v2, 5  ;;  %v3299_v2 = vld [vmem:[#allocation2 + $0xc0] sm:$0xf] }
 0x23e   : > { %3803 = vst.msk [vmem:[#allocation3 + $0x44] sm:$0xf] %vm3785_vm11, %v3724_v57  ;;  %v6569_v6 = vpop.f32.mrf.mxu0  ;;  %v2556_v57 = vor.u32 %v2555_v41, %v2552_v55  ;;  %v2585_v52 = vrot.slane %v2583_v49, 5  ;;  %v5029_v41 = vrot.slane %v2771_v37, 9  ;;  %v2932_v49 = vrot.slane %v2773_v14, 5 }
 0x23f   : > { %3743 = vrot.lane.b32.xlu1 %v3640_v51, %s5380_s13  ;;  %v3726_v7 = vpop.permute.xlu0 %3725  ;;  %v5151_v5 = vpack.c.bf16 %v6569_v6, %v6569_v6  ;;  %v2209_v51 = vld [vmem:[#allocation2 + $0xbc] sm:$0x1] }
 0x240   : > { %3804 = vst.msk [vmem:[#allocation3 + $0x48] sm:$0xf] %vm3785_vm11, %v3726_v7  ;;  %v6576_v54 = vpop.f32.mrf.mxu0  ;;  %v2566_v7 = vor.u32 %v2565_v48, %v2561_v46 }
 0x241   : > { %v3728_v60 = vpop.permute.xlu1 %3727  ;;  %4074 = vrot.lane.b32.xlu0 %v4001_v1, %s5381_s14  ;;  %4838 = vst.msk [vmem:[%s6566_s30 + $0x8] sm:$0xf] %vm411_vm0, %v5151_v5  ;;  %v5149_v13 = vpack.c.bf16 %v6576_v54, %v6576_v54  ;;  %v2589_v5 = vrot.slane %v2587_v3, 4  ;;  %v3302_v3 = vld [vmem:[#allocation2 + $0xcc] sm:$0xf] }
 0x242   : > { %3805 = vst.msk [vmem:[#allocation3 + $0x4c] sm:$0xf] %vm3785_vm11, %v3728_v60  ;;  %v6587_v17 = vpop.f32.mrf.mxu0  ;;  %v2557_v60 = vrot.slane %v2556_v57, 4  ;;  %v2567_v15 = vrot.slane %v2566_v7, 4  ;;  %v3669_v7 = vshll.u32 %v3302_v3, 16 }
 0x243   : > { %4076 = vrot.lane.b32.xlu1 %v4004_v61, %s5381_s14  ;;  %v4059_v18 = vpop.permute.xlu0 %4058  ;;  %4836 = vst.msk [vmem:[%s6566_s30] sm:$0xf] %vm411_vm0, %v5149_v13  ;;  %v5152_v21 = vpack.c.bf16 %v6587_v17, %v6587_v17  ;;  %v2569_v61 = vshll.u32 %v2209_v51, 16  ;;  %v3655_v51 = vshrl.u32 %v3300_v42, 16 }
 0x244   : > { %4139 = vst.msk [vmem:[#allocation3 + $0x40] sm:$0xf] %vm4122_vm12, %v4059_v18  ;;  %v6596_v27 = vpop.f32.mrf.mxu0  ;;  %v2590_v18 = vor.u32 %v2589_v5, %v2585_v52 }
 0x245   : > { %v4061_v26 = vpop.permute.xlu1 %4060  ;;  %4078 = vrot.lane.b32.xlu0 %v4008_v10, %s5381_s14  ;;  %4839 = vst.msk [vmem:[%s6566_s30 + $0xc] sm:$0xf] %vm411_vm0, %v5152_v21  ;;  %v5150_v30 = vpack.c.bf16 %v6596_v27, %v6596_v27  ;;  %v2003_v10 = vld [vmem:[#allocation2 + $0xc4] sm:$0xf]  ;;  %v2571_v16 = vrot.slane %v2569_v61, 5 }
 0x246   : > { %4140 = vst.msk [vmem:[#allocation3 + $0x44] sm:$0xf] %vm4122_vm12, %v4061_v26  ;;  %v2769_v21 = vld [vmem:[#allocation2 + $0xb8] sm:$0xf]  ;;  %v2591_v28 = vrot.slane %v2590_v18, 4 }
 0x247   : > { %4080 = vrot.lane.b32.xlu1 %v4011_v22, %s5381_s14  ;;  %v4063_v35 = vpop.permute.xlu0 %4062  ;;  %4837 = vst.msk [vmem:[%s6566_s30 + $0x4] sm:$0xf] %vm411_vm0, %v5150_v30  ;;  %v2562_v22 = vsel %vm5511_vm7, %v2557_v60, %v2561_v46  ;;  %v2572_v26 = vsel %vm5511_vm7, %v2567_v15, %v2571_v16  ;;  %v2922_v30 = vrot.slane %v2769_v21, 5  ;;  %v3301_v60 = vld [vmem:[#allocation2 + $0xc8] sm:$0x1]  ;;  %v3671_v15 = vrot.slane %v3669_v7, 5 }
 0x248   : > { %4141 = vst.msk [vmem:[#allocation3 + $0x48] sm:$0xf] %vm4122_vm12, %v4063_v35  ;;  %v2586_v35 = vsel %vm5511_vm7, %v2581_v23, %v2585_v52  ;;  %v2596_v38 = vsel %vm5511_vm7, %v2591_v28, %v2595_v29  ;;  %v3093_v18 = vld [vmem:[#allocation2 + $0xc4] sm:$0xf] }
 0x249   : > { %v4065_v39 = vpop.permute.xlu1 %4064  ;;  %1899 = vrot.lane.b32.xlu0 %v1832_v31, %s5375_s8  ;;  %v2772_v31 = vld [vmem:[#allocation2 + $0xc4] sm:$0xf]  ;;  %v2923_v43 = vsel %vm5878_vm13, %v5028_v36, %v2922_v30 }
 0x24a   : > { %4142 = vst.msk [vmem:[#allocation3 + $0x4c] sm:$0xf] %vm4122_vm12, %v4065_v39  ;;  %v2924_v39 = vrot.slane %v2922_v30, 4  ;;  %v3095_v30 = vld [vmem:[#allocation2 + $0xd0] sm:$0xf] }
 0x24b   : > { %1901 = vrot.lane.b32.xlu1 %v1835_v62, %s5375_s8  ;;  %v1884_v44 = vpop.permute.xlu0 %1883  ;;  %v2929_v62 = vrot.slane %v2772_v31, 5  ;;  %v3861_v36 = vld [vmem:[#allocation2 + $0xc4] sm:$0xf] }
 0x24c   : > { %1960 = vst.msk [vmem:[#allocation3 + $0x50] sm:$0xf] %vm1939_vm2, %v1884_v44  ;;  %v3642_v44 = vshrl.u32 %v3299_v2, 16 }
 0x24d   : > { %v1886_v59 = vpop.permute.xlu1 %1885  ;;  %1903 = vrot.lane.b32.xlu0 %v1839_v40, %s5375_s8  ;;  %v5353_v50 = vld [vmem:[#allocation3 + $0x40] sm:$0xff]   ;;  %v2925_v40 = vrot.slane %v2770_v34, 5  ;;  %v2931_v48 = vrot.slane %v2929_v62, 4  ;;  %v2930_v57 = vsel %vm5878_vm13, %v5029_v41, %v2929_v62 }
 0x24e   : > { %1961 = vst.msk [vmem:[#allocation3 + $0x54] sm:$0xf] %vm1939_vm2, %v1886_v59  ;;  %5301 = vmatprep.mubr.msk.bf16.mxu1 %vm4287_vm14, %v5353_v50  ;;  %v3651_v50 = vshll.u32 %v3300_v42, 16  ;;  %v3644_v0 = vrot.slane %v3642_v44, 4 }
 0x24f   : > { %1905 = vrot.lane.b32.xlu1 %v1842_v45, %s5375_s8  ;;  %v1888_v1 = vpop.permute.xlu0 %1887  ;;  %v3645_v45 = vshll.u32 %v3299_v2, 16  ;;  %v2926_v59 = vsel %vm5878_vm13, %v2924_v39, %v2925_v40  ;;  %v2933_v52 = vsel %vm5878_vm13, %v2931_v48, %v2932_v49  ;;  %v3860_v39 = vld [vmem:[#allocation2 + $0xc0] sm:$0xe]  ;;  %v4014_v40 = vrot.slane %v3861_v36, 5  ;;  %s7005_s8 = scalar_lea.vmem %s7117_s5, %s4963_s20 }
 0x250   : > { %1962 = vst.msk [vmem:[#allocation3 + $0x58] sm:$0xf] %vm1939_vm2, %v1888_v1  ;;  %v3653_v5 = vrot.slane %v3651_v50, 5 }
 0x251   : > { %v1890_v53 = vpop.permute.xlu1 %1889  ;;  %2092 = vrot.lane.b32.xlu0 %v2000_v56, %s5376_s9  ;;  %v5354_v8 = vld [vmem:[#allocation3 + $0x48] sm:$0xff]   ;;  %v3647_v1 = vrot.slane %v3645_v45, 5  ;;  %v3862_v45 = vld [vmem:[#allocation2 + $0xc8] sm:$0x1] }
 0x252   : > { %1963 = vst.msk [vmem:[#allocation3 + $0x5c] sm:$0xf] %vm1939_vm2, %v1890_v53  ;;  %5302 = vmatmul.mubr.msk.bf16.vlgmr.msra.gmra.mxu1 %vm4287_vm14, %v5354_v8  ;;  %v3657_v53 = vrot.slane %v3655_v51, 4  ;;  %v3675_v8 = vshll.u32 %v3303_v58, 16  ;;  %v4016_v51 = vrot.slane %v4014_v40, 4 }
 0x253   : > { %2094 = vrot.lane.b32.xlu1 %v2001_v4, %s5376_s9  ;;  %v2077_v13 = vpop.permute.xlu0 %2076  ;;  %v3666_v4 = vshrl.u32 %v3302_v3, 16  ;;  %v5044_v3 = vrot.slane %v3860_v39, 9 }
 0x254   : > { %2153 = vst.msk [vmem:[#allocation3 + $0x50] sm:$0xf] %vm2132_vm3, %v2077_v13  ;;  %v3648_v13 = vor.u32 %v3647_v1, %v3644_v0  ;;  %v3658_v19 = vor.u32 %v3657_v53, %v3653_v5  ;;  %v3677_v21 = vrot.slane %v3675_v8, 5  ;;  %v4017_v0 = vrot.slane %v3862_v45, 5 }
 0x255   : > { %v2079_v20 = vpop.permute.xlu1 %2078  ;;  %2096 = vrot.lane.b32.xlu0 %v2002_v11, %s5376_s9 }
 0x256   : > { %2154 = vst.msk [vmem:[#allocation3 + $0x54] sm:$0xf] %vm2132_vm3, %v2079_v20  ;;  %v3661_v20 = vshll.u32 %v3301_v60, 16  ;;  %v3659_v31 = vrot.slane %v3658_v19, 4  ;;  %v4018_v8 = vsel %vm5878_vm13, %v4016_v51, %v4017_v0 }
 0x257   : > { %2098 = vrot.lane.b32.xlu1 %v2003_v10, %s5376_s9  ;;  %v2081_v24 = vpop.permute.xlu0 %2080  ;;  %v3668_v10 = vrot.slane %v3666_v4, 4 }
 0x258   : > { %2155 = vst.msk [vmem:[#allocation3 + $0x58] sm:$0xf] %vm2132_vm3, %v2081_v24  ;;  %v3304_v24 = vld [vmem:[#allocation2 + $0xd4] sm:$0x1] }
 0x259   : > { %v2083_v32 = vpop.permute.xlu1 %2082  ;;  %2653 = vrot.lane.b32.xlu0 %v2562_v22, %s5377_s10  ;;  %v3681_v22 = vrot.slane %v3679_v9, 4  ;;  %v3672_v28 = vor.u32 %v3671_v15, %v3668_v10 }
 0x25a   : > { %2156 = vst.msk [vmem:[#allocation3 + $0x5c] sm:$0xf] %vm2132_vm3, %v2083_v32  ;;  %v3663_v32 = vrot.slane %v3661_v20, 5 }
 0x25b   : > { %2655 = vrot.lane.b32.xlu1 %v2572_v26, %s5377_s10  ;;  %v2638_v47 = vpop.permute.xlu0 %2637  ;;  %v3649_v26 = vrot.slane %v3648_v13, 4  ;;  %v3682_v34 = vor.u32 %v3681_v22, %v3677_v21  ;;  %v3673_v62 = vrot.slane %v3672_v28, 4 }
 0x25c   : > { %2714 = vst.msk [vmem:[#allocation3 + $0x50] sm:$0xf] %vm2693_vm4, %v2638_v47 }
 0x25d   : > { %v2640_v55 = vpop.permute.xlu1 %2639  ;;  %2657 = vrot.lane.b32.xlu0 %v2586_v35, %s5377_s10  ;;  %v3685_v35 = vshll.u32 %v3304_v24, 16  ;;  %v3654_v47 = vsel %vm5511_vm7, %v3649_v26, %v3653_v5  ;;  %v3683_v41 = vrot.slane %v3682_v34, 4  ;;  %v3678_v49 = vsel %vm5511_vm7, %v3673_v62, %v3677_v21 }
 0x25e   : > { %2715 = vst.msk [vmem:[#allocation3 + $0x54] sm:$0xf] %vm2693_vm4, %v2640_v55  ;;  %v3664_v55 = vsel %vm5511_vm7, %v3659_v31, %v3663_v32  ;;  %v4015_v5 = vsel %vm5878_vm13, %v5044_v3, %v4014_v40 }
 0x25f   : > { %2659 = vrot.lane.b32.xlu1 %v2596_v38, %s5377_s10  ;;  %v2642_v46 = vpop.permute.xlu0 %2641  ;;  %v3687_v42 = vrot.slane %v3685_v35, 5 }
 0x260   : > { %2716 = vst.msk [vmem:[#allocation3 + $0x58] sm:$0xf] %vm2693_vm4, %v2642_v46  ;;  %v3864_v46 = vld [vmem:[#allocation2 + $0xd0] sm:$0xf] }
 0x261   : > { %v2644_v56 = vpop.permute.xlu1 %2643  ;;  %2990 = vrot.lane.b32.xlu0 %v2923_v43, %s5378_s11  ;;  %v3688_v58 = vsel %vm5511_vm7, %v3683_v41, %v3687_v42  ;;  %v4021_v1 = vrot.slane %v3864_v46, 5  ;;  %vm4501_vm7 = vcmask 31744  }
 0x262   : > { %2717 = vst.msk [vmem:[#allocation3 + $0x5c] sm:$0xf] %vm2693_vm4, %v2644_v56  ;;  %v3863_v56 = vld [vmem:[#allocation2 + $0xcc] sm:$0xe] }
 0x263   : > { %2992 = vrot.lane.b32.xlu1 %v2926_v59, %s5378_s11  ;;  %v2975_v61 = vpop.permute.xlu0 %2974  ;;  %v5045_v33 = vrot.slane %v3863_v56, 9  ;;  %v4023_v9 = vrot.slane %v4021_v1, 4 }
 0x264   : > { %3051 = vst.msk [vmem:[#allocation3 + $0x50] sm:$0xf] %vm3030_vm5, %v2975_v61  ;;  %v3865_v61 = vld [vmem:[#allocation2 + $0xd4] sm:$0x1] }
 0x265   : > { %v2977_v11 = vpop.permute.xlu1 %2976  ;;  %2994 = vrot.lane.b32.xlu0 %v2930_v57, %s5378_s11 }
 0x266   : > { %3052 = vst.msk [vmem:[#allocation3 + $0x54] sm:$0xf] %vm3030_vm5, %v2977_v11  ;;  %v4024_v11 = vrot.slane %v3865_v61, 5 }
 0x267   : > { %2996 = vrot.lane.b32.xlu1 %v2933_v52, %s5378_s11  ;;  %v2979_v16 = vpop.permute.xlu0 %2978 }
 0x268   : > { %3053 = vst.msk [vmem:[#allocation3 + $0x58] sm:$0xf] %vm3030_vm5, %v2979_v16  ;;  %v4025_v10 = vsel %vm5878_vm13, %v4023_v9, %v4024_v11 }
 0x269   : > { %v2981_v23 = vpop.permute.xlu1 %2980  ;;  %3184 = vrot.lane.b32.xlu0 %v3092_v12, %s5379_s12  ;;  %v4022_v12 = vsel %vm5878_vm13, %v5045_v33, %v4021_v1 }
 0x26a   : > { %3054 = vst.msk [vmem:[#allocation3 + $0x5c] sm:$0xf] %vm3030_vm5, %v2981_v23 }
 0x26b   : > { %3186 = vrot.lane.b32.xlu1 %v3093_v18, %s5379_s12  ;;  %v3169_v29 = vpop.permute.xlu0 %3168 }
 0x26c   : > { %3245 = vst.msk [vmem:[#allocation3 + $0x50] sm:$0xf] %vm3224_vm6, %v3169_v29 }
 0x26d   : > { %v3171_v37 = vpop.permute.xlu1 %3170  ;;  %3188 = vrot.lane.b32.xlu0 %v3094_v25, %s5379_s12 }
 0x26e   : > { %3246 = vst.msk [vmem:[#allocation3 + $0x54] sm:$0xf] %vm3224_vm6, %v3171_v37  ;;  %v6675_v2 = vpop.f32.mrf.mxu0 }
 0x26f   : > { %3190 = vrot.lane.b32.xlu1 %v3095_v30, %s5379_s12  ;;  %v3173_v38 = vpop.permute.xlu0 %3172  ;;  %v5155_v14 = vpack.c.bf16 %v6675_v2, %v6675_v2 }
 0x270   : > { %3247 = vst.msk [vmem:[#allocation3 + $0x58] sm:$0xf] %vm3224_vm6, %v3173_v38  ;;  %v6682_v44 = vpop.f32.mrf.mxu0 }
 0x271   : > { %v3175_v43 = vpop.permute.xlu1 %3174  ;;  %3745 = vrot.lane.b32.xlu0 %v3654_v47, %s5380_s13  ;;  %4842 = vst.msk [vmem:[%s6566_s30 + $0x18] sm:$0xf] %vm411_vm0, %v5155_v14  ;;  %v5153_v48 = vpack.c.bf16 %v6682_v44, %v6682_v44 }
 0x272   : > { %3248 = vst.msk [vmem:[#allocation3 + $0x5c] sm:$0xf] %vm3224_vm6, %v3175_v43  ;;  %v6693_v59 = vpop.f32.mrf.mxu0 }
 0x273   : > { %3747 = vrot.lane.b32.xlu1 %v3664_v55, %s5380_s13  ;;  %v3730_v50 = vpop.permute.xlu0 %3729  ;;  %4840 = vst.msk [vmem:[%s6566_s30 + $0x10] sm:$0xf] %vm411_vm0, %v5153_v48  ;;  %v5156_v57 = vpack.c.bf16 %v6693_v59, %v6693_v59 }
 0x274   : > { %3806 = vst.msk [vmem:[#allocation3 + $0x50] sm:$0xf] %vm3785_vm11, %v3730_v50  ;;  %v6702_v7 = vpop.f32.mrf.mxu0 }
 0x275   : > { %v3732_v4 = vpop.permute.xlu1 %3731  ;;  %3749 = vrot.lane.b32.xlu0 %v3678_v49, %s5380_s13  ;;  %4843 = vst.msk [vmem:[%s6566_s30 + $0x1c] sm:$0xf] %vm411_vm0, %v5156_v57  ;;  %v5154_v52 = vpack.c.bf16 %v6702_v7, %v6702_v7 }
 0x276   : > { %3807 = vst.msk [vmem:[#allocation3 + $0x54] sm:$0xf] %vm3785_vm11, %v3732_v4 }
 0x277   : > { %3751 = vrot.lane.b32.xlu1 %v3688_v58, %s5380_s13  ;;  %v3734_v53 = vpop.permute.xlu0 %3733  ;;  %4841 = vst.msk [vmem:[%s6566_s30 + $0x14] sm:$0xf] %vm411_vm0, %v5154_v52 }
 0x278   : > { %3808 = vst.msk [vmem:[#allocation3 + $0x58] sm:$0xf] %vm3785_vm11, %v3734_v53 }
 0x279   : > { %v3736_v60 = vpop.permute.xlu1 %3735  ;;  %4082 = vrot.lane.b32.xlu0 %v4015_v5, %s5381_s14 }
 0x27a   : > { %3809 = vst.msk [vmem:[#allocation3 + $0x5c] sm:$0xf] %vm3785_vm11, %v3736_v60 }
 0x27b   : > { %4084 = vrot.lane.b32.xlu1 %v4018_v8, %s5381_s14  ;;  %v4067_v13 = vpop.permute.xlu0 %4066 }
 0x27c   : > { %4143 = vst.msk [vmem:[#allocation3 + $0x50] sm:$0xf] %vm4122_vm12, %v4067_v13 }
 0x27d   : > { %v4069_v15 = vpop.permute.xlu1 %4068  ;;  %4086 = vrot.lane.b32.xlu0 %v4022_v12, %s5381_s14 }
 0x27e   : > { %4144 = vst.msk [vmem:[#allocation3 + $0x54] sm:$0xf] %vm4122_vm12, %v4069_v15 }
 0x27f   : > { %4088 = vrot.lane.b32.xlu1 %v4025_v10, %s5381_s14  ;;  %v4071_v16 = vpop.permute.xlu0 %4070 }
 0x280   : > { %4145 = vst.msk [vmem:[#allocation3 + $0x58] sm:$0xf] %vm4122_vm12, %v4071_v16 }
 0x281   : > { %v4073_v18 = vpop.permute.xlu1 %4072 }
 0x282   : > { %4146 = vst.msk [vmem:[#allocation3 + $0x5c] sm:$0xf] %vm4122_vm12, %v4073_v18 }
 0x283   : > { %v1892_v19 = vpop.permute.xlu0 %1891 }
 0x284   : > { %1964 = vst.msk [vmem:[#allocation3 + $0x60] sm:$0xf] %vm1939_vm2, %v1892_v19 }
 0x285   : > { %v1894_v20 = vpop.permute.xlu1 %1893  ;;  %v5355_v21 = vld [vmem:[#allocation3 + $0x50] sm:$0xff]  }
 0x286   : > { %1965 = vst.msk [vmem:[#allocation3 + $0x64] sm:$0xf] %vm1939_vm2, %v1894_v20  ;;  %5305 = vmatprep.mubr.msk.bf16.mxu1 %vm4287_vm14, %v5355_v21 }
 0x287   : > { %v1896_v63 = vpop.permute.xlu0 %1895 }
 0x288   : > { %1966 = vst.msk [vmem:[#allocation3 + $0x68] sm:$0xf] %vm1939_vm2, %v1896_v63 }
 0x289   : > { %v1898_v22 = vpop.permute.xlu1 %1897  ;;  %v5356_v23 = vld [vmem:[#allocation3 + $0x58] sm:$0xff]  }
 0x28a   : > { %1967 = vst.msk [vmem:[#allocation3 + $0x6c] sm:$0xf] %vm1939_vm2, %v1898_v22  ;;  %5306 = vmatmul.mubr.msk.bf16.gmra.mxu1 %vm4287_vm14, %v5356_v23 }
 0x28b   : > { %v2085_v24 = vpop.permute.xlu0 %2084 }
 0x28c   : > { %2157 = vst.msk [vmem:[#allocation3 + $0x60] sm:$0xf] %vm2132_vm3, %v2085_v24 }
 0x28d   : > { %v2087_v25 = vpop.permute.xlu1 %2086 }
 0x28e   : > { %2158 = vst.msk [vmem:[#allocation3 + $0x64] sm:$0xf] %vm2132_vm3, %v2087_v25 }
 0x28f   : > { %v2089_v26 = vpop.permute.xlu0 %2088 }
 0x290   : > { %2159 = vst.msk [vmem:[#allocation3 + $0x68] sm:$0xf] %vm2132_vm3, %v2089_v26 }
 0x291   : > { %v2091_v28 = vpop.permute.xlu1 %2090 }
 0x292   : > { %2160 = vst.msk [vmem:[#allocation3 + $0x6c] sm:$0xf] %vm2132_vm3, %v2091_v28 }
 0x293   : > { %v2646_v29 = vpop.permute.xlu0 %2645 }
 0x294   : > { %2718 = vst.msk [vmem:[#allocation3 + $0x60] sm:$0xf] %vm2693_vm4, %v2646_v29 }
 0x295   : > { %v2648_v30 = vpop.permute.xlu1 %2647 }
 0x296   : > { %2719 = vst.msk [vmem:[#allocation3 + $0x64] sm:$0xf] %vm2693_vm4, %v2648_v30 }
 0x297   : > { %v2650_v31 = vpop.permute.xlu0 %2649 }
 0x298   : > { %2720 = vst.msk [vmem:[#allocation3 + $0x68] sm:$0xf] %vm2693_vm4, %v2650_v31 }
 0x299   : > { %v2652_v32 = vpop.permute.xlu1 %2651 }
 0x29a   : > { %2721 = vst.msk [vmem:[#allocation3 + $0x6c] sm:$0xf] %vm2693_vm4, %v2652_v32 }
 0x29b   : > { %v2983_v34 = vpop.permute.xlu0 %2982 }
 0x29c   : > { %3055 = vst.msk [vmem:[#allocation3 + $0x60] sm:$0xf] %vm3030_vm5, %v2983_v34 }
 0x29d   : > { %v2985_v35 = vpop.permute.xlu1 %2984 }
 0x29e   : > { %3056 = vst.msk [vmem:[#allocation3 + $0x64] sm:$0xf] %vm3030_vm5, %v2985_v35 }
 0x29f   : > { %v2987_v36 = vpop.permute.xlu0 %2986 }
 0x2a0   : > { %3057 = vst.msk [vmem:[#allocation3 + $0x68] sm:$0xf] %vm3030_vm5, %v2987_v36 }
 0x2a1   : > { %v2989_v37 = vpop.permute.xlu1 %2988 }
 0x2a2   : > { %3058 = vst.msk [vmem:[#allocation3 + $0x6c] sm:$0xf] %vm3030_vm5, %v2989_v37  ;;  %v6749_v47 = vpop.f32.mrf.mxu0 }
 0x2a3   : > { %v3177_v62 = vpop.permute.xlu0 %3176  ;;  %v5159_v38 = vpack.c.bf16 %v6749_v47, %v6749_v47 }
 0x2a4   : > { %3249 = vst.msk [vmem:[#allocation3 + $0x60] sm:$0xf] %vm3224_vm6, %v3177_v62  ;;  %v6754_v40 = vpop.f32.mrf.mxu0 }
 0x2a5   : > { %v3179_v39 = vpop.permute.xlu1 %3178  ;;  %4846 = vst.msk [vmem:[%s6566_s30 + $0x28] sm:$0xf] %vm411_vm0, %v5159_v38  ;;  %v5157_v14 = vpack.c.bf16 %v6754_v40, %v6754_v40 }
 0x2a6   : > { %3250 = vst.msk [vmem:[#allocation3 + $0x64] sm:$0xf] %vm3224_vm6, %v3179_v39  ;;  %v6761_v55 = vpop.f32.mrf.mxu0 }
 0x2a7   : > { %v3181_v41 = vpop.permute.xlu0 %3180  ;;  %4844 = vst.msk [vmem:[%s6566_s30 + $0x20] sm:$0xf] %vm411_vm0, %v5157_v14  ;;  %v5160_v42 = vpack.c.bf16 %v6761_v55, %v6761_v55 }
 0x2a8   : > { %3251 = vst.msk [vmem:[#allocation3 + $0x68] sm:$0xf] %vm3224_vm6, %v3181_v41  ;;  %v6768_v45 = vpop.f32.mrf.mxu0 }
 0x2a9   : > { %v3183_v43 = vpop.permute.xlu1 %3182  ;;  %4847 = vst.msk [vmem:[%s6566_s30 + $0x2c] sm:$0xf] %vm411_vm0, %v5160_v42  ;;  %v5158_v46 = vpack.c.bf16 %v6768_v45, %v6768_v45 }
 0x2aa   : > { %3252 = vst.msk [vmem:[#allocation3 + $0x6c] sm:$0xf] %vm3224_vm6, %v3183_v43 }
 0x2ab   : > { %v3738_v48 = vpop.permute.xlu0 %3737  ;;  %4845 = vst.msk [vmem:[%s6566_s30 + $0x24] sm:$0xf] %vm411_vm0, %v5158_v46 }
 0x2ac   : > { %3810 = vst.msk [vmem:[#allocation3 + $0x60] sm:$0xf] %vm3785_vm11, %v3738_v48 }
 0x2ad   : > { %v3740_v49 = vpop.permute.xlu1 %3739 }
 0x2ae   : > { %3811 = vst.msk [vmem:[#allocation3 + $0x64] sm:$0xf] %vm3785_vm11, %v3740_v49 }
 0x2af   : > { %v3742_v3 = vpop.permute.xlu0 %3741 }
 0x2b0   : > { %3812 = vst.msk [vmem:[#allocation3 + $0x68] sm:$0xf] %vm3785_vm11, %v3742_v3 }
 0x2b1   : > { %v3744_v50 = vpop.permute.xlu1 %3743 }
 0x2b2   : > { %3813 = vst.msk [vmem:[#allocation3 + $0x6c] sm:$0xf] %vm3785_vm11, %v3744_v50 }
 0x2b3   : > { %v4075_v51 = vpop.permute.xlu0 %4074 }
 0x2b4   : > { %4147 = vst.msk [vmem:[#allocation3 + $0x60] sm:$0xf] %vm4122_vm12, %v4075_v51 }
 0x2b5   : > { %v4077_v56 = vpop.permute.xlu1 %4076 }
 0x2b6   : > { %4148 = vst.msk [vmem:[#allocation3 + $0x64] sm:$0xf] %vm4122_vm12, %v4077_v56 }
 0x2b7   : > { %v4079_v57 = vpop.permute.xlu0 %4078 }
 0x2b8   : > { %4149 = vst.msk [vmem:[#allocation3 + $0x68] sm:$0xf] %vm4122_vm12, %v4079_v57 }
 0x2b9   : > { %v4081_v58 = vpop.permute.xlu1 %4080 }
 0x2ba   : > { %4150 = vst.msk [vmem:[#allocation3 + $0x6c] sm:$0xf] %vm4122_vm12, %v4081_v58 }
 0x2bb   : > { %v1900_v0 = vpop.permute.xlu0 %1899 }
 0x2bc   : > { %1968 = vst.msk [vmem:[#allocation3 + $0x70] sm:$0xf] %vm1939_vm2, %v1900_v0 }
 0x2bd   : > { %v1902_v1 = vpop.permute.xlu1 %1901  ;;  %v5357_v4 = vld [vmem:[#allocation3 + $0x60] sm:$0xff]  }
 0x2be   : > { %1969 = vst.msk [vmem:[#allocation3 + $0x74] sm:$0xf] %vm1939_vm2, %v1902_v1  ;;  %5309 = vmatprep.mubr.msk.bf16.mxu1 %vm4287_vm14, %v5357_v4 }
 0x2bf   : > { %v1904_v61 = vpop.permute.xlu0 %1903 }
 0x2c0   : > { %1970 = vst.msk [vmem:[#allocation3 + $0x78] sm:$0xf] %vm1939_vm2, %v1904_v61 }
 0x2c1   : > { %v1906_v52 = vpop.permute.xlu1 %1905  ;;  %v5358_v5 = vld [vmem:[#allocation3 + $0x68] sm:$0xff]  }
 0x2c2   : > { %1971 = vst.msk [vmem:[#allocation3 + $0x7c] sm:$0xf] %vm1939_vm2, %v1906_v52  ;;  %5310 = vmatmul.mubr.msk.bf16.gmra.mxu1 %vm4287_vm14, %v5358_v5  ;;  %v4503_v52 = vsel %vm4501_vm7, %v6596_v27, 0.0  ;;  %v4502_v5 = vsel %vm4501_vm7, %v6576_v54, 0.0 }
 0x2c3   : > { %v2093_v33 = vpop.permute.xlu0 %2092 }
 0x2c4   : > { %2161 = vst.msk [vmem:[#allocation3 + $0x70] sm:$0xf] %vm2132_vm3, %v2093_v33  ;;  %v4504_v33 = vadd.f32 %v4503_v52, %v4502_v5 }
 0x2c5   : > { %v2095_v53 = vpop.permute.xlu1 %2094 }
 0x2c6   : > { %2162 = vst.msk [vmem:[#allocation3 + $0x74] sm:$0xf] %vm2132_vm3, %v2095_v53  ;;  %v4505_v53 = vsel %vm4501_vm7, %v6569_v6, 0.0 }
 0x2c7   : > { %v2097_v8 = vpop.permute.xlu0 %2096 }
 0x2c8   : > { %2163 = vst.msk [vmem:[#allocation3 + $0x78] sm:$0xf] %vm2132_vm3, %v2097_v8  ;;  %v4506_v8 = vadd.f32 %v4505_v53, %v4504_v33 }
 0x2c9   : > { %v2099_v9 = vpop.permute.xlu1 %2098 }
 0x2ca   : > { %2164 = vst.msk [vmem:[#allocation3 + $0x7c] sm:$0xf] %vm2132_vm3, %v2099_v9  ;;  %v4507_v9 = vsel %vm4501_vm7, %v6587_v17, 0.0 }
 0x2cb   : > { %v2654_v11 = vpop.permute.xlu0 %2653 }
 0x2cc   : > { %2722 = vst.msk [vmem:[#allocation3 + $0x70] sm:$0xf] %vm2693_vm4, %v2654_v11  ;;  %v4509_v11 = vsel %vm4501_vm7, %v6682_v44, 0.0 }
 0x2cd   : > { %v2656_v60 = vpop.permute.xlu1 %2655 }
 0x2ce   : > { %2723 = vst.msk [vmem:[#allocation3 + $0x74] sm:$0xf] %vm2693_vm4, %v2656_v60  ;;  %v4508_v60 = vadd.f32 %v4507_v9, %v4506_v8 }
 0x2cf   : > { %v2658_v12 = vpop.permute.xlu0 %2657 }
 0x2d0   : > { %2724 = vst.msk [vmem:[#allocation3 + $0x78] sm:$0xf] %vm2693_vm4, %v2658_v12  ;;  %v4511_v12 = vsel %vm4501_vm7, %v6702_v7, 0.0 }
 0x2d1   : > { %v2660_v13 = vpop.permute.xlu1 %2659 }
 0x2d2   : > { %2725 = vst.msk [vmem:[#allocation3 + $0x7c] sm:$0xf] %vm2693_vm4, %v2660_v13  ;;  %v4510_v13 = vadd.f32 %v4509_v11, %v4508_v60 }
 0x2d3   : > { %v2991_v10 = vpop.permute.xlu0 %2990 }
 0x2d4   : > { %3059 = vst.msk [vmem:[#allocation3 + $0x70] sm:$0xf] %vm3030_vm5, %v2991_v10  ;;  %v4512_v10 = vadd.f32 %v4511_v12, %v4510_v13 }
 0x2d5   : > { %v2993_v15 = vpop.permute.xlu1 %2992 }
 0x2d6   : > { %3060 = vst.msk [vmem:[#allocation3 + $0x74] sm:$0xf] %vm3030_vm5, %v2993_v15  ;;  %v4513_v15 = vsel %vm4501_vm7, %v6675_v2, 0.0 }
 0x2d7   : > { %v2995_v16 = vpop.permute.xlu0 %2994 }
 0x2d8   : > { %3061 = vst.msk [vmem:[#allocation3 + $0x78] sm:$0xf] %vm3030_vm5, %v2995_v16  ;;  %v4514_v16 = vadd.f32 %v4513_v15, %v4512_v10 }
 0x2d9   : > { %v2997_v18 = vpop.permute.xlu1 %2996 }
 0x2da   : > { %3062 = vst.msk [vmem:[#allocation3 + $0x7c] sm:$0xf] %vm3030_vm5, %v2997_v18  ;;  %v6803_v19 = vpop.f32.mrf.mxu0  ;;  %v4515_v18 = vsel %vm4501_vm7, %v6693_v59, 0.0 }
 0x2db   : > { %v3185_v20 = vpop.permute.xlu0 %3184  ;;  %v5163_v21 = vpack.c.bf16 %v6803_v19, %v6803_v19 }
 0x2dc   : > { %3253 = vst.msk [vmem:[#allocation3 + $0x70] sm:$0xf] %vm3224_vm6, %v3185_v20  ;;  %v6808_v22 = vpop.f32.mrf.mxu0  ;;  %v4517_v20 = vsel %vm4501_vm7, %v6754_v40, 0.0 }
 0x2dd   : > { %v3187_v63 = vpop.permute.xlu1 %3186  ;;  %4850 = vst.msk [vmem:[%s6566_s30 + $0x38] sm:$0xf] %vm411_vm0, %v5163_v21  ;;  %v5161_v23 = vpack.c.bf16 %v6808_v22, %v6808_v22  ;;  %v4516_v21 = vadd.f32 %v4515_v18, %v4514_v16 }
 0x2de   : > { %3254 = vst.msk [vmem:[#allocation3 + $0x74] sm:$0xf] %vm3224_vm6, %v3187_v63  ;;  %v6815_v24 = vpop.f32.mrf.mxu0 }
 0x2df   : > { %v3189_v25 = vpop.permute.xlu0 %3188  ;;  %4848 = vst.msk [vmem:[%s6566_s30 + $0x30] sm:$0xf] %vm411_vm0, %v5161_v23  ;;  %v5164_v26 = vpack.c.bf16 %v6815_v24, %v6815_v24  ;;  %v4519_v23 = vsel %vm4501_vm7, %v6768_v45, 0.0 }
 0x2e0   : > { %3255 = vst.msk [vmem:[#allocation3 + $0x78] sm:$0xf] %vm3224_vm6, %v3189_v25  ;;  %v6822_v29 = vpop.f32.mrf.mxu0 }
 0x2e1   : > { %v3191_v28 = vpop.permute.xlu1 %3190  ;;  %4851 = vst.msk [vmem:[%s6566_s30 + $0x3c] sm:$0xf] %vm411_vm0, %v5164_v26  ;;  %v5162_v30 = vpack.c.bf16 %v6822_v29, %v6822_v29  ;;  %v4518_v26 = vadd.f32 %v4517_v20, %v4516_v21 }
 0x2e2   : > { %3256 = vst.msk [vmem:[#allocation3 + $0x7c] sm:$0xf] %vm3224_vm6, %v3191_v28 }
 0x2e3   : > { %v3746_v31 = vpop.permute.xlu0 %3745  ;;  %4849 = vst.msk [vmem:[%s6566_s30 + $0x34] sm:$0xf] %vm411_vm0, %v5162_v30 }
 0x2e4   : > { %3814 = vst.msk [vmem:[#allocation3 + $0x70] sm:$0xf] %vm3785_vm11, %v3746_v31  ;;  %v4520_v31 = vadd.f32 %v4519_v23, %v4518_v26 }
 0x2e5   : > { %v3748_v32 = vpop.permute.xlu1 %3747 }
 0x2e6   : > { %3815 = vst.msk [vmem:[#allocation3 + $0x74] sm:$0xf] %vm3785_vm11, %v3748_v32 }
 0x2e7   : > { %v3750_v34 = vpop.permute.xlu0 %3749 }
 0x2e8   : > { %3816 = vst.msk [vmem:[#allocation3 + $0x78] sm:$0xf] %vm3785_vm11, %v3750_v34 }
 0x2e9   : > { %v3752_v35 = vpop.permute.xlu1 %3751 }
 0x2ea   : > { %3817 = vst.msk [vmem:[#allocation3 + $0x7c] sm:$0xf] %vm3785_vm11, %v3752_v35 }
 0x2eb   : > { %v4083_v36 = vpop.permute.xlu0 %4082 }
 0x2ec   : > { %4151 = vst.msk [vmem:[#allocation3 + $0x70] sm:$0xf] %vm4122_vm12, %v4083_v36  ;;  %v4521_v36 = vsel %vm4501_vm7, %v6749_v47, 0.0 }
 0x2ed   : > { %v4085_v37 = vpop.permute.xlu1 %4084 }
 0x2ee   : > { %4152 = vst.msk [vmem:[#allocation3 + $0x74] sm:$0xf] %vm4122_vm12, %v4085_v37 }
 0x2ef   : > { %v4087_v62 = vpop.permute.xlu0 %4086 }
 0x2f0   : > { %4153 = vst.msk [vmem:[#allocation3 + $0x78] sm:$0xf] %vm4122_vm12, %v4087_v62  ;;  %v4522_v62 = vadd.f32 %v4521_v36, %v4520_v31 }
 0x2f1   : > { %v4089_v38 = vpop.permute.xlu1 %4088 }
 0x2f2   : > { %4154 = vst.msk [vmem:[#allocation3 + $0x7c] sm:$0xf] %vm4122_vm12, %v4089_v38  ;;  %v4523_v38 = vsel %vm4501_vm7, %v6761_v55, 0.0 }
 0x2f5   : > { %v5359_v39 = vld [vmem:[#allocation3 + $0x70] sm:$0xff]  }
 0x2f6   : > { %5313 = vmatprep.mubr.msk.bf16.mxu1 %vm4287_vm14, %v5359_v39  ;;  %v4525_v39 = vsel %vm4501_vm7, %v6808_v22, 0.0 }
 0x2f9   : > { %v5360_v14 = vld [vmem:[#allocation3 + $0x78] sm:$0xff]  }
 0x2fa   : > { %5314 = vmatmul.mubr.msk.bf16.gmra.mxu1 %vm4287_vm14, %v5360_v14  ;;  %v4524_v14 = vadd.f32 %v4523_v38, %v4522_v62 }
 0x312   : > { %v6841_v41 = vpop.f32.mrf.mxu1 }
 0x313   : > { %v5167_v42 = vpack.c.bf16 %v6841_v41, %v6841_v41  ;;  %v4537_v53 = vsel %vm4501_vm7, %v6841_v41, 0.0 }
 0x314   : > { %v6845_v43 = vpop.f32.mrf.mxu1 }
 0x315   : > { %4854 = vst.msk [vmem:[%s6566_s30 + $0x48] sm:$0xf] %vm411_vm0, %v5167_v42  ;;  %v5165_v46 = vpack.c.bf16 %v6845_v43, %v6845_v43  ;;  %v4527_v42 = vsel %vm4501_vm7, %v6822_v29, 0.0 }
 0x316   : > { %v6851_v48 = vpop.f32.mrf.mxu1 }
 0x317   : > { %4852 = vst.msk [vmem:[%s6566_s30 + $0x40] sm:$0xf] %vm411_vm0, %v5165_v46  ;;  %v5168_v49 = vpack.c.bf16 %v6851_v48, %v6851_v48  ;;  %v4526_v46 = vadd.f32 %v4525_v39, %v4524_v14  ;;  %v4539_v9 = vsel %vm4501_vm7, %v6851_v48, 0.0 }
 0x318   : > { %v6857_v3 = vpop.f32.mrf.mxu1 }
 0x319   : > { %4855 = vst.msk [vmem:[%s6566_s30 + $0x4c] sm:$0xf] %vm411_vm0, %v5168_v49  ;;  %v5166_v50 = vpack.c.bf16 %v6857_v3, %v6857_v3  ;;  %v4528_v49 = vadd.f32 %v4527_v42, %v4526_v46  ;;  %v4535_v52 = vsel %vm4501_vm7, %v6857_v3, 0.0 }
 0x31b   : > { %4853 = vst.msk [vmem:[%s6566_s30 + $0x44] sm:$0xf] %vm411_vm0, %v5166_v50  ;;  %v4529_v50 = vsel %vm4501_vm7, %v6803_v19, 0.0 }
 0x34a   : > { %v6865_v51 = vpop.f32.mrf.mxu1 }
 0x34b   : > { %v5171_v56 = vpack.c.bf16 %v6865_v51, %v6865_v51  ;;  %v4545_v15 = vsel %vm4501_vm7, %v6865_v51, 0.0 }
 0x34c   : > { %v6869_v57 = vpop.f32.mrf.mxu1 }
 0x34d   : > { %4858 = vst.msk [vmem:[%s6566_s30 + $0x58] sm:$0xf] %vm411_vm0, %v5171_v56  ;;  %v5169_v58 = vpack.c.bf16 %v6869_v57, %v6869_v57  ;;  %v4530_v56 = vadd.f32 %v4529_v50, %v4528_v49  ;;  %v4541_v11 = vsel %vm4501_vm7, %v6869_v57, 0.0 }
 0x34e   : > { %v6875_v0 = vpop.f32.mrf.mxu1 }
 0x34f   : > { %4856 = vst.msk [vmem:[%s6566_s30 + $0x50] sm:$0xf] %vm411_vm0, %v5169_v58  ;;  %v5172_v1 = vpack.c.bf16 %v6875_v0, %v6875_v0  ;;  %v4531_v58 = vsel %vm4501_vm7, %v6815_v24, 0.0  ;;  %v4547_v18 = vsel %vm4501_vm7, %v6875_v0, 0.0 }
 0x350   : > { %v6881_v4 = vpop.f32.mrf.mxu1 }
 0x351   : > { %4859 = vst.msk [vmem:[%s6566_s30 + $0x5c] sm:$0xf] %vm411_vm0, %v5172_v1  ;;  %v5170_v61 = vpack.c.bf16 %v6881_v4, %v6881_v4  ;;  %v4533_v1 = vsel %vm4501_vm7, %v6845_v43, 0.0  ;;  %v4543_v12 = vsel %vm4501_vm7, %v6881_v4, 0.0 }
 0x353   : > { %4857 = vst.msk [vmem:[%s6566_s30 + $0x54] sm:$0xf] %vm411_vm0, %v5170_v61  ;;  %v4532_v61 = vadd.f32 %v4531_v58, %v4530_v56 }
 0x355   : > { %v4534_v5 = vadd.f32 %v4533_v1, %v4532_v61 }
 0x357   : > { %v4536_v33 = vadd.f32 %v4535_v52, %v4534_v5 }
 0x359   : > { %v4538_v8 = vadd.f32 %v4537_v53, %v4536_v33 }
 0x35b   : > { %v4540_v60 = vadd.f32 %v4539_v9, %v4538_v8 }
 0x35d   : > { %v4542_v13 = vadd.f32 %v4541_v11, %v4540_v60 }
 0x35f   : > { %v4544_v10 = vadd.f32 %v4543_v12, %v4542_v13 }
 0x361   : > { %v4546_v16 = vadd.f32 %v4545_v15, %v4544_v10 }
 0x363   : > { %v4548_v21 = vadd.f32 %v4547_v18, %v4546_v16 }
 0x382   : > { %v6907_v63 = vpop.f32.mrf.mxu1 }
 0x383   : > { %v5175_v25 = vpack.c.bf16 %v6907_v63, %v6907_v63 }
 0x384   : > { %v6913_v28 = vpop.f32.mrf.mxu1 }
 0x385   : > { %4862 = vst.msk [vmem:[%s6566_s30 + $0x68] sm:$0xf] %vm411_vm0, %v5175_v25  ;;  %v5173_v30 = vpack.c.bf16 %v6913_v28, %v6913_v28  ;;  %v4549_v20 = vsel %vm4501_vm7, %v6913_v28, 0.0 }
 0x386   : > { %v6919_v32 = vpop.f32.mrf.mxu1  ;;  %v4550_v25 = vadd.f32 %v4549_v20, %v4548_v21 }
 0x387   : > { %4860 = vst.msk [vmem:[%s6566_s30 + $0x60] sm:$0xf] %vm411_vm0, %v5173_v30  ;;  %v5176_v34 = vpack.c.bf16 %v6919_v32, %v6919_v32  ;;  %v4553_v30 = vsel %vm4501_vm7, %v6907_v63, 0.0  ;;  %v4555_v62 = vsel %vm4501_vm7, %v6919_v32, 0.0 }
 0x388   : > { %v6925_v35 = vpop.f32.mrf.mxu1 }
 0x389   : > { %4863 = vst.msk [vmem:[%s6566_s30 + $0x6c] sm:$0xf] %vm411_vm0, %v5176_v34  ;;  %v5174_v37 = vpack.c.bf16 %v6925_v35, %v6925_v35  ;;  %v4551_v23 = vsel %vm4501_vm7, %v6925_v35, 0.0 }
 0x38a   : > { %v4552_v26 = vadd.f32 %v4551_v23, %v4550_v25 }
 0x38b   : > { %4861 = vst.msk [vmem:[%s6566_s30 + $0x64] sm:$0xf] %vm411_vm0, %v5174_v37 }
 0x38c   : > { %v4554_v31 = vadd.f32 %v4553_v30, %v4552_v26 }
 0x38e   : > { %v4556_v14 = vadd.f32 %v4555_v62, %v4554_v31 }
 0x3ba   : > { %v6967_v34 = vpop.f32.mrf.mxu1 }
 0x3bb   : > { %v5179_v36 = vpack.c.bf16 %v6967_v34, %v6967_v34  ;;  %v4561_v61 = vsel %vm4501_vm7, %v6967_v34, 0.0 }
 0x3bc   : > { %v6971_v37 = vpop.f32.mrf.mxu1 }
 0x3bd   : > { %4866 = vst.msk [vmem:[%s6566_s30 + $0x78] sm:$0xf] %vm411_vm0, %v5179_v36  ;;  %v4557_v38 = vsel %vm4501_vm7, %v6971_v37, 0.0  ;;  %v5177_v39 = vpack.c.bf16 %v6971_v37, %v6971_v37 }
 0x3be   : > { %v6981_v42 = vpop.f32.mrf.mxu1  ;;  %v4558_v49 = vadd.f32 %v4557_v38, %v4556_v14 }
 0x3bf   : > { %4864 = vst.msk [vmem:[%s6566_s30 + $0x70] sm:$0xf] %vm411_vm0, %v5177_v39  ;;  %v5180_v46 = vpack.c.bf16 %v6981_v42, %v6981_v42  ;;  %v4563_v5 = vsel %vm4501_vm7, %v6981_v42, 0.0 }
 0x3c0   : > { %v6987_v50 = vpop.f32.mrf.mxu1 }
 0x3c1   : > { %4867 = vst.msk [vmem:[%s6566_s30 + $0x7c] sm:$0xf] %vm411_vm0, %v5180_v46  ;;  %v4559_v56 = vsel %vm4501_vm7, %v6987_v50, 0.0  ;;  %v5178_v58 = vpack.c.bf16 %v6987_v50, %v6987_v50 }
 0x3c2   : > { %v4560_v1 = vadd.f32 %v4559_v56, %v4558_v49 }
 0x3c3   : > { %4865 = vst.msk [vmem:[%s6566_s30 + $0x74] sm:$0xf] %vm411_vm0, %v5178_v58 }
 0x3c4   : > { %v4562_v52 = vadd.f32 %v4561_v61, %v4560_v1 }
 0x3c6   : > { %v4564_v33 = vadd.f32 %v4563_v5, %v4562_v52 }
 0x3c8   : > { %v4565_v53 = vrot.slane %v4564_v33, 4 }
 0x3ca   : > { %v4566_v8 = vadd.f32 %v4565_v53, %v4564_v33 }
 0x3cc   : > { %v4567_v9 = vrot.slane %v4566_v8, 2 }
 0x3ce   : > { %v4568_v11 = vadd.f32 %v4567_v9, %v4566_v8 }
 0x3d0   : > { %v4569_v60 = vrot.slane %v4568_v11, 1 }
 0x3d2   : > { %v4570_v12 = vadd.f32 %v4569_v60, %v4568_v11 }
 0x3d4   : > { %4605 = vst.msk [vmem:[%s7005_s8] sm:$0x1] %vm414_vm1, %v4570_v12  ;;  %v7009_v13 = vmul.f32 0.00390625, %v4570_v12 }
 0x3d6   : > { %v4573_v10 = vsub.f32 %v6576_v54, %v7009_v13  ;;  %v4574_v15 = vsub.f32 %v6596_v27, %v7009_v13  ;;  %v4575_v16 = vsub.f32 %v6569_v6, %v7009_v13  ;;  %v4576_v18 = vsub.f32 %v6587_v17, %v7009_v13 }
 0x3d7   : > { %v4577_v23 = vsub.f32 %v6682_v44, %v7009_v13  ;;  %v4578_v26 = vsub.f32 %v6702_v7, %v7009_v13  ;;  %v4579_v6 = vsub.f32 %v6675_v2, %v7009_v13  ;;  %v4580_v44 = vsub.f32 %v6693_v59, %v7009_v13 }
 0x3d8   : > { %v4606_v20 = vmul.f32 %v4573_v10, %v4573_v10  ;;  %v4607_v21 = vmul.f32 %v4574_v15, %v4574_v15  ;;  %v4608_v25 = vmul.f32 %v4575_v16, %v4575_v16  ;;  %v4609_v30 = vmul.f32 %v4576_v18, %v4576_v18 }
 0x3d9   : > { %v4610_v36 = vmul.f32 %v4577_v23, %v4577_v23  ;;  %v4611_v38 = vmul.f32 %v4578_v26, %v4578_v26  ;;  %v4581_v14 = vsub.f32 %v6754_v40, %v7009_v13  ;;  %v4612_v46 = vmul.f32 %v4579_v6, %v4579_v6 }
 0x3da   : > { %v4638_v54 = vsel %vm4501_vm7, %v4606_v20, 0.0  ;;  %v4639_v27 = vsel %vm4501_vm7, %v4607_v21, 0.0  ;;  %v4641_v17 = vsel %vm4501_vm7, %v4608_v25, 0.0  ;;  %v4643_v39 = vsel %vm4501_vm7, %v4609_v30, 0.0 }
 0x3db   : > { %v4640_v31 = vadd.f32 %v4639_v27, %v4638_v54  ;;  %v4645_v49 = vsel %vm4501_vm7, %v4610_v36, 0.0  ;;  %v4582_v2 = vsub.f32 %v6768_v45, %v7009_v13  ;;  %v4613_v58 = vmul.f32 %v4580_v44, %v4580_v44 }
 0x3dc   : > { %v4647_v1 = vsel %vm4501_vm7, %v4611_v38, 0.0  ;;  %v4583_v59 = vsub.f32 %v6749_v47, %v7009_v13  ;;  %v4614_v52 = vmul.f32 %v4581_v14, %v4581_v14  ;;  %v4649_v5 = vsel %vm4501_vm7, %v4612_v46, 0.0 }
 0x3dd   : > { %v4642_v62 = vadd.f32 %v4641_v17, %v4640_v31  ;;  %v4584_v40 = vsub.f32 %v6761_v55, %v7009_v13  ;;  %v4615_v53 = vmul.f32 %v4582_v2, %v4582_v2  ;;  %v4651_v8 = vsel %vm4501_vm7, %v4613_v58, 0.0 }
 0x3de   : > { %v4585_v45 = vsub.f32 %v6808_v22, %v7009_v13  ;;  %v4616_v11 = vmul.f32 %v4583_v59, %v4583_v59  ;;  %v4653_v60 = vsel %vm4501_vm7, %v4614_v52, 0.0  ;;  %v4586_v47 = vsub.f32 %v6822_v29, %v7009_v13 }
 0x3df   : > { %v4644_v7 = vadd.f32 %v4643_v39, %v4642_v62  ;;  %v4617_v10 = vmul.f32 %v4584_v40, %v4584_v40  ;;  %v4655_v15 = vsel %vm4501_vm7, %v4615_v53, 0.0  ;;  %v4587_v55 = vsub.f32 %v6803_v19, %v7009_v13 }
 0x3e0   : > { %v4618_v18 = vmul.f32 %v4585_v45, %v4585_v45  ;;  %v4657_v20 = vsel %vm4501_vm7, %v4616_v11, 0.0  ;;  %v4588_v22 = vsub.f32 %v6815_v24, %v7009_v13  ;;  %v4619_v23 = vmul.f32 %v4586_v47, %v4586_v47 }
 0x3e1   : > { %v4646_v56 = vadd.f32 %v4645_v49, %v4644_v7  ;;  %v4659_v25 = vsel %vm4501_vm7, %v4617_v10, 0.0  ;;  %v4589_v29 = vsub.f32 %v6845_v43, %v7009_v13  ;;  %v4620_v30 = vmul.f32 %v4587_v55, %v4587_v55 }
 0x3e2   : > { %v4661_v54 = vsel %vm4501_vm7, %v4618_v18, 0.0  ;;  %v4590_v19 = vsub.f32 %v6857_v3, %v7009_v13  ;;  %v4621_v31 = vmul.f32 %v4588_v22, %v4588_v22  ;;  %v4663_v6 = vsel %vm4501_vm7, %v4619_v23, 0.0 }
 0x3e3   : > { %v4648_v61 = vadd.f32 %v4647_v1, %v4646_v56  ;;  %v4591_v24 = vsub.f32 %v6841_v41, %v7009_v13  ;;  %v4622_v17 = vmul.f32 %v4589_v29, %v4589_v29  ;;  %v4665_v62 = vsel %vm4501_vm7, %v4620_v30, 0.0 }
 0x3e4   : > { %v4592_v43 = vsub.f32 %v6851_v48, %v7009_v13  ;;  %v4623_v38 = vmul.f32 %v4590_v19, %v4590_v19  ;;  %v4667_v39 = vsel %vm4501_vm7, %v4621_v31, 0.0  ;;  %v4593_v3 = vsub.f32 %v6869_v57, %v7009_v13 }
 0x3e5   : > { %v4650_v33 = vadd.f32 %v4649_v5, %v4648_v61  ;;  %v4624_v14 = vmul.f32 %v4591_v24, %v4591_v24  ;;  %v4669_v46 = vsel %vm4501_vm7, %v4622_v17, 0.0  ;;  %v4594_v41 = vsub.f32 %v6881_v4, %v7009_v13 }
 0x3e6   : > { %v4625_v56 = vmul.f32 %v4592_v43, %v4592_v43  ;;  %v4671_v2 = vsel %vm4501_vm7, %v4623_v38, 0.0  ;;  %v4595_v48 = vsub.f32 %v6865_v51, %v7009_v13  ;;  %v4626_v1 = vmul.f32 %v4593_v3, %v4593_v3 }
 0x3e7   : > { %v4652_v9 = vadd.f32 %v4651_v8, %v4650_v33  ;;  %v4673_v61 = vsel %vm4501_vm7, %v4624_v14, 0.0  ;;  %v4596_v57 = vsub.f32 %v6875_v0, %v7009_v13  ;;  %v4627_v52 = vmul.f32 %v4594_v41, %v4594_v41 }
 0x3e8   : > { %v4675_v5 = vsel %vm4501_vm7, %v4625_v56, 0.0  ;;  %v4597_v4 = vsub.f32 %v6913_v28, %v7009_v13  ;;  %v4628_v40 = vmul.f32 %v4595_v48, %v4595_v48  ;;  %v4677_v53 = vsel %vm4501_vm7, %v4626_v1, 0.0 }
 0x3e9   : > { %v4654_v12 = vadd.f32 %v4653_v60, %v4652_v9  ;;  %v4598_v51 = vsub.f32 %v6925_v35, %v7009_v13  ;;  %v4629_v9 = vmul.f32 %v4596_v57, %v4596_v57  ;;  %v4679_v45 = vsel %vm4501_vm7, %v4627_v52, 0.0 }
 0x3ea   : > { %v4599_v0 = vsub.f32 %v6907_v63, %v7009_v13  ;;  %v4630_v60 = vmul.f32 %v4597_v4, %v4597_v4  ;;  %v4600_v28 = vsub.f32 %v6919_v32, %v7009_v13  ;;  %v4601_v35 = vsub.f32 %v6971_v37, %v7009_v13 }
 0x3eb   : > { %v4656_v16 = vadd.f32 %v4655_v15, %v4654_v12  ;;  %v4681_v12 = vsel %vm4501_vm7, %v4628_v40, 0.0  ;;  %v4631_v10 = vmul.f32 %v4598_v51, %v4598_v51  ;;  %v4683_v15 = vsel %vm4501_vm7, %v4629_v9, 0.0 }
 0x3ec   : > { %v4632_v55 = vmul.f32 %v4599_v0, %v4599_v0  ;;  %v4685_v18 = vsel %vm4501_vm7, %v4630_v60, 0.0  ;;  %v4602_v63 = vsub.f32 %v6987_v50, %v7009_v13  ;;  %v4603_v32 = vsub.f32 %v6967_v34, %v7009_v13 }
 0x3ed   : > { %v4658_v21 = vadd.f32 %v4657_v20, %v4656_v16  ;;  %v4687_v22 = vsel %vm4501_vm7, %v4631_v10, 0.0  ;;  %v4604_v37 = vsub.f32 %v6981_v42, %v7009_v13 }
 0x3ee   : > { %v4635_v30 = vmul.f32 %v4602_v63, %v4602_v63  ;;  %v4636_v19 = vmul.f32 %v4603_v32, %v4603_v32 }
 0x3ef   : > { %v4660_v26 = vadd.f32 %v4659_v25, %v4658_v21  ;;  %v4633_v21 = vmul.f32 %v4600_v28, %v4600_v28  ;;  %v4634_v25 = vmul.f32 %v4601_v35, %v4601_v35 }
 0x3f0   : > { %v4697_v24 = vsel %vm4501_vm7, %v4636_v19, 0.0 }
 0x3f1   : > { %v4662_v27 = vadd.f32 %v4661_v54, %v4660_v26  ;;  %v4689_v26 = vsel %vm4501_vm7, %v4632_v55, 0.0  ;;  %v4691_v54 = vsel %vm4501_vm7, %v4633_v21, 0.0  ;;  %v4693_v50 = vsel %vm4501_vm7, %v4634_v25, 0.0 }
 0x3f3   : > { %v4664_v36 = vadd.f32 %v4663_v6, %v4662_v27  ;;  %v4637_v6 = vmul.f32 %v4604_v37, %v4604_v37 }
 0x3f5   : > { %v4666_v44 = vadd.f32 %v4665_v62, %v4664_v36  ;;  %v4695_v36 = vsel %vm4501_vm7, %v4635_v30, 0.0  ;;  %v4699_v62 = vsel %vm4501_vm7, %v4637_v6, 0.0 }
 0x3f7   : > { %v4668_v7 = vadd.f32 %v4667_v39, %v4666_v44 }
 0x3f9   : > { %v4670_v49 = vadd.f32 %v4669_v46, %v4668_v7 }
 0x3fb   : > { %v4672_v58 = vadd.f32 %v4671_v2, %v4670_v49 }
 0x3fd   : > { %v4674_v59 = vadd.f32 %v4673_v61, %v4672_v58 }
 0x3ff   : > { %v4676_v33 = vadd.f32 %v4675_v5, %v4674_v59 }
 0x401   : > { %v4678_v8 = vadd.f32 %v4677_v53, %v4676_v33 }
 0x403   : > { %v4680_v11 = vadd.f32 %v4679_v45, %v4678_v8 }
 0x405   : > { %v4682_v47 = vadd.f32 %v4681_v12, %v4680_v11 }
 0x407   : > { %v4684_v16 = vadd.f32 %v4683_v15, %v4682_v47 }
 0x409   : > { %v4686_v20 = vadd.f32 %v4685_v18, %v4684_v16 }
 0x40b   : > { %v4688_v23 = vadd.f32 %v4687_v22, %v4686_v20 }
 0x40d   : > { %v4690_v29 = vadd.f32 %v4689_v26, %v4688_v23 }
 0x40f   : > { %v4692_v27 = vadd.f32 %v4691_v54, %v4690_v29 }
 0x411   : > { %v4694_v31 = vadd.f32 %v4693_v50, %v4692_v27 }
 0x413   : > { %v4696_v34 = vadd.f32 %v4695_v36, %v4694_v31 }
 0x415   : > { %v4698_v17 = vadd.f32 %v4697_v24, %v4696_v34 }
 0x417   : > { %v4700_v44 = vadd.f32 %v4699_v62, %v4698_v17 }
 0x419   : > { %v4701_v42 = vrot.slane %v4700_v44, 4 }
 0x41b   : > { %v4702_v13 = vadd.f32 %v4701_v42, %v4700_v44 }
 0x41d   : > { %v4703_v43 = vrot.slane %v4702_v13, 2 }
 0x41f   : > { %v4704_v38 = vadd.f32 %v4703_v43, %v4702_v13 }
 0x421   : > { %v4705_v39 = vrot.slane %v4704_v38, 1 }
 0x423   : > { %v4706_v7 = vadd.f32 %v4705_v39, %v4704_v38 }
 0x425   : > { %4707 = vst.msk [vmem:[%s7005_s8 + $0x1] sm:$0x1] %vm414_vm1, %v4706_v7 }
 0x426 PF: > { %s16_s18 = sadd.s32 1, %s5371_s18  }
 0x427   : > { %p13_p4 = scmp.ge.s32.totalorder %s16_s18, 4  }
 0x429   :  { %15 = sbr.rel (!%p13_p4) target bundleno = 1 (0x1), region = 80 }

</bundles_post_ra>
